<compile_context>
chip_gen: v6e
topology: v6e:2x2x1
jax: 0.10.0
libtpu: 0.0.40
codegen_flags: <defaults>
</compile_context>

<pallas_src>
import math

import jax
import jax.numpy as jnp
from jax import lax
from jax.experimental import pallas as pl
from jax.experimental.pallas import tpu as pltpu

EMBED_DIM = 32
N_BLOCKS = 2
ENHANCEMENT = 2.0
KERNEL_SCALE = 1.0
EMB_EPS = 1e-4      # DensityEmbedding.eps (used inside log)
LN_EPS = 1e-5
NORM_EPS = 1e-5

_LANE = 128
_SUBLANE = 8
# Explicit scoped-VMEM limit: lifts the 16/32 MiB defaults but stays under
# v7x's 64 MiB physical VMEM (also fine on v5e/v6e's 128 MiB).
_VMEM_LIMIT = 48 * 1024 * 1024


def _round_up(x, m):
    return (x + m - 1) // m * m


# ----------------------- helpers used inside the kernel ----------------------

def _silu(x):
    return x * jax.nn.sigmoid(x)


def _layer_norm(x, g, b, eps=LN_EPS):
    mu = jnp.mean(x, axis=-1, keepdims=True)
    var = jnp.mean((x - mu) ** 2, axis=-1, keepdims=True)
    return (x - mu) * lax.rsqrt(var + eps) * g + b


def _small_k_matmul(a, w):
    # a: (N, K) with tiny static K (2 or 3); unrolled as VPU broadcasts to
    # avoid an MXU matmul with a degenerate contraction dimension.
    out = a[:, 0:1] * w[0:1, :]
    for i in range(1, a.shape[1]):
        out = out + a[:, i:i + 1] * w[i:i + 1, :]
    return out


# -------------------------- parameter packing (host) -------------------------

def _pack_entries(entries, lanes):
    """Pack small 2-D parameter tensors into one (R, lanes) f32 buffer.

    Every parameter gets an 8-row-aligned slot, so every in-kernel load is a
    sublane-aligned, full-lane-width window followed by a cheap value slice.
    Returns (packed_array, {name: (row0, rows, cols, slot_rows)}).
    """
    layout = {}
    blocks = []
    r = 0
    for name, a in entries:
        a = jnp.asarray(a, jnp.float32)
        if a.ndim == 1:
            a = a[None, :]
        nr, nc = a.shape
        assert nc <= lanes, (name, a.shape)
        slot = _round_up(nr, _SUBLANE)
        layout[name] = (r, nr, nc, slot)
        blocks.append(jnp.pad(a, ((0, slot - nr), (0, lanes - nc))))
        r += slot
    return jnp.concatenate(blocks, axis=0), layout


def _pack_gda_params(params):
    emb, blocks, proj = params["embedding"], params["blocks"], params["proj"]
    W = emb["win"].shape[1]           # hidden width = embed_dim * enhancement
    D = emb["wout"].shape[1]          # embed_dim
    nb = len(blocks)
    lanes = _round_up(max(W + nb * D, 2 * W, _LANE), _LANE)

    # Concatenated random-Fourier frequency / phase / scale matrices:
    # [embedding gate (W) | block0 keys (D) | block1 keys (D) | ...].
    f_all = jnp.concatenate([emb["fc"]] + [b["fa"] for b in blocks], axis=1)
    p_all = jnp.concatenate([emb["pc"]] + [b["pa"] for b in blocks], axis=1)
    s_all = jnp.concatenate(
        [jnp.full((1, W), (2.0 / W) ** 0.5, jnp.float32)]
        + [jnp.full((1, D), (2.0 / D) ** 0.5, jnp.float32) for _ in blocks],
        axis=1)

    entries = [
        ("f_all", f_all), ("p_all", p_all), ("s_all", s_all),
        ("e_win", emb["win"]), ("e_bin", emb["bin"]),
        ("e_wout", emb["wout"]), ("e_bout", emb["bout"]),
    ]
    for i, b in enumerate(blocks):
        pfx = f"b{i}_"
        entries += [(pfx + "wv", b["wv"]), (pfx + "bv", b["bv"]),
                    (pfx + "wo", b["wo"]), (pfx + "bo", b["bo"]),
                    (pfx + "g", b["g"]), (pfx + "b", b["b"]),
                    (pfx + "w1", b["w1"]), (pfx + "b1", b["b1"]),
                    (pfx + "w2", b["w2"]), (pfx + "b2", b["b2"])]
    entries += [("p_g", proj["g"]), ("p_b", proj["b"]),
                ("p_w1", proj["w1"]), ("p_b1", proj["b1"]),
                ("p_w2", proj["w2"]), ("p_b2", proj["b2"]),
                ("p_wpT", proj["wp"].T), ("p_bp", proj["bp"])]

    packed, layout = _pack_entries(entries, lanes)
    return packed, layout, nb, D, W


# ------------------------------ fused Pallas kernel ---------------------------

def _fused_forward(feats, packed, layout, n_blocks, D, W):
    # feats: (B, N, 6) = [x(2) | normalized coords(3) | weights*rho(1)]
    B, N, C = feats.shape
    R, L = packed.shape

    # TODO(synk): for very large grids (N >> 1e4) the whole-N block exceeds the
    # scoped VMEM limit; tile N with a two-pass (kv-accumulate / apply)
    # structure per block and an f32 (D, D) kv scratch accumulator.

    def kernel(in_ref, pk_ref, out_ref):
        def par(name):
            r0, nr, nc, slot = layout[name]
            # 8-row-aligned, full-lane-width load; slice the value (cheap).
            return pk_ref[r0:r0 + slot, :][:nr, :nc]

        row = in_ref[0]                 # (N, 6)
        x = row[:, 0:2]                 # grid_norm(log([rho, gamma] + eps))
        c = row[:, 2:5]                 # normalized coordinates
        w = row[:, 5:6]                 # quadrature weights * rho

        # Random-Fourier features for the embedding gate and every block's
        # attention keys, computed once from the concatenated matrices.
        ff = (jnp.cos(_small_k_matmul(c, par("f_all")) + par("p_all"))
              * par("s_all"))                                          # (N, W+nb*D)

        # ---- DensityEmbedding ----
        h = _small_k_matmul(x, par("e_win")) + par("e_bin")            # (N, W)
        gate = _silu(ff[:, 0:W])
        phi = (jnp.dot(h * gate, par("e_wout"),
                       preferred_element_type=jnp.float32) + par("e_bout"))

        # ---- Blocks (static unroll) ----
        for i in range(n_blocks):
            pfx = f"b{i}_"
            # FourierAttention == linear attention with a RFF kernel.
            # TODO(synk): FourierAttention source not provided; assumed
            #   out_i = Wo @ sum_j w_j <f(r_i), f(r_j)> (Wv phi_j)  (no softmax).
            k = ff[:, W + i * D: W + (i + 1) * D]                      # (N, D)
            v = (jnp.dot(phi, par(pfx + "wv"),
                         preferred_element_type=jnp.float32) + par(pfx + "bv"))
            kv = lax.dot_general(k, w * v, (((0,), (0,)), ((), ())),
                                 preferred_element_type=jnp.float32)   # (D, D)
            # re-associated output projection: (k @ kv) @ wo == k @ (kv @ wo)
            kv2 = jnp.dot(kv, par(pfx + "wo"),
                          preferred_element_type=jnp.float32)          # (D, D)
            phi = phi + jnp.dot(k, kv2,
                                preferred_element_type=jnp.float32) + par(pfx + "bo")

            # pre-LayerNorm gated MLP with residual
            ln = _layer_norm(phi, par(pfx + "g"), par(pfx + "b"))
            hh = (jnp.dot(ln, par(pfx + "w1"),
                          preferred_element_type=jnp.float32) + par(pfx + "b1"))
            y = _silu(hh[:, :W]) * hh[:, W:]
            phi = phi + jnp.dot(y, par(pfx + "w2"),
                                preferred_element_type=jnp.float32) + par(pfx + "b2")

        # ---- FieldProjection ----
        ln = _layer_norm(phi, par("p_g"), par("p_b"))
        hh = (jnp.dot(ln, par("p_w1"),
                      preferred_element_type=jnp.float32) + par("p_b1"))
        y = _silu(hh[:, :W]) * hh[:, W:]
        t = jnp.tanh(jnp.dot(y, par("p_w2"),
                             preferred_element_type=jnp.float32) + par("p_b2"))
        # lane-dense (1, N) output row:  wp^T @ tanh(.)^T  (trans-B matmul)
        out = lax.dot_general(par("p_wpT"), t, (((1,), (1,)), ((), ())),
                              preferred_element_type=jnp.float32)      # (1, N)
        out_ref[0] = out + par("p_bp")

    out = pl.pallas_call(
        kernel,
        out_shape=jax.ShapeDtypeStruct((B, 1, N), jnp.float32),
        grid=(B,),
        in_specs=[pl.BlockSpec((1, N, C), lambda b: (b, 0, 0)),
                  pl.BlockSpec((R, L), lambda b: (0, 0))],   # params: resident
        out_specs=pl.BlockSpec((1, 1, N), lambda b: (b, 0, 0)),
        compiler_params=pltpu.CompilerParams(
            dimension_semantics=("parallel",),
            vmem_limit_bytes=_VMEM_LIMIT),
    )(feats, packed)
    return out[:, 0, :]        # (B, N), squeeze is a free metadata reshape


# ------------------------- plain-JAX glue (normalizers) ----------------------

def coordinate_norm(coords, weights, eps=NORM_EPS):
    # TODO(synk): coordinate_norm source not provided; assumed weighted
    # centering + isotropic (weighted) std normalization of the coordinates.
    w = weights[..., None]
    wsum = jnp.sum(w, axis=-2, keepdims=True)
    mean = jnp.sum(w * coords, axis=-2, keepdims=True) / wsum
    d = coords - mean
    var = jnp.mean(jnp.sum(w * d * d, axis=-2, keepdims=True) / wsum,
                   axis=-1, keepdims=True)
    return d * lax.rsqrt(var + eps)


def grid_norm(x, weights, eps=NORM_EPS):
    # TODO(synk): grid_norm source not provided; assumed quadrature-weighted
    # zero-mean / unit-variance normalization over the grid axis.
    w = weights[..., None]
    wsum = jnp.sum(w, axis=-2, keepdims=True)
    mean = jnp.sum(w * x, axis=-2, keepdims=True) / wsum
    var = jnp.sum(w * (x - mean) ** 2, axis=-2, keepdims=True) / wsum
    return (x - mean) * lax.rsqrt(var + eps)


# ------------------------------ parameter init -------------------------------

def _linear_init(key, fan_in, fan_out):
    kw, kb = jax.random.split(key)
    lim = 1.0 / math.sqrt(fan_in)
    w = jax.random.uniform(kw, (fan_in, fan_out), jnp.float32, -lim, lim)
    b = jax.random.uniform(kb, (1, fan_out), jnp.float32, -lim, lim)
    return w, b


def _fourier_init(key, out_dim, scale):
    kf, kp = jax.random.split(key)
    f = jax.random.normal(kf, (3, out_dim), jnp.float32) / scale
    p = jax.random.uniform(kp, (1, out_dim), jnp.float32, 0.0, 2.0 * math.pi)
    return f, p


def init_params(key, embed_dim=EMBED_DIM, n_blocks=N_BLOCKS,
                enhancement=ENHANCEMENT, kernel_scale=KERNEL_SCALE):
    width = int(embed_dim * enhancement)
    keys = jax.random.split(key, n_blocks + 2)

    ke = jax.random.split(keys[0], 3)
    win, bi = _linear_init(ke[0], 2, width)
    wout, bout = _linear_init(ke[1], width, embed_dim)
    fc, pc = _fourier_init(ke[2], width, kernel_scale)
    embedding = dict(win=win, bin=bi, fc=fc, pc=pc, wout=wout, bout=bout)

    blocks = []
    for i in range(n_blocks):
        kb = jax.random.split(keys[1 + i], 5)
        fa, pa = _fourier_init(kb[0], embed_dim, kernel_scale)
        wv, bv = _linear_init(kb[1], embed_dim, embed_dim)
        wo, bo = _linear_init(kb[2], embed_dim, embed_dim)
        w1, b1 = _linear_init(kb[3], embed_dim, 2 * width)
        w2, b2 = _linear_init(kb[4], width, embed_dim)
        blocks.append(dict(
            fa=fa, pa=pa, wv=wv, bv=bv, wo=wo, bo=bo,
            g=jnp.ones((1, embed_dim), jnp.float32),
            b=jnp.zeros((1, embed_dim), jnp.float32),
            w1=w1, b1=b1, w2=w2, b2=b2))

    kp_ = jax.random.split(keys[1 + n_blocks], 3)
    w1, b1 = _linear_init(kp_[0], embed_dim, 2 * width)
    w2, b2 = _linear_init(kp_[1], width, embed_dim)
    wp, bp = _linear_init(kp_[2], embed_dim, 1)
    proj = dict(g=jnp.ones((1, embed_dim), jnp.float32),
                b=jnp.zeros((1, embed_dim), jnp.float32),
                w1=w1, b1=b1, w2=w2, b2=b2, wp=wp, bp=bp)
    return dict(embedding=embedding, blocks=blocks, proj=proj)


# --------------------------------- forward -----------------------------------

@jax.jit
def global_density_approx(params, rho, grad_rho, coords, weights):
    wrho = weights * rho
    coords_n = coordinate_norm(coords, wrho)
    gamma = jnp.sum(grad_rho ** 2, axis=-1)
    x = grid_norm(jnp.log(jnp.stack([rho, gamma], axis=-1) + EMB_EPS), wrho)
    # one packed (B, N, 6) input slab: 1 DMA per grid step instead of 3
    feats = jnp.concatenate([x, coords_n, wrho[..., None]], axis=-1)
    packed, layout, nb, D, W = _pack_gda_params(params)
    return _fused_forward(feats, packed, layout, nb, D, W)     # (B, N)


if __name__ == "__main__":
    key = jax.random.PRNGKey(0)
    kp, kr, kg, kc, kw = jax.random.split(key, 5)
    B, N = 2, 128
    params = init_params(kp)
    rho = jax.random.uniform(kr, (B, N), jnp.float32, 1e-3, 1.0)
    grad_rho = jax.random.normal(kg, (B, N, 3), jnp.float32)
    coords = 2.0 * jax.random.normal(kc, (B, N, 3), jnp.float32)
    weights = jax.random.uniform(kw, (B, N), jnp.float32, 1e-2, 1.0)

    out = global_density_approx(params, rho, grad_rho, coords, weights)
    out = jax.block_until_ready(out)
    assert out.shape == (B, N), out.shape
    assert bool(jnp.all(jnp.isfinite(out)))
    print("KERNEL_OK")
</pallas_src>

<mosaic_0001>
module attributes {stable_mosaic.version = 11 : i64} {
  func.func @kernel(%arg0: i32, %arg1: memref<1x128x6xf32, #tpu.memory_space<vmem>>, %arg2: memref<672x128xf32, #tpu.memory_space<vmem>>, %arg3: memref<1x1x128xf32, #tpu.memory_space<vmem>>) attributes {dimension_semantics = [#tpu.dimension_semantics<parallel>], iteration_bounds = array<i64: 2>, scalar_prefetch = 0 : i64, scratch_operands = 0 : i64, tpu.core_type = #tpu.core_type<tc>, window_params = [{transform_indices = @transform_0, window_bounds = array<i64: 1, 128, 6>}, {pipeline_mode = #tpu.pipeline_mode<synchronous>, transform_indices = @transform_1, window_bounds = array<i64: 672, 128>}, {transform_indices = @transform_2, window_bounds = array<i64: 1, 1, 128>}]} {
    %c0 = arith.constant 0 : index
    %c0_0 = arith.constant 0 : index
    %c0_1 = arith.constant 0 : index
    %0 = vector.load %arg1[%c0, %c0_0, %c0_1] : memref<1x128x6xf32, #tpu.memory_space<vmem>>, vector<1x128x6xf32>
    %1 = vector.shape_cast %0 : vector<1x128x6xf32> to vector<128x6xf32>
    %2 = vector.extract_strided_slice %1 {offsets = [0, 0], sizes = [128, 2], strides = [1, 1]} : vector<128x6xf32> to vector<128x2xf32>
    %3 = vector.extract_strided_slice %1 {offsets = [0, 2], sizes = [128, 3], strides = [1, 1]} : vector<128x6xf32> to vector<128x3xf32>
    %4 = vector.extract_strided_slice %1 {offsets = [0, 5], sizes = [128, 1], strides = [1, 1]} : vector<128x6xf32> to vector<128x1xf32>
    %c0_2 = arith.constant 0 : index
    %c0_3 = arith.constant 0 : index
    %5 = vector.load %arg2[%c0_2, %c0_3] : memref<672x128xf32, #tpu.memory_space<vmem>>, vector<8x128xf32>
    %6 = vector.extract_strided_slice %5 {offsets = [0, 0], sizes = [3, 128], strides = [1, 1]} : vector<8x128xf32> to vector<3x128xf32>
    %7 = vector.extract_strided_slice %3 {offsets = [0, 0], sizes = [128, 1], strides = [1, 1]} : vector<128x3xf32> to vector<128x1xf32>
    %8 = vector.extract_strided_slice %6 {offsets = [0, 0], sizes = [1, 128], strides = [1, 1]} : vector<3x128xf32> to vector<1x128xf32>
    %9 = vector.broadcast %7 : vector<128x1xf32> to vector<128x128xf32>
    %10 = vector.broadcast %8 : vector<1x128xf32> to vector<128x128xf32>
    %11 = arith.mulf %9, %10 : vector<128x128xf32>
    %12 = vector.extract_strided_slice %3 {offsets = [0, 1], sizes = [128, 1], strides = [1, 1]} : vector<128x3xf32> to vector<128x1xf32>
    %13 = vector.extract_strided_slice %6 {offsets = [1, 0], sizes = [1, 128], strides = [1, 1]} : vector<3x128xf32> to vector<1x128xf32>
    %14 = vector.broadcast %12 : vector<128x1xf32> to vector<128x128xf32>
    %15 = vector.broadcast %13 : vector<1x128xf32> to vector<128x128xf32>
    %16 = arith.mulf %14, %15 : vector<128x128xf32>
    %17 = arith.addf %11, %16 : vector<128x128xf32>
    %18 = vector.extract_strided_slice %3 {offsets = [0, 2], sizes = [128, 1], strides = [1, 1]} : vector<128x3xf32> to vector<128x1xf32>
    %19 = vector.extract_strided_slice %6 {offsets = [2, 0], sizes = [1, 128], strides = [1, 1]} : vector<3x128xf32> to vector<1x128xf32>
    %20 = vector.broadcast %18 : vector<128x1xf32> to vector<128x128xf32>
    %21 = vector.broadcast %19 : vector<1x128xf32> to vector<128x128xf32>
    %22 = arith.mulf %20, %21 : vector<128x128xf32>
    %23 = arith.addf %17, %22 : vector<128x128xf32>
    %c8 = arith.constant 8 : index
    %c0_4 = arith.constant 0 : index
    %24 = vector.load %arg2[%c8, %c0_4] : memref<672x128xf32, #tpu.memory_space<vmem>>, vector<8x128xf32>
    %25 = vector.extract_strided_slice %24 {offsets = [0, 0], sizes = [1, 128], strides = [1, 1]} : vector<8x128xf32> to vector<1x128xf32>
    %26 = vector.broadcast %25 : vector<1x128xf32> to vector<128x128xf32>
    %27 = arith.addf %23, %26 : vector<128x128xf32>
    %28 = math.cos %27 : vector<128x128xf32>
    %c16 = arith.constant 16 : index
    %c0_5 = arith.constant 0 : index
    %29 = vector.load %arg2[%c16, %c0_5] : memref<672x128xf32, #tpu.memory_space<vmem>>, vector<8x128xf32>
    %30 = vector.extract_strided_slice %29 {offsets = [0, 0], sizes = [1, 128], strides = [1, 1]} : vector<8x128xf32> to vector<1x128xf32>
    %31 = vector.broadcast %30 : vector<1x128xf32> to vector<128x128xf32>
    %32 = arith.mulf %28, %31 : vector<128x128xf32>
    %c24 = arith.constant 24 : index
    %c0_6 = arith.constant 0 : index
    %33 = vector.load %arg2[%c24, %c0_6] : memref<672x128xf32, #tpu.memory_space<vmem>>, vector<8x128xf32>
    %34 = vector.extract_strided_slice %33 {offsets = [0, 0], sizes = [2, 64], strides = [1, 1]} : vector<8x128xf32> to vector<2x64xf32>
    %35 = vector.extract_strided_slice %2 {offsets = [0, 0], sizes = [128, 1], strides = [1, 1]} : vector<128x2xf32> to vector<128x1xf32>
    %36 = vector.extract_strided_slice %34 {offsets = [0, 0], sizes = [1, 64], strides = [1, 1]} : vector<2x64xf32> to vector<1x64xf32>
    %37 = vector.broadcast %35 : vector<128x1xf32> to vector<128x64xf32>
    %38 = vector.broadcast %36 : vector<1x64xf32> to vector<128x64xf32>
    %39 = arith.mulf %37, %38 : vector<128x64xf32>
    %40 = vector.extract_strided_slice %2 {offsets = [0, 1], sizes = [128, 1], strides = [1, 1]} : vector<128x2xf32> to vector<128x1xf32>
    %41 = vector.extract_strided_slice %34 {offsets = [1, 0], sizes = [1, 64], strides = [1, 1]} : vector<2x64xf32> to vector<1x64xf32>
    %42 = vector.broadcast %40 : vector<128x1xf32> to vector<128x64xf32>
    %43 = vector.broadcast %41 : vector<1x64xf32> to vector<128x64xf32>
    %44 = arith.mulf %42, %43 : vector<128x64xf32>
    %45 = arith.addf %39, %44 : vector<128x64xf32>
    %c32 = arith.constant 32 : index
    %c0_7 = arith.constant 0 : index
    %46 = vector.load %arg2[%c32, %c0_7] : memref<672x128xf32, #tpu.memory_space<vmem>>, vector<8x128xf32>
    %47 = vector.extract_strided_slice %46 {offsets = [0, 0], sizes = [1, 64], strides = [1, 1]} : vector<8x128xf32> to vector<1x64xf32>
    %48 = vector.broadcast %47 : vector<1x64xf32> to vector<128x64xf32>
    %49 = arith.addf %45, %48 : vector<128x64xf32>
    %50 = vector.extract_strided_slice %32 {offsets = [0, 0], sizes = [128, 64], strides = [1, 1]} : vector<128x128xf32> to vector<128x64xf32>
    %51 = arith.negf %50 : vector<128x64xf32>
    %52 = math.exp %51 : vector<128x64xf32>
    %cst = arith.constant 1.000000e+00 : f32
    %53 = vector.broadcast %cst : f32 to vector<128x64xf32>
    %54 = arith.addf %53, %52 : vector<128x64xf32>
    %55 = arith.divf %53, %54 : vector<128x64xf32>
    %56 = arith.mulf %50, %55 : vector<128x64xf32>
    %57 = arith.mulf %49, %56 : vector<128x64xf32>
    %c40 = arith.constant 40 : index
    %c0_8 = arith.constant 0 : index
    %58 = vector.load %arg2[%c40, %c0_8] : memref<672x128xf32, #tpu.memory_space<vmem>>, vector<64x128xf32>
    %59 = vector.extract_strided_slice %58 {offsets = [0, 0], sizes = [64, 32], strides = [1, 1]} : vector<64x128xf32> to vector<64x32xf32>
    %cst_9 = arith.constant dense<0.000000e+00> : vector<128x32xf32>
    %60 = tpu.matmul %57, %59, %cst_9 {dimension_numbers = #tpu.dot_dimension_numbers<[1], [0], [0], [1], [0, 0, 1, 1], [], []>} : vector<128x64xf32>, vector<64x32xf32>, vector<128x32xf32> -> vector<128x32xf32>
    %c104 = arith.constant 104 : index
    %c0_10 = arith.constant 0 : index
    %61 = vector.load %arg2[%c104, %c0_10] : memref<672x128xf32, #tpu.memory_space<vmem>>, vector<8x128xf32>
    %62 = vector.extract_strided_slice %61 {offsets = [0, 0], sizes = [1, 32], strides = [1, 1]} : vector<8x128xf32> to vector<1x32xf32>
    %63 = vector.broadcast %62 : vector<1x32xf32> to vector<128x32xf32>
    %64 = arith.addf %60, %63 : vector<128x32xf32>
    %65 = vector.extract_strided_slice %32 {offsets = [0, 64], sizes = [128, 32], strides = [1, 1]} : vector<128x128xf32> to vector<128x32xf32>
    %c112 = arith.constant 112 : index
    %c0_11 = arith.constant 0 : index
    %66 = vector.load %arg2[%c112, %c0_11] : memref<672x128xf32, #tpu.memory_space<vmem>>, vector<32x128xf32>
    %67 = vector.extract_strided_slice %66 {offsets = [0, 0], sizes = [32, 32], strides = [1, 1]} : vector<32x128xf32> to vector<32x32xf32>
    %cst_12 = arith.constant dense<0.000000e+00> : vector<128x32xf32>
    %68 = tpu.matmul %64, %67, %cst_12 {dimension_numbers = #tpu.dot_dimension_numbers<[1], [0], [0], [1], [0, 0, 1, 1], [], []>} : vector<128x32xf32>, vector<32x32xf32>, vector<128x32xf32> -> vector<128x32xf32>
    %c144 = arith.constant 144 : index
    %c0_13 = arith.constant 0 : index
    %69 = vector.load %arg2[%c144, %c0_13] : memref<672x128xf32, #tpu.memory_space<vmem>>, vector<8x128xf32>
    %70 = vector.extract_strided_slice %69 {offsets = [0, 0], sizes = [1, 32], strides = [1, 1]} : vector<8x128xf32> to vector<1x32xf32>
    %71 = vector.broadcast %70 : vector<1x32xf32> to vector<128x32xf32>
    %72 = arith.addf %68, %71 : vector<128x32xf32>
    %73 = vector.broadcast %4 : vector<128x1xf32> to vector<128x32xf32>
    %74 = arith.mulf %73, %72 : vector<128x32xf32>
    %cst_14 = arith.constant dense<0.000000e+00> : vector<32x32xf32>
    %75 = tpu.matmul %65, %74, %cst_14 {dimension_numbers = #tpu.dot_dimension_numbers<[0], [0], [1], [1], [0, 1, 1, 1], [], []>} : vector<128x32xf32>, vector<128x32xf32>, vector<32x32xf32> -> vector<32x32xf32>
    %c152 = arith.constant 152 : index
    %c0_15 = arith.constant 0 : index
    %76 = vector.load %arg2[%c152, %c0_15] : memref<672x128xf32, #tpu.memory_space<vmem>>, vector<32x128xf32>
    %77 = vector.extract_strided_slice %76 {offsets = [0, 0], sizes = [32, 32], strides = [1, 1]} : vector<32x128xf32> to vector<32x32xf32>
    %cst_16 = arith.constant dense<0.000000e+00> : vector<32x32xf32>
    %78 = tpu.matmul %75, %77, %cst_16 {dimension_numbers = #tpu.dot_dimension_numbers<[1], [0], [0], [1], [0, 0, 1, 1], [], []>} : vector<32x32xf32>, vector<32x32xf32>, vector<32x32xf32> -> vector<32x32xf32>
    %cst_17 = arith.constant dense<0.000000e+00> : vector<128x32xf32>
    %79 = tpu.matmul %65, %78, %cst_17 {dimension_numbers = #tpu.dot_dimension_numbers<[1], [0], [0], [1], [0, 0, 1, 1], [], []>} : vector<128x32xf32>, vector<32x32xf32>, vector<128x32xf32> -> vector<128x32xf32>
    %80 = arith.addf %64, %79 : vector<128x32xf32>
    %c184 = arith.constant 184 : index
    %c0_18 = arith.constant 0 : index
    %81 = vector.load %arg2[%c184, %c0_18] : memref<672x128xf32, #tpu.memory_space<vmem>>, vector<8x128xf32>
    %82 = vector.extract_strided_slice %81 {offsets = [0, 0], sizes = [1, 32], strides = [1, 1]} : vector<8x128xf32> to vector<1x32xf32>
    %83 = vector.broadcast %82 : vector<1x32xf32> to vector<128x32xf32>
    %84 = arith.addf %80, %83 : vector<128x32xf32>
    %c192 = arith.constant 192 : index
    %c0_19 = arith.constant 0 : index
    %85 = vector.load %arg2[%c192, %c0_19] : memref<672x128xf32, #tpu.memory_space<vmem>>, vector<8x128xf32>
    %86 = vector.extract_strided_slice %85 {offsets = [0, 0], sizes = [1, 32], strides = [1, 1]} : vector<8x128xf32> to vector<1x32xf32>
    %c200 = arith.constant 200 : index
    %c0_20 = arith.constant 0 : index
    %87 = vector.load %arg2[%c200, %c0_20] : memref<672x128xf32, #tpu.memory_space<vmem>>, vector<8x128xf32>
    %88 = vector.extract_strided_slice %87 {offsets = [0, 0], sizes = [1, 32], strides = [1, 1]} : vector<8x128xf32> to vector<1x32xf32>
    %cst_21 = arith.constant dense<0.000000e+00> : vector<128xf32>
    %89 = vector.multi_reduction <add>, %84, %cst_21 [1] : vector<128x32xf32> to vector<128xf32>
    %90 = vector.shape_cast %89 : vector<128xf32> to vector<128x1xf32>
    %cst_22 = arith.constant 3.200000e+01 : f32
    %91 = vector.broadcast %cst_22 : f32 to vector<128x1xf32>
    %92 = arith.divf %90, %91 : vector<128x1xf32>
    %93 = vector.broadcast %92 : vector<128x1xf32> to vector<128x32xf32>
    %94 = arith.subf %84, %93 : vector<128x32xf32>
    %95 = arith.mulf %94, %94 : vector<128x32xf32>
    %cst_23 = arith.constant dense<0.000000e+00> : vector<128xf32>
    %96 = vector.multi_reduction <add>, %95, %cst_23 [1] : vector<128x32xf32> to vector<128xf32>
    %97 = vector.shape_cast %96 : vector<128xf32> to vector<128x1xf32>
    %cst_24 = arith.constant 3.200000e+01 : f32
    %98 = vector.broadcast %cst_24 : f32 to vector<128x1xf32>
    %99 = arith.divf %97, %98 : vector<128x1xf32>
    %100 = vector.broadcast %92 : vector<128x1xf32> to vector<128x32xf32>
    %101 = arith.subf %84, %100 : vector<128x32xf32>
    %cst_25 = arith.constant 9.99999974E-6 : f32
    %102 = vector.broadcast %cst_25 : f32 to vector<128x1xf32>
    %103 = arith.addf %99, %102 : vector<128x1xf32>
    %104 = math.rsqrt %103 : vector<128x1xf32>
    %105 = vector.broadcast %104 : vector<128x1xf32> to vector<128x32xf32>
    %106 = arith.mulf %101, %105 : vector<128x32xf32>
    %107 = vector.broadcast %86 : vector<1x32xf32> to vector<128x32xf32>
    %108 = arith.mulf %106, %107 : vector<128x32xf32>
    %109 = vector.broadcast %88 : vector<1x32xf32> to vector<128x32xf32>
    %110 = arith.addf %108, %109 : vector<128x32xf32>
    %c208 = arith.constant 208 : index
    %c0_26 = arith.constant 0 : index
    %111 = vector.load %arg2[%c208, %c0_26] : memref<672x128xf32, #tpu.memory_space<vmem>>, vector<32x128xf32>
    %cst_27 = arith.constant dense<0.000000e+00> : vector<128x128xf32>
    %112 = tpu.matmul %110, %111, %cst_27 {dimension_numbers = #tpu.dot_dimension_numbers<[1], [0], [0], [1], [0, 0, 1, 1], [], []>} : vector<128x32xf32>, vector<32x128xf32>, vector<128x128xf32> -> vector<128x128xf32>
    %c240 = arith.constant 240 : index
    %c0_28 = arith.constant 0 : index
    %113 = vector.load %arg2[%c240, %c0_28] : memref<672x128xf32, #tpu.memory_space<vmem>>, vector<8x128xf32>
    %114 = vector.extract_strided_slice %113 {offsets = [0, 0], sizes = [1, 128], strides = [1, 1]} : vector<8x128xf32> to vector<1x128xf32>
    %115 = vector.broadcast %114 : vector<1x128xf32> to vector<128x128xf32>
    %116 = arith.addf %112, %115 : vector<128x128xf32>
    %117 = vector.extract_strided_slice %116 {offsets = [0, 0], sizes = [128, 64], strides = [1, 1]} : vector<128x128xf32> to vector<128x64xf32>
    %118 = arith.negf %117 : vector<128x64xf32>
    %119 = math.exp %118 : vector<128x64xf32>
    %cst_29 = arith.constant 1.000000e+00 : f32
    %120 = vector.broadcast %cst_29 : f32 to vector<128x64xf32>
    %121 = arith.addf %120, %119 : vector<128x64xf32>
    %122 = arith.divf %120, %121 : vector<128x64xf32>
    %123 = arith.mulf %117, %122 : vector<128x64xf32>
    %124 = vector.extract_strided_slice %116 {offsets = [0, 64], sizes = [128, 64], strides = [1, 1]} : vector<128x128xf32> to vector<128x64xf32>
    %125 = arith.mulf %123, %124 : vector<128x64xf32>
    %c248 = arith.constant 248 : index
    %c0_30 = arith.constant 0 : index
    %126 = vector.load %arg2[%c248, %c0_30] : memref<672x128xf32, #tpu.memory_space<vmem>>, vector<64x128xf32>
    %127 = vector.extract_strided_slice %126 {offsets = [0, 0], sizes = [64, 32], strides = [1, 1]} : vector<64x128xf32> to vector<64x32xf32>
    %cst_31 = arith.constant dense<0.000000e+00> : vector<128x32xf32>
    %128 = tpu.matmul %125, %127, %cst_31 {dimension_numbers = #tpu.dot_dimension_numbers<[1], [0], [0], [1], [0, 0, 1, 1], [], []>} : vector<128x64xf32>, vector<64x32xf32>, vector<128x32xf32> -> vector<128x32xf32>
    %129 = arith.addf %84, %128 : vector<128x32xf32>
    %c312 = arith.constant 312 : index
    %c0_32 = arith.constant 0 : index
    %130 = vector.load %arg2[%c312, %c0_32] : memref<672x128xf32, #tpu.memory_space<vmem>>, vector<8x128xf32>
    %131 = vector.extract_strided_slice %130 {offsets = [0, 0], sizes = [1, 32], strides = [1, 1]} : vector<8x128xf32> to vector<1x32xf32>
    %132 = vector.broadcast %131 : vector<1x32xf32> to vector<128x32xf32>
    %133 = arith.addf %129, %132 : vector<128x32xf32>
    %134 = vector.extract_strided_slice %32 {offsets = [0, 96], sizes = [128, 32], strides = [1, 1]} : vector<128x128xf32> to vector<128x32xf32>
    %c320 = arith.constant 320 : index
    %c0_33 = arith.constant 0 : index
    %135 = vector.load %arg2[%c320, %c0_33] : memref<672x128xf32, #tpu.memory_space<vmem>>, vector<32x128xf32>
    %136 = vector.extract_strided_slice %135 {offsets = [0, 0], sizes = [32, 32], strides = [1, 1]} : vector<32x128xf32> to vector<32x32xf32>
    %cst_34 = arith.constant dense<0.000000e+00> : vector<128x32xf32>
    %137 = tpu.matmul %133, %136, %cst_34 {dimension_numbers = #tpu.dot_dimension_numbers<[1], [0], [0], [1], [0, 0, 1, 1], [], []>} : vector<128x32xf32>, vector<32x32xf32>, vector<128x32xf32> -> vector<128x32xf32>
    %c352 = arith.constant 352 : index
    %c0_35 = arith.constant 0 : index
    %138 = vector.load %arg2[%c352, %c0_35] : memref<672x128xf32, #tpu.memory_space<vmem>>, vector<8x128xf32>
    %139 = vector.extract_strided_slice %138 {offsets = [0, 0], sizes = [1, 32], strides = [1, 1]} : vector<8x128xf32> to vector<1x32xf32>
    %140 = vector.broadcast %139 : vector<1x32xf32> to vector<128x32xf32>
    %141 = arith.addf %137, %140 : vector<128x32xf32>
    %142 = vector.broadcast %4 : vector<128x1xf32> to vector<128x32xf32>
    %143 = arith.mulf %142, %141 : vector<128x32xf32>
    %cst_36 = arith.constant dense<0.000000e+00> : vector<32x32xf32>
    %144 = tpu.matmul %134, %143, %cst_36 {dimension_numbers = #tpu.dot_dimension_numbers<[0], [0], [1], [1], [0, 1, 1, 1], [], []>} : vector<128x32xf32>, vector<128x32xf32>, vector<32x32xf32> -> vector<32x32xf32>
    %c360 = arith.constant 360 : index
    %c0_37 = arith.constant 0 : index
    %145 = vector.load %arg2[%c360, %c0_37] : memref<672x128xf32, #tpu.memory_space<vmem>>, vector<32x128xf32>
    %146 = vector.extract_strided_slice %145 {offsets = [0, 0], sizes = [32, 32], strides = [1, 1]} : vector<32x128xf32> to vector<32x32xf32>
    %cst_38 = arith.constant dense<0.000000e+00> : vector<32x32xf32>
    %147 = tpu.matmul %144, %146, %cst_38 {dimension_numbers = #tpu.dot_dimension_numbers<[1], [0], [0], [1], [0, 0, 1, 1], [], []>} : vector<32x32xf32>, vector<32x32xf32>, vector<32x32xf32> -> vector<32x32xf32>
    %cst_39 = arith.constant dense<0.000000e+00> : vector<128x32xf32>
    %148 = tpu.matmul %134, %147, %cst_39 {dimension_numbers = #tpu.dot_dimension_numbers<[1], [0], [0], [1], [0, 0, 1, 1], [], []>} : vector<128x32xf32>, vector<32x32xf32>, vector<128x32xf32> -> vector<128x32xf32>
    %149 = arith.addf %133, %148 : vector<128x32xf32>
    %c392 = arith.constant 392 : index
    %c0_40 = arith.constant 0 : index
    %150 = vector.load %arg2[%c392, %c0_40] : memref<672x128xf32, #tpu.memory_space<vmem>>, vector<8x128xf32>
    %151 = vector.extract_strided_slice %150 {offsets = [0, 0], sizes = [1, 32], strides = [1, 1]} : vector<8x128xf32> to vector<1x32xf32>
    %152 = vector.broadcast %151 : vector<1x32xf32> to vector<128x32xf32>
    %153 = arith.addf %149, %152 : vector<128x32xf32>
    %c400 = arith.constant 400 : index
    %c0_41 = arith.constant 0 : index
    %154 = vector.load %arg2[%c400, %c0_41] : memref<672x128xf32, #tpu.memory_space<vmem>>, vector<8x128xf32>
    %155 = vector.extract_strided_slice %154 {offsets = [0, 0], sizes = [1, 32], strides = [1, 1]} : vector<8x128xf32> to vector<1x32xf32>
    %c408 = arith.constant 408 : index
    %c0_42 = arith.constant 0 : index
    %156 = vector.load %arg2[%c408, %c0_42] : memref<672x128xf32, #tpu.memory_space<vmem>>, vector<8x128xf32>
    %157 = vector.extract_strided_slice %156 {offsets = [0, 0], sizes = [1, 32], strides = [1, 1]} : vector<8x128xf32> to vector<1x32xf32>
    %cst_43 = arith.constant dense<0.000000e+00> : vector<128xf32>
    %158 = vector.multi_reduction <add>, %153, %cst_43 [1] : vector<128x32xf32> to vector<128xf32>
    %159 = vector.shape_cast %158 : vector<128xf32> to vector<128x1xf32>
    %cst_44 = arith.constant 3.200000e+01 : f32
    %160 = vector.broadcast %cst_44 : f32 to vector<128x1xf32>
    %161 = arith.divf %159, %160 : vector<128x1xf32>
    %162 = vector.broadcast %161 : vector<128x1xf32> to vector<128x32xf32>
    %163 = arith.subf %153, %162 : vector<128x32xf32>
    %164 = arith.mulf %163, %163 : vector<128x32xf32>
    %cst_45 = arith.constant dense<0.000000e+00> : vector<128xf32>
    %165 = vector.multi_reduction <add>, %164, %cst_45 [1] : vector<128x32xf32> to vector<128xf32>
    %166 = vector.shape_cast %165 : vector<128xf32> to vector<128x1xf32>
    %cst_46 = arith.constant 3.200000e+01 : f32
    %167 = vector.broadcast %cst_46 : f32 to vector<128x1xf32>
    %168 = arith.divf %166, %167 : vector<128x1xf32>
    %169 = vector.broadcast %161 : vector<128x1xf32> to vector<128x32xf32>
    %170 = arith.subf %153, %169 : vector<128x32xf32>
    %cst_47 = arith.constant 9.99999974E-6 : f32
    %171 = vector.broadcast %cst_47 : f32 to vector<128x1xf32>
    %172 = arith.addf %168, %171 : vector<128x1xf32>
    %173 = math.rsqrt %172 : vector<128x1xf32>
    %174 = vector.broadcast %173 : vector<128x1xf32> to vector<128x32xf32>
    %175 = arith.mulf %170, %174 : vector<128x32xf32>
    %176 = vector.broadcast %155 : vector<1x32xf32> to vector<128x32xf32>
    %177 = arith.mulf %175, %176 : vector<128x32xf32>
    %178 = vector.broadcast %157 : vector<1x32xf32> to vector<128x32xf32>
    %179 = arith.addf %177, %178 : vector<128x32xf32>
    %c416 = arith.constant 416 : index
    %c0_48 = arith.constant 0 : index
    %180 = vector.load %arg2[%c416, %c0_48] : memref<672x128xf32, #tpu.memory_space<vmem>>, vector<32x128xf32>
    %cst_49 = arith.constant dense<0.000000e+00> : vector<128x128xf32>
    %181 = tpu.matmul %179, %180, %cst_49 {dimension_numbers = #tpu.dot_dimension_numbers<[1], [0], [0], [1], [0, 0, 1, 1], [], []>} : vector<128x32xf32>, vector<32x128xf32>, vector<128x128xf32> -> vector<128x128xf32>
    %c448 = arith.constant 448 : index
    %c0_50 = arith.constant 0 : index
    %182 = vector.load %arg2[%c448, %c0_50] : memref<672x128xf32, #tpu.memory_space<vmem>>, vector<8x128xf32>
    %183 = vector.extract_strided_slice %182 {offsets = [0, 0], sizes = [1, 128], strides = [1, 1]} : vector<8x128xf32> to vector<1x128xf32>
    %184 = vector.broadcast %183 : vector<1x128xf32> to vector<128x128xf32>
    %185 = arith.addf %181, %184 : vector<128x128xf32>
    %186 = vector.extract_strided_slice %185 {offsets = [0, 0], sizes = [128, 64], strides = [1, 1]} : vector<128x128xf32> to vector<128x64xf32>
    %187 = arith.negf %186 : vector<128x64xf32>
    %188 = math.exp %187 : vector<128x64xf32>
    %cst_51 = arith.constant 1.000000e+00 : f32
    %189 = vector.broadcast %cst_51 : f32 to vector<128x64xf32>
    %190 = arith.addf %189, %188 : vector<128x64xf32>
    %191 = arith.divf %189, %190 : vector<128x64xf32>
    %192 = arith.mulf %186, %191 : vector<128x64xf32>
    %193 = vector.extract_strided_slice %185 {offsets = [0, 64], sizes = [128, 64], strides = [1, 1]} : vector<128x128xf32> to vector<128x64xf32>
    %194 = arith.mulf %192, %193 : vector<128x64xf32>
    %c456 = arith.constant 456 : index
    %c0_52 = arith.constant 0 : index
    %195 = vector.load %arg2[%c456, %c0_52] : memref<672x128xf32, #tpu.memory_space<vmem>>, vector<64x128xf32>
    %196 = vector.extract_strided_slice %195 {offsets = [0, 0], sizes = [64, 32], strides = [1, 1]} : vector<64x128xf32> to vector<64x32xf32>
    %cst_53 = arith.constant dense<0.000000e+00> : vector<128x32xf32>
    %197 = tpu.matmul %194, %196, %cst_53 {dimension_numbers = #tpu.dot_dimension_numbers<[1], [0], [0], [1], [0, 0, 1, 1], [], []>} : vector<128x64xf32>, vector<64x32xf32>, vector<128x32xf32> -> vector<128x32xf32>
    %198 = arith.addf %153, %197 : vector<128x32xf32>
    %c520 = arith.constant 520 : index
    %c0_54 = arith.constant 0 : index
    %199 = vector.load %arg2[%c520, %c0_54] : memref<672x128xf32, #tpu.memory_space<vmem>>, vector<8x128xf32>
    %200 = vector.extract_strided_slice %199 {offsets = [0, 0], sizes = [1, 32], strides = [1, 1]} : vector<8x128xf32> to vector<1x32xf32>
    %201 = vector.broadcast %200 : vector<1x32xf32> to vector<128x32xf32>
    %202 = arith.addf %198, %201 : vector<128x32xf32>
    %c528 = arith.constant 528 : index
    %c0_55 = arith.constant 0 : index
    %203 = vector.load %arg2[%c528, %c0_55] : memref<672x128xf32, #tpu.memory_space<vmem>>, vector<8x128xf32>
    %204 = vector.extract_strided_slice %203 {offsets = [0, 0], sizes = [1, 32], strides = [1, 1]} : vector<8x128xf32> to vector<1x32xf32>
    %c536 = arith.constant 536 : index
    %c0_56 = arith.constant 0 : index
    %205 = vector.load %arg2[%c536, %c0_56] : memref<672x128xf32, #tpu.memory_space<vmem>>, vector<8x128xf32>
    %206 = vector.extract_strided_slice %205 {offsets = [0, 0], sizes = [1, 32], strides = [1, 1]} : vector<8x128xf32> to vector<1x32xf32>
    %cst_57 = arith.constant dense<0.000000e+00> : vector<128xf32>
    %207 = vector.multi_reduction <add>, %202, %cst_57 [1] : vector<128x32xf32> to vector<128xf32>
    %208 = vector.shape_cast %207 : vector<128xf32> to vector<128x1xf32>
    %cst_58 = arith.constant 3.200000e+01 : f32
    %209 = vector.broadcast %cst_58 : f32 to vector<128x1xf32>
    %210 = arith.divf %208, %209 : vector<128x1xf32>
    %211 = vector.broadcast %210 : vector<128x1xf32> to vector<128x32xf32>
    %212 = arith.subf %202, %211 : vector<128x32xf32>
    %213 = arith.mulf %212, %212 : vector<128x32xf32>
    %cst_59 = arith.constant dense<0.000000e+00> : vector<128xf32>
    %214 = vector.multi_reduction <add>, %213, %cst_59 [1] : vector<128x32xf32> to vector<128xf32>
    %215 = vector.shape_cast %214 : vector<128xf32> to vector<128x1xf32>
    %cst_60 = arith.constant 3.200000e+01 : f32
    %216 = vector.broadcast %cst_60 : f32 to vector<128x1xf32>
    %217 = arith.divf %215, %216 : vector<128x1xf32>
    %218 = vector.broadcast %210 : vector<128x1xf32> to vector<128x32xf32>
    %219 = arith.subf %202, %218 : vector<128x32xf32>
    %cst_61 = arith.constant 9.99999974E-6 : f32
    %220 = vector.broadcast %cst_61 : f32 to vector<128x1xf32>
    %221 = arith.addf %217, %220 : vector<128x1xf32>
    %222 = math.rsqrt %221 : vector<128x1xf32>
    %223 = vector.broadcast %222 : vector<128x1xf32> to vector<128x32xf32>
    %224 = arith.mulf %219, %223 : vector<128x32xf32>
    %225 = vector.broadcast %204 : vector<1x32xf32> to vector<128x32xf32>
    %226 = arith.mulf %224, %225 : vector<128x32xf32>
    %227 = vector.broadcast %206 : vector<1x32xf32> to vector<128x32xf32>
    %228 = arith.addf %226, %227 : vector<128x32xf32>
    %c544 = arith.constant 544 : index
    %c0_62 = arith.constant 0 : index
    %229 = vector.load %arg2[%c544, %c0_62] : memref<672x128xf32, #tpu.memory_space<vmem>>, vector<32x128xf32>
    %cst_63 = arith.constant dense<0.000000e+00> : vector<128x128xf32>
    %230 = tpu.matmul %228, %229, %cst_63 {dimension_numbers = #tpu.dot_dimension_numbers<[1], [0], [0], [1], [0, 0, 1, 1], [], []>} : vector<128x32xf32>, vector<32x128xf32>, vector<128x128xf32> -> vector<128x128xf32>
    %c576 = arith.constant 576 : index
    %c0_64 = arith.constant 0 : index
    %231 = vector.load %arg2[%c576, %c0_64] : memref<672x128xf32, #tpu.memory_space<vmem>>, vector<8x128xf32>
    %232 = vector.extract_strided_slice %231 {offsets = [0, 0], sizes = [1, 128], strides = [1, 1]} : vector<8x128xf32> to vector<1x128xf32>
    %233 = vector.broadcast %232 : vector<1x128xf32> to vector<128x128xf32>
    %234 = arith.addf %230, %233 : vector<128x128xf32>
    %235 = vector.extract_strided_slice %234 {offsets = [0, 0], sizes = [128, 64], strides = [1, 1]} : vector<128x128xf32> to vector<128x64xf32>
    %236 = arith.negf %235 : vector<128x64xf32>
    %237 = math.exp %236 : vector<128x64xf32>
    %cst_65 = arith.constant 1.000000e+00 : f32
    %238 = vector.broadcast %cst_65 : f32 to vector<128x64xf32>
    %239 = arith.addf %238, %237 : vector<128x64xf32>
    %240 = arith.divf %238, %239 : vector<128x64xf32>
    %241 = arith.mulf %235, %240 : vector<128x64xf32>
    %242 = vector.extract_strided_slice %234 {offsets = [0, 64], sizes = [128, 64], strides = [1, 1]} : vector<128x128xf32> to vector<128x64xf32>
    %243 = arith.mulf %241, %242 : vector<128x64xf32>
    %c584 = arith.constant 584 : index
    %c0_66 = arith.constant 0 : index
    %244 = vector.load %arg2[%c584, %c0_66] : memref<672x128xf32, #tpu.memory_space<vmem>>, vector<64x128xf32>
    %245 = vector.extract_strided_slice %244 {offsets = [0, 0], sizes = [64, 32], strides = [1, 1]} : vector<64x128xf32> to vector<64x32xf32>
    %cst_67 = arith.constant dense<0.000000e+00> : vector<128x32xf32>
    %246 = tpu.matmul %243, %245, %cst_67 {dimension_numbers = #tpu.dot_dimension_numbers<[1], [0], [0], [1], [0, 0, 1, 1], [], []>} : vector<128x64xf32>, vector<64x32xf32>, vector<128x32xf32> -> vector<128x32xf32>
    %c648 = arith.constant 648 : index
    %c0_68 = arith.constant 0 : index
    %247 = vector.load %arg2[%c648, %c0_68] : memref<672x128xf32, #tpu.memory_space<vmem>>, vector<8x128xf32>
    %248 = vector.extract_strided_slice %247 {offsets = [0, 0], sizes = [1, 32], strides = [1, 1]} : vector<8x128xf32> to vector<1x32xf32>
    %249 = vector.broadcast %248 : vector<1x32xf32> to vector<128x32xf32>
    %250 = arith.addf %246, %249 : vector<128x32xf32>
    %251 = math.tanh %250 : vector<128x32xf32>
    %c656 = arith.constant 656 : index
    %c0_69 = arith.constant 0 : index
    %252 = vector.load %arg2[%c656, %c0_69] : memref<672x128xf32, #tpu.memory_space<vmem>>, vector<8x128xf32>
    %253 = vector.extract_strided_slice %252 {offsets = [0, 0], sizes = [1, 32], strides = [1, 1]} : vector<8x128xf32> to vector<1x32xf32>
    %cst_70 = arith.constant dense<0.000000e+00> : vector<1x128xf32>
    %254 = tpu.matmul %253, %251, %cst_70 {dimension_numbers = #tpu.dot_dimension_numbers<[1], [1], [0], [0], [0, 0, 1, 0], [], []>} : vector<1x32xf32>, vector<128x32xf32>, vector<1x128xf32> -> vector<1x128xf32>
    %c664 = arith.constant 664 : index
    %c0_71 = arith.constant 0 : index
    %255 = vector.load %arg2[%c664, %c0_71] : memref<672x128xf32, #tpu.memory_space<vmem>>, vector<8x128xf32>
    %256 = vector.extract_strided_slice %255 {offsets = [0, 0], sizes = [1, 1], strides = [1, 1]} : vector<8x128xf32> to vector<1x1xf32>
    %257 = vector.broadcast %256 : vector<1x1xf32> to vector<1x128xf32>
    %258 = arith.addf %254, %257 : vector<1x128xf32>
    %c0_72 = arith.constant 0 : index
    %c0_73 = arith.constant 0 : index
    %c0_74 = arith.constant 0 : index
    %259 = vector.load %arg3[%c0_72, %c0_73, %c0_74] : memref<1x1x128xf32, #tpu.memory_space<vmem>>, vector<1x1x128xf32>
    %260 = vector.shape_cast %259 : vector<1x1x128xf32> to vector<1x128xf32>
    %261 = vector.shape_cast %258 : vector<1x128xf32> to vector<1x1x128xf32>
    tpu.vector_store %arg3[%c0_72, %c0_73, %c0_74], %261 {strides = array<i32>} : memref<1x1x128xf32, #tpu.memory_space<vmem>>, vector<1x1x128xf32>,
    return
  }
  func.func @transform_0(%arg0: i32) -> (i32, i32, i32) {
    %c0_i32 = arith.constant 0 : i32
    %c0_i32_0 = arith.constant 0 : i32
    %c0_i32_1 = arith.constant 0 : i32
    return %arg0, %c0_i32, %c0_i32_0 : i32, i32, i32
  }
  func.func @transform_1(%arg0: i32) -> (i32, i32) {
    %c0_i32 = arith.constant 0 : i32
    %c0_i32_0 = arith.constant 0 : i32
    %c0_i32_1 = arith.constant 0 : i32
    return %c0_i32, %c0_i32_0 : i32, i32
  }
  func.func @transform_2(%arg0: i32) -> (i32, i32, i32) {
    %c0_i32 = arith.constant 0 : i32
    %c0_i32_0 = arith.constant 0 : i32
    %c0_i32_1 = arith.constant 0 : i32
    return %arg0, %c0_i32, %c0_i32_0 : i32, i32, i32
  }
}

</mosaic_0001>

<bundles_post_ra>
// kernel: global_density_approx.1
= control target key start
LH: loop header
LB: loop body
LE: loop exit
PB: predicated region body
PF: predicated region fallthrough
CT: control target
= control target key end

     0   :  { %7 = vsyncpa [#allocation3], 0  ;;  %s12934_s0 = inlined_call_operand.vmem [shape: f32[2,128,6], index: 0, kind: input, shape index: {}]   ;;  %s12935_s1 = inlined_call_operand.vmem [shape: f32[672,128], index: 1, kind: input, shape index: {}]   ;;  %s12936_s2 = inlined_call_operand.hbm [shape: f32[2,1,128], index: 2, kind: output, shape index: {}]  }
   0x1   :  { %9 = vsyncpa [#allocation3 + $0x1], 0  ;;  %s8889_s9 = smov 0   ;;  %s8891_s10 = smov 0  }
   0x2   :  { %s8893_s11 = smov 0   ;;  %s8895_s12 = smov 0  }
   0x3 LB: > { %s8910_s13 = sadd.s32 4294967295, %s8855_s12   ;;  %s6994_s14 = sadd.s32 4294967294, %s8855_s12   ;;  %s8855_s12 = sphi %s8895_s12, %s13314_s12   ;;  %s8851_s11 = sphi %s8893_s11, %s13313_s11   ;;  %s8847_s10 = sphi %s8891_s10, %s13312_s10   ;;  %s8843_s9 = sphi %s8889_s9, %s13311_s9  }
   0x4   : > { %s8914_s15 = sadd.s32 1, %s8855_s12   ;;  %s69_s16 = sadd.s32 1, %s8851_s11 }
   0x5   : > { %s66_s17 = ssub.s32 %s8855_s12, %s8914_s15  ;;  %p79_p0 = scmp.ne.s32.totalorder %s8851_s11, %s8847_s10 }
   0x6   : > { %p67_p1 = scmp.eq.s32.totalorder %s66_s17, 0  ;;  %p80_p2 = scmp.eq.s32.totalorder %s8910_s13, 1 }
   0x7   : > { %p85_p3 = scmp.ne.s32.totalorder %s8847_s10, %s8843_s9  ;;  %p86_p4 = scmp.eq.s32.totalorder %s6994_s14, 1 }
   0x8   : > { %s8925_s18 = scalar_select %p67_p1, %s8851_s11, %s69_s16  }
   0x9   : > { %p8927_p5 = por %p80_p2, %p79_p0  ;;  %p8931_p6 = por %p86_p4, %p85_p3 }
   0xa   : > { %p6997_p7 = scmp.ge.s32.totalorder %s8855_s12, 1  ;;  %p115_p8 = scmp.lt.s32.totalorder %s8855_s12, 3 }
   0xc   : > { %p116_p9 = pnand %p6997_p7, %p115_p8 }
   0xe   : > { %119 = sbr.rel (%p116_p9) target bundleno = 5429 (0x1535), region = 28 }
  0x13   : > { %p136_p10 = scmp.lt.s32.totalorder %s8910_s13, 1  ;;  %v8857_v0 = vmov 3   ;;  %v8858_v1 = vmov 2   ;;  %v8859_v5 = vmov 4   ;;  %v12956_v16 = vmov 0   ;;  %v157_v27 = vld [vmem:[%s12935_s1] sm:$0xff] }
  0x14   : > { %8284 = vset.pattern.permute.xlu0 %v8857_v0  ;;  %8286 = vset.pattern.permute.xlu1 %v8858_v1  ;;  %v12951_v17 = vmov 1   ;;  %v238_v21 = vlaneseq  ;;  %v458_v36 = vld [vmem:[%s12935_s1 + $0x8] sm:$0xff]  ;;  %s8868_s4 = smov 64   ;;  %s8870_s6 = smov 32  }
  0x15   : > { %s137_s21 = scalar_select %p136_p10, %s8910_s13, 1 }
  0x16   : > { %v9072_v22 = vshrl.u32 %v238_v21, 7  ;;  %s7329_s7 = sshll.u32 %s8910_s13, 4  ;;  %s8873_s24 = smov [#allocation2]  }
  0x17   : > { %s7332_s22 = sshll.u32 %s137_s21, 7  ;;  %s12899_s21 = scalar_lea.hbm %s12936_s2, %s7329_s7 }
  0x18   : > { %s8944_s25 = scalar_lea.vmem %s12934_s0, %s7332_s22  ;;  %13074 = vst [vmem:[#allocation5_spill] sm:$0xff] %v9072_v22  ;;  %v12937_v23 = vsub.s32 1, %v9072_v22  ;;  %v9076_v24 = vsub.s32 0, %v9072_v22  ;;  %v424_v29 = vsub.s32 2, %v9072_v22  ;;  %s8799_s13 = sshll.u32 %s8873_s24, 4  ;;  %s8800_s13 = int_to_ptr.vmem [resolvable:$false] %s8799_s13 }
  0x19   : > { %v8947_v2 = vld [vmem:[%s8944_s25 + $0x8] sm:$0xff]  ;;  %v8950_v3 = vld [vmem:[%s8944_s25] sm:$0xff]  ;;  %v8959_v4 = vld [vmem:[%s8944_s25 + $0x18] sm:$0xff]  ;;  %s8801_s26 = scalar_lea.vmem %s8800_s13, 32 }
  0x1a   : > { %165 = vperm.xlu1 %8286, %v8947_v2   ;;  %259 = vperm.xlu0 %8284, %v8950_v3   ;;  %v8965_v6 = vld [vmem:[%s8944_s25 + $0x28] sm:$0xff]  ;;  %v8968_v7 = vld [vmem:[%s8944_s25 + $0x10] sm:$0xff]  ;;  %v8973_v8 = vld [vmem:[%s8944_s25 + $0x38] sm:$0xff]  ;;  %13075 = vst [vmem:[#allocation6_spill] sm:$0xff] %v9076_v24  ;;  %v9085_v28 = vrot.slane %v157_v27, %v12937_v23  ;;  %v9089_v30 = vrot.slane %v157_v27, %v9076_v24 }
  0x1b   : > { %v8978_v9 = vld [vmem:[%s8944_s25 + $0x48] sm:$0xff]  ;;  %v8984_v10 = vld [vmem:[%s8944_s25 + $0x58] sm:$0xff]  ;;  %v8998_v13 = vld [vmem:[%s8944_s25 + $0x20] sm:$0xff]  ;;  %v9095_v35 = vrot.slane %v157_v27, %v424_v29  ;;  %v9104_v40 = vrot.slane %v458_v36, %v9076_v24  ;;  %v12948_v29 = vmov 2475754826  }
  0x1c   : > { %v8989_v11 = vld [vmem:[%s8944_s25 + $0x68] sm:$0xff]  ;;  %v8995_v12 = vld [vmem:[%s8944_s25 + $0x78] sm:$0xff]  ;;  %v9013_v14 = vld [vmem:[%s8944_s25 + $0x30] sm:$0xff] }
  0x1d   : > { %v9028_v15 = vld [vmem:[%s8944_s25 + $0x40] sm:$0xff]  ;;  %v9044_v18 = vld [vmem:[%s8944_s25 + $0x50] sm:$0xff] }
  0x1e   : > { %8287 = vset.pattern.permute.xlu1 %v8857_v0  ;;  %8285 = vset.pattern.permute.xlu0 %v8858_v1  ;;  %v9060_v19 = vld [vmem:[%s8944_s25 + $0x60] sm:$0xff]  ;;  %v9064_v20 = vld [vmem:[%s8944_s25 + $0x70] sm:$0xff] }
  0x1f   : > { %263 = vperm.xlu1 %8287, %v8947_v2   ;;  %160 = vperm.xlu0 %8285, %v8950_v3  }
  0x23   : > { %8288 = vset.pattern.permute.xlu1 %v8859_v5  ;;  %175 = vperm.xlu0 %8285, %v8959_v4  }
  0x24   : > { %359 = vperm.xlu1 %8288, %v8950_v3  }
  0x27   : > { %185 = vperm.xlu0 %8285, %v8965_v6  }
  0x28   : > { %8289 = vset.pattern.permute.xlu1 %v8858_v1 }
  0x29   : > { %170 = vperm.xlu1 %8289, %v8968_v7  }
  0x2b   : > { %195 = vperm.xlu0 %8285, %v8973_v8  }
  0x2d   : > { %8290 = vset.pattern.permute.xlu1 %v8857_v0 }
  0x2e   : > { %267 = vperm.xlu1 %8290, %v8968_v7  }
  0x2f   : > { %205 = vperm.xlu0 %8285, %v8978_v9  }
  0x32   : > { %271 = vperm.xlu1 %8290, %v8959_v4  }
  0x33   : > { %215 = vperm.xlu0 %8285, %v8984_v10  }
  0x36   : > { %8291 = vset.pattern.permute.xlu1 %v8859_v5 }
  0x37   : > { %367 = vperm.xlu1 %8291, %v8968_v7   ;;  %225 = vperm.xlu0 %8285, %v8989_v11  }
  0x3b   : > { %8292 = vset.pattern.permute.xlu1 %v8858_v1  ;;  %235 = vperm.xlu0 %8285, %v8995_v12  }
  0x3c   : > { %180 = vperm.xlu1 %8292, %v8998_v13  }
  0x3f   : > { %8309 = vset.pattern.permute.xlu0 %v8859_v5 }
  0x40   : > { %8293 = vset.pattern.permute.xlu1 %v8857_v0  ;;  %363 = vperm.xlu0 %8309, %v8947_v2  }
  0x41   : > { %275 = vperm.xlu1 %8293, %v8998_v13  }
  0x44   : > { %371 = vperm.xlu0 %8309, %v8959_v4  }
  0x45   : > { %279 = vperm.xlu1 %8293, %v8965_v6  }
  0x48   : > { %379 = vperm.xlu0 %8309, %v8965_v6  }
  0x49   : > { %8294 = vset.pattern.permute.xlu1 %v8859_v5 }
  0x4a   : > { %375 = vperm.xlu1 %8294, %v8998_v13  }
  0x4c   : > { %387 = vperm.xlu0 %8309, %v8973_v8  }
  0x4e   : > { %8295 = vset.pattern.permute.xlu1 %v8858_v1 }
  0x4f   : > { %190 = vperm.xlu1 %8295, %v9013_v14  }
  0x50   : > { %395 = vperm.xlu0 %8309, %v8978_v9  }
  0x53   : > { %8296 = vset.pattern.permute.xlu1 %v8857_v0 }
  0x54   : > { %283 = vperm.xlu1 %8296, %v9013_v14   ;;  %403 = vperm.xlu0 %8309, %v8984_v10  }
  0x58   : > { %287 = vperm.xlu1 %8296, %v8973_v8   ;;  %411 = vperm.xlu0 %8309, %v8989_v11  }
  0x5c   : > { %8297 = vset.pattern.permute.xlu1 %v8859_v5  ;;  %419 = vperm.xlu0 %8309, %v8995_v12  }
  0x5d   : > { %383 = vperm.xlu1 %8297, %v9013_v14  }
  0x60   : > { %8313 = vset.pattern.permute.xlu0 %v12956_v16 }
  0x61   : > { %8298 = vset.pattern.permute.xlu1 %v8858_v1  ;;  %2154 = vperm.xlu0 %8313, %v8947_v2  }
  0x62   : > { %200 = vperm.xlu1 %8298, %v9028_v15  }
  0x65   : > { %8315 = vset.pattern.permute.xlu0 %v12951_v17 }
  0x66   : > { %8299 = vset.pattern.permute.xlu1 %v8857_v0  ;;  %2242 = vperm.xlu0 %8315, %v8968_v7  }
  0x67   : > { %291 = vperm.xlu1 %8299, %v9028_v15  }
  0x6a   : > { %2254 = vperm.xlu0 %8315, %v8965_v6  }
  0x6b   : > { %295 = vperm.xlu1 %8299, %v8978_v9  }
  0x6e   : > { %2266 = vperm.xlu0 %8315, %v9028_v15  }
  0x6f   : > { %8300 = vset.pattern.permute.xlu1 %v8859_v5 }
  0x70   : > { %391 = vperm.xlu1 %8300, %v9028_v15  }
  0x72   : > { %2278 = vperm.xlu0 %8315, %v8984_v10  }
  0x74   : > { %8301 = vset.pattern.permute.xlu1 %v8858_v1 }
  0x75   : > { %210 = vperm.xlu1 %8301, %v9044_v18  }
  0x76   : > { %8322 = vset.pattern.permute.xlu0 %v12956_v16 }
  0x77   : > { %2166 = vperm.xlu0 %8322, %v8998_v13  }
  0x79   : > { %8302 = vset.pattern.permute.xlu1 %v8857_v0 }
  0x7a   : > { %299 = vperm.xlu1 %8302, %v9044_v18  }
  0x7b   : > { %2178 = vperm.xlu0 %8322, %v8973_v8  }
  0x7e   : > { %303 = vperm.xlu1 %8302, %v8984_v10  }
  0x7f   : > { %2190 = vperm.xlu0 %8322, %v9044_v18  }
  0x82   : > { %8303 = vset.pattern.permute.xlu1 %v8859_v5 }
  0x83   : > { %399 = vperm.xlu1 %8303, %v9044_v18   ;;  %2202 = vperm.xlu0 %8322, %v8989_v11  }
  0x87   : > { %8304 = vset.pattern.permute.xlu1 %v8858_v1  ;;  %8325 = vset.pattern.permute.xlu0 %v12951_v17 }
  0x88   : > { %220 = vperm.xlu1 %8304, %v9060_v19   ;;  %2290 = vperm.xlu0 %8325, %v9064_v20  }
  0x8c   : > { %8305 = vset.pattern.permute.xlu1 %v8857_v0 }
  0x8d   : > { %307 = vperm.xlu1 %8305, %v9060_v19  }
  0x91   : > { %311 = vperm.xlu1 %8305, %v8989_v11  }
  0x95   : > { %v166_v25 = vpop.permute.xlu1 %165  ;;  %8306 = vset.pattern.permute.xlu1 %v8859_v5  ;;  %v260_v26 = vpop.permute.xlu0 %259 }
  0x96   : > { %407 = vperm.xlu1 %8306, %v9060_v19   ;;  %v326_v31 = vmul.f32 %v9085_v28, %v260_v26  ;;  %v243_v62 = vmul.f32 %v9089_v30, %v166_v25  ;;  %v12953_v26 = vmov 683565275  }
  0x9a   : > { %v264_v32 = vpop.permute.xlu1 %263  ;;  %8307 = vset.pattern.permute.xlu1 %v8858_v1  ;;  %v161_v33 = vpop.permute.xlu0 %160 }
  0x9b   : > { %230 = vperm.xlu1 %8307, %v9064_v20   ;;  %v242_v34 = vmul.f32 %v9089_v30, %v161_v33  ;;  %v327_v63 = vmul.f32 %v9085_v28, %v264_v32  ;;  %v12946_v32 = vmov 2131351028  }
  0x9d   : > { %v342_v37 = vadd.f32 %v326_v31, %v242_v34 }
  0x9e   : > { %v9100_v38 = vpop.permute.xlu0 %175 }
  0x9f   : > { %8308 = vset.pattern.permute.xlu1 %v8857_v0  ;;  %v360_v39 = vpop.permute.xlu1 %359 }
  0xa0   : > { %v426_v41 = vmul.f32 %v9095_v35, %v360_v39  ;;  %315 = vperm.xlu1 %8308, %v9064_v20   ;;  %v12944_v39 = vmov 2102212464  }
  0xa2   : > { %v442_v42 = vadd.f32 %v426_v41, %v342_v37  ;;  %v9108_v43 = vpop.permute.xlu0 %185 }
  0xa4   : > { %v9111_v44 = vadd.f32 %v9104_v40, %v442_v42  ;;  %319 = vperm.xlu1 %8308, %v8995_v12   ;;  %v171_v45 = vpop.permute.xlu1 %170 }
  0xa5   : > { %v244_v61 = vmul.f32 %v9089_v30, %v171_v45  ;;  %v12939_v45 = vmov 920167782  }
  0xa6   : > { %v12938_v46 = vand.u32 2147483647, %v9111_v44  ;;  %v482_v47 = vand.u32 2139095040, %v9111_v44  ;;  %v9116_v48 = vpop.permute.xlu0 %195 }
  0xa8   : > { %v483_v49 = vshrl.u32 %v482_v47, 23  ;;  %8310 = vset.pattern.permute.xlu1 %v8859_v5  ;;  %v486_v52 = vand.u32 8388607, %v12938_v46 }
  0xa9   : > { %415 = vperm.xlu1 %8310, %v9064_v20   ;;  %v268_v50 = vpop.permute.xlu1 %267 }
  0xaa   : > { %v7000_v51 = vadd.s32 4294967169, %v483_v49  ;;  %v9122_v53 = vpop.permute.xlu0 %205  ;;  %v487_v56 = vor.u32 8388608, %v486_v52  ;;  %v328_v59 = vmul.f32 %v9085_v28, %v268_v50  ;;  %v12941_v50 = vmov 1326507024  }
  0xac   : > { %v489_v54 = vadd.s32 1, %v7000_v51  ;;  %v9134_v1 = vshll.u32 %v487_v56, 8  ;;  %v344_v33 = vadd.f32 %v328_v59, %v244_v61 }
  0xad   : > { %8311 = vset.pattern.permute.xlu1 %v12956_v16  ;;  %v9125_v55 = vpop.permute.xlu1 %271 }
  0xae   : > { %vm490_vm0 = vcmp.gt.s32.totalorder %v489_v54, 0  ;;  %2150 = vperm.xlu1 %8311, %v8950_v3   ;;  %v9128_v57 = vpop.permute.xlu0 %215 }
  0xaf   : > { %v491_v58 = vsel %vm490_vm0, %v489_v54, 0 }
  0xb0   : > { %v493_v60 = vand.u32 31, %v491_v58  ;;  %v492_v21 = vshrl.u32 %v491_v58, 5 }
  0xb2   : > { %v494_v0 = vsub.s32 32, %v493_v60  ;;  %8312 = vset.pattern.permute.xlu1 %v12951_v17  ;;  %v9137_v5 = vpop.permute.xlu0 %225  ;;  %v496_v27 = vshll.u32 %v12953_v26, %v493_v60  ;;  %v499_v31 = vshll.u32 %v12948_v29, %v493_v60  ;;  %v368_v34 = vpop.permute.xlu1 %367  ;;  %v502_v37 = vshll.u32 %v12946_v32, %v493_v60 }
  0xb3   : > { %2234 = vperm.xlu1 %8312, %v8950_v3   ;;  %v505_v42 = vshll.u32 %v12944_v39, %v493_v60  ;;  %v508_v49 = vshll.u32 %v12939_v45, %v493_v60  ;;  %v428_v56 = vmul.f32 %v9095_v35, %v368_v34  ;;  %vm511_vm1 = vcmp.lt.s32.totalorder %v492_v21, 1 }
  0xb4   : > { %v497_v25 = vshrl.u32 %v12948_v29, %v494_v0  ;;  %v500_v36 = vshrl.u32 %v12946_v32, %v494_v0  ;;  %v503_v41 = vshrl.u32 %v12944_v39, %v494_v0  ;;  %v506_v47 = vshrl.u32 %v12939_v45, %v494_v0 }
  0xb5   : > { %v509_v3 = vshrl.u32 %v12941_v50, %v494_v0  ;;  %vm514_vm2 = vcmp.lt.s32.totalorder %v492_v21, 4  ;;  %v495_v23 = vshrl.u32 %v12953_v26, %v494_v0  ;;  %vm513_vm3 = vcmp.lt.s32.totalorder %v492_v21, 3 }
  0xb6   : > { %v498_v51 = vor.u32 %v497_v25, %v496_v27  ;;  %v501_v52 = vor.u32 %v500_v36, %v499_v31  ;;  %v504_v54 = vor.u32 %v503_v41, %v502_v37  ;;  %v9151_v58 = vpop.permute.xlu0 %235  ;;  %v507_v59 = vor.u32 %v506_v47, %v505_v42 }
  0xb7   : > { %v510_v61 = vor.u32 %v509_v3, %v508_v49  ;;  %2238 = vperm.xlu1 %8312, %v8947_v2   ;;  %v444_v31 = vadd.f32 %v428_v56, %v344_v33  ;;  %vm512_vm4 = vcmp.lt.s32.totalorder %v492_v21, 2 }
  0xb8   : > { %v516_v46 = vsel %vm514_vm2, %v504_v54, 2102212464  ;;  %v519_v60 = vsel %vm511_vm1, %v498_v51, %v501_v52  ;;  %v523_v45 = vsel %vm511_vm1, %v501_v52, %v504_v54  ;;  %v520_v50 = vsel %vm514_vm2, %v507_v59, 920167782 }
  0xb9   : > { %v524_v27 = vsel %vm514_vm2, %v510_v61, 1326507024  ;;  %v515_v25 = vsel %vm511_vm1, %v495_v23, %v498_v51  ;;  %v521_v34 = vsel %vm513_vm3, %v504_v54, %v520_v50  ;;  %v517_v37 = vsel %vm513_vm3, %v501_v52, %v516_v46 }
  0xba   : > { %v525_v36 = vsel %vm513_vm3, %v507_v59, %v524_v27  ;;  %v522_v41 = vsel %vm512_vm4, %v519_v60, %v521_v34  ;;  %v9158_v2 = vadd.f32 %v9104_v40, %v444_v31  ;;  %v343_v46 = vadd.f32 %v327_v63, %v243_v62 }
  0xbb   : > { %v526_v42 = vsel %vm512_vm4, %v523_v45, %v525_v36  ;;  %8314 = vset.pattern.permute.xlu1 %v12956_v16  ;;  %v364_v0 = vpop.permute.xlu0 %363  ;;  %v9166_v33 = vmul.u32.u64.low %v9134_v1, %v522_v41  ;;  %v9167_v23 = vmul.u32.u64.high %v9134_v1, %v522_v41, %v9166_v33  ;;  %v518_v51 = vsel %vm512_vm4, %v515_v25, %v517_v37 }
  0xbc   : > { %v9162_v47 = vmul.u32.u64.low %v9134_v1, %v526_v42  ;;  %v9163_v49 = vmul.u32.u64.high %v9134_v1, %v526_v42, %v9162_v47  ;;  %2158 = vperm.xlu1 %8314, %v8968_v7   ;;  %v12943_v45 = vand.u32 2147483647, %v9158_v2  ;;  %v688_v50 = vand.u32 2139095040, %v9158_v2 }
  0xbd   : > { %v427_v3 = vmul.f32 %v9095_v35, %v364_v0  ;;  %v537_v56 = vadd.s32 1, %v9167_v23  ;;  %v534_v7 = vmul.u32 %v9134_v1, %v518_v51  ;;  %v245_v27 = vmul.f32 %v9089_v30, %v9100_v38 }
  0xbe   : > { %v689_v52 = vshrl.u32 %v688_v50, 23  ;;  %vm536_vm5 = vc.u32 %v9163_v49, %v9166_v33  ;;  %v692_v63 = vand.u32 8388607, %v12943_v45  ;;  %v329_v31 = vmul.f32 %v9085_v28, %v9125_v55  ;;  %v9215_v45 = vpop.permute.xlu1 %180 }
  0xbf   : > { %v443_v54 = vadd.f32 %v427_v3, %v343_v46  ;;  %v538_v21 = vsel %vm536_vm5, %v537_v56, %v9167_v23  ;;  %v372_v36 = vpop.permute.xlu0 %371 }
  0xc0   : > { %2162 = vperm.xlu1 %8314, %v8959_v4   ;;  %v7008_v62 = vadd.s32 4294967169, %v689_v52  ;;  %v9186_v61 = vadd.s32 %v538_v21, %v534_v7  ;;  %v693_v34 = vor.u32 8388608, %v692_v63  ;;  %v345_v0 = vadd.f32 %v329_v31, %v245_v27 }
  0xc1   : > { %v9183_v59 = vadd.f32 %v9104_v40, %v443_v54  ;;  %v429_v38 = vmul.f32 %v9095_v35, %v372_v36  ;;  %v13078_v63 = vmov 920167782  }
  0xc2   : > { %v695_v60 = vadd.s32 1, %v7008_v62  ;;  %v540_v25 = vadd.s32 536870912, %v9186_v61  ;;  %v9199_v23 = vshll.u32 %v693_v34, 8 }
  0xc3   : > { %13076 = vst [vmem:[#allocation7_spill] sm:$0xff] %v9183_v59  ;;  %v585_v1 = vand.u32 2139095040, %v9183_v59  ;;  %v12950_v46 = vand.u32 2147483647, %v9183_v59  ;;  %v445_v34 = vadd.f32 %v429_v38, %v345_v0 }
  0xc4   : > { %8316 = vset.pattern.permute.xlu1 %v12951_v17  ;;  %vm696_vm6 = vcmp.gt.s32.totalorder %v695_v60, 0  ;;  %v9197_v47 = vshrl.u32 %v540_v25, 30 }
  0xc5   : > { %2246 = vperm.xlu1 %8316, %v8959_v4   ;;  %v697_v37 = vsel %vm696_vm6, %v695_v60, 0  ;;  %v586_v41 = vshrl.u32 %v585_v1, 23  ;;  %v13079_v60 = vmov 1326507024  }
  0xc6   : > { %v699_v42 = vand.u32 31, %v697_v37  ;;  %13077 = vst [vmem:[#allocation8_spill] sm:$0xff] %v9197_v47  ;;  %v698_v50 = vshrl.u32 %v697_v37, 5  ;;  %v542_v31 = vshll.u32 %v9197_v47, 30 }
  0xc7   : > { %v7004_v51 = vadd.s32 4294967169, %v586_v41 }
  0xc8   : > { %v700_v55 = vsub.s32 32, %v699_v42  ;;  %v702_v3 = vshll.u32 %v12953_v26, %v699_v42  ;;  %v705_v4 = vshll.u32 %v12948_v29, %v699_v42  ;;  %v708_v56 = vshll.u32 %v12946_v32, %v699_v42 }
  0xc9   : > { %2250 = vperm.xlu1 %8316, %v8998_v13   ;;  %v711_v7 = vshll.u32 %v12944_v39, %v699_v42  ;;  %v714_v13 = vshll.u32 %v13078_v63, %v699_v42  ;;  %vm717_vm7 = vcmp.lt.s32.totalorder %v698_v50, 1  ;;  %vm719_vm8 = vcmp.lt.s32.totalorder %v698_v50, 3 }
  0xca   : > { %v703_v52 = vshrl.u32 %v12948_v29, %v700_v55  ;;  %v706_v54 = vshrl.u32 %v12946_v32, %v700_v55  ;;  %v709_v62 = vshrl.u32 %v12944_v39, %v700_v55  ;;  %v712_v21 = vshrl.u32 %v13078_v63, %v700_v55 }
  0xcb   : > { %v715_v27 = vshrl.u32 %v13079_v60, %v700_v55  ;;  %vm720_vm9 = vcmp.lt.s32.totalorder %v698_v50, 4  ;;  %v592_v39 = vadd.s32 1, %v7004_v51  ;;  %v701_v38 = vshrl.u32 %v12953_v26, %v700_v55 }
  0xcc   : > { %v704_v1 = vor.u32 %v703_v52, %v702_v3  ;;  %v707_v25 = vor.u32 %v706_v54, %v705_v4  ;;  %v710_v36 = vor.u32 %v709_v62, %v708_v56  ;;  %v713_v37 = vor.u32 %v712_v21, %v711_v7 }
  0xcd   : > { %8317 = vset.pattern.permute.xlu1 %v12956_v16  ;;  %v716_v41 = vor.u32 %v715_v27, %v714_v13  ;;  %vm718_vm10 = vcmp.lt.s32.totalorder %v698_v50, 2  ;;  %vm593_vm11 = vcmp.gt.s32.totalorder %v592_v39, 0  ;;  %v589_v21 = vand.u32 8388607, %v12950_v46  ;;  %v9239_v27 = vpop.permute.xlu1 %275 }
  0xce   : > { %2170 = vperm.xlu1 %8317, %v8965_v6   ;;  %v725_v42 = vsel %vm717_vm7, %v704_v1, %v707_v25  ;;  %v722_v32 = vsel %vm720_vm9, %v710_v36, 2102212464  ;;  %v726_v29 = vsel %vm720_vm9, %v713_v37, 920167782  ;;  %v729_v3 = vsel %vm717_vm7, %v707_v25, %v710_v36 }
  0xcf   : > { %v730_v0 = vsel %vm720_vm9, %v716_v41, 1326507024  ;;  %v727_v4 = vsel %vm719_vm8, %v710_v36, %v726_v29  ;;  %v721_v51 = vsel %vm717_vm7, %v701_v38, %v704_v1  ;;  %v723_v56 = vsel %vm719_vm8, %v707_v25, %v722_v32 }
  0xd0   : > { %v731_v52 = vsel %vm719_vm8, %v713_v37, %v730_v0  ;;  %v728_v54 = vsel %vm718_vm10, %v725_v42, %v727_v4  ;;  %v594_v13 = vsel %vm593_vm11, %v592_v39, 0  ;;  %v9242_v36 = vsub.s32 %v9186_v61, %v542_v31 }
  0xd1   : > { %v732_v6 = vsel %vm718_vm10, %v729_v3, %v731_v52  ;;  %v9233_v55 = vmul.u32.u64.low %v9199_v23, %v728_v54  ;;  %v9234_v29 = vmul.u32.u64.high %v9199_v23, %v728_v54, %v9233_v55  ;;  %v596_v1 = vand.u32 31, %v594_v13  ;;  %v280_v52 = vpop.permute.xlu1 %279 }
  0xd2   : > { %2174 = vperm.xlu1 %8317, %v9013_v14   ;;  %v9229_v7 = vmul.u32.u64.low %v9199_v23, %v732_v6  ;;  %v9230_v62 = vmul.u32.u64.high %v9199_v23, %v732_v6, %v9229_v7  ;;  %v9245_v32 = vadd.f32 %v9104_v40, %v445_v34  ;;  %v724_v25 = vsel %vm718_vm10, %v721_v51, %v723_v56 }
  0xd3   : > { %v743_v39 = vadd.s32 1, %v9234_v29  ;;  %v590_v37 = vor.u32 8388608, %v589_v21  ;;  %v597_v41 = vsub.s32 32, %v596_v1  ;;  %v545_v61 = vsub.s32 0, %v9242_v36 }
  0xd4   : > { %13080 = vst [vmem:[#allocation9_spill] sm:$0xff] %v9245_v32  ;;  %vm742_vm12 = vc.u32 %v9230_v62, %v9233_v55  ;;  %v740_v31 = vmul.u32 %v9199_v23, %v724_v25  ;;  %v599_v34 = vshll.u32 %v12953_v26, %v596_v1  ;;  %v791_v50 = vand.u32 2139095040, %v9245_v32 }
  0xd5   : > { %v744_v42 = vsel %vm742_vm12, %v743_v39, %v9234_v29  ;;  %v13081_v3 = vmov 2475754826   ;;  %v13082_v38 = vmov 2131351028   ;;  %v595_v6 = vshrl.u32 %v594_v13, 5 }
  0xd6   : > { %8318 = vset.pattern.permute.xlu1 %v12951_v17  ;;  %v600_v0 = vshrl.u32 %v13081_v3, %v597_v41  ;;  %v603_v4 = vshrl.u32 %v13082_v38, %v597_v41  ;;  %v745_v54 = vadd.s32 %v744_v42, %v740_v31  ;;  %v605_v51 = vshll.u32 %v13082_v38, %v596_v1 }
  0xd7   : > { %2258 = vperm.xlu1 %8318, %v9013_v14   ;;  %v602_v14 = vshll.u32 %v13081_v3, %v596_v1  ;;  %v13083_v56 = vmov 2102212464   ;;  %v609_v29 = vshrl.u32 %v13078_v63, %v597_v41  ;;  %v247_v39 = vmul.f32 %v9089_v30, %v9108_v43 }
  0xd8   : > { %v606_v7 = vshrl.u32 %v13083_v56, %v597_v41  ;;  %v601_v23 = vor.u32 %v600_v0, %v599_v34  ;;  %v608_v25 = vshll.u32 %v13083_v56, %v596_v1  ;;  %v746_v46 = vadd.s32 536870912, %v745_v54 }
  0xd9   : > { %v604_v21 = vor.u32 %v603_v4, %v602_v14  ;;  %v331_v31 = vmul.f32 %v9085_v28, %v280_v52  ;;  %v7001_v13 = vmin.u32 %v545_v61, %v9242_v36  ;;  %v611_v26 = vshll.u32 %v13078_v63, %v596_v1 }
  0xda   : > { %v607_v17 = vor.u32 %v606_v7, %v605_v51  ;;  %v610_v42 = vor.u32 %v609_v29, %v608_v25  ;;  %v9272_v34 = vshrl.u32 %v746_v46, 30  ;;  %vm614_vm13 = vcmp.lt.s32.totalorder %v595_v6, 1  ;;  %v380_v29 = vpop.permute.xlu0 %379 }
  0xdb   : > { %2262 = vperm.xlu1 %8318, %v8973_v8   ;;  %v612_v8 = vshrl.u32 %v13079_v60, %v597_v41  ;;  %v630_v0 = vshll.u32 %v590_v37, 8  ;;  %v792_v14 = vshrl.u32 %v791_v50, 23  ;;  %v13085_v4 = vmov 683565275  }
  0xdc   : > { %13084 = vst [vmem:[#allocation10_spill] sm:$0xff] %v9272_v34  ;;  %v598_v43 = vshrl.u32 %v13085_v4, %v597_v41  ;;  %vm617_vm14 = vcmp.lt.s32.totalorder %v595_v6, 4  ;;  %v622_v52 = vsel %vm614_vm13, %v601_v23, %v604_v21  ;;  %v748_v61 = vshll.u32 %v9272_v34, 30 }
  0xdd   : > { %v613_v22 = vor.u32 %v612_v8, %v611_v26  ;;  %vm616_vm15 = vcmp.lt.s32.totalorder %v595_v6, 3  ;;  %v619_v1 = vsel %vm617_vm14, %v607_v17, 2102212464  ;;  %v623_v51 = vsel %vm617_vm14, %v610_v42, 920167782 }
  0xde   : > { %vm615_vm0 = vcmp.lt.s32.totalorder %v595_v6, 2  ;;  %v624_v46 = vsel %vm616_vm15, %v607_v17, %v623_v51  ;;  %v626_v37 = vsel %vm614_vm13, %v604_v21, %v607_v17  ;;  %v547_v7 = vclz %v7001_v13 }
  0xdf   : > { %8319 = vset.pattern.permute.xlu1 %v12956_v16  ;;  %v627_v50 = vsel %vm617_vm14, %v613_v22, 1326507024  ;;  %v9280_v25 = vsub.s32 %v745_v54, %v748_v61  ;;  %v618_v26 = vsel %vm614_vm13, %v598_v43, %v601_v23  ;;  %v625_v41 = vsel %vm615_vm0, %v622_v52, %v624_v46  ;;  %v376_v52 = vpop.permute.xlu1 %375 }
  0xe0   : > { %2182 = vperm.xlu1 %8319, %v9028_v15   ;;  %v620_v8 = vsel %vm616_vm15, %v604_v21, %v619_v1  ;;  %v628_v15 = vsel %vm616_vm15, %v610_v42, %v627_v50  ;;  %v9284_v16 = vmul.u32.u64.low %v630_v0, %v625_v41  ;;  %v9285_v34 = vmul.u32.u64.high %v630_v0, %v625_v41, %v9284_v16 }
  0xe1   : > { %v751_v51 = vsub.s32 0, %v9280_v25  ;;  %v629_v17 = vsel %vm615_vm0, %v626_v37, %v628_v15  ;;  %v7012_v22 = vadd.s32 4294967169, %v792_v14  ;;  %v347_v23 = vadd.f32 %v331_v31, %v247_v39 }
  0xe2   : > { %v9291_v54 = vmul.u32.u64.low %v630_v0, %v629_v17  ;;  %v9292_v13 = vmul.u32.u64.high %v630_v0, %v629_v17, %v9291_v54  ;;  %v431_v43 = vmul.f32 %v9095_v35, %v380_v29  ;;  %v7002_v21 = vadd.s32 4294967294, %v547_v7 }
  0xe3   : > { %v7009_v42 = vmin.u32 %v751_v51, %v9280_v25  ;;  %v621_v61 = vsel %vm615_vm0, %v618_v26, %v620_v8  ;;  %v798_v1 = vadd.s32 1, %v7012_v22  ;;  %v640_v46 = vadd.s32 1, %v9285_v34 }
  0xe4   : > { %2186 = vperm.xlu1 %8319, %v8978_v9   ;;  %v330_v50 = vmul.f32 %v9085_v28, %v9239_v27  ;;  %v13086_v37 = vmov 1   ;;  %v246_v14 = vmul.f32 %v9089_v30, %v9215_v45  ;;  %v12960_v39 = vand.u32 2147483647, %v9245_v32 }
  0xe5   : > { %vm799_vm1 = vcmp.gt.s32.totalorder %v798_v1, 0  ;;  %v430_v31 = vmul.f32 %v9095_v35, %v376_v52  ;;  %v637_v6 = vmul.u32 %v630_v0, %v621_v61  ;;  %vm639_vm2 = vc.u32 %v9292_v13, %v9284_v16 }
  0xe6   : > { %v800_v7 = vsel %vm799_vm1, %v798_v1, 0  ;;  %v447_v26 = vadd.f32 %v431_v43, %v347_v23  ;;  %vm7003_vm3 = vcmp.lt.s32.totalorder %v7002_v21, 0  ;;  %v753_v27 = vclz %v7009_v42 }
  0xe7   : > { %v641_v41 = vsel %vm639_vm2, %v640_v46, %v9285_v34  ;;  %v802_v29 = vand.u32 31, %v800_v7  ;;  %v346_v45 = vadd.f32 %v330_v50, %v246_v14  ;;  %v795_v15 = vand.u32 8388607, %v12960_v39 }
  0xe8   : > { %8320 = vset.pattern.permute.xlu1 %v13086_v37  ;;  %v642_v8 = vadd.s32 %v641_v41, %v637_v6  ;;  %v9315_v17 = vadd.f32 %v9104_v40, %v447_v26  ;;  %v7010_v54 = vadd.s32 4294967294, %v753_v27  ;;  %v801_v1 = vshrl.u32 %v800_v7, 5 }
  0xe9   : > { %2270 = vperm.xlu1 %8320, %v8978_v9   ;;  %v803_v51 = vsub.s32 32, %v802_v29  ;;  %v9312_v9 = vsel %vm7003_vm3, 0, %v7002_v21  ;;  %v446_v22 = vadd.f32 %v430_v31, %v346_v45  ;;  %v805_v23 = vshll.u32 %v13085_v4, %v802_v29 }
  0xea   : > { %v643_v0 = vadd.s32 536870912, %v642_v8  ;;  %13087 = vst [vmem:[#allocation11_spill] sm:$0xff] %v9315_v17  ;;  %v808_v34 = vshll.u32 %v13081_v3, %v802_v29  ;;  %v811_v43 = vshll.u32 %v13082_v38, %v802_v29  ;;  %v796_v61 = vor.u32 8388608, %v795_v15 }
  0xeb   : > { %v806_v42 = vshrl.u32 %v13081_v3, %v803_v51  ;;  %v812_v21 = vshrl.u32 %v13083_v56, %v803_v51  ;;  %v814_v46 = vshll.u32 %v13083_v56, %v802_v29  ;;  %v815_v50 = vshrl.u32 %v13078_v63, %v803_v51 }
  0xec   : > { %v9320_v52 = vshrl.u32 %v643_v0, 30  ;;  %v13089_v14 = vmov 0   ;;  %v997_v27 = vand.u32 2139095040, %v9315_v17  ;;  %vm7011_vm4 = vcmp.lt.s32.totalorder %v7010_v54, 0 }
  0xed   : > { %2274 = vperm.xlu1 %8320, %v9044_v18   ;;  %v809_v18 = vshrl.u32 %v13082_v38, %v803_v51  ;;  %v807_v31 = vor.u32 %v806_v42, %v805_v23  ;;  %v813_v26 = vor.u32 %v812_v21, %v811_v43  ;;  %v816_v41 = vor.u32 %v815_v50, %v814_v46 }
  0xee   : > { %13088 = vst [vmem:[#allocation12_spill] sm:$0xff] %v9320_v52  ;;  %v817_v45 = vshll.u32 %v13078_v63, %v802_v29  ;;  %v818_v15 = vshrl.u32 %v13079_v60, %v803_v51  ;;  %v555_v7 = vsub.s32 4294967266, %v9312_v9  ;;  %v645_v0 = vshll.u32 %v9320_v52, 30 }
  0xef   : > { %v810_v6 = vor.u32 %v809_v18, %v808_v34  ;;  %v9335_v39 = vadd.f32 %v9104_v40, %v446_v22  ;;  %vm820_vm5 = vcmp.lt.s32.totalorder %v801_v1, 1  ;;  %vm823_vm6 = vcmp.lt.s32.totalorder %v801_v1, 4 }
  0xf0   : > { %v819_v23 = vor.u32 %v818_v15, %v817_v45  ;;  %v836_v34 = vshll.u32 %v796_v61, 8  ;;  %v9337_v43 = vsel %vm7011_vm4, 0, %v7010_v54  ;;  %v998_v18 = vshrl.u32 %v997_v27, 23 }
  0xf1   : > { %8321 = vset.pattern.permute.xlu1 %v13089_v14  ;;  %13090 = vst [vmem:[#allocation13_spill] sm:$0xff] %v9335_v39  ;;  %v828_v42 = vsel %vm820_vm5, %v807_v31, %v810_v6  ;;  %v804_v29 = vshrl.u32 %v13085_v4, %v803_v51  ;;  %vm822_vm7 = vcmp.lt.s32.totalorder %v801_v1, 3  ;;  %v829_v21 = vsel %vm823_vm6, %v816_v41, 920167782 }
  0xf2   : > { %2194 = vperm.xlu1 %8321, %v8984_v10   ;;  %v825_v10 = vsel %vm823_vm6, %v813_v26, 2102212464  ;;  %v832_v46 = vsel %vm820_vm5, %v810_v6, %v813_v26  ;;  %v9343_v22 = vsub.s32 %v642_v8, %v645_v0  ;;  %vm821_vm8 = vcmp.lt.s32.totalorder %v801_v1, 2 }
  0xf3   : > { %v830_v50 = vsel %vm822_vm7, %v813_v26, %v829_v21  ;;  %v833_v45 = vsel %vm823_vm6, %v819_v23, 1326507024  ;;  %v824_v54 = vsel %vm820_vm5, %v804_v29, %v807_v31  ;;  %v826_v61 = vsel %vm822_vm7, %v810_v6, %v825_v10 }
  0xf4   : > { %v831_v15 = vsel %vm821_vm8, %v828_v42, %v830_v50  ;;  %v834_v52 = vsel %vm822_vm7, %v816_v41, %v833_v45  ;;  %v551_v27 = vsub.s32 32, %v9312_v9  ;;  %v556_v8 = vadd.s32 127, %v555_v7 }
  0xf5   : > { %v835_v32 = vsel %vm821_vm8, %v832_v46, %v834_v52  ;;  %v9349_v51 = vmul.u32.u64.low %v836_v34, %v831_v15  ;;  %v9350_v59 = vmul.u32.u64.high %v836_v34, %v831_v15, %v9349_v51  ;;  %v7020_v23 = vadd.s32 4294967169, %v998_v18  ;;  %v9374_v46 = vpop.permute.xlu1 %190 }
  0xf6   : > { %2198 = vperm.xlu1 %8321, %v9060_v19   ;;  %v9354_v0 = vmul.u32.u64.low %v836_v34, %v835_v32  ;;  %v9355_v26 = vmul.u32.u64.high %v836_v34, %v835_v32, %v9354_v0  ;;  %v535_v31 = vadd.s32 %v9166_v33, %v9163_v49  ;;  %v761_v6 = vsub.s32 4294967266, %v9337_v43 }
  0xf7   : > { %v827_v52 = vsel %vm821_vm8, %v824_v54, %v826_v61  ;;  %v12967_v41 = vand.u32 2147483647, %v9315_v17  ;;  %v648_v10 = vsub.s32 0, %v9343_v22  ;;  %v1004_v42 = vadd.s32 1, %v7020_v23 }
  0xf8   : > { %v894_v7 = vand.u32 2139095040, %v9335_v39  ;;  %v553_v29 = vshrl.u32 %v535_v31, %v551_v27  ;;  %v846_v32 = vadd.s32 1, %v9350_v59  ;;  %v557_v18 = vshll.u32 %v556_v8, 23 }
  0xf9   : > { %v843_v21 = vmul.u32 %v836_v34, %v827_v52  ;;  %vm845_vm9 = vc.u32 %v9355_v26, %v9349_v51  ;;  %vm1005_vm10 = vcmp.gt.s32.totalorder %v1004_v42, 0  ;;  %v762_v49 = vadd.s32 127, %v761_v6 }
  0xfa   : > { %8323 = vset.pattern.permute.xlu1 %v13086_v37  ;;  %v847_v33 = vsel %vm845_vm9, %v846_v32, %v9350_v59  ;;  %v1001_v1 = vand.u32 8388607, %v12967_v41  ;;  %v7005_v50 = vmin.u32 %v648_v10, %v9343_v22  ;;  %v1006_v45 = vsel %vm1005_vm10, %v1004_v42, 0  ;;  %v284_v42 = vpop.permute.xlu1 %283 }
  0xfb   : > { %2282 = vperm.xlu1 %8323, %v9060_v19   ;;  %v552_v19 = vshll.u32 %v9242_v36, %v9312_v9  ;;  %v9377_v34 = vadd.s32 %v847_v33, %v843_v21  ;;  %v895_v54 = vshrl.u32 %v894_v7, 23  ;;  %v1008_v61 = vand.u32 31, %v1006_v45 }
  0xfc   : > { %v9385_v36 = vmul.f32 %v9089_v30, %v9116_v48  ;;  %v741_v59 = vadd.s32 %v9233_v55, %v9230_v62  ;;  %v757_v9 = vsub.s32 32, %v9337_v43  ;;  %v1002_v8 = vor.u32 8388608, %v1001_v1 }
  0xfd   : > { %v9379_v15 = vor.u32 %v553_v29, %v552_v19  ;;  %v849_v27 = vadd.s32 536870912, %v9377_v34  ;;  %v1009_v0 = vsub.s32 32, %v1008_v61  ;;  %v763_v23 = vshll.u32 %v762_v49, 23 }
  0xfe   : > { %v650_v31 = vclz %v7005_v50  ;;  %v1007_v6 = vshrl.u32 %v1006_v45, 5  ;;  %v7016_v52 = vadd.s32 4294967169, %v895_v54  ;;  %v1011_v48 = vshll.u32 %v13085_v4, %v1008_v61 }
  0xff   : > { %2286 = vperm.xlu1 %8323, %v8989_v11   ;;  %v9381_v11 = vor.u32 4788187, %v557_v18  ;;  %v1012_v10 = vshrl.u32 %v13081_v3, %v1009_v0  ;;  %v1014_v62 = vshll.u32 %v13081_v3, %v1008_v61  ;;  %v1017_v55 = vshll.u32 %v13082_v38, %v1008_v61 }
 0x100   : > { %v1015_v7 = vshrl.u32 %v13082_v38, %v1009_v0  ;;  %v1018_v29 = vshrl.u32 %v13083_v56, %v1009_v0  ;;  %v1020_v32 = vshll.u32 %v13083_v56, %v1008_v61  ;;  %v9401_v18 = vshrl.u32 %v849_v27, 30 }
 0x101   : > { %v1013_v21 = vor.u32 %v1012_v10, %v1011_v48  ;;  %v1023_v19 = vshll.u32 %v13078_v63, %v1008_v61  ;;  %v1024_v49 = vshrl.u32 %v13079_v60, %v1009_v0  ;;  %v12971_v45 = vand.u32 2147483647, %v9335_v39 }
 0x102   : > { %13091 = vst [vmem:[#allocation14_spill] sm:$0xff] %v9401_v18  ;;  %v1016_v33 = vor.u32 %v1015_v7, %v1014_v62  ;;  %v1019_v1 = vor.u32 %v1018_v29, %v1017_v55  ;;  %v759_v54 = vshrl.u32 %v741_v59, %v757_v9  ;;  %v9407_v41 = vor.u32 4788187, %v763_v23  ;;  %v288_v55 = vpop.permute.xlu1 %287 }
 0x103   : > { %8324 = vset.pattern.permute.xlu1 %v13089_v14  ;;  %v9409_v14 = vadd.s32 4294967294, %v650_v31  ;;  %v1025_v17 = vor.u32 %v1024_v49, %v1023_v19  ;;  %vm1026_vm11 = vcmp.lt.s32.totalorder %v1007_v6, 1  ;;  %vm1029_vm12 = vcmp.lt.s32.totalorder %v1007_v6, 4 }
 0x104   : > { %2206 = vperm.xlu1 %8324, %v9064_v20   ;;  %v1021_v20 = vshrl.u32 %v13078_v63, %v1009_v0  ;;  %v1042_v27 = vshll.u32 %v1002_v8, 8  ;;  %v901_v48 = vadd.s32 1, %v7016_v52  ;;  %v851_v61 = vshll.u32 %v9401_v18, 30 }
 0x105   : > { %vm1028_vm13 = vcmp.lt.s32.totalorder %v1007_v6, 3  ;;  %v1034_v10 = vsel %vm1026_vm11, %v1013_v21, %v1016_v33  ;;  %vm1027_vm14 = vcmp.lt.s32.totalorder %v1007_v6, 2  ;;  %v1031_v59 = vsel %vm1029_vm12, %v1019_v1, 2102212464 }
 0x106   : > { %v1022_v50 = vor.u32 %v1021_v20, %v1020_v32  ;;  %v1038_v23 = vsel %vm1026_vm11, %v1016_v33, %v1019_v1  ;;  %v1010_v8 = vshrl.u32 %v13085_v4, %v1009_v0  ;;  %v1039_v52 = vsel %vm1029_vm12, %v1025_v17, 1326507024 }
 0x107   : > { %v898_v7 = vand.u32 8388607, %v12971_v45  ;;  %v333_v20 = vmul.f32 %v9085_v28, %v288_v55  ;;  %vm902_vm15 = vcmp.gt.s32.totalorder %v901_v48, 0  ;;  %v9434_v17 = vsub.s32 %v9377_v34, %v851_v61 }
 0x108   : > { %2210 = vperm.xlu1 %8324, %v8995_v12   ;;  %v1035_v62 = vsel %vm1029_vm12, %v1022_v50, 920167782  ;;  %v1030_v19 = vsel %vm1026_vm11, %v1010_v8, %v1013_v21  ;;  %v248_v34 = vmul.f32 %v9089_v30, %v9374_v46  ;;  %v388_v8 = vpop.permute.xlu0 %387  ;;  %vm7007_vm0 = vcmp.lt.s32.totalorder %v9409_v14, 0 }
 0x109   : > { %v1036_v9 = vsel %vm1028_vm13, %v1019_v1, %v1035_v62  ;;  %v758_v62 = vshll.u32 %v9280_v25, %v9337_v43  ;;  %v854_v25 = vsub.s32 0, %v9434_v17  ;;  %v899_v43 = vor.u32 8388608, %v898_v7 }
 0x10a   : > { %v1037_v31 = vsel %vm1027_vm14, %v1034_v10, %v1036_v9  ;;  %v349_v6 = vadd.f32 %v333_v20, %v9385_v36  ;;  %v384_v20 = vpop.permute.xlu1 %383  ;;  %vm481_vm6 = vcmp.lt.s32.totalorder %v9111_v44, 0  ;;  %vm687_vm9 = vcmp.lt.s32.totalorder %v9158_v2, 0 }
 0x10b   : > { %v9425_v29 = vmul.u32.u64.low %v1042_v27, %v1037_v31  ;;  %v9426_v32 = vmul.u32.u64.high %v1042_v27, %v1037_v31, %v9425_v29  ;;  %v9447_v61 = vor.u32 %v759_v54, %v758_v62 }
 0x10c   : > { %8326 = vset.pattern.permute.xlu1 %v13086_v37  ;;  %v1040_v37 = vsel %vm1028_vm13, %v1022_v50, %v1039_v52  ;;  %v903_v50 = vsel %vm902_vm15, %v901_v48, 0 }
 0x10d   : > { %2294 = vperm.xlu1 %8326, %v8995_v12   ;;  %v1032_v12 = vsel %vm1028_vm13, %v1016_v33, %v1031_v59  ;;  %v1041_v0 = vsel %vm1027_vm14, %v1038_v23, %v1040_v37  ;;  %v905_v55 = vand.u32 31, %v903_v50  ;;  %v1052_v59 = vadd.s32 1, %v9426_v32 }
 0x10e   : > { %v9436_v49 = vmul.u32.u64.low %v1042_v27, %v1041_v0  ;;  %v9437_v1 = vmul.u32.u64.high %v1042_v27, %v1041_v0, %v9436_v49  ;;  %v1033_v33 = vsel %vm1027_vm14, %v1030_v19, %v1032_v12  ;;  %v332_v23 = vmul.f32 %v9085_v28, %v284_v42  ;;  %v9478_v21 = vpop.permute.xlu1 %200 }
 0x10f   : > { %v906_v48 = vsub.s32 32, %v905_v55  ;;  %v1049_v31 = vmul.u32 %v1042_v27, %v1033_v33  ;;  %v908_v42 = vshll.u32 %v13085_v4, %v905_v55  ;;  %v911_v37 = vshll.u32 %v13081_v3, %v905_v55 }
 0x110   : > { %vm1051_vm1 = vc.u32 %v9437_v1, %v9425_v29  ;;  %v433_v19 = vmul.f32 %v9095_v35, %v388_v8  ;;  %v904_v7 = vshrl.u32 %v903_v50, 5  ;;  %v914_v36 = vshll.u32 %v13082_v38, %v905_v55 }
 0x111   : > { %v909_v46 = vshrl.u32 %v13081_v3, %v906_v48  ;;  %v912_v54 = vshrl.u32 %v13082_v38, %v906_v48  ;;  %v1053_v52 = vsel %vm1051_vm1, %v1052_v59, %v9426_v32  ;;  %v915_v27 = vshrl.u32 %v13083_v56, %v906_v48 }
 0x112   : > { %v1054_v12 = vadd.s32 %v1053_v52, %v1049_v31  ;;  %v917_v62 = vshll.u32 %v13083_v56, %v905_v55  ;;  %v918_v33 = vshrl.u32 %v13078_v63, %v906_v48  ;;  %v920_v45 = vshll.u32 %v13078_v63, %v905_v55 }
 0x113   : > { %v910_v0 = vor.u32 %v909_v46, %v908_v42  ;;  %v913_v49 = vor.u32 %v912_v54, %v911_v37  ;;  %v916_v59 = vor.u32 %v915_v27, %v914_v36  ;;  %v921_v9 = vshrl.u32 %v13079_v60, %v906_v48 }
 0x114   : > { %v1055_v32 = vadd.s32 536870912, %v1054_v12  ;;  %v9471_v50 = vsel %vm7007_vm0, 0, %v9409_v14  ;;  %v7013_v8 = vmin.u32 %v854_v25, %v9434_v17  ;;  %v919_v31 = vor.u32 %v918_v33, %v917_v62 }
 0x115   : > { %v939_v46 = vshll.u32 %v899_v43, 8  ;;  %v922_v52 = vor.u32 %v921_v9, %v920_v45  ;;  %vm923_vm2 = vcmp.lt.s32.totalorder %v904_v7, 1  ;;  %v449_v42 = vadd.f32 %v433_v19, %v349_v6 }
 0x116   : > { %v9474_v54 = vshrl.u32 %v1055_v32, 30  ;;  %v907_v37 = vshrl.u32 %v13085_v4, %v906_v48  ;;  %vm926_vm3 = vcmp.lt.s32.totalorder %v904_v7, 4  ;;  %v931_v55 = vsel %vm923_vm2, %v910_v0, %v913_v49 }
 0x117   : > { %v432_v36 = vmul.f32 %v9095_v35, %v384_v20  ;;  %vm925_vm4 = vcmp.lt.s32.totalorder %v904_v7, 3  ;;  %v928_v27 = vsel %vm926_vm3, %v916_v59, 2102212464  ;;  %v932_v10 = vsel %vm926_vm3, %v919_v31, 920167782 }
 0x118   : > { %13092 = vst [vmem:[#allocation15_spill] sm:$0xff] %v9474_v54  ;;  %v935_v14 = vsel %vm923_vm2, %v913_v49, %v916_v59  ;;  %vm924_vm5 = vcmp.lt.s32.totalorder %v904_v7, 2  ;;  %v927_v25 = vsel %vm923_vm2, %v907_v37, %v910_v0  ;;  %v933_v43 = vsel %vm925_vm4, %v916_v59, %v932_v10 }
 0x119   : > { %v936_v62 = vsel %vm926_vm3, %v922_v52, 1326507024  ;;  %v1057_v45 = vshll.u32 %v9474_v54, 30  ;;  %v929_v9 = vsel %vm925_vm4, %v913_v49, %v928_v27  ;;  %v934_v6 = vsel %vm924_vm5, %v931_v55, %v933_v43 }
 0x11a   : > { %v937_v19 = vsel %vm925_vm4, %v919_v31, %v936_v62  ;;  %v9481_v33 = vmul.u32.u64.low %v939_v46, %v934_v6  ;;  %v9482_v32 = vmul.u32.u64.high %v939_v46, %v934_v6, %v9481_v33  ;;  %v348_v20 = vadd.f32 %v332_v23, %v248_v34 }
 0x11b   : > { %v938_v48 = vsel %vm924_vm5, %v935_v14, %v937_v19  ;;  %v767_v18 = vcvt.s32.f32 %v9447_v61  ;;  %v856_v39 = vclz %v7013_v8  ;;  %v658_v10 = vsub.s32 4294967266, %v9471_v50  ;;  %v292_v8 = vpop.permute.xlu1 %291 }
 0x11c   : > { %v9486_v24 = vmul.u32.u64.low %v939_v46, %v938_v48  ;;  %v9487_v47 = vmul.u32.u64.high %v939_v46, %v938_v48, %v9486_v24  ;;  %v930_v7 = vsel %vm924_vm5, %v927_v25, %v929_v9  ;;  %v9491_v0 = vadd.f32 %v9104_v40, %v449_v42 }
 0x11d   : > { %v448_v49 = vadd.f32 %v432_v36, %v348_v20  ;;  %v13094_v59 = vand.u32 2147483647, %v9381_v11  ;;  %v13095_v31 = vcvt.s32.f32 %v9379_v15  ;;  %v13096_v34 = vand.u32 2147483647, %v9407_v41 }
 0x11e   : > { %13093 = vst [vmem:[#allocation16_spill] sm:$0xff] %v9491_v0  ;;  %v9499_v61 = vsub.s32 %v1054_v12, %v1057_v45  ;;  %v251_v24 = vmul.f32 %v9089_v30, %v9122_v53  ;;  %v949_v42 = vadd.s32 1, %v9482_v32  ;;  %v1203_v37 = vand.u32 2139095040, %v9491_v0 }
 0x11f   : > { %v562_v52 = vmul.f32 %v13095_v31, %v13094_v59  ;;  %v768_v23 = vmul.f32 %v767_v18, %v13096_v34  ;;  %v7014_v55 = vadd.s32 4294967294, %v856_v39  ;;  %v946_v11 = vmul.u32 %v939_v46, %v930_v7  ;;  %v296_v19 = vpop.permute.xlu1 %295 }
 0x120   : > { %vm948_vm7 = vc.u32 %v9487_v47, %v9481_v33  ;;  %v9509_v41 = vadd.f32 %v9104_v40, %v448_v49  ;;  %v654_v15 = vsub.s32 32, %v9471_v50  ;;  %v659_v18 = vadd.s32 127, %v658_v10  ;;  %v396_v49 = vpop.permute.xlu0 %395 }
 0x121   : > { %v950_v12 = vsel %vm948_vm7, %v949_v42, %v9482_v32  ;;  %v1204_v36 = vshrl.u32 %v1203_v37, 23  ;;  %v563_v27 = vxor.u32 2147483648, %v562_v52  ;;  %v769_v53 = vxor.u32 2147483648, %v768_v23 }
 0x122   : > { %13097 = vst [vmem:[#allocation17_spill] sm:$0xff] %v9509_v41  ;;  %v1060_v14 = vsub.s32 0, %v9499_v61  ;;  %v951_v25 = vadd.s32 %v950_v12, %v946_v11  ;;  %v9516_v39 = vmul.f32 %v9089_v30, %v9128_v57  ;;  %v9520_v46 = vmul.f32 %v9089_v30, %v9137_v5 }
 0x123   : > { %v638_v43 = vadd.s32 %v9284_v16, %v9292_v13  ;;  %v7028_v62 = vadd.s32 4294967169, %v1204_v36  ;;  %v9526_v45 = vmul.f32 %v9089_v30, %v9151_v58  ;;  %vm7015_vm8 = vcmp.lt.s32.totalorder %v7014_v55, 0 }
 0x124   : > { %v952_v9 = vadd.s32 536870912, %v951_v25  ;;  %v1100_v6 = vand.u32 2139095040, %v9509_v41  ;;  %v660_v48 = vshll.u32 %v659_v18, 23  ;;  %v9532_v5 = vsel %vm481_vm6, %v563_v27, %v562_v52 }
 0x125   : > { %13098 = vst [vmem:[#allocation18_spill] sm:$0xff] %v9526_v45  ;;  %v656_v57 = vshrl.u32 %v638_v43, %v654_v15  ;;  %v1210_v32 = vadd.s32 1, %v7028_v62  ;;  %v9536_v16 = vsel %vm687_vm9, %v769_v53, %v768_v23  ;;  %v655_v58 = vshll.u32 %v9343_v22, %v9471_v50 }
 0x126   : > { %13099 = vst [vmem:[#allocation19_spill] sm:$0xff] %v9536_v16  ;;  %v7021_v13 = vmin.u32 %v1060_v14, %v9499_v61  ;;  %v9541_v20 = vsel %vm7015_vm8, 0, %v7014_v55  ;;  %v12980_v10 = vand.u32 2147483647, %v9491_v0  ;;  %v335_v7 = vmul.f32 %v9085_v28, %v296_v19 }
 0x127   : > { %vm1211_vm10 = vcmp.gt.s32.totalorder %v1210_v32, 0  ;;  %v9547_v59 = vadd.s32 %v9349_v51, %v9355_v26  ;;  %v9549_v31 = vshrl.u32 %v952_v9, 30  ;;  %v1101_v34 = vshrl.u32 %v1100_v6, 23 }
 0x128   : > { %v1212_v52 = vsel %vm1211_vm10, %v1210_v32, 0  ;;  %v9551_v23 = vor.u32 %v656_v57, %v655_v58  ;;  %v9553_v22 = vor.u32 4788187, %v660_v48  ;;  %v250_v42 = vmul.f32 %v9089_v30, %v9478_v21 }
 0x129   : > { %13100 = vst [vmem:[#allocation20_spill] sm:$0xff] %v9549_v31  ;;  %v1214_v50 = vand.u32 31, %v1212_v52  ;;  %v1062_v55 = vclz %v7021_v13  ;;  %v334_v11 = vmul.f32 %v9085_v28, %v292_v8  ;;  %v435_v51 = vmul.f32 %v9095_v35, %v396_v49 }
 0x12a   : > { %v1207_v26 = vand.u32 8388607, %v12980_v10  ;;  %v351_v12 = vadd.f32 %v335_v7, %v251_v24  ;;  %v954_v36 = vshll.u32 %v9549_v31, 30  ;;  %v7024_v53 = vadd.s32 4294967169, %v1101_v34 }
 0x12b   : > { %v1215_v15 = vsub.s32 32, %v1214_v50  ;;  %v1217_v27 = vshll.u32 %v13085_v4, %v1214_v50  ;;  %v1220_v21 = vshll.u32 %v13081_v3, %v1214_v50  ;;  %v1223_v43 = vshll.u32 %v13082_v38, %v1214_v50 }
 0x12c   : > { %v1213_v9 = vshrl.u32 %v1212_v52, 5  ;;  %v1226_v6 = vshll.u32 %v13083_v56, %v1214_v50  ;;  %v1229_v19 = vshll.u32 %v13078_v63, %v1214_v50  ;;  %v864_v13 = vsub.s32 4294967266, %v9541_v20 }
 0x12d   : > { %v1218_v14 = vshrl.u32 %v13081_v3, %v1215_v15  ;;  %v1221_v8 = vshrl.u32 %v13082_v38, %v1215_v15  ;;  %v1224_v62 = vshrl.u32 %v13083_v56, %v1215_v15  ;;  %v1227_v24 = vshrl.u32 %v13078_v63, %v1215_v15 }
 0x12e   : > { %v1230_v58 = vshrl.u32 %v13079_v60, %v1215_v15  ;;  %v7022_v7 = vadd.s32 4294967294, %v1062_v55  ;;  %v350_v34 = vadd.f32 %v334_v11, %v250_v42  ;;  %v9575_v10 = vsub.s32 %v951_v25, %v954_v36 }
 0x12f   : > { %v1219_v57 = vor.u32 %v1218_v14, %v1217_v27  ;;  %v1222_v48 = vor.u32 %v1221_v8, %v1220_v21  ;;  %v1225_v32 = vor.u32 %v1224_v62, %v1223_v43  ;;  %v1228_v49 = vor.u32 %v1227_v24, %v1226_v6  ;;  %v392_v43 = vpop.permute.xlu1 %391 }
 0x130   : > { %v1208_v37 = vor.u32 8388608, %v1207_v26  ;;  %v1231_v52 = vor.u32 %v1230_v58, %v1229_v19  ;;  %v451_v18 = vadd.f32 %v435_v51, %v351_v12  ;;  %vm1232_vm11 = vcmp.lt.s32.totalorder %v1213_v9, 1 }
 0x131   : > { %vm1235_vm12 = vcmp.lt.s32.totalorder %v1213_v9, 4  ;;  %v13101_v31 = vand.u32 2147483647, %v9509_v41  ;;  %v1107_v27 = vadd.s32 1, %v7024_v53  ;;  %vm1234_vm13 = vcmp.lt.s32.totalorder %v1213_v9, 3 }
 0x132   : > { %v1237_v21 = vsel %vm1235_vm12, %v1225_v32, 2102212464  ;;  %v1240_v14 = vsel %vm1232_vm11, %v1219_v57, %v1222_v48  ;;  %v1241_v8 = vsel %vm1235_vm12, %v1228_v49, 920167782  ;;  %v1216_v55 = vshrl.u32 %v13085_v4, %v1215_v15 }
 0x133   : > { %v1104_v50 = vand.u32 8388607, %v13101_v31  ;;  %vm1233_vm14 = vcmp.lt.s32.totalorder %v1213_v9, 2  ;;  %v1242_v25 = vsel %vm1234_vm13, %v1225_v32, %v1241_v8  ;;  %v1244_v42 = vsel %vm1232_vm11, %v1222_v48, %v1225_v32 }
 0x134   : > { %v957_v11 = vsub.s32 0, %v9575_v10  ;;  %v1243_v51 = vsel %vm1233_vm14, %v1240_v14, %v1242_v25  ;;  %v1245_v26 = vsel %vm1235_vm12, %v1231_v52, 1326507024  ;;  %v1248_v12 = vshll.u32 %v1208_v37, 8 }
 0x135   : > { %v1236_v31 = vsel %vm1232_vm11, %v1216_v55, %v1219_v57  ;;  %v1238_v36 = vsel %vm1234_vm13, %v1222_v48, %v1237_v21  ;;  %v1246_v53 = vsel %vm1234_vm13, %v1228_v49, %v1245_v26  ;;  %v434_v62 = vmul.f32 %v9095_v35, %v392_v43 }
 0x136   : > { %v1247_v6 = vsel %vm1233_vm14, %v1244_v42, %v1246_v53  ;;  %v9587_v24 = vmul.u32.u64.low %v1248_v12, %v1243_v51  ;;  %v9588_v15 = vmul.u32.u64.high %v1248_v12, %v1243_v51, %v9587_v24  ;;  %vm1108_vm15 = vcmp.gt.s32.totalorder %v1107_v27, 0 }
 0x137   : > { %vm7023_vm0 = vcmp.lt.s32.totalorder %v7022_v7, 0  ;;  %v9591_v19 = vmul.u32.u64.low %v1248_v12, %v1247_v6  ;;  %v9592_v32 = vmul.u32.u64.high %v1248_v12, %v1247_v6, %v9591_v19  ;;  %v1105_v58 = vor.u32 8388608, %v1104_v50 }
 0x138   : > { %v7017_v37 = vmin.u32 %v957_v11, %v9575_v10  ;;  %v1239_v57 = vsel %vm1233_vm14, %v1236_v31, %v1238_v36  ;;  %v1109_v48 = vsel %vm1108_vm15, %v1107_v27, 0  ;;  %v9597_v49 = vadd.f32 %v9104_v40, %v451_v18 }
 0x139   : > { %v664_v21 = vcvt.s32.f32 %v9551_v23  ;;  %v1111_v8 = vand.u32 31, %v1109_v48  ;;  %v13103_v43 = vsub.s32 32, %v9541_v20  ;;  %v9608_v55 = vadd.s32 127, %v864_v13 }
 0x13a   : > { %13102 = vst [vmem:[#allocation21_spill] sm:$0xff] %v9597_v49  ;;  %v1258_v9 = vadd.s32 1, %v9588_v15  ;;  %v9611_v27 = vadd.f32 %v434_v62, %v350_v34  ;;  %v9614_v18 = vsel %vm7023_vm0, 0, %v7022_v7  ;;  %v1255_v25 = vmul.u32 %v1248_v12, %v1239_v57 }
 0x13b   : > { %v9606_v50 = vshrl.u32 %v9547_v59, %v13103_v43  ;;  %vm1257_vm1 = vc.u32 %v9592_v32, %v9587_v24  ;;  %v9618_v23 = vshll.u32 %v1105_v58, 8  ;;  %v959_v42 = vclz %v7017_v37 }
 0x13c   : > { %v1259_v11 = vsel %vm1257_vm1, %v1258_v9, %v9588_v15  ;;  %v1112_v59 = vsub.s32 32, %v1111_v8  ;;  %v1409_v13 = vand.u32 2139095040, %v9597_v49  ;;  %v1110_v26 = vshrl.u32 %v1109_v48, 5 }
 0x13d   : > { %v1260_v51 = vadd.s32 %v1259_v11, %v1255_v25  ;;  %v1114_v34 = vshll.u32 %v13085_v4, %v1111_v8  ;;  %v1117_v31 = vshll.u32 %v13081_v3, %v1111_v8  ;;  %v1120_v36 = vshll.u32 %v13082_v38, %v1111_v8 }
 0x13e   : > { %v1115_v7 = vshrl.u32 %v13081_v3, %v1112_v59  ;;  %v1118_v12 = vshrl.u32 %v13082_v38, %v1112_v59  ;;  %v1121_v53 = vshrl.u32 %v13083_v56, %v1112_v59  ;;  %v1123_v6 = vshll.u32 %v13083_v56, %v1111_v8 }
 0x13f   : > { %v1261_v62 = vadd.s32 536870912, %v1260_v51  ;;  %v1124_v15 = vshrl.u32 %v13078_v63, %v1112_v59  ;;  %v1126_v19 = vshll.u32 %v13078_v63, %v1111_v8  ;;  %v1127_v48 = vshrl.u32 %v13079_v60, %v1112_v59 }
 0x140   : > { %v1116_v58 = vor.u32 %v1115_v7, %v1114_v34  ;;  %v1119_v37 = vor.u32 %v1118_v12, %v1117_v31  ;;  %v1122_v57 = vor.u32 %v1121_v53, %v1120_v36  ;;  %v7018_v43 = vadd.s32 4294967294, %v959_v42 }
 0x141   : > { %v9632_v9 = vshrl.u32 %v1261_v62, 30  ;;  %v1125_v25 = vor.u32 %v1124_v15, %v1123_v6  ;;  %v1113_v14 = vshrl.u32 %v13085_v4, %v1112_v59  ;;  %v1128_v52 = vor.u32 %v1127_v48, %v1126_v19 }
 0x142   : > { %vm1132_vm2 = vcmp.lt.s32.totalorder %v1110_v26, 4  ;;  %v1410_v45 = vshrl.u32 %v1409_v13, 23  ;;  %vm1129_vm3 = vcmp.lt.s32.totalorder %v1110_v26, 1  ;;  %vm1130_vm4 = vcmp.lt.s32.totalorder %v1110_v26, 2 }
 0x143   : > { %13104 = vst [vmem:[#allocation22_spill] sm:$0xff] %v9632_v9  ;;  %v1263_v54 = vshll.u32 %v9632_v9, 30  ;;  %v1134_v8 = vsel %vm1132_vm2, %v1122_v57, 2102212464  ;;  %vm1131_vm5 = vcmp.lt.s32.totalorder %v1110_v26, 3  ;;  %v1137_v34 = vsel %vm1129_vm3, %v1116_v58, %v1119_v37 }
 0x144   : > { %v1138_v31 = vsel %vm1132_vm2, %v1125_v25, 920167782  ;;  %v1141_v7 = vsel %vm1129_vm3, %v1119_v37, %v1122_v57  ;;  %v1133_v12 = vsel %vm1129_vm3, %v1113_v14, %v1116_v58  ;;  %v1142_v53 = vsel %vm1132_vm2, %v1128_v52, 1326507024 }
 0x145   : > { %v9637_v42 = vsub.s32 %v1260_v51, %v1263_v54  ;;  %v1139_v36 = vsel %vm1131_vm5, %v1122_v57, %v1138_v31  ;;  %v1135_v62 = vsel %vm1131_vm5, %v1119_v37, %v1134_v8  ;;  %v1143_v6 = vsel %vm1131_vm5, %v1125_v25, %v1142_v53 }
 0x146   : > { %v1140_v59 = vsel %vm1130_vm4, %v1137_v34, %v1139_v36  ;;  %v7036_v15 = vadd.s32 4294967169, %v1410_v45  ;;  %vm7019_vm7 = vcmp.lt.s32.totalorder %v7018_v43, 0  ;;  %v1144_v13 = vsel %vm1130_vm4, %v1141_v7, %v1143_v6 }
 0x147   : > { %v9642_v19 = vmul.u32.u64.low %v9618_v23, %v1140_v59  ;;  %v9643_v48 = vmul.u32.u64.high %v9618_v23, %v1140_v59, %v9642_v19  ;;  %v1266_v11 = vsub.s32 0, %v9637_v42  ;;  %v13105_v51 = vand.u32 2147483647, %v9553_v22 }
 0x148   : > { %v9648_v54 = vmul.u32.u64.low %v9618_v23, %v1144_v13  ;;  %v9649_v14 = vmul.u32.u64.high %v9618_v23, %v1144_v13, %v9648_v54  ;;  %v1416_v52 = vadd.s32 1, %v7036_v15  ;;  %v866_v45 = vshll.u32 %v9608_v55, 23 }
 0x149   : > { %v9653_v58 = vmul.f32 %v664_v21, %v13105_v51  ;;  %v1050_v37 = vadd.s32 %v9425_v29, %v9437_v1  ;;  %v1136_v57 = vsel %vm1130_vm4, %v1133_v12, %v1135_v62  ;;  %v13106_v25 = vshll.u32 %v9434_v17, %v9541_v20 }
 0x14a   : > { %v1070_v34 = vsub.s32 4294967266, %v9614_v18  ;;  %v9666_v31 = vsel %vm7019_vm7, 0, %v7018_v43  ;;  %vm1417_vm8 = vcmp.gt.s32.totalorder %v1416_v52, 0  ;;  %v1155_v22 = vadd.s32 1, %v9643_v48 }
 0x14b   : > { %v9663_v8 = vor.u32 %v9606_v50, %v13106_v25  ;;  %v13107_v21 = vand.u32 2147483647, %v9597_v49  ;;  %v1418_v7 = vsel %vm1417_vm8, %v1416_v52, 0  ;;  %v9673_v29 = vadd.f32 %v9104_v40, %v9611_v27 }
 0x14c   : > { %v7029_v17 = vmin.u32 %v1266_v11, %v9637_v42  ;;  %v1152_v1 = vmul.u32 %v9618_v23, %v1136_v57  ;;  %vm1154_vm10 = vc.u32 %v9649_v14, %v9642_v19  ;;  %v1420_v20 = vand.u32 31, %v1418_v7 }
 0x14d   : > { %v1413_v55 = vand.u32 8388607, %v13107_v21  ;;  %13108 = vst [vmem:[#allocation23_spill] sm:$0xff] %v9673_v29  ;;  %v9679_v50 = vor.u32 4788187, %v866_v45  ;;  %v1066_v26 = vsub.s32 32, %v9614_v18  ;;  %v947_v43 = vadd.s32 %v9481_v33, %v9487_v47 }
 0x14e   : > { %v1156_v12 = vsel %vm1154_vm10, %v1155_v22, %v9643_v48  ;;  %v1067_v27 = vshll.u32 %v9499_v61, %v9614_v18  ;;  %v1071_v36 = vadd.s32 127, %v1070_v34  ;;  %v1421_v53 = vsub.s32 32, %v1420_v20 }
 0x14f   : > { %v1157_v11 = vadd.s32 %v1156_v12, %v1152_v1  ;;  %v963_v23 = vsub.s32 32, %v9666_v31  ;;  %v967_v62 = vsub.s32 4294967266, %v9666_v31  ;;  %v1414_v59 = vor.u32 8388608, %v1413_v55  ;;  %v9702_v55 = vpop.permute.xlu1 %210 }
 0x150   : > { %v1306_v6 = vand.u32 2139095040, %v9673_v29  ;;  %v1268_v15 = vclz %v7029_v17  ;;  %v1419_v54 = vshrl.u32 %v1418_v7, 5  ;;  %v1424_v47 = vshrl.u32 %v13081_v3, %v1421_v53 }
 0x151   : > { %v1158_v13 = vadd.s32 536870912, %v1157_v11  ;;  %v1423_v33 = vshll.u32 %v13085_v4, %v1420_v20  ;;  %v1426_v48 = vshll.u32 %v13081_v3, %v1420_v20  ;;  %v1427_v61 = vshrl.u32 %v13082_v38, %v1421_v53 }
 0x152   : > { %v1429_v18 = vshll.u32 %v13082_v38, %v1420_v20  ;;  %v1430_v51 = vshrl.u32 %v13083_v56, %v1421_v53  ;;  %v1432_v45 = vshll.u32 %v13083_v56, %v1420_v20  ;;  %v1433_v57 = vshrl.u32 %v13078_v63, %v1421_v53 }
 0x153   : > { %v9695_v52 = vshrl.u32 %v1158_v13, 30  ;;  %v1425_v25 = vor.u32 %v1424_v47, %v1423_v33  ;;  %v1428_v34 = vor.u32 %v1427_v61, %v1426_v48  ;;  %v1435_v22 = vshll.u32 %v13078_v63, %v1420_v20 }
 0x154   : > { %v1436_v21 = vshrl.u32 %v13079_v60, %v1421_v53  ;;  %v1068_v7 = vshrl.u32 %v1050_v37, %v1066_v26  ;;  %v1431_v1 = vor.u32 %v1430_v51, %v1429_v18  ;;  %v1434_v12 = vor.u32 %v1433_v57, %v1432_v45 }
 0x155   : > { %13109 = vst [vmem:[#allocation24_spill] sm:$0xff] %v9695_v52  ;;  %v1160_v17 = vshll.u32 %v9695_v52, 30  ;;  %v1072_v13 = vshll.u32 %v1071_v36, 23  ;;  %v965_v9 = vshrl.u32 %v947_v43, %v963_v23  ;;  %v1307_v41 = vshrl.u32 %v1306_v6, 23 }
 0x156   : > { %v1437_v49 = vor.u32 %v1436_v21, %v1435_v22  ;;  %v968_v0 = vadd.s32 127, %v967_v62  ;;  %vm1438_vm11 = vcmp.lt.s32.totalorder %v1419_v54, 1  ;;  %vm1441_vm12 = vcmp.lt.s32.totalorder %v1419_v54, 4  ;;  %v9710_v62 = vpop.permute.xlu1 %299 }
 0x157   : > { %v1454_v47 = vshll.u32 %v1414_v59, 8  ;;  %v7030_v33 = vadd.s32 4294967294, %v1268_v15  ;;  %v9705_v48 = vsub.s32 %v1157_v11, %v1160_v17  ;;  %v1443_v20 = vsel %vm1441_vm12, %v1431_v1, 2102212464 }
 0x158   : > { %v1446_v61 = vsel %vm1438_vm11, %v1425_v25, %v1428_v34  ;;  %v1422_v37 = vshrl.u32 %v13085_v4, %v1421_v53  ;;  %vm1440_vm13 = vcmp.lt.s32.totalorder %v1419_v54, 3  ;;  %v1447_v26 = vsel %vm1441_vm12, %v1434_v12, 920167782 }
 0x159   : > { %v1450_v18 = vsel %vm1438_vm11, %v1428_v34, %v1431_v1  ;;  %vm1439_vm14 = vcmp.lt.s32.totalorder %v1419_v54, 2  ;;  %v1448_v43 = vsel %vm1440_vm13, %v1431_v1, %v1447_v26  ;;  %v1451_v36 = vsel %vm1441_vm12, %v1437_v49, 1326507024 }
 0x15a   : > { %v7032_v23 = vadd.s32 4294967169, %v1307_v41  ;;  %v1442_v59 = vsel %vm1438_vm11, %v1422_v37, %v1425_v25  ;;  %v1444_v6 = vsel %vm1440_vm13, %v1428_v34, %v1443_v20  ;;  %v1449_v11 = vsel %vm1439_vm14, %v1446_v61, %v1448_v43 }
 0x15b   : > { %v1452_v15 = vsel %vm1440_vm13, %v1434_v12, %v1451_v36  ;;  %v1163_v51 = vsub.s32 0, %v9705_v48  ;;  %v9716_v45 = vmul.u32.u64.low %v1454_v47, %v1449_v11  ;;  %v9717_v57 = vmul.u32.u64.high %v1454_v47, %v1449_v11, %v9716_v45 }
 0x15c   : > { %v1453_v53 = vsel %vm1439_vm14, %v1450_v18, %v1452_v15  ;;  %v13110_v22 = vand.u32 2147483647, %v9111_v44  ;;  %v9726_v49 = vor.u32 %v1068_v7, %v1067_v27  ;;  %v964_v25 = vshll.u32 %v9575_v10, %v9666_v31 }
 0x15d   : > { %v9730_v34 = vmul.u32.u64.low %v1454_v47, %v1453_v53  ;;  %v9731_v21 = vmul.u32.u64.high %v1454_v47, %v1453_v53, %v9730_v34  ;;  %v9733_v17 = vor.u32 4788187, %v1072_v13  ;;  %vm7031_vm0 = vcmp.lt.s32.totalorder %v7030_v33, 0  ;;  %v304_v13 = vpop.permute.xlu1 %303 }
 0x15e   : > { %vm9722_vm15 = vcmp.le.f32.partialorder %v13110_v22, 0.7853982  ;;  %v1445_v1 = vsel %vm1439_vm14, %v1442_v59, %v1444_v6  ;;  %v1313_v12 = vadd.s32 1, %v7032_v23  ;;  %v9738_v37 = vor.u32 %v965_v9, %v964_v25 }
 0x15f   : > { %v969_v27 = vshll.u32 %v968_v0, 23  ;;  %v7025_v7 = vmin.u32 %v1163_v51, %v9705_v48  ;;  %v1464_v10 = vadd.s32 1, %v9717_v57  ;;  %v12993_v31 = vand.u32 2147483647, %v9673_v29 }
 0x160   : > { %vm1314_vm1 = vcmp.gt.s32.totalorder %v1313_v12, 0  ;;  %v9743_v26 = vsel %vm7031_vm0, 0, %v7030_v33  ;;  %v1461_v54 = vmul.u32 %v1454_v47, %v1445_v1  ;;  %vm1463_vm2 = vc.u32 %v9731_v21, %v9716_v45 }
 0x161   : > { %v1315_v18 = vsel %vm1314_vm1, %v1313_v12, 0  ;;  %v1465_v0 = vsel %vm1463_vm2, %v1464_v10, %v9717_v57  ;;  %v9750_v23 = vor.u32 4788187, %v969_v27  ;;  %v9754_v33 = vmul.f32 %v9085_v28, %v304_v13  ;;  %v400_v29 = vpop.permute.xlu1 %399 }
 0x162   : > { %v1317_v36 = vand.u32 31, %v1315_v18  ;;  %v1466_v6 = vadd.s32 %v1465_v0, %v1461_v54  ;;  %v1276_v47 = vsub.s32 4294967266, %v9743_v26  ;;  %v1165_v11 = vclz %v7025_v7 }
 0x163   : > { %v1310_v15 = vand.u32 8388607, %v12993_v31  ;;  %v567_v25 = vsel %vm9722_vm15, %v9111_v44, %v9532_v5  ;;  %v1316_v10 = vshrl.u32 %v1315_v18, 5  ;;  %v1272_v0 = vsub.s32 32, %v9743_v26 }
 0x164   : > { %v1318_v51 = vsub.s32 32, %v1317_v36  ;;  %v1467_v53 = vadd.s32 536870912, %v1466_v6  ;;  %v1320_v22 = vshll.u32 %v13085_v4, %v1317_v36  ;;  %v1323_v57 = vshll.u32 %v13081_v3, %v1317_v36 }
 0x165   : > { %v1326_v12 = vshll.u32 %v13082_v38, %v1317_v36  ;;  %v1329_v13 = vshll.u32 %v13083_v56, %v1317_v36  ;;  %v9774_v9 = vadd.s32 127, %v1276_v47  ;;  %v1311_v61 = vor.u32 8388608, %v1310_v15 }
 0x166   : > { %v1321_v34 = vshrl.u32 %v13081_v3, %v1318_v51  ;;  %v1324_v1 = vshrl.u32 %v13082_v38, %v1318_v51  ;;  %v1327_v27 = vshrl.u32 %v13083_v56, %v1318_v51  ;;  %v9769_v7 = vshrl.u32 %v1467_v53, 30 }
 0x167   : > { %v1330_v54 = vshrl.u32 %v13078_v63, %v1318_v51  ;;  %v7026_v52 = vadd.s32 4294967294, %v1165_v11  ;;  %v1332_v53 = vshll.u32 %v13078_v63, %v1317_v36  ;;  %v1333_v18 = vshrl.u32 %v13079_v60, %v1318_v51 }
 0x168   : > { %13113 = vst [vmem:[#allocation25_spill] sm:$0xff] %v9769_v7  ;;  %v1322_v31 = vor.u32 %v1321_v34, %v1320_v22  ;;  %v1325_v59 = vor.u32 %v1324_v1, %v1323_v57  ;;  %v1328_v5 = vor.u32 %v1327_v27, %v1326_v12  ;;  %v1469_v43 = vshll.u32 %v9769_v7, 30 }
 0x169   : > { %v1331_v20 = vor.u32 %v1330_v54, %v1329_v13  ;;  %8331 = vcosq.f32 %v567_v25  ;;  %vm1335_vm3 = vcmp.lt.s32.totalorder %v1316_v10, 1  ;;  %vm1337_vm4 = vcmp.lt.s32.totalorder %v1316_v10, 3 }
 0x16a   : > { %v9779_v16 = vsub.s32 %v1466_v6, %v1469_v43  ;;  %vm1338_vm5 = vcmp.lt.s32.totalorder %v1316_v10, 4  ;;  %v1334_v22 = vor.u32 %v1333_v18, %v1332_v53  ;;  %v1343_v47 = vsel %vm1335_vm3, %v1322_v31, %v1325_v59 }
 0x16b   : > { %v1340_v57 = vsel %vm1338_vm5, %v1328_v5, 2102212464  ;;  %v1344_v34 = vsel %vm1338_vm5, %v1331_v20, 920167782  ;;  %v1319_v11 = vshrl.u32 %v13085_v4, %v1318_v51  ;;  %vm1336_vm7 = vcmp.lt.s32.totalorder %v1316_v10, 2 }
 0x16c   : > { %v1472_v15 = vsub.s32 0, %v9779_v16  ;;  %v1345_v36 = vsel %vm1337_vm4, %v1328_v5, %v1344_v34  ;;  %v1347_v43 = vsel %vm1335_vm3, %v1325_v59, %v1328_v5  ;;  %v1348_v6 = vsel %vm1338_vm5, %v1334_v22, 1326507024 }
 0x16d   : > { %v1346_v1 = vsel %vm1336_vm7, %v1343_v47, %v1345_v36  ;;  %v1351_v12 = vshll.u32 %v1311_v61, 8  ;;  %vm7027_vm8 = vcmp.lt.s32.totalorder %v7026_v52, 0  ;;  %v1339_v27 = vsel %vm1335_vm3, %v1319_v11, %v1322_v31  ;;  %v9796_v47 = vpop.permute.xlu1 %220  ;;  %v13114_v31 = vld [vmem:[#allocation8_spill] sm:$0xff] }
 0x16e   : > { %v1341_v13 = vsel %vm1337_vm4, %v1325_v59, %v1340_v57  ;;  %v1349_v54 = vsel %vm1337_vm4, %v1331_v20, %v1348_v6  ;;  %v7037_v53 = vmin.u32 %v1472_v15, %v9779_v16  ;;  %v1256_v61 = vadd.s32 %v9587_v24, %v9592_v32  ;;  %v404_v57 = vpop.permute.xlu0 %403 }
 0x16f   : > { %v1350_v51 = vsel %vm1336_vm7, %v1347_v43, %v1349_v54  ;;  %v9792_v18 = vmul.u32.u64.low %v1351_v12, %v1346_v1  ;;  %v9793_v7 = vmul.u32.u64.high %v1351_v12, %v1346_v1, %v9792_v18  ;;  %v565_v59 = vsub.s32 4, %v13114_v31 }
 0x170   : > { %v9800_v5 = vmul.u32.u64.low %v1351_v12, %v1350_v51  ;;  %v9801_v22 = vmul.u32.u64.high %v1351_v12, %v1350_v51, %v9800_v5  ;;  %v971_v20 = vand.u32 2147483647, %v9750_v23  ;;  %v1342_v34 = vsel %vm1336_vm7, %v1339_v27, %v1341_v13 }
 0x171   : > { %v252_v15 = vmul.f32 %v9089_v30, %v9702_v55  ;;  %8333 = vsinq.f32 %v567_v25  ;;  %v1274_v11 = vshrl.u32 %v1256_v61, %v1272_v0  ;;  %v1278_v36 = vshll.u32 %v9774_v9, 23  ;;  %v9838_v13 = vpop.permute.xlu1 %307 }
 0x172   : > { %v9810_v1 = vsel %vm7027_vm8, 0, %v7026_v52  ;;  %v336_v24 = vmul.f32 %v9085_v28, %v9710_v62  ;;  %v1474_v32 = vclz %v7037_v53  ;;  %v1361_v43 = vadd.s32 1, %v9793_v7 }
 0x173   : > { %v353_v23 = vadd.f32 %v9754_v33, %v9516_v39  ;;  %v437_v10 = vmul.f32 %v9095_v35, %v404_v57  ;;  %v1358_v6 = vmul.u32 %v1351_v12, %v1342_v34  ;;  %vm1360_vm10 = vc.u32 %v9801_v22, %v9792_v18 }
 0x174   : > { %v566_v52 = vsel %vm481_vm6, %v565_v59, %v13114_v31  ;;  %v436_v55 = vmul.f32 %v9095_v35, %v400_v29  ;;  %v13115_v62 = vand.u32 2147483647, %v9679_v50  ;;  %v13116_v9 = vcvt.s32.f32 %v9663_v8 }
 0x175   : > { %v13117_v39 = vand.u32 2147483647, %v9733_v17  ;;  %v13118_v33 = vcvt.s32.f32 %v9726_v49  ;;  %v1173_v12 = vsub.s32 4294967266, %v9810_v1  ;;  %v1362_v27 = vsel %vm1360_vm10, %v1361_v43, %v9793_v7  ;;  %v312_v43 = vpop.permute.xlu1 %311 }
 0x176   : > { %v9828_v25 = vmul.f32 %v13116_v9, %v13115_v62  ;;  %v8332_v54 = vpop.eup %8331  ;;  %v13119_v29 = vcvt.s32.f32 %v9738_v37  ;;  %v1273_v8 = vshll.u32 %v9637_v42, %v9743_v26  ;;  %v1363_v53 = vadd.s32 %v1362_v27, %v1358_v6 }
 0x177   : > { %v9834_v0 = vmul.f32 %v13118_v33, %v13117_v39  ;;  %v352_v17 = vadd.f32 %v336_v24, %v252_v15  ;;  %v7038_v51 = vadd.s32 4294967294, %v1474_v32  ;;  %v568_v61 = vsel %vm9722_vm15, 0, %v566_v52 }
 0x178   : > { %v9842_v50 = vmul.f32 %v13119_v29, %v971_v20  ;;  %v453_v5 = vadd.f32 %v437_v10, %v353_v23  ;;  %v9849_v7 = vor.u32 %v1274_v11, %v1273_v8  ;;  %v9851_v31 = vor.u32 4788187, %v1278_v36  ;;  %v13127_v23 = vld [vmem:[#allocation19_spill] sm:$0xff] }
 0x179   : > { %v1364_v59 = vadd.s32 536870912, %v1363_v53  ;;  %v452_v37 = vadd.f32 %v436_v55, %v352_v17  ;;  %v1169_v20 = vsub.s32 32, %v9810_v1  ;;  %v1174_v42 = vadd.s32 127, %v1173_v12 }
 0x17a   : > { %v9856_v26 = vadd.f32 %v9104_v40, %v453_v5  ;;  %v572_v11 = vand.u32 3, %v568_v61  ;;  %v1153_v36 = vadd.s32 %v9642_v19, %v9649_v14  ;;  %vm7039_vm6 = vcmp.lt.s32.totalorder %v7038_v51, 0  ;;  %v2127_v19 = vld [vmem:[%s12935_s1 + $0x10] sm:$0xff] }
 0x17b   : > { %v9860_v15 = vshrl.u32 %v1364_v59, 30  ;;  %v578_v24 = vxor.u32 2147483648, %v8332_v54  ;;  %v9869_v52 = vadd.f32 %v9104_v40, %v452_v37  ;;  %v1170_v55 = vshll.u32 %v9705_v48, %v9810_v1  ;;  %v13121_v61 = vld [vmem:[#allocation6_spill] sm:$0xff] }
 0x17c   : > { %v1615_v32 = vand.u32 2139095040, %v9856_v26  ;;  %v1171_v62 = vshrl.u32 %v1153_v36, %v1169_v20  ;;  %v1175_v9 = vshll.u32 %v1174_v42, 23  ;;  %v9876_v33 = vsel %vm7039_vm6, 0, %v7038_v51 }
 0x17d   : > { %13120 = vst [vmem:[#allocation8_spill] sm:$0xff] %v9860_v15  ;;  %v1366_v6 = vshll.u32 %v9860_v15, 30  ;;  %vm577_vm11 = vcmp.eq.s32.totalorder %v572_v11, 2  ;;  %v339_v27 = vmul.f32 %v9085_v28, %v312_v43  ;;  %v13000_v17 = vand.u32 2147483647, %v9856_v26 }
 0x17e   : > { %v1616_v14 = vshrl.u32 %v1615_v32, 23  ;;  %v8334_v39 = vpop.eup %8333  ;;  %vm574_vm12 = vcmp.eq.s32.totalorder %v572_v11, 0  ;;  %v9884_v5 = vrot.slane %v2127_v19, %v13121_v61  ;;  %v1512_v59 = vand.u32 2139095040, %v9869_v52  ;;  %v412_v19 = vpop.permute.xlu0 %411 }
 0x17f   : > { %v9878_v12 = vsub.s32 %v1363_v53, %v1366_v6  ;;  %v575_v29 = vxor.u32 2147483648, %v8334_v39  ;;  %v579_v8 = vsel %vm577_vm11, %v578_v24, %v8334_v39  ;;  %vm571_vm13 = vweird.f32 %v9111_v44 }
 0x180   : > { %v7044_v48 = vadd.s32 4294967169, %v1616_v14  ;;  %vm573_vm14 = vcmp.lt.s32.totalorder %v572_v11, 2  ;;  %v1482_v37 = vsub.s32 4294967266, %v9876_v33  ;;  %v355_v36 = vadd.f32 %v339_v27, %v9520_v46 }
 0x181   : > { %v1369_v1 = vsub.s32 0, %v9878_v12  ;;  %v576_v53 = vsel %vm574_vm12, %v8332_v54, %v575_v29  ;;  %v1619_v32 = vand.u32 8388607, %v13000_v17  ;;  %v13001_v43 = vand.u32 2147483647, %v9869_v52 }
 0x182   : > { %v1622_v51 = vadd.s32 1, %v7044_v48  ;;  %v580_v42 = vsel %vm573_vm14, %v576_v53, %v579_v8  ;;  %v1513_v11 = vshrl.u32 %v1512_v59, 23  ;;  %v9897_v14 = vor.u32 %v1171_v62, %v1170_v55 }
 0x183   : > { %v7033_v20 = vmin.u32 %v1369_v1, %v9878_v12  ;;  %v581_v24 = vsel %vm571_vm13, nan, %v580_v42  ;;  %v9901_v39 = vadd.s32 %v9716_v45, %v9731_v21  ;;  %v439_v27 = vmul.f32 %v9095_v35, %v412_v19 }
 0x184   : > { %vm1623_vm15 = vcmp.gt.s32.totalorder %v1622_v51, 0  ;;  %v9895_v44 = vmul.f32 %v9884_v5, %v581_v24  ;;  %v9904_v29 = vor.u32 4788187, %v1175_v9  ;;  %v1478_v8 = vsub.s32 32, %v9876_v33 }
 0x185   : > { %v1371_v6 = vclz %v7033_v20  ;;  %v1624_v54 = vsel %vm1623_vm15, %v1622_v51, 0  ;;  %v9909_v48 = vadd.s32 %v9792_v18, %v9801_v22  ;;  %v9913_v55 = vadd.s32 127, %v1482_v37 }
 0x186   : > { %13122 = vst [vmem:[#allocation6_spill] sm:$0xff] %v9895_v44  ;;  %v1626_v46 = vand.u32 31, %v1624_v54  ;;  %2988 = vrot.lane.b32.xlu0 %v9895_v44, %s8868_s4  ;;  %v1516_v21 = vand.u32 8388607, %v13001_v43  ;;  %v455_v62 = vadd.f32 %v439_v27, %v355_v36  ;;  %v1620_v9 = vor.u32 8388608, %v1619_v32 }
 0x187   : > { %v7034_v1 = vadd.s32 4294967294, %v1371_v6  ;;  %v1625_v59 = vshrl.u32 %v1624_v54, 5  ;;  %v7040_v51 = vadd.s32 4294967169, %v1513_v11  ;;  %v13123_v43 = vand.u32 2147483647, %v9158_v2 }
 0x188   : > { %v1627_v45 = vsub.s32 32, %v1626_v46  ;;  %v1629_v53 = vshll.u32 %v13085_v4, %v1626_v46  ;;  %v1632_v22 = vshll.u32 %v13081_v3, %v1626_v46  ;;  %v1635_v42 = vshll.u32 %v13082_v38, %v1626_v46 }
 0x189   : > { %vm7035_vm0 = vcmp.lt.s32.totalorder %v7034_v1, 0  ;;  %v1638_v24 = vshll.u32 %v13083_v56, %v1626_v46  ;;  %v1641_v36 = vshll.u32 %v13078_v63, %v1626_v46  ;;  %v1660_v27 = vshll.u32 %v1620_v9, 8 }
 0x18a   : > { %v1630_v18 = vshrl.u32 %v13081_v3, %v1627_v45  ;;  %v1633_v20 = vshrl.u32 %v13082_v38, %v1627_v45  ;;  %v1636_v37 = vshrl.u32 %v13083_v56, %v1627_v45  ;;  %v1639_v54 = vshrl.u32 %v13078_v63, %v1627_v45 }
 0x18b   : > { %v1642_v11 = vshrl.u32 %v13079_v60, %v1627_v45  ;;  %v1517_v17 = vor.u32 8388608, %v1516_v21  ;;  %vm9929_vm1 = vcmp.le.f32.partialorder %v13123_v43, 0.7853982  ;;  %v1519_v49 = vadd.s32 1, %v7040_v51 }
 0x18c   : > { %v1631_v32 = vor.u32 %v1630_v18, %v1629_v53  ;;  %v1634_v6 = vor.u32 %v1633_v20, %v1632_v22  ;;  %v1637_v19 = vor.u32 %v1636_v37, %v1635_v42  ;;  %v1640_v34 = vor.u32 %v1639_v54, %v1638_v24 }
 0x18d   : > { %v1643_v57 = vor.u32 %v1642_v11, %v1641_v36  ;;  %v9934_v46 = vadd.f32 %v9104_v40, %v455_v62  ;;  %v9937_v53 = vsel %vm7035_vm0, 0, %v7034_v1  ;;  %v1628_v18 = vshrl.u32 %v13085_v4, %v1627_v45 }
 0x18e   : > { %vm1644_vm2 = vcmp.lt.s32.totalorder %v1625_v59, 1  ;;  %vm1647_vm3 = vcmp.lt.s32.totalorder %v1625_v59, 4  ;;  %vm1646_vm4 = vcmp.lt.s32.totalorder %v1625_v59, 3  ;;  %vm1645_vm5 = vcmp.lt.s32.totalorder %v1625_v59, 2 }
 0x18f   : > { %13126 = vst [vmem:[#allocation26_spill] sm:$0xff] %v9934_v46  ;;  %v1649_v21 = vsel %vm1647_vm3, %v1637_v19, 2102212464  ;;  %v1652_v9 = vsel %vm1644_vm2, %v1631_v32, %v1634_v6  ;;  %v1653_v43 = vsel %vm1647_vm3, %v1640_v34, 920167782  ;;  %v1648_v22 = vsel %vm1644_vm2, %v1628_v18, %v1631_v32 }
 0x190   : > { %v1654_v20 = vsel %vm1646_vm4, %v1637_v19, %v1653_v43  ;;  %v1656_v42 = vsel %vm1644_vm2, %v1634_v6, %v1637_v19  ;;  %v1650_v37 = vsel %vm1646_vm4, %v1634_v6, %v1649_v21  ;;  %v1657_v24 = vsel %vm1647_vm3, %v1643_v57, 1326507024 }
 0x191   : > { %v1655_v51 = vsel %vm1645_vm5, %v1652_v9, %v1654_v20  ;;  %vm1520_vm7 = vcmp.gt.s32.totalorder %v1519_v49, 0  ;;  %v1658_v62 = vsel %vm1646_vm4, %v1640_v34, %v1657_v24  ;;  %v1821_v45 = vand.u32 2139095040, %v9934_v46 }
 0x192   : > { %v9940_v36 = vmul.u32.u64.low %v1660_v27, %v1655_v51  ;;  %v9941_v1 = vmul.u32.u64.high %v1660_v27, %v1655_v51, %v9940_v36  ;;  %v1379_v54 = vsub.s32 4294967266, %v9937_v53  ;;  %v1659_v11 = vsel %vm1645_vm5, %v1656_v42, %v1658_v62 }
 0x193   : > { %v1521_v10 = vsel %vm1520_vm7, %v1519_v49, 0  ;;  %v9950_v59 = vsel %vm9929_vm1, %v9158_v2, %v13127_v23  ;;  %v1651_v32 = vsel %vm1645_vm5, %v1648_v22, %v1650_v37  ;;  %v9960_v18 = vshrl.u32 %v9901_v39, %v1478_v8 }
 0x194   : > { %v9952_v57 = vmul.u32.u64.low %v1660_v27, %v1659_v11  ;;  %v9953_v6 = vmul.u32.u64.high %v1660_v27, %v1659_v11, %v9952_v57  ;;  %v9955_v34 = vshrl.u32 %v1521_v10, 5  ;;  %v1484_v49 = vshll.u32 %v9913_v55, 23 }
 0x195   : > { %v1523_v21 = vand.u32 31, %v1521_v10  ;;  %v1670_v23 = vadd.s32 1, %v9941_v1  ;;  %v9965_v43 = vshll.u32 %v1517_v17, 8  ;;  %v1822_v22 = vshrl.u32 %v1821_v45, 23 }
 0x196   : > { %v9967_v20 = vadd.s32 127, %v1379_v54  ;;  %v1667_v42 = vmul.u32 %v1660_v27, %v1651_v32  ;;  %8335 = vcosq.f32 %v9950_v59  ;;  %vm1669_vm8 = vc.u32 %v9953_v6, %v9940_v36 }
 0x197   : > { %v1524_v37 = vsub.s32 32, %v1523_v21  ;;  %v1526_v39 = vshll.u32 %v13085_v4, %v1523_v21  ;;  %v1529_v10 = vshll.u32 %v13081_v3, %v1523_v21  ;;  %vm1541_vm10 = vcmp.lt.s32.totalorder %v9955_v34, 1 }
 0x198   : > { %v1671_v8 = vsel %vm1669_vm8, %v1670_v23, %v9941_v1  ;;  %v1532_v27 = vshll.u32 %v13082_v38, %v1523_v21  ;;  %v1535_v62 = vshll.u32 %v13083_v56, %v1523_v21  ;;  %v1538_v32 = vshll.u32 %v13078_v63, %v1523_v21 }
 0x199   : > { %v1527_v17 = vshrl.u32 %v13081_v3, %v1524_v37  ;;  %v1530_v55 = vshrl.u32 %v13082_v38, %v1524_v37  ;;  %v1672_v51 = vadd.s32 %v1671_v8, %v1667_v42  ;;  %v1533_v24 = vshrl.u32 %v13083_v56, %v1524_v37 }
 0x19a   : > { %v1536_v45 = vshrl.u32 %v13078_v63, %v1524_v37  ;;  %v1539_v57 = vshrl.u32 %v13079_v60, %v1524_v37  ;;  %v1525_v23 = vshrl.u32 %v13085_v4, %v1524_v37  ;;  %vm1543_vm6 = vcmp.lt.s32.totalorder %v9955_v34, 3 }
 0x19b   : > { %v1528_v54 = vor.u32 %v1527_v17, %v1526_v39  ;;  %v1531_v11 = vor.u32 %v1530_v55, %v1529_v10  ;;  %v1673_v1 = vadd.s32 536870912, %v1672_v51  ;;  %v1534_v9 = vor.u32 %v1533_v24, %v1532_v27 }
 0x19c   : > { %v1537_v19 = vor.u32 %v1536_v45, %v1535_v62  ;;  %v1540_v46 = vor.u32 %v1539_v57, %v1538_v32  ;;  %vm1544_vm11 = vcmp.lt.s32.totalorder %v9955_v34, 4  ;;  %vm1542_vm12 = vcmp.lt.s32.totalorder %v9955_v34, 2  ;;  %v2489_v32 = vld [vmem:[%s12935_s1 + $0x60] sm:$0xff]  ;;  %v2488_v57 = vld [vmem:[%s12935_s1 + $0x58] sm:$0xff] }
 0x19d   : > { %v1549_v42 = vsel %vm1541_vm10, %v1528_v54, %v1531_v11  ;;  %v9989_v8 = vshrl.u32 %v1673_v1, 30  ;;  %v1546_v39 = vsel %vm1544_vm11, %v1534_v9, 2102212464  ;;  %v1553_v21 = vsel %vm1541_vm10, %v1531_v11, %v1534_v9  ;;  %7642 = vmatprep.subr.mxu0 %v2489_v32  ;;  %v13129_v1 = vld [vmem:[#allocation7_spill] sm:$0xff]  ;;  %v13133_v34 = vld [vmem:[#allocation13_spill] sm:$0xff] }
 0x19e   : > { %v1550_v10 = vsel %vm1544_vm11, %v1537_v19, 920167782  ;;  %v1545_v37 = vsel %vm1541_vm10, %v1525_v23, %v1528_v54  ;;  %v1554_v55 = vsel %vm1544_vm11, %v1540_v46, 1326507024  ;;  %v1547_v24 = vsel %vm1543_vm6, %v1531_v11, %v1546_v39  ;;  %v13130_v39 = vld [vmem:[#allocation10_spill] sm:$0xff]  ;;  %7643 = vmatpush3.msra.mxu0 %v2489_v32 }
 0x19f   : > { %13128 = vst [vmem:[#allocation19_spill] sm:$0xff] %v9989_v8  ;;  %v1551_v17 = vsel %vm1543_vm6, %v1534_v9, %v1550_v10  ;;  %v1675_v27 = vshll.u32 %v9989_v8, 30  ;;  %v1555_v45 = vsel %vm1543_vm6, %v1537_v19, %v1554_v55  ;;  %v7052_v11 = vadd.s32 4294967169, %v1822_v22  ;;  %7644 = vmatprep.subr.mxu0 %v2488_v57 }
 0x1a0   : > { %v1552_v62 = vsel %vm1542_vm12, %v1549_v42, %v1551_v17  ;;  %v1556_v54 = vsel %vm1542_vm12, %v1553_v21, %v1555_v45  ;;  %vm584_vm13 = vcmp.lt.s32.totalorder %v13129_v1, 0  ;;  %v771_v10 = vsub.s32 4, %v13130_v39  ;;  %v2487_v21 = vld [vmem:[%s12935_s1 + $0x50] sm:$0xff]  ;;  %v13131_v17 = vld [vmem:[#allocation9_spill] sm:$0xff]  ;;  %7645 = vmatpush3.msra.mxu0 %v2488_v57 }
 0x1a1   : > { %v10008_v46 = vmul.u32.u64.low %v9965_v43, %v1552_v62  ;;  %v10009_v9 = vmul.u32.u64.high %v9965_v43, %v1552_v62, %v10008_v46  ;;  %v10013_v19 = vsub.s32 %v1672_v51, %v1675_v27  ;;  %vm790_vm14 = vcmp.lt.s32.totalorder %v13131_v17, 0  ;;  %v13132_v62 = vld [vmem:[#allocation11_spill] sm:$0xff]  ;;  %7646 = vmatprep.subr.mxu0 %v2487_v21 }
 0x1a2   : > { %v10016_v23 = vmul.u32.u64.low %v9965_v43, %v1556_v54  ;;  %v10017_v42 = vmul.u32.u64.high %v9965_v43, %v1556_v54, %v10016_v23  ;;  %v1485_v55 = vor.u32 4788187, %v1484_v49  ;;  %v1381_v22 = vshll.u32 %v9967_v20, 23  ;;  %7647 = vmatpush3.msra.mxu0 %v2487_v21 }
 0x1a3   : > { %v1548_v51 = vsel %vm1542_vm12, %v1545_v37, %v1547_v24  ;;  %8337 = vsinq.f32 %v9950_v59  ;;  %v10028_v27 = vpop.eup %8335  ;;  %vm996_vm15 = vcmp.lt.s32.totalorder %v13132_v62, 0  ;;  %v1177_v45 = vand.u32 2147483647, %v9904_v29  ;;  %v2486_v59 = vld [vmem:[%s12935_s1 + $0x48] sm:$0xff] }
 0x1a4   : > { %v1678_v32 = vsub.s32 0, %v10013_v19  ;;  %v254_v54 = vmul.f32 %v9089_v30, %v9796_v47  ;;  %v338_v49 = vmul.f32 %v9085_v28, %v9838_v13  ;;  %vm893_vm0 = vcmp.lt.s32.totalorder %v13133_v34, 0  ;;  %v408_v13 = vpop.permute.xlu1 %407  ;;  %7648 = vmatprep.subr.mxu0 %v2486_v59 }
 0x1a5   : > { %v13134_v20 = vshll.u32 %v9779_v16, %v9876_v33  ;;  %v13135_v37 = vsub.s32 32, %v9937_v53  ;;  %v1567_v47 = vadd.s32 1, %v10009_v9  ;;  %v1828_v23 = vadd.s32 1, %v7052_v11  ;;  %v2485_v33 = vld [vmem:[%s12935_s1 + $0x40] sm:$0xff]  ;;  %7649 = vmatpush3.msra.mxu0 %v2486_v59 }
 0x1a6   : > { %v7045_v57 = vmin.u32 %v1678_v32, %v10013_v19  ;;  %v1564_v8 = vmul.u32 %v9965_v43, %v1548_v51  ;;  %vm1566_vm2 = vc.u32 %v10017_v42, %v10008_v46  ;;  %v772_v16 = vsel %vm687_vm9, %v771_v10, %v13130_v39  ;;  %7650 = vmatprep.subr.mxu0 %v2485_v33 }
 0x1a7   : > { %v1481_v29 = vor.u32 %v9960_v18, %v13134_v20  ;;  %v1377_v24 = vshrl.u32 %v9909_v48, %v13135_v37  ;;  %v1486_v48 = vand.u32 2147483647, %v1485_v55  ;;  %v1376_v18 = vshll.u32 %v9878_v12, %v9937_v53  ;;  %v2484_v55 = vld [vmem:[%s12935_s1 + $0x38] sm:$0xff]  ;;  %7651 = vmatpush3.msra.mxu0 %v2485_v33  ;;  %v13144_v33 = vld [vmem:[#allocation17_spill] sm:$0xff] }
 0x1a8   : > { %v1382_v11 = vor.u32 4788187, %v1381_v22  ;;  %v1568_v32 = vsel %vm1566_vm2, %v1567_v47, %v10009_v9  ;;  %v13136_v43 = vand.u32 2147483647, %v9851_v31  ;;  %v13137_v51 = vcvt.s32.f32 %v9849_v7  ;;  %7652 = vmatprep.subr.mxu0 %v2484_v55 }
 0x1a9   : > { %v1569_v39 = vadd.s32 %v1568_v32, %v1564_v8  ;;  %v354_v10 = vadd.f32 %v338_v49, %v254_v54  ;;  %v438_v21 = vmul.f32 %v9095_v35, %v408_v13  ;;  %v1179_v12 = vcvt.s32.f32 %v9897_v14  ;;  %v2483_v54 = vld [vmem:[%s12935_s1 + $0x30] sm:$0xff]  ;;  %7653 = vmatpush3.msra.mxu0 %v2484_v55 }
 0x1aa   : > { %v10066_v20 = vmul.f32 %v13137_v51, %v13136_v43  ;;  %v1488_v53 = vcvt.s32.f32 %v1481_v29  ;;  %v1378_v9 = vor.u32 %v1377_v24, %v1376_v18  ;;  %v774_v31 = vsel %vm9929_vm1, 0, %v772_v16  ;;  %7654 = vmatprep.subr.mxu0 %v2483_v54 }
 0x1ab   : > { %v1680_v7 = vclz %v7045_v57  ;;  %v1570_v22 = vadd.s32 536870912, %v1569_v39  ;;  %vm1829_vm9 = vcmp.gt.s32.totalorder %v1828_v23, 0  ;;  %v454_v8 = vadd.f32 %v438_v21, %v354_v10  ;;  %7655 = vmatpush3.msra.mxu0 %v2483_v54 }
 0x1ac   : > { %v13138_v49 = vxor.u32 2147483648, %v9653_v58  ;;  %v1180_v59 = vmul.f32 %v1179_v12, %v1177_v45  ;;  %v10083_v29 = vmul.f32 %v1488_v53, %v1486_v48  ;;  %v1383_v41 = vand.u32 2147483647, %v1382_v11 }
 0x1ad   : > { %v13139_v37 = vxor.u32 2147483648, %v9828_v25  ;;  %v10092_v47 = vshrl.u32 %v1570_v22, 30  ;;  %v778_v13 = vand.u32 3, %v774_v31  ;;  %v10095_v57 = vadd.f32 %v9104_v40, %v454_v8 }
 0x1ae   : > { %v667_v14 = vsel %vm584_vm13, %v13138_v49, %v9653_v58  ;;  %v2482_v58 = vld [vmem:[%s12935_s1 + $0x28] sm:$0xff]  ;;  %v13142_v45 = vxor.u32 2147483648, %v9834_v0  ;;  %vm1099_vm3 = vcmp.lt.s32.totalorder %v13144_v33, 0  ;;  %v1385_v48 = vcvt.s32.f32 %v1378_v9 }
 0x1af   : > { %v10090_v24 = vsel %vm790_vm14, %v13139_v37, %v9828_v25  ;;  %13140 = vst [vmem:[#allocation7_spill] sm:$0xff] %v10092_v47  ;;  %13141 = vst [vmem:[#allocation10_spill] sm:$0xff] %v10095_v57  ;;  %v13143_v25 = vld [vmem:[#allocation16_spill] sm:$0xff]  ;;  %v1830_v18 = vsel %vm1829_vm9, %v1828_v23, 0  ;;  %v784_v11 = vxor.u32 2147483648, %v10028_v27  ;;  %v13145_v32 = vxor.u32 2147483648, %v9842_v50  ;;  %7656 = vmatprep.subr.mxu0 %v2482_v58 }
 0x1b0   : > { %v10105_v16 = vsel %vm996_vm15, %v13142_v45, %v9834_v0  ;;  %vm1202_vm1 = vcmp.lt.s32.totalorder %v13143_v25, 0  ;;  %v1284_v0 = vxor.u32 2147483648, %v10066_v20  ;;  %v7046_v51 = vadd.s32 4294967294, %v1680_v7  ;;  %v8338_v53 = vpop.eup %8337  ;;  %v13146_v9 = vld [vmem:[#allocation21_spill] sm:$0xff]  ;;  %v13148_v7 = vld [vmem:[#allocation12_spill] sm:$0xff]  ;;  %7657 = vmatpush3.msra.mxu0 %v2482_v58 }
 0x1b1   : > { %v10116_v43 = vsel %vm893_vm0, %v13145_v32, %v9842_v50  ;;  %v1572_v10 = vshll.u32 %v10092_v47, 30  ;;  %v1181_v21 = vxor.u32 2147483648, %v1180_v59  ;;  %v1490_v55 = vxor.u32 2147483648, %v10083_v29  ;;  %v420_v32 = vpop.permute.xlu0 %419 }
 0x1b2   : > { %v10121_v23 = vmul.f32 %v1385_v48, %v1383_v41  ;;  %v1718_v12 = vand.u32 2139095040, %v10095_v57  ;;  %vm1408_vm4 = vcmp.lt.s32.totalorder %v13146_v9, 0  ;;  %v10127_v50 = vand.u32 31, %v1830_v18 }
 0x1b3   : > { %v10125_v31 = vsub.s32 %v1569_v39, %v1572_v10  ;;  %vm783_vm5 = vcmp.eq.s32.totalorder %v778_v13, 2  ;;  %v668_v22 = vsub.s32 4, %v13148_v7  ;;  %v781_v8 = vxor.u32 2147483648, %v8338_v53 }
 0x1b4   : > { %13147 = vst [vmem:[#allocation9_spill] sm:$0xff] %v10127_v50  ;;  %v785_v54 = vsel %vm783_vm5, %v784_v11, %v8338_v53  ;;  %v1719_v49 = vshrl.u32 %v1718_v12, 23  ;;  %v13149_v41 = vand.u32 2147483647, %v13129_v1  ;;  %vm7047_vm8 = vcmp.lt.s32.totalorder %v7046_v51, 0 }
 0x1b5   : > { %v1575_v45 = vsub.s32 0, %v10125_v31  ;;  %vm780_vm10 = vcmp.eq.s32.totalorder %v778_v13, 0  ;;  %vm777_vm6 = vweird.f32 %v9158_v2  ;;  %vm779_vm11 = vcmp.lt.s32.totalorder %v778_v13, 2 }
 0x1b6   : > { %vm10132_vm7 = vcmp.le.f32.partialorder %v13149_v41, 0.7853982  ;;  %v782_v58 = vsel %vm780_vm10, %v10028_v27, %v781_v8  ;;  %v7048_v48 = vadd.s32 4294967169, %v1719_v49  ;;  %v13008_v12 = vand.u32 2147483647, %v10095_v57 }
 0x1b7   : > { %v670_v39 = vsel %vm10132_vm7, %v13129_v1, %v667_v14  ;;  %v7041_v11 = vmin.u32 %v1575_v45, %v10125_v31  ;;  %v786_v10 = vsel %vm779_vm11, %v782_v58, %v785_v54  ;;  %v669_v53 = vsel %vm584_vm13, %v668_v22, %v13148_v7 }
 0x1b8   : > { %v10147_v41 = vsel %vm7047_vm8, 0, %v7046_v51  ;;  %v787_v47 = vsel %vm777_vm6, nan, %v786_v10  ;;  %v1725_v14 = vadd.s32 1, %v7048_v48  ;;  %8339 = vsinq.f32 %v670_v39 }
 0x1b9   : > { %v10152_v2 = vsel %vm1202_vm1, %v1284_v0, %v10066_v20  ;;  %v10156_v27 = vsel %vm1099_vm3, %v1181_v21, %v1180_v59  ;;  %v1577_v13 = vclz %v7041_v11  ;;  %v10159_v8 = vmul.f32 %v9884_v5, %v787_v47 }
 0x1ba   : > { %13152 = vst [vmem:[#allocation11_spill] sm:$0xff] %v10152_v2  ;;  %13153 = vst [vmem:[#allocation13_spill] sm:$0xff] %v10156_v27  ;;  %v10162_v7 = vmul.f32 %v9095_v35, %v420_v32  ;;  %vm1726_vm12 = vcmp.gt.s32.totalorder %v1725_v14, 0  ;;  %v671_v51 = vsel %vm10132_vm7, 0, %v669_v53  ;;  %8341 = vcosq.f32 %v670_v39 }
 0x1bb   : > { %13154 = vst [vmem:[#allocation16_spill] sm:$0xff] %v10159_v8  ;;  %v1688_v22 = vsub.s32 4294967266, %v10147_v41  ;;  %v10168_v20 = vsub.s32 32, %v10127_v50  ;;  %2992 = vrot.lane.b32.xlu0 %v10159_v8, %s8868_s4  ;;  %v1722_v59 = vand.u32 8388607, %v13008_v12  ;;  %v1727_v47 = vsel %vm1726_vm12, %v1725_v14, 0 }
 0x1bc   : > { %v10177_v0 = vsel %vm1408_vm4, %v1490_v55, %v10083_v29  ;;  %v10181_v54 = vmul.f32 -1.442695, %v9895_v44  ;;  %v1729_v49 = vand.u32 31, %v1727_v47  ;;  %v10185_v37 = vadd.s32 %v9940_v36, %v9953_v6 }
 0x1bd   : > { %13155 = vst [vmem:[#allocation12_spill] sm:$0xff] %v10168_v20  ;;  %13156 = vst [vmem:[#allocation27_spill] sm:$0xff] %v10177_v0  ;;  %v7042_v45 = vadd.s32 4294967294, %v1577_v13  ;;  %v10187_v39 = vshrl.u32 %v1830_v18, 5  ;;  %v10189_v58 = vand.u32 3, %v671_v51  ;;  %v10193_v48 = vadd.s32 %v10008_v46, %v10017_v42 }
 0x1be   : > { %v10197_v29 = vshll.u32 %v13083_v56, %v10127_v50  ;;  %v10201_v55 = vshll.u32 %v13078_v63, %v10127_v50  ;;  %v1730_v11 = vsub.s32 32, %v1729_v49  ;;  %v10204_v6 = vadd.s32 127, %v1688_v22  ;;  %v10216_v22 = vpop.permute.xlu1 %230 }
 0x1bf   : > { %13157 = vst [vmem:[#allocation28_spill] sm:$0xff] %v10187_v39  ;;  %v10208_v18 = vshrl.u32 %v13078_v63, %v10168_v20  ;;  %v1723_v32 = vor.u32 8388608, %v1722_v59  ;;  %v1732_v46 = vshll.u32 %v13085_v4, %v1729_v49  ;;  %v1735_v10 = vshll.u32 %v13081_v3, %v1729_v49 }
 0x1c0   : > { %v1733_v42 = vshrl.u32 %v13081_v3, %v1730_v11  ;;  %v1736_v53 = vshrl.u32 %v13082_v38, %v1730_v11  ;;  %vm7043_vm13 = vcmp.lt.s32.totalorder %v7042_v45, 0  ;;  %v1728_v14 = vshrl.u32 %v1727_v47, 5 }
 0x1c1   : > { %v1738_v13 = vshll.u32 %v13082_v38, %v1729_v49  ;;  %v1739_v51 = vshrl.u32 %v13083_v56, %v1730_v11  ;;  %vm677_vm2 = vcmp.eq.s32.totalorder %v10189_v58, 0  ;;  %v1741_v21 = vshll.u32 %v13083_v56, %v1729_v49 }
 0x1c2   : > { %v1734_v12 = vor.u32 %v1733_v42, %v1732_v46  ;;  %v1737_v59 = vor.u32 %v1736_v53, %v1735_v10  ;;  %v1742_v36 = vshrl.u32 %v13078_v63, %v1730_v11  ;;  %v1744_v57 = vshll.u32 %v13078_v63, %v1729_v49  ;;  %v316_v27 = vpop.permute.xlu1 %315 }
 0x1c3   : > { %v1740_v50 = vor.u32 %v1739_v51, %v1738_v13  ;;  %v1745_v44 = vshrl.u32 %v13079_v60, %v1730_v11  ;;  %v13158_v47 = vand.u32 2147483647, %v13131_v17  ;;  %v10229_v0 = vsel %vm7043_vm13, 0, %v7042_v45 }
 0x1c4   : > { %v1743_v9 = vor.u32 %v1742_v36, %v1741_v21  ;;  %v1763_v46 = vshll.u32 %v1723_v32, 8  ;;  %vm676_vm5 = vcmp.lt.s32.totalorder %v10189_v58, 2  ;;  %v1731_v10 = vshrl.u32 %v13085_v4, %v1730_v11 }
 0x1c5   : > { %vm10225_vm9 = vcmp.le.f32.partialorder %v13158_v47, 0.7853982  ;;  %v8340_v49 = vpop.eup %8339  ;;  %v1746_v53 = vor.u32 %v1745_v44, %v1744_v57  ;;  %vm1747_vm7 = vcmp.lt.s32.totalorder %v1728_v14, 1  ;;  %vm1750_vm8 = vcmp.lt.s32.totalorder %v1728_v14, 4 }
 0x1c6   : > { %v876_v42 = vsel %vm10225_vm9, %v13131_v17, %v10090_v24  ;;  %vm1749_vm10 = vcmp.lt.s32.totalorder %v1728_v14, 3  ;;  %v1752_v13 = vsel %vm1750_vm8, %v1740_v50, 2102212464  ;;  %v1755_v51 = vsel %vm1747_vm7, %v1734_v12, %v1737_v59 }
 0x1c7   : > { %v1756_v45 = vsel %vm1750_vm8, %v1743_v9, 920167782  ;;  %v8342_v47 = vpop.eup %8341  ;;  %v1585_v21 = vsub.s32 4294967266, %v10229_v0  ;;  %vm1748_vm6 = vcmp.lt.s32.totalorder %v1728_v14, 2  ;;  %v1759_v32 = vsel %vm1747_vm7, %v1737_v59, %v1740_v50 }
 0x1c8   : > { %v1757_v36 = vsel %vm1749_vm10, %v1740_v50, %v1756_v45  ;;  %v1751_v33 = vsel %vm1747_vm7, %v1731_v10, %v1734_v12  ;;  %v1760_v63 = vsel %vm1750_vm8, %v1746_v53, 1326507024  ;;  %v678_v56 = vxor.u32 2147483648, %v8340_v49  ;;  %v13161_v53 = vld [vmem:[#allocation14_spill] sm:$0xff] }
 0x1c9   : > { %v1758_v24 = vsel %vm1748_vm6, %v1755_v51, %v1757_v36  ;;  %v1753_v11 = vsel %vm1749_vm10, %v1737_v59, %v1752_v13  ;;  %v1761_v44 = vsel %vm1749_vm10, %v1743_v9, %v1760_v63  ;;  %vm680_vm11 = vcmp.eq.s32.totalorder %v10189_v58, 2 }
 0x1ca   : > { %v10239_v57 = vmul.u32.u64.low %v1763_v46, %v1758_v24  ;;  %v10240_v38 = vmul.u32.u64.high %v1763_v46, %v1758_v24, %v10239_v57  ;;  %v1762_v2 = vsel %vm1748_vm6, %v1759_v32, %v1761_v44  ;;  %v679_v3 = vsel %vm677_vm2, %v8342_v47, %v678_v56 }
 0x1cb   : > { %v681_v50 = vxor.u32 2147483648, %v8342_v47  ;;  %v7066_v12 = vmul.f32 -1.442695, %v10159_v8  ;;  %v10248_v10 = vmul.u32.u64.low %v1763_v46, %v1762_v2  ;;  %v10249_v51 = vmul.u32.u64.high %v1763_v46, %v1762_v2, %v10248_v10  ;;  %v320_v47 = vpop.permute.xlu1 %319 }
 0x1cc   : > { %v874_v59 = vsub.s32 4, %v13161_v53  ;;  %v1586_v63 = vadd.s32 127, %v1585_v21  ;;  %v1754_v9 = vsel %vm1748_vm6, %v1751_v33, %v1753_v11  ;;  %8343 = vcosq.f32 %v876_v42 }
 0x1cd   : > { %v682_v13 = vsel %vm680_vm11, %v681_v50, %v8340_v49  ;;  %v1690_v45 = vshll.u32 %v10204_v6, 23  ;;  %v1773_v36 = vadd.s32 1, %v10240_v38  ;;  %vm674_vm12 = vweird.f32 %v13129_v1 }
 0x1ce   : > { %v683_v56 = vsel %vm676_vm5, %v679_v3, %v682_v13  ;;  %v1581_v2 = vsub.s32 32, %v10229_v0  ;;  %v10261_v32 = vshrl.u32 %v13079_v60, %v10168_v20  ;;  %8345 = vsinq.f32 %v876_v42 }
 0x1cf   : > { %v684_v14 = vsel %vm674_vm12, nan, %v683_v56  ;;  %v13162_v33 = vsub.s32 32, %v10147_v41  ;;  %v1770_v49 = vmul.u32 %v1763_v46, %v1754_v9  ;;  %vm1772_vm13 = vc.u32 %v10249_v51, %v10239_v57 }
 0x1d0   : > { %v10269_v1 = vmul.f32 %v9884_v5, %v684_v14  ;;  %v1587_v3 = vshll.u32 %v1586_v63, 23  ;;  %8347 = vpow2.f32 %v7066_v12  ;;  %v1774_v58 = vsel %vm1772_vm13, %v1773_v36, %v10240_v38  ;;  %v13170_v36 = vld [vmem:[#allocation15_spill] sm:$0xff] }
 0x1d1   : > { %v1686_v6 = vshrl.u32 %v10185_v37, %v13162_v33  ;;  %v875_v21 = vsel %vm790_vm14, %v874_v59, %v13161_v53  ;;  %v1685_v42 = vshll.u32 %v10013_v19, %v10147_v41  ;;  %v1691_v24 = vor.u32 4788187, %v1690_v45 }
 0x1d2   : > { %13163 = vst [vmem:[#allocation14_spill] sm:$0xff] %v10269_v1  ;;  %v1775_v37 = vadd.s32 %v1774_v58, %v1770_v49  ;;  %2990 = vrot.lane.b32.xlu1 %v10269_v1, %s8868_s4  ;;  %v13164_v46 = vand.u32 2147483647, %v13132_v62  ;;  %v1583_v38 = vshrl.u32 %v10193_v48, %v1581_v2  ;;  %v256_v44 = vmul.f32 %v9089_v30, %v10216_v22  ;;  %v416_v48 = vpop.permute.xlu1 %415  ;;  %v13173_v58 = vld [vmem:[#allocation23_spill] sm:$0xff] }
 0x1d3   : > { %v340_v50 = vmul.f32 %v9085_v28, %v316_v27  ;;  %v1687_v41 = vor.u32 %v1686_v6, %v1685_v42  ;;  %v877_v10 = vsel %vm10225_vm9, 0, %v875_v21  ;;  %v13167_v53 = vand.u32 2147483647, %v13133_v34  ;;  %v13172_v6 = vld [vmem:[#allocation18_spill] sm:$0xff] }
 0x1d4   : > { %vm10281_vm2 = vcmp.le.f32.partialorder %v13164_v46, 0.7853982  ;;  %v1776_v12 = vadd.s32 536870912, %v1775_v37  ;;  %v1582_v30 = vshll.u32 %v10125_v31, %v10229_v0  ;;  %v1588_v27 = vor.u32 4788187, %v1587_v3  ;;  %v13174_v46 = vld [vmem:[#allocation20_spill] sm:$0xff] }
 0x1d5   : > { %v1082_v19 = vsel %vm10281_vm2, %v13132_v62, %v10105_v16  ;;  %vm10297_vm14 = vcmp.le.f32.partialorder %v13167_v53, 0.7853982  ;;  %v1692_v22 = vand.u32 2147483647, %v1691_v24  ;;  %v341_v63 = vmul.f32 %v9085_v28, %v320_v47 }
 0x1d6   : > { %8349 = vcosq.f32 %v1082_v19  ;;  %v979_v16 = vsel %vm10297_vm14, %v13133_v34, %v10116_v43  ;;  %v10307_v15 = vshrl.u32 %v1776_v12, 30  ;;  %v1584_v9 = vor.u32 %v1583_v38, %v1582_v30 }
 0x1d7   : > { %8351 = vsinq.f32 %v1082_v19  ;;  %v356_v13 = vadd.f32 %v340_v50, %v256_v44  ;;  %v440_v45 = vmul.f32 %v9095_v35, %v416_v48  ;;  %v881_v0 = vand.u32 3, %v877_v10 }
 0x1d8   : > { %8353 = vcosq.f32 %v979_v16  ;;  %v1778_v31 = vshll.u32 %v10307_v15, 30  ;;  %v1080_v56 = vsub.s32 4, %v13170_v36  ;;  %v1694_v2 = vcvt.s32.f32 %v1687_v41 }
 0x1d9   : > { %8355 = vsinq.f32 %v979_v16  ;;  %v1589_v14 = vand.u32 2147483647, %v1588_v27  ;;  %v10315_v43 = vor.u32 %v10208_v18, %v10197_v29  ;;  %v1849_v28 = vor.u32 %v10261_v32, %v10201_v55  ;;  %v8344_v47 = vpop.eup %8343 }
 0x1da   : > { %v10319_v33 = vsub.s32 %v1775_v37, %v1778_v31  ;;  %v7065_v35 = vmul.f32 -1.442695, %v10269_v1  ;;  %v357_v49 = vadd.f32 %v341_v63, %v13172_v6  ;;  %v456_v3 = vadd.f32 %v440_v45, %v356_v13 }
 0x1db   : > { %13171 = vst [vmem:[#allocation15_spill] sm:$0xff] %v10315_v43  ;;  %vm1305_vm9 = vcmp.lt.s32.totalorder %v13173_v58, 0  ;;  %v1695_v21 = vmul.f32 %v1694_v2, %v1692_v22  ;;  %v1591_v42 = vcvt.s32.f32 %v1584_v9  ;;  %v887_v24 = vxor.u32 2147483648, %v8344_v47  ;;  %v8346_v29 = vpop.eup %8345 }
 0x1dc   : > { %v977_v38 = vsub.s32 4, %v13174_v46  ;;  %vm1614_vm5 = vcmp.lt.s32.totalorder %v9856_v26, 0  ;;  %vm1511_vm7 = vcmp.lt.s32.totalorder %v9869_v52, 0  ;;  %v1781_v55 = vsub.s32 0, %v10319_v33 }
 0x1dd   : > { %vm886_vm8 = vcmp.eq.s32.totalorder %v881_v0, 2  ;;  %v1081_v18 = vsel %vm996_vm15, %v1080_v56, %v13170_v36  ;;  %v10332_v32 = vadd.f32 %v9104_v40, %v456_v3  ;;  %v1592_v37 = vmul.f32 %v1591_v42, %v1589_v14  ;;  %v8348_v19 = vpop.eup %8347 }
 0x1de   : > { %vm882_vm10 = vcmp.lt.s32.totalorder %v881_v0, 2  ;;  %v884_v44 = vxor.u32 2147483648, %v8346_v29  ;;  %v888_v50 = vsel %vm886_vm8, %v887_v24, %v8346_v29  ;;  %v7049_v41 = vmin.u32 %v1781_v55, %v10319_v33 }
 0x1df   : > { %13175 = vst [vmem:[#allocation18_spill] sm:$0xff] %v10332_v32  ;;  %8357 = vpow2.f32 %v7065_v35  ;;  %vm883_vm6 = vcmp.eq.s32.totalorder %v881_v0, 0  ;;  %v457_v12 = vadd.f32 %v10162_v7, %v357_v49  ;;  %v1083_v53 = vsel %vm10281_vm2, 0, %v1081_v18 }
 0x1e0   : > { %v885_v10 = vsel %vm883_vm6, %v8344_v47, %v884_v44  ;;  %v978_v48 = vsel %vm893_vm0, %v977_v38, %v13174_v46  ;;  %v1924_v30 = vand.u32 2139095040, %v10332_v32  ;;  %v1696_v27 = vxor.u32 2147483648, %v1695_v21  ;;  %v10384_v38 = vpop.permute.xlu1 %2150 }
 0x1e1   : > { %v1783_v16 = vclz %v7049_v41  ;;  %vm880_vm15 = vweird.f32 %v13131_v17  ;;  %v889_v22 = vsel %vm882_vm10, %v885_v10, %v888_v50  ;;  %v1593_v63 = vxor.u32 2147483648, %v1592_v37 }
 0x1e2   : > { %v2404_v9 = vadd.f32 1.0, %v8348_v19  ;;  %v890_v13 = vsel %vm880_vm15, nan, %v889_v22  ;;  %v1925_v45 = vshrl.u32 %v1924_v30, 23  ;;  %v1087_v0 = vand.u32 3, %v1083_v53 }
 0x1e3   : > { %v8350_v7 = vpop.eup %8349  ;;  %v7050_v31 = vadd.s32 4294967294, %v1783_v16  ;;  %v10344_v11 = vmul.f32 %v9884_v5, %v890_v13  ;;  %v980_v36 = vsel %vm10297_vm14, 0, %v978_v48  ;;  %vm1853_vm0 = vcmp.lt.s32.totalorder %v10187_v39, 4 }
 0x1e4   : > { %v8352_v56 = vpop.eup %8351  ;;  %v10350_v2 = vadd.f32 %v9104_v40, %v457_v12  ;;  %v1093_v17 = vxor.u32 2147483648, %v8350_v7  ;;  %v13023_v14 = vand.u32 2147483647, %v10332_v32  ;;  %v13178_v35 = vxor.u32 2147483648, %v10121_v23  ;;  %v10398_v16 = vpop.permute.xlu1 %2234 }
 0x1e5   : > { %13176 = vst [vmem:[#allocation23_spill] sm:$0xff] %v10344_v11  ;;  %v8354_v47 = vpop.eup %8353  ;;  %8359 = vpow2.f32 %v10181_v54  ;;  %v13179_v59 = vand.u32 2147483647, %v9869_v52  ;;  %v10370_v40 = vsel %vm1853_vm0, %v10315_v43, 920167782  ;;  %2994 = vrot.lane.b32.xlu1 %v10344_v11, %s8868_s4  ;;  %v10380_v54 = vsel %vm1614_vm5, %v1696_v27, %v1695_v21  ;;  %v2148_v27 = vld [vmem:[%s12935_s1 + $0x18] sm:$0xff] }
 0x1e6   : > { %13177 = vst [vmem:[#allocation20_spill] sm:$0xff] %v10350_v2  ;;  %v10358_v6 = vsel %vm1305_vm9, %v13178_v35, %v10121_v23  ;;  %13182 = vst [vmem:[#allocation29_spill] sm:$0xff] %v10370_v40  ;;  %v10374_v3 = vsel %vm1853_vm0, %v1849_v28, 1326507024  ;;  %v8356_v23 = vpop.eup %8355  ;;  %v1594_v42 = vsel %vm1511_vm7, %v1593_v63, %v1592_v37  ;;  %v984_v24 = vand.u32 3, %v980_v36 }
 0x1e7   : > { %vm10363_vm11 = vcmp.le.f32.partialorder %v13179_v59, 0.7853982  ;;  %13183 = vst [vmem:[#allocation30_spill] sm:$0xff] %v10374_v3  ;;  %v7056_v46 = vadd.s32 4294967169, %v1925_v45  ;;  %8361 = vrcp.f32 %v2404_v9  ;;  %vm7051_vm12 = vcmp.lt.s32.totalorder %v7050_v31, 0 }
 0x1e8   : > { %vm1086_vm13 = vweird.f32 %v13132_v62  ;;  %vm1092_vm2 = vcmp.eq.s32.totalorder %v1087_v0, 2  ;;  %v2027_v28 = vand.u32 2139095040, %v10350_v2  ;;  %v1090_v29 = vxor.u32 2147483648, %v8352_v56 }
 0x1e9   : > { %v1094_v55 = vsel %vm1092_vm2, %v1093_v17, %v8352_v56  ;;  %v1928_v21 = vand.u32 8388607, %v13023_v14  ;;  %vm1088_vm14 = vcmp.lt.s32.totalorder %v1087_v0, 2  ;;  %vm1089_vm8 = vcmp.eq.s32.totalorder %v1087_v0, 0  ;;  %v10423_v17 = vpop.permute.xlu0 %2154 }
 0x1ea   : > { %v987_v18 = vxor.u32 2147483648, %v8356_v23  ;;  %v990_v37 = vxor.u32 2147483648, %v8354_v47  ;;  %v10390_v44 = vsel %vm7051_vm12, 0, %v7050_v31  ;;  %v1091_v50 = vsel %vm1089_vm8, %v8350_v7, %v1090_v29 }
 0x1eb   : > { %vm986_vm10 = vcmp.eq.s32.totalorder %v984_v24, 0  ;;  %v1931_v19 = vadd.s32 1, %v7056_v46  ;;  %v1095_v41 = vsel %vm1088_vm14, %v1091_v50, %v1094_v55  ;;  %vm983_vm6 = vweird.f32 %v13133_v34  ;;  %v13186_v34 = vld [vmem:[#allocation5_spill] sm:$0xff]  ;;  %v13191_v50 = vld [vmem:[#allocation22_spill] sm:$0xff] }
 0x1ec   : > { %v988_v12 = vsel %vm986_vm10, %v8354_v47, %v987_v18  ;;  %vm989_vm15 = vcmp.eq.s32.totalorder %v984_v24, 2  ;;  %v8358_v10 = vpop.eup %8357  ;;  %v1096_v53 = vsel %vm1086_vm13, nan, %v1095_v41  ;;  %vm985_vm2 = vcmp.lt.s32.totalorder %v984_v24, 2  ;;  %v10448_v41 = vpop.permute.xlu1 %2238 }
 0x1ed   : > { %v991_v48 = vsel %vm989_vm15, %v990_v37, %v8356_v23  ;;  %v1929_v30 = vor.u32 8388608, %v1928_v21  ;;  %v1791_v22 = vsub.s32 4294967266, %v10390_v44  ;;  %v7067_v63 = vmul.f32 -1.442695, %v10344_v11  ;;  %v10466_v2 = vpop.permute.xlu0 %2242 }
 0x1ee   : > { %v10403_v9 = vmul.f32 %v9884_v5, %v1096_v53  ;;  %v992_v13 = vsel %vm985_vm2, %v988_v12, %v991_v48  ;;  %v10408_v62 = vsel %vm10363_vm11, %v9869_v52, %v1594_v42  ;;  %v10410_v45 = vshrl.u32 %v2027_v28, 23  ;;  %v13193_v48 = vld [vmem:[#allocation11_spill] sm:$0xff] }
 0x1ef   : > { %v993_v7 = vsel %vm983_vm6, nan, %v992_v13  ;;  %vm1932_vm12 = vcmp.gt.s32.totalorder %v1931_v19, 0  ;;  %v10421_v56 = vrot.slane %v2148_v27, %v13121_v61  ;;  %v10425_v47 = vadd.f32 1.0, %v8358_v10 }
 0x1f0   : > { %13184 = vst [vmem:[#allocation31_spill] sm:$0xff] %v10403_v9  ;;  %2998 = vrot.lane.b32.xlu1 %v10403_v9, %s8868_s4  ;;  %v7069_v31 = vmul.f32 -1.442695, %v10403_v9  ;;  %v10418_v0 = vmul.f32 %v9884_v5, %v993_v7  ;;  %v1933_v36 = vsel %vm1932_vm12, %v1931_v19, 0  ;;  %v13187_v59 = vsub.s32 1, %v13186_v34 }
 0x1f1   : > { %v1935_v35 = vand.u32 31, %v1933_v36  ;;  %v13188_v42 = vand.u32 2147483647, %v13143_v25  ;;  %v10438_v28 = vadd.s32 127, %v1791_v22  ;;  %8363 = vpow2.f32 %v7067_v63 }
 0x1f2   : > { %13185 = vst [vmem:[#allocation32_spill] sm:$0xff] %v10418_v0  ;;  %v10429_v23 = vrot.slane %v2148_v27, %v13187_v59  ;;  %2996 = vrot.lane.b32.xlu0 %v10418_v0, %s8868_s4  ;;  %v10442_v29 = vshll.u32 %v1929_v30, 8  ;;  %v10444_v55 = vpop.eup %8359  ;;  %v7068_v21 = vmul.f32 -1.442695, %v10418_v0  ;;  %v1934_v18 = vshrl.u32 %v1933_v36, 5 }
 0x1f3   : > { %vm10433_vm13 = vcmp.le.f32.partialorder %v13188_v42, 0.7853982  ;;  %v1936_v37 = vsub.s32 32, %v1935_v35  ;;  %v1286_v19 = vsub.s32 4, %v13191_v50  ;;  %8365 = vpow2.f32 %v7069_v31 }
 0x1f4   : > { %v1938_v12 = vshll.u32 %v13085_v4, %v1935_v35  ;;  %v13192_v10 = vmov 2475754826   ;;  %v1288_v30 = vsel %vm10433_vm13, %v13143_v25, %v13193_v48  ;;  %v10456_v27 = vpop.eup %8361  ;;  %v13194_v63 = vmov 2131351028  }
 0x1f5   : > { %v1941_v53 = vshll.u32 %v13192_v10, %v1935_v35  ;;  %v1939_v22 = vshrl.u32 %v13192_v10, %v1936_v37  ;;  %v1942_v13 = vshrl.u32 %v13194_v63, %v1936_v37  ;;  %v1944_v7 = vshll.u32 %v13194_v63, %v1935_v35  ;;  %v10469_v63 = vpop.permute.xlu1 %2158 }
 0x1f6   : > { %v13195_v36 = vmov 2102212464   ;;  %v13196_v59 = vmov 920167782   ;;  %v1951_v46 = vshrl.u32 %v13079_v60, %v1936_v37  ;;  %8367 = vpow2.f32 %v7068_v21 }
 0x1f7   : > { %v1945_v34 = vshrl.u32 %v13195_v36, %v1936_v37  ;;  %v1947_v31 = vshll.u32 %v13195_v36, %v1935_v35  ;;  %v1948_v42 = vshrl.u32 %v13196_v59, %v1936_v37  ;;  %v1950_v14 = vshll.u32 %v13196_v59, %v1935_v35 }
 0x1f8   : > { %v1940_v48 = vor.u32 %v1939_v22, %v1938_v12  ;;  %v1943_v32 = vor.u32 %v1942_v13, %v1941_v53  ;;  %v1937_v43 = vshrl.u32 %v13085_v4, %v1936_v37  ;;  %vm1953_vm14 = vcmp.lt.s32.totalorder %v1934_v18, 1 }
 0x1f9   : > { %v1946_v40 = vor.u32 %v1945_v34, %v1944_v7  ;;  %v1949_v3 = vor.u32 %v1948_v42, %v1947_v31  ;;  %v1952_v39 = vor.u32 %v1951_v46, %v1950_v14  ;;  %vm1954_vm8 = vcmp.lt.s32.totalorder %v1934_v18, 2  ;;  %v10473_v46 = vpop.permute.xlu0 %2254  ;;  %v10497_v31 = vpop.permute.xlu1 %2162 }
 0x1fa   : > { %vm1955_vm10 = vcmp.lt.s32.totalorder %v1934_v18, 3  ;;  %vm1956_vm6 = vcmp.lt.s32.totalorder %v1934_v18, 4  ;;  %v1961_v36 = vsel %vm1953_vm14, %v1940_v48, %v1943_v32  ;;  %v1957_v20 = vsel %vm1953_vm14, %v1937_v43, %v1940_v48  ;;  %v13199_v18 = vld [vmem:[#allocation17_spill] sm:$0xff] }
 0x1fb   : > { %v1958_v35 = vsel %vm1956_vm6, %v1946_v40, 2102212464  ;;  %v1962_v59 = vsel %vm1956_vm6, %v1949_v3, 920167782  ;;  %v1965_v60 = vsel %vm1953_vm14, %v1943_v32, %v1946_v40  ;;  %v1966_v10 = vsel %vm1956_vm6, %v1952_v39, 1326507024 }
 0x1fc   : > { %v1963_v21 = vsel %vm1955_vm10, %v1946_v40, %v1962_v59  ;;  %v1967_v12 = vsel %vm1955_vm10, %v1949_v3, %v1966_v10  ;;  %8369 = vcosq.f32 %v1288_v30  ;;  %v1959_v53 = vsel %vm1955_vm10, %v1943_v32, %v1958_v35  ;;  %v13203_v59 = vld [vmem:[#allocation13_spill] sm:$0xff] }
 0x1fd   : > { %v1964_v37 = vsel %vm1954_vm8, %v1961_v36, %v1963_v21  ;;  %v1968_v14 = vsel %vm1954_vm8, %v1965_v60, %v1967_v12  ;;  %8371 = vsinq.f32 %v1288_v30  ;;  %v1771_v39 = vadd.s32 %v10239_v57, %v10249_v51  ;;  %v13197_v30 = vld [vmem:[#allocation24_spill] sm:$0xff]  ;;  %v10524_v24 = vpop.permute.xlu0 %2266 }
 0x1fe   : > { %v10476_v22 = vmul.u32.u64.low %v10442_v29, %v1968_v14  ;;  %v10477_v13 = vmul.u32.u64.high %v10442_v29, %v1968_v14, %v10476_v22  ;;  %v10480_v7 = vmul.u32.u64.low %v10442_v29, %v1964_v37  ;;  %v10481_v34 = vmul.u32.u64.high %v10442_v29, %v1964_v37, %v10480_v7  ;;  %v8364_v32 = vpop.eup %8363 }
 0x1ff   : > { %8373 = vcosq.f32 %v10408_v62  ;;  %v7060_v43 = vadd.s32 4294967169, %v10410_v45  ;;  %v1287_v60 = vsel %vm1202_vm1, %v1286_v19, %v13191_v50  ;;  %v1960_v40 = vsel %vm1954_vm8, %v1957_v20, %v1959_v53  ;;  %v2333_v22 = vld [vmem:[%s12935_s1 + $0x20] sm:$0xff] }
 0x200   : > { %v2217_v3 = vmul.f32 %v10421_v56, %v10384_v38  ;;  %v2301_v10 = vmul.f32 %v10429_v23, %v10398_v16  ;;  %v1183_v36 = vsub.s32 4, %v13197_v30  ;;  %v1788_v57 = vshll.u32 %v10319_v33, %v10390_v44  ;;  %v8366_v20 = vpop.eup %8365 }
 0x201   : > { %v13198_v51 = vsub.s32 32, %v10390_v44  ;;  %v1793_v50 = vshll.u32 %v10438_v28, 23  ;;  %8375 = vrcp.f32 %v10425_v47  ;;  %vm1978_vm1 = vc.u32 %v10477_v13, %v10480_v7 }
 0x202   : > { %v1979_v38 = vadd.s32 1, %v10481_v34  ;;  %v1289_v16 = vsel %vm10433_vm13, 0, %v1287_v60  ;;  %v13200_v19 = vand.u32 2147483647, %v13199_v18  ;;  %v2405_v44 = vadd.f32 1.0, %v8364_v32 }
 0x203   : > { %v1789_v45 = vshrl.u32 %v1771_v39, %v13198_v51  ;;  %v1976_v28 = vmul.u32 %v10442_v29, %v1960_v40  ;;  %v1184_v47 = vsel %vm1099_vm3, %v1183_v36, %v13197_v30  ;;  %v2218_v35 = vmul.f32 %v10421_v56, %v10423_v17  ;;  %v8368_v29 = vpop.eup %8367 }
 0x204   : > { %vm10512_vm15 = vcmp.le.f32.partialorder %v13200_v19, 0.7853982  ;;  %v1980_v48 = vsel %vm1978_vm1, %v1979_v38, %v10481_v34  ;;  %v2302_v21 = vmul.f32 %v10429_v23, %v10448_v41  ;;  %v10533_v53 = vadd.s32 1, %v7060_v43  ;;  %v2247_v41 = vpop.permute.xlu1 %2246 }
 0x205   : > { %v1185_v42 = vsel %vm10512_vm15, %v13199_v18, %v13203_v59  ;;  %v10531_v12 = vor.u32 %v1789_v45, %v1788_v57  ;;  %v1981_v37 = vadd.s32 %v1980_v48, %v1976_v28  ;;  %v2317_v14 = vadd.f32 %v2301_v10, %v2217_v3  ;;  %v10554_v45 = vpop.permute.xlu0 %2278 }
 0x206   : > { %8377 = vcosq.f32 %v1185_v42  ;;  %v1293_v39 = vand.u32 3, %v1289_v16  ;;  %v1186_v34 = vsel %vm10512_vm15, 0, %v1184_v47  ;;  %v2402_v17 = vadd.f32 1.0, %v10444_v55 }
 0x207   : > { %8379 = vsinq.f32 %v1185_v42  ;;  %v10541_v60 = vor.u32 4788187, %v1793_v50  ;;  %v2407_v32 = vadd.f32 1.0, %v8366_v20  ;;  %v1982_v43 = vadd.s32 536870912, %v1981_v37  ;;  %v13204_v42 = vld [vmem:[#allocation21_spill] sm:$0xff] }
 0x208   : > { %8381 = vrcp.f32 %v2405_v44  ;;  %v2406_v40 = vadd.f32 1.0, %v8368_v29  ;;  %v10544_v3 = vrot.slane %v2333_v22, %v13121_v61  ;;  %v2318_v10 = vadd.f32 %v2302_v21, %v2218_v35  ;;  %v2251_v44 = vpop.permute.xlu1 %2250  ;;  %v13208_v22 = vld [vmem:[#allocation27_spill] sm:$0xff] }
 0x209   : > { %8383 = vrcp.f32 %v2402_v17  ;;  %v8370_v30 = vpop.eup %8369  ;;  %v10546_v36 = vshrl.u32 %v1982_v43, 30  ;;  %v10548_v57 = vand.u32 3, %v1186_v34  ;;  %v2303_v55 = vmul.f32 %v10429_v23, %v10466_v2 }
 0x20a   : > { %v2219_v51 = vmul.f32 %v10421_v56, %v10469_v63  ;;  %v8372_v50 = vpop.eup %8371  ;;  %vm1292_vm3 = vweird.f32 %v13143_v25  ;;  %vm1294_vm2 = vcmp.lt.s32.totalorder %v1293_v39, 2  ;;  %vm1295_vm12 = vcmp.eq.s32.totalorder %v1293_v39, 0 }
 0x20b   : > { %v1299_v20 = vxor.u32 2147483648, %v8370_v30  ;;  %8385 = vrcp.f32 %v2407_v32  ;;  %v1984_v38 = vshll.u32 %v10546_v36, 30  ;;  %v1296_v16 = vxor.u32 2147483648, %v8372_v50 }
 0x20c   : > { %vm1298_vm13 = vcmp.eq.s32.totalorder %v1293_v39, 2  ;;  %v10558_v19 = vpop.eup %8373  ;;  %8387 = vrcp.f32 %v2406_v40  ;;  %v2339_v33 = vadd.f32 %v10544_v3, %v2318_v10  ;;  %v2338_v63 = vadd.f32 %v10544_v3, %v2317_v14  ;;  %v13209_v39 = vld [vmem:[#allocation25_spill] sm:$0xff]  ;;  %v2167_v40 = vpop.permute.xlu0 %2166 }
 0x20d   : > { %v1300_v2 = vsel %vm1298_vm13, %v1299_v20, %v8372_v50  ;;  %v10562_v28 = vsub.s32 %v1981_v37, %v1984_v38  ;;  %v1297_v47 = vsel %vm1295_vm12, %v8370_v30, %v1296_v16  ;;  %vm1192_vm14 = vcmp.eq.s32.totalorder %v10548_v57, 0 }
 0x20e   : > { %v2319_v59 = vadd.f32 %v2303_v55, %v2219_v51  ;;  %v13205_v48 = vand.u32 2147483647, %v13204_v42  ;;  %v8376_v21 = vpop.eup %8375  ;;  %v1301_v29 = vsel %vm1294_vm2, %v1297_v47, %v1300_v2  ;;  %vm1191_vm10 = vcmp.lt.s32.totalorder %v10548_v57, 2  ;;  %v2171_v2 = vpop.permute.xlu1 %2170 }
 0x20f   : > { %v2220_v14 = vmul.f32 %v10421_v56, %v10497_v31  ;;  %v2304_v37 = vmul.f32 %v10429_v23, %v2247_v41  ;;  %v1987_v17 = vsub.s32 0, %v10562_v28  ;;  %v1302_v32 = vsel %vm1292_vm3, nan, %v1301_v29 }
 0x210   : > { %vm10567_vm8 = vcmp.le.f32.partialorder %v13205_v48, 0.7853982  ;;  %vm1189_vm6 = vweird.f32 %v13199_v18  ;;  %v1492_v43 = vsub.s32 4, %v13209_v39  ;;  %v10586_v31 = vmul.f32 %v9884_v5, %v1302_v32 }
 0x211   : > { %v1494_v34 = vsel %vm10567_vm8, %v13204_v42, %v13208_v22  ;;  %vm1195_vm1 = vcmp.eq.s32.totalorder %v10548_v57, 2  ;;  %vm2495_vm15 = vcmask 523264   ;;  %v7057_v10 = vmin.u32 %v1987_v17, %v10562_v28 }
 0x212   : > { %8389 = vcosq.f32 %v1494_v34  ;;  %13210 = vst [vmem:[#allocation5_spill] sm:$0xff] %v10586_v31  ;;  %v2451_v30 = vmul.f32 %v8376_v21, %v10269_v1  ;;  %v2305_v25 = vmul.f32 %v10429_v23, %v2251_v44  ;;  %v13211_v55 = vand.u32 2147483647, %v13173_v58  ;;  %3002 = vrot.lane.b32.xlu1 %v10586_v31, %s8868_s4 }
 0x213   : > { %8391 = vsinq.f32 %v1494_v34  ;;  %v8378_v41 = vpop.eup %8377  ;;  %v7071_v50 = vmul.f32 -1.442695, %v10586_v31  ;;  %v2221_v38 = vmul.f32 %v10421_v56, %v2167_v40  ;;  %v2340_v47 = vadd.f32 %v10544_v3, %v2319_v59 }
 0x214   : > { %vm10594_vm3 = vcmp.le.f32.partialorder %v13211_v55, 0.7853982  ;;  %v1196_v20 = vxor.u32 2147483648, %v8378_v41  ;;  %v8380_v44 = vpop.eup %8379  ;;  %v2306_v48 = vmul.f32 %v10429_v23, %v10473_v46  ;;  %v2320_v21 = vadd.f32 %v2304_v37, %v2220_v14  ;;  %v13214_v55 = vld [vmem:[#allocation8_spill] sm:$0xff]  ;;  %v13215_v14 = vld [vmem:[#allocation6_spill] sm:$0xff] }
 0x215   : > { %v1391_v16 = vsel %vm10594_vm3, %v13173_v58, %v10358_v6  ;;  %v1493_v29 = vsel %vm1408_vm4, %v1492_v43, %v13209_v39  ;;  %v8382_v22 = vpop.eup %8381  ;;  %v1989_v34 = vclz %v7057_v10  ;;  %8393 = vpow2.f32 %v7071_v50 }
 0x216   : > { %v1193_v17 = vxor.u32 2147483648, %v8380_v44  ;;  %v1197_v32 = vsel %vm1195_vm1, %v1196_v20, %v8380_v44  ;;  %v8384_v6 = vpop.eup %8383  ;;  %v2467_v40 = vmul.f32 %v2451_v30, %v2339_v33  ;;  %v2452_v59 = vmul.f32 %v10456_v27, %v10159_v8 }
 0x217   : > { %v1389_v1 = vsub.s32 4, %v13214_v55  ;;  %8395 = vcosq.f32 %v1391_v16  ;;  %v2450_v37 = vmul.f32 %v8384_v6, %v13215_v14  ;;  %v2321_v39 = vadd.f32 %v2305_v25, %v2221_v38 }
 0x218   : > { %v1194_v46 = vsel %vm1192_vm14, %v8378_v41, %v1193_v17  ;;  %8397 = vsinq.f32 %v1391_v16  ;;  %v2341_v10 = vadd.f32 %v10544_v3, %v2320_v21  ;;  %v1495_v33 = vsel %vm10567_vm8, 0, %v1493_v29  ;;  %v8386_v30 = vpop.eup %8385  ;;  %v10628_v17 = vpop.permute.xlu1 %2174 }
 0x219   : > { %v1198_v43 = vsel %vm1191_vm10, %v1194_v46, %v1197_v32  ;;  %v2222_v27 = vmul.f32 %v10421_v56, %v2171_v2  ;;  %v7058_v50 = vadd.s32 4294967294, %v1989_v34  ;;  %v2466_v41 = vmul.f32 %v2450_v37, %v2338_v63  ;;  %v8388_v25 = vpop.eup %8387 }
 0x21a   : > { %v1199_v20 = vsel %vm1189_vm6, nan, %v1198_v43  ;;  %v2468_v44 = vmul.f32 %v2452_v59, %v2340_v47  ;;  %v1795_v57 = vand.u32 2147483647, %v10541_v60  ;;  %vm2035_vm4 = vcmp.gt.s32.totalorder %v10533_v53, 0 }
 0x21b   : > { %v10633_v38 = vmul.f32 %v9884_v5, %v1199_v20  ;;  %v2453_v35 = vmul.f32 %v8382_v22, %v10344_v11  ;;  %7658 = vmatprep.mubr.msk.f32.mxu0 %vm2495_vm15, %v2466_v41  ;;  %v1499_v16 = vand.u32 3, %v1495_v33  ;;  %v2342_v18 = vadd.f32 %v10544_v3, %v2321_v39 }
 0x21c   : > { %v1390_v63 = vsel %vm1305_vm9, %v1389_v1, %v13214_v55  ;;  %v2322_v2 = vadd.f32 %v2306_v48, %v2222_v27  ;;  %8399 = vsinq.f32 %v10408_v62  ;;  %v1797_v60 = vcvt.s32.f32 %v10531_v12  ;;  %7659 = vmatmul.mubr.msk.f32.vlgmr.msra.gmra.mxu0 %vm2495_vm15, %v2467_v40  ;;  %v2259_v59 = vpop.permute.xlu1 %2258  ;;  %v13217_v55 = vld [vmem:[#allocation10_spill] sm:$0xff] }
 0x21d   : > { %13216 = vst [vmem:[#allocation22_spill] sm:$0xff] %v10633_v38  ;;  %v7070_v47 = vmul.f32 -1.442695, %v10633_v38  ;;  %3000 = vrot.lane.b32.xlu0 %v10633_v38, %s8868_s4  ;;  %v2469_v21 = vmul.f32 %v2453_v35, %v2341_v10  ;;  %v10648_v22 = vsel %vm2035_vm4, %v10533_v53, 0  ;;  %vm7059_vm2 = vcmp.lt.s32.totalorder %v7058_v50, 0  ;;  %7661 = vmatprep.mubr.msk.f32.mxu0 %vm2495_vm15, %v2468_v44 }
 0x21e   : > { %v2343_v1 = vadd.f32 %v10544_v3, %v2322_v2  ;;  %v2454_v62 = vmul.f32 %v8388_v25, %v10418_v0  ;;  %v1798_v48 = vmul.f32 %v1797_v60, %v1795_v57  ;;  %v1392_v32 = vsel %vm10594_vm3, 0, %v1390_v63 }
 0x21f   : > { %v8390_v29 = vpop.eup %8389  ;;  %8401 = vpow2.f32 %v7070_v47  ;;  %vm1504_vm9 = vcmp.eq.s32.totalorder %v1499_v16, 2  ;;  %v2455_v53 = vmul.f32 %v8386_v30, %v10403_v9  ;;  %vm1717_vm12 = vcmp.lt.s32.totalorder %v13217_v55, 0 }
 0x220   : > { %v8392_v12 = vpop.eup %8391  ;;  %v1505_v34 = vxor.u32 2147483648, %v8390_v29  ;;  %v2470_v40 = vmul.f32 %v2454_v62, %v2342_v18  ;;  %v10658_v46 = vand.u32 31, %v10648_v22  ;;  %v10661_v37 = vsel %vm7059_vm2, 0, %v7058_v50  ;;  %7662 = vmatmul.mubr.msk.f32.gmra.mxu0 %vm2495_vm15, %v2469_v21  ;;  %v2263_v47 = vpop.permute.xlu1 %2262 }
 0x221   : > { %v1502_v6 = vxor.u32 2147483648, %v8392_v12  ;;  %vm1501_vm13 = vcmp.eq.s32.totalorder %v1499_v16, 0  ;;  %vm1500_vm14 = vcmp.lt.s32.totalorder %v1499_v16, 2  ;;  %v1396_v43 = vand.u32 3, %v1392_v32 }
 0x222   : > { %v1506_v39 = vsel %vm1504_vm9, %v1505_v34, %v8392_v12  ;;  %7664 = vmatprep.mubr.msk.f32.mxu0 %vm2495_vm15, %v2470_v40  ;;  %v2471_v10 = vmul.f32 %v2455_v53, %v2343_v1  ;;  %v8394_v33 = vpop.eup %8393  ;;  %v1799_v27 = vxor.u32 2147483648, %v1798_v48  ;;  %vm1498_vm8 = vweird.f32 %v13204_v42  ;;  %v2179_v12 = vpop.permute.xlu0 %2178 }
 0x223   : > { %v1503_v51 = vsel %vm1501_vm13, %v8390_v29, %v1502_v6  ;;  %v13218_v20 = vand.u32 2147483647, %v9856_v26  ;;  %v1997_v44 = vsub.s32 4294967266, %v10661_v37  ;;  %v2409_v25 = vadd.f32 1.0, %v8394_v33 }
 0x224   : > { %v1507_v30 = vsel %vm1500_vm14, %v1503_v51, %v1506_v39  ;;  %v8396_v41 = vpop.eup %8395  ;;  %v1977_v42 = vadd.s32 %v10480_v7, %v10477_v13  ;;  %v1993_v18 = vsub.s32 32, %v10661_v37  ;;  %7665 = vmatmul.mubr.msk.f32.gmra.mxu0 %vm2495_vm15, %v2471_v10  ;;  %vm1398_vm6 = vcmp.eq.s32.totalorder %v1396_v43, 0  ;;  %v13222_v13 = vld [vmem:[#allocation19_spill] sm:$0xff]  ;;  %v10693_v51 = vpop.permute.xlu1 %2182 }
 0x225   : > { %vm10668_vm10 = vcmp.le.f32.partialorder %v13218_v20, 0.7853982  ;;  %v1508_v57 = vsel %vm1498_vm8, nan, %v1507_v30  ;;  %v8398_v16 = vpop.eup %8397  ;;  %v1402_v2 = vxor.u32 2147483648, %v8396_v41  ;;  %8403 = vrcp.f32 %v2409_v25 }
 0x226   : > { %v1700_v35 = vsel %vm10668_vm10, %v9856_v26, %v10380_v54  ;;  %v10681_v63 = vmul.f32 %v9884_v5, %v1508_v57  ;;  %v1399_v60 = vxor.u32 2147483648, %v8398_v16  ;;  %vm1401_vm1 = vcmp.eq.s32.totalorder %v1396_v43, 2 }
 0x227   : > { %v1403_v21 = vsel %vm1401_vm1, %v1402_v2, %v8398_v16  ;;  %v1698_v7 = vsub.s32 4, %v13222_v13  ;;  %8405 = vcosq.f32 %v1700_v35  ;;  %v1998_v29 = vadd.s32 127, %v1997_v44 }
 0x228   : > { %13221 = vst [vmem:[#allocation11_spill] sm:$0xff] %v10681_v63  ;;  %3006 = vrot.lane.b32.xlu1 %v10681_v63, %s8868_s4  ;;  %v7073_v54 = vmul.f32 -1.442695, %v10681_v63  ;;  %vm1397_vm3 = vcmp.lt.s32.totalorder %v1396_v43, 2  ;;  %v1400_v1 = vsel %vm1398_vm6, %v8396_v41, %v1399_v60  ;;  %8407 = vsinq.f32 %v1700_v35 }
 0x229   : > { %vm1395_vm4 = vweird.f32 %v13173_v58  ;;  %v1404_v62 = vsel %vm1397_vm3, %v1400_v1, %v1403_v21  ;;  %v8400_v34 = vpop.eup %8399  ;;  %v1800_v32 = vsel %vm1717_vm12, %v1799_v27, %v1798_v48  ;;  %v1995_v6 = vshrl.u32 %v1977_v42, %v1993_v18  ;;  %v13224_v48 = vld [vmem:[#allocation7_spill] sm:$0xff] }
 0x22a   : > { %8409 = vpow2.f32 %v7073_v54  ;;  %v1405_v40 = vsel %vm1395_vm4, nan, %v1404_v62  ;;  %v2223_v53 = vmul.f32 %v10421_v56, %v10628_v17  ;;  %v8869_v39 = vmov 5  }
 0x22b   : > { %8327 = vset.pattern.permute.xlu1 %v8869_v39  ;;  %8328 = vset.pattern.permute.xlu0 %v8869_v39  ;;  %v10696_v43 = vmul.f32 %v9884_v5, %v1405_v40  ;;  %v2307_v58 = vmul.f32 %v10429_v23, %v2259_v59  ;;  %v1699_v10 = vsel %vm1614_vm5, %v1698_v7, %v13222_v13  ;;  %v1595_v33 = vsub.s32 4, %v13224_v48 }
 0x22c   : > { %v8402_v27 = vpop.eup %8401  ;;  %v1999_v30 = vshll.u32 %v1998_v29, 23  ;;  %v10705_v17 = vmul.f32 %v10429_v23, %v10524_v24  ;;  %v2308_v20 = vmul.f32 %v10429_v23, %v2263_v47  ;;  %v2224_v41 = vmul.f32 %v10421_v56, %v2179_v12  ;;  %v2187_v47 = vpop.permute.xlu1 %2186 }
 0x22d   : > { %13223 = vst [vmem:[#allocation24_spill] sm:$0xff] %v10696_v43  ;;  %v1994_v44 = vshll.u32 %v10562_v28, %v10661_v37  ;;  %v2408_v59 = vadd.f32 1.0, %v8402_v27  ;;  %v7072_v25 = vmul.f32 -1.442695, %v10696_v43  ;;  %3004 = vrot.lane.b32.xlu0 %v10696_v43, %s8868_s4  ;;  %v1596_v57 = vsel %vm1511_vm7, %v1595_v33, %v13224_v48  ;;  %v13229_v33 = vld [vmem:[#allocation26_spill] sm:$0xff] }
 0x22e   : > { %v1701_v24 = vsel %vm10668_vm10, 0, %v1699_v10  ;;  %v1598_v35 = vsel %vm10363_vm11, 0, %v1596_v57  ;;  %v1605_v16 = vxor.u32 2147483648, %v8400_v34  ;;  %v1608_v42 = vxor.u32 2147483648, %v10558_v19 }
 0x22f   : > { %v10722_v28 = vor.u32 %v1995_v6, %v1994_v44  ;;  %8411 = vrcp.f32 %v2408_v59  ;;  %v2323_v37 = vadd.f32 %v2307_v58, %v2223_v53  ;;  %v1602_v18 = vand.u32 3, %v1598_v35 }
 0x230   : > { %v10724_v2 = vor.u32 4788187, %v1999_v30  ;;  %8413 = vpow2.f32 %v7072_v25  ;;  %v2324_v60 = vadd.f32 %v2308_v20, %v2224_v41  ;;  %v1801_v54 = vsub.s32 4, %v10307_v15 }
 0x231   : > { %v1705_v50 = vand.u32 3, %v1701_v24  ;;  %vm1604_vm5 = vcmp.eq.s32.totalorder %v1602_v18, 0  ;;  %vm1607_vm7 = vcmp.eq.s32.totalorder %v1602_v18, 2  ;;  %v13225_v49 = vand.u32 2147483647, %v13217_v55 }
 0x232   : > { %vm1603_vm2 = vcmp.lt.s32.totalorder %v1602_v18, 2  ;;  %v1606_v13 = vsel %vm1604_vm5, %v10558_v19, %v1605_v16  ;;  %v1609_v7 = vsel %vm1607_vm7, %v1608_v42, %v8400_v34  ;;  %v1802_v29 = vsel %vm1717_vm12, %v1801_v54, %v10307_v15  ;;  %v8404_v1 = vpop.eup %8403 }
 0x233   : > { %vm10729_vm11 = vcmp.le.f32.partialorder %v13225_v49, 0.7853982  ;;  %v2344_v62 = vadd.f32 %v10544_v3, %v2323_v37  ;;  %vm1601_vm9 = vweird.f32 %v9869_v52  ;;  %v1610_v12 = vsel %vm1603_vm2, %v1606_v13, %v1609_v7 }
 0x234   : > { %v1803_v6 = vsel %vm10729_vm11, %v13217_v55, %v1800_v32  ;;  %v8406_v40 = vpop.eup %8405  ;;  %v2001_v53 = vand.u32 2147483647, %v10724_v2  ;;  %v1611_v39 = vsel %vm1601_vm9, nan, %v1610_v12  ;;  %v1804_v19 = vsel %vm10729_vm11, 0, %v1802_v29  ;;  %v2271_v32 = vpop.permute.xlu1 %2270 }
 0x235   : > { %8415 = vcosq.f32 %v1803_v6  ;;  %v8408_v34 = vpop.eup %8407  ;;  %v2345_v15 = vadd.f32 %v10544_v3, %v2324_v60  ;;  %v1711_v58 = vxor.u32 2147483648, %v8406_v40  ;;  %v10747_v10 = vmul.f32 %v9884_v5, %v1611_v39 }
 0x236   : > { %8417 = vsinq.f32 %v1803_v6  ;;  %vm1707_vm12 = vcmp.eq.s32.totalorder %v1705_v50, 0  ;;  %v1708_v48 = vxor.u32 2147483648, %v8408_v34  ;;  %vm1710_vm13 = vcmp.eq.s32.totalorder %v1705_v50, 2 }
 0x237   : > { %13228 = vst [vmem:[#allocation17_spill] sm:$0xff] %v10747_v10  ;;  %v8410_v52 = vpop.eup %8409  ;;  %v1818_v27 = vand.u32 2147483647, %v13229_v33  ;;  %v1712_v20 = vsel %vm1710_vm13, %v1711_v58, %v8408_v34  ;;  %v7074_v41 = vmul.f32 -1.442695, %v10747_v10  ;;  %3008 = vrot.lane.b32.xlu0 %v10747_v10, %s8868_s4  ;;  %v10753_v44 = vand.u32 3, %v1804_v19 }
 0x238   : > { %v2411_v30 = vadd.f32 1.0, %v8410_v52  ;;  %vm1704_vm14 = vweird.f32 %v9856_v26  ;;  %vm1706_vm8 = vcmp.lt.s32.totalorder %v1705_v50, 2  ;;  %v1709_v59 = vsel %vm1707_vm12, %v8406_v40, %v1708_v48  ;;  %v13236_v48 = vld [vmem:[#allocation28_spill] sm:$0xff] }
 0x239   : > { %v2457_v25 = vmul.f32 %v8404_v1, %v10586_v31  ;;  %v1713_v57 = vsel %vm1706_vm8, %v1709_v59, %v1712_v20  ;;  %v10759_v24 = vmul.f32 %v10421_v56, %v10693_v51  ;;  %v10762_v35 = vmul.f32 %v10421_v56, %v2187_v47  ;;  %v13231_v51 = vld [vmem:[#allocation9_spill] sm:$0xff]  ;;  %v13232_v47 = vld [vmem:[#allocation12_spill] sm:$0xff]  ;;  %v13238_v59 = vld [vmem:[#allocation15_spill] sm:$0xff] }
 0x23a   : > { %v10765_v16 = vmul.f32 %v10429_v23, %v2271_v32  ;;  %v1714_v42 = vsel %vm1704_vm14, nan, %v1713_v57  ;;  %8419 = vpow2.f32 %v7074_v41  ;;  %v1825_v26 = vand.u32 8388607, %v1818_v27  ;;  %v13237_v41 = vld [vmem:[#allocation30_spill] sm:$0xff] }
 0x23b   : > { %v2473_v37 = vmul.f32 %v2457_v25, %v2345_v15  ;;  %8421 = vrcp.f32 %v2411_v30  ;;  %v10770_v18 = vmul.f32 %v9884_v5, %v1714_v42  ;;  %vm1813_vm10 = vcmp.eq.s32.totalorder %v10753_v44, 2  ;;  %v8779_v42 = vld [vmem:[%s8944_s25 + $0x78] sm:$0xff] }
 0x23c   : > { %v1835_v60 = vshll.u32 %v13085_v4, %v13231_v51  ;;  %v13233_v54 = vmov 2475754826   ;;  %v8412_v49 = vpop.eup %8411  ;;  %v1826_v21 = vor.u32 8388608, %v1825_v26  ;;  %v13234_v7 = vmov 2131351028   ;;  %v13239_v26 = vld [vmem:[#allocation29_spill] sm:$0xff] }
 0x23d   : > { %13230 = vst [vmem:[#allocation13_spill] sm:$0xff] %v10770_v18  ;;  %v1836_v50 = vshrl.u32 %v13233_v54, %v13232_v47  ;;  %v1838_v13 = vshll.u32 %v13233_v54, %v13231_v51  ;;  %v1839_v29 = vshrl.u32 %v13234_v7, %v13232_v47  ;;  %v1841_v1 = vshll.u32 %v13234_v7, %v13231_v51  ;;  %v8414_v12 = vpop.eup %8413 }
 0x23e   : > { %3010 = vrot.lane.b32.xlu1 %v10770_v18, %s8868_s4  ;;  %v7075_v6 = vmul.f32 -1.442695, %v10770_v18  ;;  %v2456_v40 = vmul.f32 %v8412_v49, %v10633_v38  ;;  %v13235_v19 = vmov 2102212464   ;;  %v2410_v15 = vadd.f32 1.0, %v8414_v12 }
 0x23f   : > { %v1837_v39 = vor.u32 %v1836_v50, %v1835_v60  ;;  %v1842_v34 = vshrl.u32 %v13235_v19, %v13232_v47  ;;  %v1834_v58 = vshrl.u32 %v13085_v4, %v13232_v47  ;;  %v1840_v52 = vor.u32 %v1839_v29, %v1838_v13 }
 0x240   : > { %vm1850_vm6 = vcmp.lt.s32.totalorder %v13236_v48, 1  ;;  %8423 = vpow2.f32 %v7075_v6  ;;  %v2472_v32 = vmul.f32 %v2456_v40, %v2344_v62  ;;  %vm1852_vm1 = vcmp.lt.s32.totalorder %v13236_v48, 3 }
 0x241   : > { %v1843_v30 = vor.u32 %v1842_v34, %v1841_v1  ;;  %8425 = vrcp.f32 %v2410_v15  ;;  %vm1851_vm3 = vcmp.lt.s32.totalorder %v13236_v48, 2  ;;  %v1858_v20 = vsel %vm1850_vm6, %v1837_v39, %v1840_v52 }
 0x242   : > { %v1864_v25 = vsel %vm1852_vm1, %v13238_v59, %v13237_v41  ;;  %v8416_v57 = vpop.eup %8415  ;;  %2953 = vperm.xlu1 %8327, %v8779_v42   ;;  %7667 = vmatprep.mubr.msk.f32.mxu0 %vm2495_vm15, %v2472_v32  ;;  %v1866_v47 = vshll.u32 %v1826_v21, 8  ;;  %v1854_v13 = vsel %vm1850_vm6, %v1834_v58, %v1837_v39  ;;  %v2003_v15 = vcvt.s32.f32 %v10722_v28  ;;  %v8780_v58 = vld [vmem:[%s8944_s25 + $0x70] sm:$0xff] }
 0x243   : > { %v1855_v62 = vsel %vm1853_vm0, %v1843_v30, 2102212464  ;;  %v1860_v51 = vsel %vm1852_vm1, %v1843_v30, %v13239_v26  ;;  %v1862_v60 = vsel %vm1850_vm6, %v1840_v52, %v1843_v30  ;;  %v8418_v50 = vpop.eup %8417  ;;  %7668 = vmatmul.mubr.msk.f32.gmra.mxu0 %vm2495_vm15, %v2473_v37  ;;  %v1814_v49 = vxor.u32 2147483648, %v8416_v57 }
 0x244   : > { %v1861_v29 = vsel %vm1851_vm3, %v1858_v20, %v1860_v51  ;;  %v1865_v1 = vsel %vm1851_vm3, %v1862_v60, %v1864_v25  ;;  %v1811_v12 = vxor.u32 2147483648, %v8418_v50  ;;  %v1856_v6 = vsel %vm1852_vm1, %v1840_v52, %v1855_v62  ;;  %v8781_v62 = vld [vmem:[%s8944_s25 + $0x68] sm:$0xff]  ;;  %v2191_v60 = vpop.permute.xlu0 %2190 }
 0x245   : > { %v10818_v40 = vmul.u32.u64.low %v1866_v47, %v1865_v1  ;;  %v10819_v34 = vmul.u32.u64.high %v1866_v47, %v1865_v1, %v10818_v40  ;;  %vm1810_vm0 = vcmp.eq.s32.totalorder %v10753_v44, 0  ;;  %v1815_v37 = vsel %vm1813_vm10, %v1814_v49, %v8418_v50  ;;  %v2275_v1 = vpop.permute.xlu1 %2274 }
 0x246   : > { %v10824_v21 = vmul.u32.u64.low %v1866_v47, %v1861_v29  ;;  %v10825_v39 = vmul.u32.u64.high %v1866_v47, %v1861_v29, %v10824_v21  ;;  %2949 = vperm.xlu1 %8327, %v8780_v58   ;;  %vm1809_vm4 = vcmp.lt.s32.totalorder %v10753_v44, 2  ;;  %v1812_v52 = vsel %vm1810_vm0, %v8416_v57, %v1811_v12 }
 0x247   : > { %v10832_v32 = vsub.s32 32, %v10658_v46  ;;  %vm1807_vm5 = vweird.f32 %v13217_v55  ;;  %v1816_v30 = vsel %vm1809_vm4, %v1812_v52, %v1815_v37  ;;  %v1857_v20 = vsel %vm1851_vm3, %v1854_v13, %v1856_v6  ;;  %v8420_v41 = vpop.eup %8419  ;;  %v8782_v37 = vld [vmem:[%s8944_s25 + $0x60] sm:$0xff] }
 0x248   : > { %v2004_v59 = vmul.f32 %v2003_v15, %v2001_v53  ;;  %v2326_v28 = vadd.f32 %v10765_v16, %v10762_v35  ;;  %v1817_v25 = vsel %vm1807_vm5, nan, %v1816_v30  ;;  %vm1875_vm7 = vc.u32 %v10819_v34, %v10824_v21  ;;  %v8422_v44 = vpop.eup %8421  ;;  %v13243_v30 = vld [vmem:[#allocation18_spill] sm:$0xff] }
 0x249   : > { %v2412_v57 = vadd.f32 1.0, %v8420_v41  ;;  %v2325_v55 = vadd.f32 %v10705_v17, %v10759_v24  ;;  %v10846_v42 = vmul.f32 %v9884_v5, %v1817_v25  ;;  %v1876_v48 = vadd.s32 1, %v10825_v39  ;;  %v13244_v25 = vld [vmem:[#allocation20_spill] sm:$0xff] }
 0x24a   : > { %2945 = vperm.xlu1 %8327, %v8781_v62   ;;  %v1873_v2 = vmul.u32 %v1866_v47, %v1857_v20  ;;  %v10851_v53 = vshrl.u32 %v10648_v22, 5  ;;  %v13241_v24 = vmov 920167782   ;;  %v13242_v26 = vmov 1326507024  }
 0x24b   : > { %13240 = vst [vmem:[#allocation21_spill] sm:$0xff] %v10846_v42  ;;  %8427 = vrcp.f32 %v2412_v57  ;;  %v7076_v35 = vmul.f32 -1.442695, %v10846_v42  ;;  %3012 = vrot.lane.b32.xlu0 %v10846_v42, %s8868_s4  ;;  %v1877_v17 = vsel %vm1875_vm7, %v1876_v48, %v10825_v39  ;;  %v2051_v16 = vshrl.u32 %v13241_v24, %v10832_v32 }
 0x24c   : > { %v2054_v51 = vshrl.u32 %v13242_v26, %v10832_v32  ;;  %v2347_v47 = vadd.f32 %v10544_v3, %v2326_v28  ;;  %v1878_v22 = vadd.s32 %v1877_v17, %v1873_v2  ;;  %v2005_v49 = vxor.u32 2147483648, %v2004_v59  ;;  %v2195_v26 = vpop.permute.xlu1 %2194 }
 0x24d   : > { %v8424_v50 = vpop.eup %8423  ;;  %v2346_v13 = vadd.f32 %v10544_v3, %v2325_v55  ;;  %v2227_v29 = vmul.f32 %v10421_v56, %v2191_v60  ;;  %8429 = vpow2.f32 %v7076_v35  ;;  %v2459_v40 = vmul.f32 %v8422_v44, %v10681_v63  ;;  %v8783_v35 = vld [vmem:[%s8944_s25 + $0x50] sm:$0xff] }
 0x24e   : > { %v8426_v12 = vpop.eup %8425  ;;  %v2413_v6 = vadd.f32 1.0, %v8424_v50  ;;  %2941 = vperm.xlu1 %8327, %v8782_v37   ;;  %v2311_v39 = vmul.f32 %v10429_v23, %v2275_v1  ;;  %v1879_v15 = vadd.s32 536870912, %v1878_v22  ;;  %v2050_v58 = vshll.u32 %v13235_v19, %v10658_v46 }
 0x24f   : > { %v2053_v52 = vshll.u32 %v13241_v24, %v10658_v46  ;;  %vm1923_vm11 = vcmp.lt.s32.totalorder %v13243_v30, 0  ;;  %v2458_v20 = vmul.f32 %v8426_v12, %v10696_v43  ;;  %v2475_v41 = vmul.f32 %v2459_v40, %v2347_v47 }
 0x250   : > { %8431 = vrcp.f32 %v2413_v6  ;;  %v10873_v28 = vshrl.u32 %v1879_v15, 30  ;;  %v2024_v44 = vand.u32 2147483647, %v13244_v25  ;;  %v2052_v57 = vor.u32 %v2051_v16, %v2050_v58  ;;  %v8784_v6 = vld [vmem:[%s8944_s25 + $0x48] sm:$0xff] }
 0x251   : > { %vm2059_vm2 = vcmp.lt.s32.totalorder %v10851_v53, 4  ;;  %v2006_v55 = vsel %vm1923_vm11, %v2005_v49, %v2004_v59  ;;  %v2474_v48 = vmul.f32 %v2458_v20, %v2346_v13  ;;  %v2055_v62 = vor.u32 %v2054_v51, %v2053_v52 }
 0x252   : > { %v2312_v2 = vmul.f32 %v10429_v23, %v10554_v45  ;;  %2933 = vperm.xlu1 %8327, %v8783_v35   ;;  %v2327_v17 = vadd.f32 %v2311_v39, %v2227_v29  ;;  %v1881_v24 = vshll.u32 %v10873_v28, 30  ;;  %v13245_v16 = vand.u32 2147483647, %v13243_v30 }
 0x253   : > { %7670 = vmatprep.mubr.msk.f32.mxu0 %vm2495_vm15, %v2474_v48  ;;  %v2042_v59 = vshrl.u32 %v13233_v54, %v10832_v32  ;;  %v2044_v45 = vshll.u32 %v13233_v54, %v10658_v46  ;;  %v2045_v51 = vshrl.u32 %v13234_v7, %v10832_v32  ;;  %v2228_v47 = vmul.f32 %v10421_v56, %v2195_v26 }
 0x254   : > { %vm10886_vm9 = vcmp.le.f32.partialorder %v13245_v16, 0.7853982  ;;  %7671 = vmatmul.mubr.msk.f32.gmra.mxu0 %vm2495_vm15, %v2475_v41  ;;  %v10898_v50 = vsub.s32 %v1878_v22, %v1881_v24  ;;  %v2031_v13 = vand.u32 8388607, %v2024_v44  ;;  %v2041_v29 = vshll.u32 %v13085_v4, %v10658_v46 }
 0x255   : > { %v2009_v49 = vsel %vm10886_vm9, %v13243_v30, %v2006_v55  ;;  %v2046_v54 = vor.u32 %v2045_v51, %v2044_v45  ;;  %v2047_v1 = vshll.u32 %v13234_v7, %v10658_v46  ;;  %v2048_v12 = vshrl.u32 %v13235_v19, %v10832_v32  ;;  %v2199_v51 = vpop.permute.xlu1 %2198 }
 0x256   : > { %v2065_v22 = vsel %vm2059_vm2, %v2052_v57, 920167782  ;;  %2929 = vperm.xlu1 %8327, %v8784_v6   ;;  %v1884_v40 = vsub.s32 0, %v10898_v50  ;;  %v2069_v37 = vsel %vm2059_vm2, %v2055_v62, 1326507024  ;;  %v2348_v39 = vadd.f32 %v10544_v3, %v2327_v17  ;;  %v8785_v62 = vld [vmem:[%s8944_s25 + $0x38] sm:$0xff] }
 0x257   : > { %v2043_v15 = vor.u32 %v2042_v59, %v2041_v29  ;;  %v2049_v58 = vor.u32 %v2048_v12, %v2047_v1  ;;  %v2328_v46 = vadd.f32 %v2312_v2, %v2228_v47  ;;  %8433 = vcosq.f32 %v2009_v49  ;;  %v8786_v1 = vld [vmem:[%s8944_s25 + $0x28] sm:$0xff] }
 0x258   : > { %v8428_v52 = vpop.eup %8427  ;;  %v7053_v7 = vmin.u32 %v1884_v40, %v10898_v50  ;;  %vm2056_vm12 = vcmp.lt.s32.totalorder %v10851_v53, 1  ;;  %v2032_v20 = vor.u32 8388608, %v2031_v13  ;;  %vm2058_vm13 = vcmp.lt.s32.totalorder %v10851_v53, 3 }
 0x259   : > { %v2460_v19 = vmul.f32 %v8428_v52, %v10747_v10  ;;  %v2068_v41 = vsel %vm2056_vm12, %v2046_v54, %v2049_v58  ;;  %8435 = vsinq.f32 %v2009_v49  ;;  %vm2057_vm14 = vcmp.lt.s32.totalorder %v10851_v53, 2 }
 0x25a   : > { %v8430_v55 = vpop.eup %8429  ;;  %v1886_v48 = vclz %v7053_v7  ;;  %2921 = vperm.xlu1 %8327, %v8785_v62   ;;  %v2070_v2 = vsel %vm2058_vm13, %v2052_v57, %v2069_v37  ;;  %v2064_v24 = vsel %vm2056_vm12, %v2043_v15, %v2046_v54  ;;  %v2066_v26 = vsel %vm2058_vm13, %v2049_v58, %v2065_v22 }
 0x25b   : > { %v2476_v35 = vmul.f32 %v2460_v19, %v2348_v39  ;;  %v2414_v17 = vadd.f32 1.0, %v8430_v55  ;;  %v2349_v16 = vadd.f32 %v10544_v3, %v2328_v46  ;;  %v1874_v59 = vadd.s32 %v10824_v21, %v10819_v34 }
 0x25c   : > { %v7054_v45 = vadd.s32 4294967294, %v1886_v48  ;;  %v2071_v47 = vsel %vm2057_vm14, %v2068_v41, %v2070_v2  ;;  %v2040_v49 = vshrl.u32 %v13085_v4, %v10832_v32  ;;  %v2061_v13 = vsel %vm2059_vm2, %v2049_v58, 2102212464  ;;  %v2283_v41 = vpop.permute.xlu1 %2282 }
 0x25d   : > { %v8432_v57 = vpop.eup %8431  ;;  %8437 = vrcp.f32 %v2414_v17  ;;  %7673 = vmatprep.mubr.msk.f32.mxu0 %vm2495_vm15, %v2476_v35  ;;  %v2072_v29 = vshll.u32 %v2032_v20, 8  ;;  %v2007_v21 = vsub.s32 4, %v10546_v36  ;;  %v2067_v12 = vsel %vm2057_vm14, %v2064_v24, %v2066_v26  ;;  %v8788_v26 = vld [vmem:[%s8944_s25 + $0x8] sm:$0xff] }
 0x25e   : > { %vm7055_vm8 = vcmp.lt.s32.totalorder %v7054_v45, 0  ;;  %2913 = vperm.xlu1 %8327, %v8786_v1   ;;  %v2461_v34 = vmul.f32 %v8432_v57, %v10770_v18  ;;  %v2060_v6 = vsel %vm2056_vm12, %v2040_v49, %v2043_v15  ;;  %v2062_v58 = vsel %vm2058_vm13, %v2046_v54, %v2061_v13  ;;  %v8787_v15 = vld [vmem:[%s8944_s25 + $0x18] sm:$0xff] }
 0x25f   : > { %v1889_v22 = vsel %vm7055_vm8, 0, %v7054_v45  ;;  %v10949_v4 = vmul.u32.u64.low %v2072_v29, %v2071_v47  ;;  %v10950_v32 = vmul.u32.u64.high %v2072_v29, %v2071_v47, %v10949_v4  ;;  %v2229_v55 = vmul.f32 %v10421_v56, %v2199_v51 }
 0x260   : > { %v1890_v40 = vsub.s32 32, %v1889_v22  ;;  %v1894_v37 = vsub.s32 4294967266, %v1889_v22  ;;  %v2477_v39 = vmul.f32 %v2461_v34, %v2349_v16  ;;  %v1891_v7 = vshll.u32 %v10898_v50, %v1889_v22 }
 0x261   : > { %v10954_v52 = vmul.u32.u64.low %v2072_v29, %v2067_v12  ;;  %v10955_v46 = vmul.u32.u64.high %v2072_v29, %v2067_v12, %v10954_v52  ;;  %v2313_v48 = vmul.f32 %v10429_v23, %v2283_v41  ;;  %v2008_v54 = vsel %vm1923_vm11, %v2007_v21, %v10546_v36 }
 0x262   : > { %v1892_v19 = vshrl.u32 %v1874_v59, %v1890_v40  ;;  %v1895_v20 = vadd.s32 127, %v1894_v37  ;;  %2905 = vperm.xlu1 %8327, %v8787_v15   ;;  %7674 = vmatmul.mubr.msk.f32.gmra.mxu0 %vm2495_vm15, %v2477_v39  ;;  %v2063_v62 = vsel %vm2057_vm14, %v2060_v6, %v2062_v58  ;;  %v2010_v16 = vsel %vm10886_vm9, 0, %v2008_v54 }
 0x263   : > { %vm2081_vm10 = vc.u32 %v10950_v32, %v10954_v52  ;;  %v2082_v17 = vadd.s32 1, %v10955_v46  ;;  %v2079_v59 = vmul.u32 %v2072_v29, %v2063_v62  ;;  %v2329_v36 = vadd.f32 %v2313_v48, %v2229_v55 }
 0x264   : > { %v1893_v50 = vor.u32 %v1892_v19, %v1891_v7  ;;  %v1896_v2 = vshll.u32 %v1895_v20, 23  ;;  %v8434_v35 = vpop.eup %8433  ;;  %v2014_v49 = vand.u32 3, %v2010_v16  ;;  %vm10979_vm6 = vcmp.le.f32.partialorder %v1818_v27, 0.7853982 }
 0x265   : > { %v2083_v53 = vsel %vm2081_vm10, %v2082_v17, %v10955_v46  ;;  %v2020_v21 = vxor.u32 2147483648, %v8434_v35  ;;  %v2350_v22 = vadd.f32 %v10544_v3, %v2329_v36  ;;  %vm1820_vm1 = vcmp.lt.s32.totalorder %v13229_v33, 0 }
 0x266   : > { %v1897_v24 = vor.u32 4788187, %v1896_v2  ;;  %2897 = vperm.xlu1 %8327, %v8788_v26   ;;  %v8436_v45 = vpop.eup %8435  ;;  %v1900_v47 = vcvt.s32.f32 %v1893_v50  ;;  %v2084_v57 = vadd.s32 %v2083_v53, %v2079_v59  ;;  %vm2016_vm3 = vcmp.eq.s32.totalorder %v2014_v49, 0 }
 0x267   : > { %v2017_v34 = vxor.u32 2147483648, %v8436_v45  ;;  %vm2019_vm0 = vcmp.eq.s32.totalorder %v2014_v49, 2  ;;  %vm2015_vm4 = vcmp.lt.s32.totalorder %v2014_v49, 2  ;;  %v1904_v19 = vsub.s32 4, %v10873_v28 }
 0x268   : > { %v1898_v51 = vand.u32 2147483647, %v1897_v24  ;;  %v2085_v12 = vadd.s32 536870912, %v2084_v57  ;;  %v2021_v58 = vsel %vm2019_vm0, %v2020_v21, %v8436_v45  ;;  %vm2013_vm5 = vweird.f32 %v13243_v30 }
 0x269   : > { %v2018_v39 = vsel %vm2016_vm3, %v8434_v35, %v2017_v34  ;;  %v1905_v48 = vsel %vm1820_vm1, %v1904_v19, %v10873_v28  ;;  %v11003_v35 = vpop.permute.xlu1 %2286  ;;  %v2080_v26 = vadd.s32 %v10954_v52, %v10950_v32  ;;  %v2203_v32 = vpop.permute.xlu0 %2202  ;;  %vm1910_vm12 = vweird.f32 %v13229_v33 }
 0x26a   : > { %v8438_v13 = vpop.eup %8437  ;;  %v1901_v1 = vmul.f32 %v1900_v47, %v1898_v51  ;;  %v10983_v4 = vshrl.u32 %v2085_v12, 30  ;;  %v2022_v20 = vsel %vm2015_vm4, %v2018_v39, %v2021_v58  ;;  %v1907_v50 = vsel %vm10979_vm6, 0, %v1905_v48 }
 0x26b   : > { %v2462_v6 = vmul.f32 %v8438_v13, %v10846_v42  ;;  %v2023_v15 = vsel %vm2013_vm5, nan, %v2022_v20  ;;  %v1911_v17 = vand.u32 3, %v1907_v50  ;;  %vm2026_vm13 = vcmp.lt.s32.totalorder %v13244_v25, 0 }
 0x26c   : > { %v1902_v29 = vxor.u32 2147483648, %v1901_v1  ;;  %v2087_v46 = vshll.u32 %v10983_v4, 30  ;;  %v10999_v62 = vmul.f32 %v9884_v5, %v2023_v15  ;;  %vm11024_vm14 = vcmp.le.f32.partialorder %v2024_v44, 0.7853982 }
 0x26d   : > { %v2478_v40 = vmul.f32 %v2462_v6, %v2350_v22  ;;  %vm1916_vm11 = vcmp.eq.s32.totalorder %v1911_v17, 2  ;;  %vm1913_vm2 = vcmp.eq.s32.totalorder %v1911_v17, 0  ;;  %v11008_v13 = vpop.permute.xlu1 %2206  ;;  %vm1912_vm9 = vcmp.lt.s32.totalorder %v1911_v17, 2  ;;  %v2291_v58 = vpop.permute.xlu0 %2290  ;;  %v2691_v17 = vld [vmem:[%s12935_s1 + $0x80] sm:$0xff] }
 0x26e   : > { %v1903_v37 = vsel %vm1820_vm1, %v1902_v29, %v1901_v1  ;;  %v2088_v7 = vsub.s32 %v2084_v57, %v2087_v46  ;;  %13250 = vst [vmem:[#allocation27_spill] sm:$0xff] %v10999_v62  ;;  %v7078_v30 = vmul.f32 -1.442695, %v10999_v62  ;;  %vm2116_vm1 = vweird.f32 %v13244_v25 }
 0x26f   : > { %v1906_v27 = vsel %vm10979_vm6, %v13229_v33, %v1903_v37  ;;  %7676 = vmatprep.mubr.msk.f32.mxu0 %vm2495_vm15, %v2478_v40  ;;  %v8789_v33 = vld [vmem:[%s8944_s25 + $0x58] sm:$0xff]  ;;  %vm2698_vm3 = vcmask 261120   ;;  %vm8872_vm0 = vmmov 0  }
 0x270   : > { %8439 = vcosq.f32 %v1906_v27  ;;  %v2090_v41 = vsub.s32 0, %v2088_v7 }
 0x271   : > { %8441 = vsinq.f32 %v1906_v27  ;;  %v11017_v37 = vpop.permute.xlu1 %2210  ;;  %v11034_v15 = vpop.permute.xlu0 %2988 }
 0x272   : > { %v7061_v55 = vmin.u32 %v2090_v41, %v2088_v7  ;;  %8443 = vpow2.f32 %v7078_v30  ;;  %v2110_v41 = vsub.s32 4, %v10983_v4 }
 0x274   : > { %v2092_v54 = vclz %v7061_v55  ;;  %v2111_v44 = vsel %vm2026_vm13, %v2110_v41, %v10983_v4  ;;  %v8790_v41 = vld [vmem:[%s8944_s25 + $0x40] sm:$0xff] }
 0x275   : > { %v11031_v20 = vpop.permute.xlu1 %2294 }
 0x276   : > { %v7062_v2 = vadd.s32 4294967294, %v2092_v54  ;;  %v2113_v54 = vsel %vm11024_vm14, 0, %v2111_v44  ;;  %v8791_v44 = vld [vmem:[%s8944_s25 + $0x30] sm:$0xff] }
 0x277   : > { %v2117_v4 = vand.u32 3, %v2113_v54 }
 0x278   : > { %vm7063_vm7 = vcmp.lt.s32.totalorder %v7062_v2, 0 }
 0x279   : > { %v2095_v24 = vsel %vm7063_vm7, 0, %v7062_v2  ;;  %v11038_v48 = vpop.permute.xlu1 %2990  ;;  %v2692_v2 = vld [vmem:[%s12935_s1 + $0x88] sm:$0xff]  ;;  %vm2122_vm8 = vcmp.eq.s32.totalorder %v2117_v4, 2  ;;  %vm2119_vm10 = vcmp.eq.s32.totalorder %v2117_v4, 0  ;;  %vm2118_vm6 = vcmp.lt.s32.totalorder %v2117_v4, 2  ;;  %v8793_v4 = vld [vmem:[%s8944_s25 + $0x10] sm:$0xff] }
 0x27a   : > { %v2096_v16 = vsub.s32 32, %v2095_v24  ;;  %v2100_v28 = vsub.s32 4294967266, %v2095_v24  ;;  %v2097_v53 = vshll.u32 %v2088_v7, %v2095_v24  ;;  %v11049_v24 = vpop.permute.xlu0 %2992  ;;  %7682 = vmatprep.subr.mxu1 %v2692_v2 }
 0x27b   : > { %7683 = vmatpush3.msra.mxu1 %v2692_v2 }
 0x27c   : > { %v2098_v51 = vshrl.u32 %v2080_v26, %v2096_v16  ;;  %v2101_v47 = vadd.s32 127, %v2100_v28  ;;  %v2690_v26 = vld [vmem:[%s12935_s1 + $0x78] sm:$0xff]  ;;  %7684 = vmatprep.subr.mxu1 %v2691_v17  ;;  %v2689_v28 = vld [vmem:[%s12935_s1 + $0x70] sm:$0xff] }
 0x27d   : > { %v8440_v59 = vpop.eup %8439  ;;  %7685 = vmatpush3.msra.mxu1 %v2691_v17  ;;  %v8792_v17 = vld [vmem:[%s8944_s25 + $0x20] sm:$0xff] }
 0x27e   : > { %v8442_v45 = vpop.eup %8441  ;;  %v1917_v36 = vxor.u32 2147483648, %v8440_v59  ;;  %v2099_v1 = vor.u32 %v2098_v51, %v2097_v53  ;;  %v2102_v34 = vshll.u32 %v2101_v47, 23  ;;  %7686 = vmatprep.subr.mxu1 %v2690_v26  ;;  %v2230_v51 = vmul.f32 %v10421_v56, %v2203_v32 }
 0x27f   : > { %v1914_v57 = vxor.u32 2147483648, %v8442_v45  ;;  %v8444_v19 = vpop.eup %8443  ;;  %7687 = vmatpush3.msra.mxu1 %v2690_v26  ;;  %v2314_v47 = vmul.f32 %v10429_v23, %v11003_v35  ;;  %v2232_v26 = vmul.f32 %v10421_v56, %v11017_v37 }
 0x280   : > { %v1918_v49 = vsel %vm1916_vm11, %v1917_v36, %v8442_v45  ;;  %v2103_v12 = vor.u32 4788187, %v2102_v34  ;;  %v2106_v29 = vcvt.s32.f32 %v2099_v1  ;;  %v2416_v55 = vadd.f32 1.0, %v8444_v19  ;;  %v11058_v36 = vpop.permute.xlu1 %2994  ;;  %7688 = vmatprep.subr.mxu1 %v2689_v28 }
 0x281   : > { %v1915_v21 = vsel %vm1913_vm2, %v8440_v59, %v1914_v57  ;;  %v2231_v1 = vmul.f32 %v10421_v56, %v11008_v13  ;;  %7689 = vmatpush3.msra.mxu1 %v2689_v28 }
 0x282   : > { %v1919_v52 = vsel %vm1912_vm9, %v1915_v21, %v1918_v49  ;;  %v2104_v60 = vand.u32 2147483647, %v2103_v12  ;;  %v2315_v49 = vmul.f32 %v10429_v23, %v2291_v58  ;;  %v2330_v12 = vadd.f32 %v2314_v47, %v2230_v51 }
 0x283   : > { %v1920_v22 = vsel %vm1910_vm12, nan, %v1919_v52  ;;  %v11068_v52 = vpop.permute.xlu0 %2996  ;;  %v13255_v51 = vmov 0  }
 0x284   : > { %v11012_v6 = vmul.f32 %v9884_v5, %v1920_v22  ;;  %v2107_v39 = vmul.f32 %v2106_v29, %v2104_v60  ;;  %v2331_v60 = vadd.f32 %v2315_v49, %v2231_v1  ;;  %v11077_v29 = vpop.permute.xlu1 %2998 }
 0x286   : > { %13251 = vst [vmem:[#allocation25_spill] sm:$0xff] %v11012_v6  ;;  %3014 = vrot.lane.b32.xlu0 %v11012_v6, %s8868_s4  ;;  %v7077_v40 = vmul.f32 -1.442695, %v11012_v6  ;;  %v2108_v46 = vxor.u32 2147483648, %v2107_v39 }
 0x288   : > { %8445 = vpow2.f32 %v7077_v40  ;;  %v2109_v27 = vsel %vm2026_vm13, %v2108_v46, %v2107_v39  ;;  %v2351_v40 = vadd.f32 %v10544_v3, %v2330_v12  ;;  %v11089_v19 = vpop.permute.xlu1 %3002 }
 0x289   : > { %v2112_v7 = vsel %vm11024_vm14, %v13244_v25, %v2109_v27 }
 0x28a   : > { %3016 = vrot.lane.b32.xlu0 %v10999_v62, %s8868_s4  ;;  %8447 = vcosq.f32 %v2112_v7 }
 0x28b   : > { %8449 = vsinq.f32 %v2112_v7 }
 0x28c   : > { %8451 = vrcp.f32 %v2416_v55 }
 0x28f   : > { %3036 = vxpose.xlu1.b32.start [1/16] (narrow) %v11034_v15, 32  ;;  %v11084_v46 = vpop.permute.xlu0 %3000 }
 0x293   : > { %3037 = vxpose.xlu1.b32.cont [2/16] (narrow) %v11038_v48, 32 }
 0x295   : > { %v8446_v50 = vpop.eup %8445 }
 0x296   : > { %v2415_v30 = vadd.f32 1.0, %v8446_v50 }
 0x297   : > { %3038 = vxpose.xlu1.b32.cont [3/16] (narrow) %v11049_v24, 32  ;;  %v8448_v16 = vpop.eup %8447 }
 0x298   : > { %8453 = vrcp.f32 %v2415_v30  ;;  %v8450_v59 = vpop.eup %8449  ;;  %v2123_v45 = vxor.u32 2147483648, %v8448_v16 }
 0x299   : > { %v2120_v53 = vxor.u32 2147483648, %v8450_v59  ;;  %v8452_v35 = vpop.eup %8451 }
 0x29a   : > { %v2124_v57 = vsel %vm2122_vm8, %v2123_v45, %v8450_v59  ;;  %v2464_v25 = vmul.f32 %v8452_v35, %v10999_v62  ;;  %v11098_v2 = vpop.permute.xlu1 %3006  ;;  %v8794_v59 = vld [vmem:[%s8944_s25] sm:$0xff] }
 0x29b   : > { %3039 = vxpose.xlu1.b32.cont [4/16] (narrow) %v11058_v36, 32  ;;  %v2121_v34 = vsel %vm2119_vm10, %v8448_v16, %v2120_v53  ;;  %v2316_v16 = vmul.f32 %v10429_v23, %v11031_v20  ;;  %v2490_v23 = vld [vmem:[%s12935_s1 + $0x68] sm:$0xff] }
 0x29c   : > { %v2125_v21 = vsel %vm2118_vm6, %v2121_v34, %v2124_v57  ;;  %v2494_v20 = vrot.slane %v2490_v23, %v13121_v61 }
 0x29d   : > { %v2126_v32 = vsel %vm2116_vm1, nan, %v2125_v21  ;;  %v2332_v53 = vadd.f32 %v2316_v16, %v2232_v26 }
 0x29e   : > { %v11072_v22 = vmul.f32 %v9884_v5, %v2126_v32  ;;  %v2352_v5 = vadd.f32 %v10544_v3, %v2331_v60 }
 0x29f   : > { %3040 = vxpose.xlu1.b32.cont [5/16] (narrow) %v11068_v52, 32  ;;  %v11094_v55 = vpop.permute.xlu0 %3004  ;;  %v2353_v57 = vadd.f32 %v10544_v3, %v2332_v53 }
 0x2a0   : > { %13254 = vst [vmem:[#allocation8_spill] sm:$0xff] %v11072_v22  ;;  %3018 = vrot.lane.b32.xlu0 %v11072_v22, %s8868_s4  ;;  %v7079_v13 = vmul.f32 -1.442695, %v11072_v22  ;;  %v2480_v27 = vmul.f32 %v2464_v25, %v2352_v5 }
 0x2a2   : > { %8455 = vpow2.f32 %v7079_v13 }
 0x2a3   : > { %3041 = vxpose.xlu1.b32.cont [6/16] (narrow) %v11077_v29, 32 }
 0x2a4   : > { %2937 = vperm.xlu0 %8328, %v8789_v33  }
 0x2a5   : > { %v8454_v39 = vpop.eup %8453 }
 0x2a6   : > { %v2463_v58 = vmul.f32 %v8454_v39, %v11012_v6 }
 0x2a7   : > { %3042 = vxpose.xlu1.b32.cont [7/16] (narrow) %v11084_v46, 32 }
 0x2a8   : > { %v2479_v7 = vmul.f32 %v2463_v58, %v2351_v40  ;;  %2925 = vperm.xlu0 %8328, %v8790_v41  }
 0x2a9   : > { %v11102_v30 = vpop.permute.xlu0 %3008 }
 0x2aa   : > { %7677 = vmatmul.mubr.msk.f32.gmra.mxu0 %vm2495_vm15, %v2479_v7 }
 0x2ab   : > { %7679 = vmatprep.mubr.msk.f32.mxu0 %vm2495_vm15, %v2480_v27  ;;  %3043 = vxpose.xlu1.b32.cont [8/16] (narrow) %v11089_v19, 32 }
 0x2ac   : > { %2917 = vperm.xlu0 %8328, %v8791_v44  }
 0x2af   : > { %3044 = vxpose.xlu1.b32.cont [9/16] (narrow) %v11094_v55, 32  ;;  %v8456_v54 = vpop.eup %8455 }
 0x2b0   : > { %v2417_v50 = vadd.f32 1.0, %v8456_v54  ;;  %2909 = vperm.xlu0 %8328, %v8792_v17   ;;  %v11110_v28 = vpop.permute.xlu1 %3010 }
 0x2b2   : > { %8457 = vrcp.f32 %v2417_v50 }
 0x2b3   : > { %3045 = vxpose.xlu1.b32.cont [10/16] (narrow) %v11098_v2, 32 }
 0x2b4   : > { %2901 = vperm.xlu0 %8328, %v8793_v4  }
 0x2b7   : > { %3046 = vxpose.xlu1.b32.cont [11/16] (narrow) %v11102_v30, 32 }
 0x2b8   : > { %2893 = vperm.xlu0 %8328, %v8794_v59  }
 0x2bb   : > { %3047 = vxpose.xlu1.b32.cont [12/16] (narrow) %v11110_v28, 32 }
 0x2bc   : > { %8330 = vset.pattern.permute.xlu0 %v13255_v51 }
 0x2bd   : > { %v11114_v45 = vpop.permute.xlu0 %3012 }
 0x2bf   : > { %3048 = vxpose.xlu1.b32.cont [13/16] (narrow) %v11114_v45, 32  ;;  %v8458_v47 = vpop.eup %8457 }
 0x2c0   : > { %v2465_v56 = vmul.f32 %v8458_v47, %v11072_v22 }
 0x2c2   : > { %v2481_v37 = vmul.f32 %v2465_v56, %v2353_v57 }
 0x2c4   : > { %7680 = vmatmul.mubr.msk.f32.gmra.mxu0 %vm2495_vm15, %v2481_v37 }
 0x2dc   : > { %v7660_v49 = vpop.f32.mrf.mxu0 }
 0x2dd   : > { %v11127_v21 = vadd.f32 %v7660_v49, %v2494_v20 }
 0x2de   : > { %v2610_v1 = vpop.f32.mrf.mxu0 }
 0x2df   : > { %v11125_v34 = vadd.f32 %v2610_v1, %v2494_v20 }
 0x2e0   : > { %v7663_v32 = vpop.f32.mrf.mxu0 }
 0x2e1   : > { %7690 = vmatprep.mubr.msk.f32.mxu1 %vm2698_vm3, %v11125_v34  ;;  %v11135_v12 = vadd.f32 %v7663_v32, %v2494_v20  ;;  %v11198_v32 = vpop.permute.xlu1 %2953 }
 0x2e2   : > { %7691 = vmatmul.mubr.msk.f32.vlgmr.msra.gmra.mxu1 %vm2698_vm3, %v11127_v21  ;;  %v2620_v3 = vpop.f32.mrf.mxu0 }
 0x2e3   : > { %v11133_v35 = vadd.f32 %v2620_v3, %v2494_v20 }
 0x2e4   : > { %v7666_v60 = vpop.f32.mrf.mxu0 }
 0x2e5   : > { %7693 = vmatprep.mubr.msk.f32.mxu1 %vm2698_vm3, %v11133_v35  ;;  %v11143_v40 = vadd.f32 %v7666_v60, %v2494_v20  ;;  %v11200_v3 = vpop.permute.xlu1 %2949 }
 0x2e6   : > { %7694 = vmatmul.mubr.msk.f32.gmra.mxu1 %vm2698_vm3, %v11135_v12  ;;  %v2630_v13 = vpop.f32.mrf.mxu0 }
 0x2e7   : > { %v11141_v25 = vadd.f32 %v2630_v13, %v2494_v20 }
 0x2e9   : > { %7696 = vmatprep.mubr.msk.f32.mxu1 %vm2698_vm3, %v11141_v25  ;;  %v11202_v60 = vpop.permute.xlu1 %2945 }
 0x2ea   : > { %7697 = vmatmul.mubr.msk.f32.gmra.mxu1 %vm2698_vm3, %v11143_v40 }
 0x2ed   : > { %v11204_v13 = vpop.permute.xlu1 %2941 }
 0x2f8   : > { %v11149_v39 = vpop.permute.xlu0 %3014 }
 0x2f9   : > { %3049 = vxpose.xlu1.b32.cont [14/16] (narrow) %v11149_v39, 32 }
 0x2fc   : > { %v11152_v5 = vpop.permute.xlu0 %3016 }
 0x2fd   : > { %3050 = vxpose.xlu1.b32.cont [15/16] (narrow) %v11152_v5, 32 }
 0x303   : > { %v7669_v58 = vpop.f32.mrf.mxu0 }
 0x304   : > { %v11157_v7 = vadd.f32 %v7669_v58, %v2494_v20  ;;  %v11206_v58 = vpop.permute.xlu1 %2933 }
 0x305   : > { %v2640_v33 = vpop.f32.mrf.mxu0 }
 0x306   : > { %v11155_v27 = vadd.f32 %v2640_v33, %v2494_v20 }
 0x308   : > { %7699 = vmatprep.mubr.msk.f32.mxu1 %vm2698_vm3, %v11155_v27  ;;  %v11208_v33 = vpop.permute.xlu1 %2929 }
 0x309   : > { %7700 = vmatmul.mubr.msk.f32.gmra.mxu1 %vm2698_vm3, %v11157_v7 }
 0x312   : > { %v11163_v41 = vpop.permute.xlu0 %3018 }
 0x313   : > { %3051 = vxpose.xlu1.b32.end [16/16] (narrow) %v11163_v41, 32 }
 0x314   : > { %v7672_v44 = vpop.f32.mrf.mxu0 }
 0x315   : > { %v11168_v17 = vadd.f32 %v7672_v44, %v2494_v20 }
 0x316   : > { %v2650_v54 = vpop.f32.mrf.mxu0 }
 0x317   : > { %v11166_v50 = vadd.f32 %v2650_v54, %v2494_v20 }
 0x319   : > { %13256 = vst [vmem:[#allocation10_spill] sm:$0xff] %v11166_v50  ;;  %7702 = vmatprep.mubr.msk.f32.mxu1 %vm2698_vm3, %v11166_v50 }
 0x31a   : > { %7703 = vmatmul.mubr.msk.f32.gmra.mxu1 %vm2698_vm3, %v11168_v17 }
 0x31f   : > { %v11228_v0 = vpop.permute.xlu0 %2937 }
 0x322   : > { %v7675_v4 = vpop.f32.mrf.mxu0 }
 0x323   : > { %v11176_v59 = vadd.f32 %v7675_v4, %v2494_v20 }
 0x324   : > { %v2660_v26 = vpop.f32.mrf.mxu0 }
 0x325   : > { %v11174_v16 = vadd.f32 %v2660_v26, %v2494_v20  ;;  %13258 = vst [vmem:[#allocation7_spill] sm:$0xff] %v11176_v59 }
 0x327   : > { %13257 = vst [vmem:[#allocation19_spill] sm:$0xff] %v11174_v16  ;;  %7705 = vmatprep.mubr.msk.f32.mxu1 %vm2698_vm3, %v11174_v16  ;;  %v11232_v16 = vpop.permute.xlu0 %2925 }
 0x328   : > { %7706 = vmatmul.mubr.msk.f32.gmra.mxu1 %vm2698_vm3, %v11176_v59 }
 0x36a   : > { %v7678_v53 = vpop.f32.mrf.mxu0 }
 0x36b   : > { %v11184_v56 = vadd.f32 %v7678_v53, %v2494_v20 }
 0x36c   : > { %v2670_v47 = vpop.f32.mrf.mxu0 }
 0x36d   : > { %v11182_v57 = vadd.f32 %v2670_v47, %v2494_v20  ;;  %13260 = vst [vmem:[#allocation9_spill] sm:$0xff] %v11184_v56 }
 0x36f   : > { %13259 = vst [vmem:[#allocation26_spill] sm:$0xff] %v11182_v57  ;;  %7708 = vmatprep.mubr.msk.f32.mxu1 %vm2698_vm3, %v11182_v57 }
 0x370   : > { %7709 = vmatmul.mubr.msk.f32.gmra.mxu1 %vm2698_vm3, %v11184_v56 }
 0x384   : > { %v7681_v37 = vpop.f32.mrf.mxu0 }
 0x385   : > { %v11192_v1 = vadd.f32 %v7681_v37, %v2494_v20 }
 0x386   : > { %v2680_v23 = vpop.f32.mrf.mxu0 }
 0x387   : > { %v11190_v49 = vadd.f32 %v2680_v23, %v2494_v20  ;;  %13262 = vst [vmem:[#allocation28_spill] sm:$0xff] %v11192_v1  ;;  %v11210_v20 = vpop.permute.xlu1 %2921 }
 0x389   : > { %13261 = vst [vmem:[#allocation12_spill] sm:$0xff] %v11190_v49  ;;  %7711 = vmatprep.mubr.msk.f32.mxu1 %vm2698_vm3, %v11190_v49 }
 0x38a   : > { %7712 = vmatmul.mubr.msk.f32.gmra.mxu1 %vm2698_vm3, %v11192_v1 }
 0x38b   : > { %v11212_v44 = vpop.permute.xlu1 %2913 }
 0x38f   : > { %v11214_v54 = vpop.permute.xlu1 %2905 }
 0x393   : > { %v11216_v4 = vpop.permute.xlu1 %2897 }
 0x394   : > { %13263 = vst [vmem:[#allocation30_spill] sm:$0xff] %v11216_v4 }
 0x397   : > { %v3052_v26 = vpop.trf.xlu1 }
 0x398   : > { %7746 = vmatprep.mubr.f32.mxu1 %v3052_v26  ;;  %v2693_v26 = vld [vmem:[%s12935_s1 + $0x90] sm:$0xff] }
 0x399   : > { %v2697_v31 = vrot.slane %v2693_v26, %v13121_v61 }
 0x3a2   : > { %v11218_v53 = vpop.f32.mrf.mxu1 }
 0x3a4   : > { %v11220_v47 = vpop.f32.mrf.mxu1 }
 0x3a6   : > { %v7695_v37 = vpop.f32.mrf.mxu1 }
 0x3a8   : > { %v11222_v23 = vpop.f32.mrf.mxu1 }
 0x3aa   : > { %v7698_v51 = vpop.f32.mrf.mxu1 }
 0x3ac   : > { %v2833_v62 = vpop.f32.mrf.mxu1 }
 0x3c9   : > { %v7701_v22 = vpop.f32.mrf.mxu1 }
 0x3cb   : > { %v2843_v42 = vpop.f32.mrf.mxu1 }
 0x3da   : > { %v7704_v6 = vpop.f32.mrf.mxu1 }
 0x3dc   : > { %v2853_v10 = vpop.f32.mrf.mxu1 }
 0x3e8   : > { %v7707_v18 = vpop.f32.mrf.mxu1 }
 0x3e9   : > { %v2869_v59 = vadd.f32 %v7707_v18, %v2697_v31 }
 0x3ea   : > { %v2863_v43 = vpop.f32.mrf.mxu1 }
 0x3eb   : > { %v2864_v26 = vadd.f32 %v2863_v43, %v2697_v31  ;;  %v2844_v43 = vadd.f32 %v2843_v42, %v2697_v31 }
 0x430   : > { %v7710_v63 = vpop.f32.mrf.mxu1 }
 0x431   : > { %v2879_v14 = vadd.f32 %v7710_v63, %v2697_v31  ;;  %v2859_v63 = vadd.f32 %v7704_v6, %v2697_v31 }
 0x432   : > { %v2873_v38 = vpop.f32.mrf.mxu1 }
 0x433   : > { %v2874_v57 = vadd.f32 %v2873_v38, %v2697_v31  ;;  %v2969_v50 = vmul.f32 %v11202_v60, %v2879_v14  ;;  %v2854_v38 = vadd.f32 %v2853_v10, %v2697_v31  ;;  %v2849_v14 = vadd.f32 %v7701_v22, %v2697_v31 }
 0x434   : > { %v2965_v18 = vmul.f32 %v11208_v33, %v2859_v63  ;;  %v2834_v10 = vadd.f32 %v2833_v62, %v2697_v31  ;;  %v2829_v22 = vadd.f32 %v7695_v37, %v2697_v31  ;;  %v2819_v62 = vadd.f32 %v11218_v53, %v2697_v31  ;;  %v3156_v53 = vld [vmem:[%s12935_s1 + $0xb0] sm:$0xff] }
 0x435   : > { %v2814_v37 = vadd.f32 %v11220_v47, %v2697_v31 }
 0x436   : > { %v2959_v63 = vmul.f32 %v11214_v54, %v2829_v22 }
 0x44a   : > { %v7713_v9 = vpop.f32.mrf.mxu1 }
 0x44b   : > { %v2889_v8 = vadd.f32 %v7713_v9, %v2697_v31  ;;  %v2968_v9 = vmul.f32 %v11204_v13, %v2874_v57  ;;  %v2963_v57 = vmul.f32 %v11210_v20, %v2849_v14 }
 0x44c   : > { %v2883_v11 = vpop.f32.mrf.mxu1 }
 0x44d   : > { %v2971_v1 = vmul.f32 %v11198_v32, %v2889_v8  ;;  %v2884_v49 = vadd.f32 %v2883_v11, %v2697_v31  ;;  %v2967_v8 = vmul.f32 %v11228_v0, %v2869_v59  ;;  %v11237_v11 = vpop.permute.xlu0 %2917  ;;  %v2839_v59 = vadd.f32 %v7698_v51, %v2697_v31 }
 0x44f   : > { %v2970_v56 = vmul.f32 %v11200_v3, %v2884_v49  ;;  %7714 = vmatprep.subr.mxu1 %v2971_v1  ;;  %v2966_v49 = vmul.f32 %v11206_v58, %v2864_v26  ;;  %v2824_v26 = vadd.f32 %v11222_v23, %v2697_v31  ;;  %v2957_v23 = vmul.f32 %v11216_v4, %v2819_v62  ;;  %v3155_v31 = vld [vmem:[%s12935_s1 + $0xa8] sm:$0xff] }
 0x450   : > { %7715 = vmatpush3.msra.mxu1 %v2971_v1  ;;  %v2961_v1 = vmul.f32 %v11212_v44, %v2839_v59 }
 0x451   : > { %7716 = vmatprep.subr.mxu1 %v2970_v56  ;;  %v11242_v6 = vpop.permute.xlu0 %2909 }
 0x452   : > { %7717 = vmatpush3.msra.mxu1 %v2970_v56  ;;  %v2962_v56 = vmul.f32 %v11237_v11, %v2844_v43  ;;  %v2960_v51 = vmul.f32 %v11242_v6, %v2834_v10  ;;  %v3153_v43 = vld [vmem:[%s12935_s1 + $0x98] sm:$0xff] }
 0x453   : > { %7718 = vmatprep.subr.mxu1 %v2969_v50 }
 0x454   : > { %7719 = vmatpush3.msra.mxu1 %v2969_v50  ;;  %v2964_v50 = vmul.f32 %v11232_v16, %v2854_v38 }
 0x455   : > { %7720 = vmatprep.subr.mxu1 %v2968_v9  ;;  %v11247_v42 = vpop.permute.xlu0 %2901 }
 0x456   : > { %7721 = vmatpush3.msra.mxu1 %v2968_v9  ;;  %v3053_v9 = vpop.trf.xlu1 }
 0x457   : > { %7722 = vmatprep.subr.mxu1 %v2967_v8 }
 0x458   : > { %7723 = vmatpush3.msra.mxu1 %v2967_v8  ;;  %v2958_v8 = vmul.f32 %v11247_v42, %v2824_v26 }
 0x459   : > { %7724 = vmatprep.subr.mxu1 %v2966_v49  ;;  %v11255_v38 = vpop.permute.xlu0 %2893 }
 0x45a   : > { %7725 = vmatpush3.msra.mxu1 %v2966_v49  ;;  %13264 = vst [vmem:[#allocation15_spill] sm:$0xff] %v11255_v38  ;;  %v3054_v49 = vpop.trf.xlu1  ;;  %v2956_v14 = vmul.f32 %v11255_v38, %v2814_v37 }
 0x45b   : > { %7726 = vmatprep.subr.mxu1 %v2965_v18 }
 0x45c   : > { %7727 = vmatpush3.msra.mxu1 %v2965_v18  ;;  %v3154_v18 = vld [vmem:[%s12935_s1 + $0xa0] sm:$0xff] }
 0x45d   : > { %7728 = vmatprep.subr.mxu1 %v2964_v50 }
 0x45e   : > { %7729 = vmatpush3.msra.mxu1 %v2964_v50  ;;  %v3055_v47 = vpop.trf.xlu1 }
 0x45f   : > { %7730 = vmatprep.subr.mxu1 %v2963_v57 }
 0x460   : > { %7731 = vmatpush3.msra.mxu1 %v2963_v57 }
 0x461   : > { %7732 = vmatprep.subr.mxu1 %v2962_v56 }
 0x462   : > { %7733 = vmatpush3.msra.mxu1 %v2962_v56 }
 0x463   : > { %7734 = vmatprep.subr.mxu1 %v2961_v1 }
 0x464   : > { %7735 = vmatpush3.msra.mxu1 %v2961_v1 }
 0x465   : > { %7736 = vmatprep.subr.mxu1 %v2960_v51 }
 0x466   : > { %7737 = vmatpush3.msra.mxu1 %v2960_v51 }
 0x467   : > { %7738 = vmatprep.subr.mxu1 %v2959_v63 }
 0x468   : > { %7739 = vmatpush3.msra.mxu1 %v2959_v63 }
 0x469   : > { %7740 = vmatprep.subr.mxu1 %v2958_v8 }
 0x46a   : > { %7741 = vmatpush3.msra.mxu1 %v2958_v8 }
 0x46b   : > { %7742 = vmatprep.subr.mxu1 %v2957_v23 }
 0x46c   : > { %7743 = vmatpush3.msra.mxu1 %v2957_v23 }
 0x46d   : > { %7744 = vmatprep.subr.mxu1 %v2956_v14 }
 0x46e   : > { %7745 = vmatpush3.msra.mxu1 %v2956_v14 }
 0x46f   : > { %7747 = vmatmul.mubr.f32.vlgmr.msra.gmra.mxu1 %v3053_v9  ;;  %7752 = vmatprep.subr.mxu1 %v3156_v53 }
 0x470   : > { %7749 = vmatprep.mubr.f32.mxu1 %v3054_v49  ;;  %7753 = vmatpush3.msra.mxu1 %v3156_v53 }
 0x471   : > { %7754 = vmatprep.subr.mxu1 %v3155_v31 }
 0x472   : > { %7755 = vmatpush3.msra.mxu1 %v3155_v31 }
 0x473   : > { %7750 = vmatmul.mubr.f32.gmra.mxu1 %v3055_v47  ;;  %7756 = vmatprep.subr.mxu1 %v3154_v18 }
 0x474   : > { %7757 = vmatpush3.msra.mxu1 %v3154_v18 }
 0x475   : > { %7758 = vmatprep.subr.mxu1 %v3153_v43 }
 0x476   : > { %7759 = vmatpush3.msra.mxu1 %v3153_v43 }
 0x52f   : > { %v7748_v50 = vpop.f32.mrf.mxu1 }
 0x531   : > { %v3134_v59 = vpop.f32.mrf.mxu1 }
 0x532   : > { %7760 = vmatprep.mubr.msk.f32.mxu1 %vm2698_vm3, %v3134_v59  ;;  %v13265_v59 = vld [vmem:[#allocation10_spill] sm:$0xff] }
 0x533   : > { %v7751_v57 = vpop.f32.mrf.mxu1  ;;  %7761 = vmatmul.mubr.msk.f32.vlgmr.msra.gmra.mxu1 %vm2698_vm3, %v7748_v50 }
 0x535   : > { %v3144_v10 = vpop.f32.mrf.mxu1 }
 0x536   : > { %7763 = vmatprep.mubr.msk.f32.mxu1 %vm2698_vm3, %v3144_v10 }
 0x537   : > { %7764 = vmatmul.mubr.msk.f32.gmra.mxu1 %vm2698_vm3, %v7751_v57 }
 0x538   : > { %7774 = vmatprep.mubr.msk.f32.mxu1 %vm2698_vm3, %v11034_v15  ;;  %v3447_v15 = vld [vmem:[%s12935_s1 + $0xb8] sm:$0xff] }
 0x5f3   : > { %v7762_v56 = vpop.f32.mrf.mxu1 }
 0x5f5   : > { %v3235_v22 = vpop.f32.mrf.mxu1 }
 0x5f7   : > { %v7765_v1 = vpop.f32.mrf.mxu1 }
 0x5f8   : > { %7766 = vmatprep.subr.mxu1 %v7765_v1 }
 0x5f9   : > { %v3245_v26 = vpop.f32.mrf.mxu1  ;;  %7767 = vmatpush3.msra.mxu1 %v7765_v1 }
 0x5fa   : > { %7768 = vmatprep.subr.mxu1 %v3245_v26 }
 0x5fb   : > { %7769 = vmatpush3.msra.mxu1 %v3245_v26 }
 0x5fc   : > { %7770 = vmatprep.subr.mxu1 %v7762_v56 }
 0x5fd   : > { %7771 = vmatpush3.msra.mxu1 %v7762_v56 }
 0x5fe   : > { %7772 = vmatprep.subr.mxu1 %v3235_v22 }
 0x5ff   : > { %7773 = vmatpush3.msra.mxu1 %v3235_v22  ;;  %v13266_v22 = vld [vmem:[#allocation7_spill] sm:$0xff] }
 0x600   : > { %7775 = vmatmul.mubr.msk.f32.vlgmr.msra.gmra.mxu1 %vm2698_vm3, %v11038_v48  ;;  %v11311_v48 = vrot.slane %v3447_v15, %v13121_v61 }
 0x601   : > { %7777 = vmatprep.mubr.msk.f32.mxu1 %vm2698_vm3, %v11049_v24 }
 0x604   : > { %7778 = vmatmul.mubr.msk.f32.gmra.mxu1 %vm2698_vm3, %v11058_v36 }
 0x605   : > { %7780 = vmatprep.mubr.msk.f32.mxu1 %vm2698_vm3, %v11068_v52 }
 0x608   : > { %7781 = vmatmul.mubr.msk.f32.gmra.mxu1 %vm2698_vm3, %v11077_v29 }
 0x609   : > { %7783 = vmatprep.mubr.msk.f32.mxu1 %vm2698_vm3, %v11084_v46 }
 0x60c   : > { %7784 = vmatmul.mubr.msk.f32.gmra.mxu1 %vm2698_vm3, %v11089_v19 }
 0x60d   : > { %7786 = vmatprep.mubr.msk.f32.mxu1 %vm2698_vm3, %v11094_v55 }
 0x610   : > { %7787 = vmatmul.mubr.msk.f32.gmra.mxu1 %vm2698_vm3, %v11098_v2 }
 0x611   : > { %7789 = vmatprep.mubr.msk.f32.mxu1 %vm2698_vm3, %v11102_v30 }
 0x614   : > { %7790 = vmatmul.mubr.msk.f32.gmra.mxu1 %vm2698_vm3, %v11110_v28 }
 0x615   : > { %7792 = vmatprep.mubr.msk.f32.mxu1 %vm2698_vm3, %v11114_v45 }
 0x618   : > { %7793 = vmatmul.mubr.msk.f32.gmra.mxu1 %vm2698_vm3, %v11149_v39 }
 0x619   : > { %7795 = vmatprep.mubr.msk.f32.mxu1 %vm2698_vm3, %v11152_v5 }
 0x61c   : > { %7796 = vmatmul.mubr.msk.f32.gmra.mxu1 %vm2698_vm3, %v11163_v41 }
 0x6c0   : > { %v7776_v24 = vpop.f32.mrf.mxu1 }
 0x6c1   : > { %v3432_v36 = vadd.f32 %v7776_v24, %v11127_v21  ;;  %v13267_v24 = vld [vmem:[#allocation19_spill] sm:$0xff] }
 0x6c2   : > { %v3352_v52 = vpop.f32.mrf.mxu1 }
 0x6c3   : > { %v11315_v29 = vadd.f32 %v11311_v48, %v3432_v36  ;;  %v3431_v46 = vadd.f32 %v3352_v52, %v11125_v34 }
 0x6c4   : > { %v7779_v19 = vpop.f32.mrf.mxu1 }
 0x6c5   : > { %v11319_v55 = vadd.f32 %v11311_v48, %v3431_v46  ;;  %v3434_v2 = vadd.f32 %v7779_v19, %v11135_v12  ;;  %v3473_v30 = vsel %vm2698_vm3, %v11315_v29, 0.0 }
 0x6c6   : > { %3474 = vadd.xlane.f32.xlu0 %v3473_v30  ;;  %v3362_v28 = vpop.f32.mrf.mxu1 }
 0x6c7   : > { %v11325_v21 = vadd.f32 %v11311_v48, %v3434_v2  ;;  %v3433_v39 = vadd.f32 %v3362_v28, %v11133_v35  ;;  %v3470_v34 = vsel %vm2698_vm3, %v11319_v55, 0.0  ;;  %v13268_v2 = vld [vmem:[#allocation9_spill] sm:$0xff] }
 0x6c8   : > { %v7782_v45 = vpop.f32.mrf.mxu1 }
 0x6c9   : > { %v11331_v41 = vadd.f32 %v11311_v48, %v3433_v39  ;;  %v3436_v12 = vadd.f32 %v7782_v45, %v11143_v40  ;;  %v3479_v51 = vsel %vm2698_vm3, %v11325_v21, 0.0 }
 0x6ca   : > { %3471 = vadd.xlane.f32.xlu0 %v3470_v34  ;;  %v3372_v5 = vpop.f32.mrf.mxu1  ;;  %v13269_v34 = vld [vmem:[#allocation26_spill] sm:$0xff] }
 0x6cb   : > { %v11337_v62 = vadd.f32 %v11311_v48, %v3436_v12  ;;  %v3435_v35 = vadd.f32 %v3372_v5, %v11141_v25  ;;  %v3476_v63 = vsel %vm2698_vm3, %v11331_v41, 0.0 }
 0x6cc   : > { %v7785_v9 = vpop.f32.mrf.mxu1 }
 0x6cd   : > { %v11343_v8 = vadd.f32 %v11311_v48, %v3435_v35  ;;  %v3438_v40 = vadd.f32 %v7785_v9, %v11157_v7  ;;  %v3485_v23 = vsel %vm2698_vm3, %v11337_v62, 0.0  ;;  %v13270_v35 = vld [vmem:[#allocation12_spill] sm:$0xff] }
 0x6ce   : > { %3480 = vadd.xlane.f32.xlu0 %v3479_v51  ;;  %v3382_v37 = vpop.f32.mrf.mxu1 }
 0x6cf   : > { %v11349_v14 = vadd.f32 %v11311_v48, %v3438_v40  ;;  %v3437_v25 = vadd.f32 %v3382_v37, %v11155_v27  ;;  %v3482_v53 = vsel %vm2698_vm3, %v11343_v8, 0.0  ;;  %v13271_v40 = vld [vmem:[#allocation28_spill] sm:$0xff] }
 0x6d0   : > { %v7788_v49 = vpop.f32.mrf.mxu1 }
 0x6d1   : > { %v11355_v47 = vadd.f32 %v11311_v48, %v3437_v25  ;;  %v3440_v7 = vadd.f32 %v7788_v49, %v11168_v17  ;;  %v3491_v18 = vsel %vm2698_vm3, %v11349_v14, 0.0 }
 0x6d2   : > { %3477 = vadd.xlane.f32.xlu0 %v3476_v63  ;;  %v3392_v31 = vpop.f32.mrf.mxu1 }
 0x6d3   : > { %v11361_v50 = vadd.f32 %v11311_v48, %v3440_v7  ;;  %v3439_v27 = vadd.f32 %v3392_v31, %v13265_v59  ;;  %v3488_v57 = vsel %vm2698_vm3, %v11355_v47, 0.0 }
 0x6d4   : > { %v7791_v43 = vpop.f32.mrf.mxu1 }
 0x6d5   : > { %v11367_v56 = vadd.f32 %v11311_v48, %v3439_v27  ;;  %v3442_v17 = vadd.f32 %v7791_v43, %v13266_v22  ;;  %v3497_v1 = vsel %vm2698_vm3, %v11361_v50, 0.0 }
 0x6d6   : > { %3486 = vadd.xlane.f32.xlu0 %v3485_v23  ;;  %v3402_v10 = vpop.f32.mrf.mxu1 }
 0x6d7   : > { %v11373_v15 = vadd.f32 %v11311_v48, %v3442_v17  ;;  %v3441_v36 = vadd.f32 %v3402_v10, %v13267_v24  ;;  %v3494_v52 = vsel %vm2698_vm3, %v11367_v56, 0.0 }
 0x6d8   : > { %v7794_v26 = vpop.f32.mrf.mxu1 }
 0x6d9   : > { %v11379_v19 = vadd.f32 %v11311_v48, %v3441_v36  ;;  %v3444_v30 = vadd.f32 %v7794_v26, %v13268_v2  ;;  %v3503_v28 = vsel %vm2698_vm3, %v11373_v15, 0.0 }
 0x6da   : > { %3483 = vadd.xlane.f32.xlu0 %v3482_v53  ;;  %v3412_v46 = vpop.f32.mrf.mxu1 }
 0x6db   : > { %v11385_v39 = vadd.f32 %v11311_v48, %v3444_v30  ;;  %v3443_v5 = vadd.f32 %v3412_v46, %v13269_v34  ;;  %v3500_v12 = vsel %vm2698_vm3, %v11379_v19, 0.0 }
 0x6dc   : > { %v7797_v45 = vpop.f32.mrf.mxu1 }
 0x6dd   : > { %v11391_v9 = vadd.f32 %v11311_v48, %v3443_v5  ;;  %v3509_v37 = vsel %vm2698_vm3, %v11385_v39, 0.0  ;;  %v3446_v23 = vadd.f32 %v7797_v45, %v13271_v40 }
 0x6de   : > { %3492 = vadd.xlane.f32.xlu0 %v3491_v18  ;;  %v3422_v51 = vpop.f32.mrf.mxu1 }
 0x6df   : > { %v3445_v63 = vadd.f32 %v3422_v51, %v13270_v35  ;;  %v3506_v25 = vsel %vm2698_vm3, %v11391_v9, 0.0  ;;  %v11403_v53 = vadd.f32 %v11311_v48, %v3446_v23 }
 0x6e1   : > { %v11398_v49 = vadd.f32 %v11311_v48, %v3445_v63  ;;  %v3515_v7 = vsel %vm2698_vm3, %v11403_v53, 0.0 }
 0x6e2   : > { %3489 = vadd.xlane.f32.xlu0 %v3488_v57 }
 0x6e3   : > { %v3512_v31 = vsel %vm2698_vm3, %v11398_v49, 0.0 }
 0x6e6   : > { %3498 = vadd.xlane.f32.xlu0 %v3497_v1 }
 0x6ea   : > { %3495 = vadd.xlane.f32.xlu0 %v3494_v52 }
 0x6ee   : > { %3504 = vadd.xlane.f32.xlu0 %v3503_v28 }
 0x6f2   : > { %3501 = vadd.xlane.f32.xlu0 %v3500_v12 }
 0x6f6   : > { %3510 = vadd.xlane.f32.xlu0 %v3509_v37 }
 0x6fa   : > { %3507 = vadd.xlane.f32.xlu0 %v3506_v25 }
 0x6fe   : > { %3513 = vadd.xlane.f32.xlu0 %v3512_v31 }
 0x702   : > { %3516 = vadd.xlane.f32.xlu0 %v3515_v7 }
 0x74f   : > { %v3475_v18 = vpop.xlane.xlu0 %3474 }
 0x750   : > { %v3520_v43 = vmul.f32 0.03125, %v3475_v18 }
 0x752   : > { %v11410_v59 = vsub.f32 %v11315_v29, %v3520_v43 }
 0x753   : > { %v3472_v27 = vpop.xlane.xlu0 %3471 }
 0x754   : > { %v3519_v57 = vmul.f32 0.03125, %v3472_v27  ;;  %v3552_v10 = vmul.f32 %v11410_v59, %v11410_v59 }
 0x756   : > { %v11415_v48 = vsub.f32 %v11319_v55, %v3519_v57  ;;  %v3570_v22 = vsel %vm2698_vm3, %v3552_v10, 0.0 }
 0x757   : > { %v3481_v17 = vpop.xlane.xlu0 %3480  ;;  %3571 = vadd.xlane.f32.xlu0 %v3570_v22 }
 0x758   : > { %v3522_v1 = vmul.f32 0.03125, %v3481_v17  ;;  %v3551_v26 = vmul.f32 %v11415_v48, %v11415_v48 }
 0x75a   : > { %v11421_v24 = vsub.f32 %v11325_v21, %v3522_v1  ;;  %v3567_v36 = vsel %vm2698_vm3, %v3551_v26, 0.0 }
 0x75b   : > { %v3478_v52 = vpop.xlane.xlu0 %3477  ;;  %3568 = vadd.xlane.f32.xlu0 %v3567_v36 }
 0x75c   : > { %v3521_v46 = vmul.f32 0.03125, %v3478_v52  ;;  %v3554_v2 = vmul.f32 %v11421_v24, %v11421_v24 }
 0x75e   : > { %v11427_v30 = vsub.f32 %v11331_v41, %v3521_v46  ;;  %v3576_v28 = vsel %vm2698_vm3, %v3554_v2, 0.0 }
 0x75f   : > { %v3487_v45 = vpop.xlane.xlu0 %3486  ;;  %3577 = vadd.xlane.f32.xlu0 %v3576_v28 }
 0x760   : > { %v3524_v34 = vmul.f32 0.03125, %v3487_v45  ;;  %v3553_v5 = vmul.f32 %v11427_v30, %v11427_v30 }
 0x762   : > { %v11433_v12 = vsub.f32 %v11337_v62, %v3524_v34  ;;  %v3573_v51 = vsel %vm2698_vm3, %v3553_v5, 0.0 }
 0x763   : > { %3574 = vadd.xlane.f32.xlu1 %v3573_v51  ;;  %v3484_v35 = vpop.xlane.xlu0 %3483 }
 0x764   : > { %v3523_v63 = vmul.f32 0.03125, %v3484_v35  ;;  %v3556_v37 = vmul.f32 %v11433_v12, %v11433_v12 }
 0x766   : > { %v11439_v40 = vsub.f32 %v11343_v8, %v3523_v63  ;;  %v3582_v23 = vsel %vm2698_vm3, %v3556_v37, 0.0  ;;  %v3722_v37 = vld [vmem:[%s12935_s1 + $0xe8] sm:$0xff] }
 0x767   : > { %v3493_v25 = vpop.xlane.xlu0 %3492  ;;  %3583 = vadd.xlane.f32.xlu0 %v3582_v23  ;;  %v3721_v23 = vld [vmem:[%s12935_s1 + $0xe0] sm:$0xff]  ;;  %7798 = vmatprep.subr.mxu0 %v3722_v37 }
 0x768   : > { %v3526_v31 = vmul.f32 0.03125, %v3493_v25  ;;  %v3555_v7 = vmul.f32 %v11439_v40, %v11439_v40  ;;  %7799 = vmatpush3.msra.mxu0 %v3722_v37 }
 0x769   : > { %7800 = vmatprep.subr.mxu0 %v3721_v23 }
 0x76a   : > { %v11445_v18 = vsub.f32 %v11349_v14, %v3526_v31  ;;  %v3579_v43 = vsel %vm2698_vm3, %v3555_v7, 0.0  ;;  %7801 = vmatpush3.msra.mxu0 %v3721_v23 }
 0x76b   : > { %v3490_v27 = vpop.xlane.xlu0 %3489  ;;  %3580 = vadd.xlane.f32.xlu0 %v3579_v43 }
 0x76c   : > { %v3525_v57 = vmul.f32 0.03125, %v3490_v27  ;;  %v3558_v10 = vmul.f32 %v11445_v18, %v11445_v18 }
 0x76e   : > { %v11451_v22 = vsub.f32 %v11355_v47, %v3525_v57  ;;  %v3588_v17 = vsel %vm2698_vm3, %v3558_v10, 0.0  ;;  %v3720_v57 = vld [vmem:[%s12935_s1 + $0xd8] sm:$0xff]  ;;  %v3719_v10 = vld [vmem:[%s12935_s1 + $0xd0] sm:$0xff] }
 0x76f   : > { %v3499_v1 = vpop.xlane.xlu0 %3498  ;;  %3589 = vadd.xlane.f32.xlu0 %v3588_v17  ;;  %7802 = vmatprep.subr.mxu0 %v3720_v57 }
 0x770   : > { %v3528_v26 = vmul.f32 0.03125, %v3499_v1  ;;  %v3557_v36 = vmul.f32 %v11451_v22, %v11451_v22  ;;  %7803 = vmatpush3.msra.mxu0 %v3720_v57 }
 0x771   : > { %7804 = vmatprep.subr.mxu0 %v3719_v10 }
 0x772   : > { %v11457_v52 = vsub.f32 %v11361_v50, %v3528_v26  ;;  %v3585_v46 = vsel %vm2698_vm3, %v3557_v36, 0.0  ;;  %7805 = vmatpush3.msra.mxu0 %v3719_v10 }
 0x773   : > { %v3496_v2 = vpop.xlane.xlu0 %3495  ;;  %3586 = vadd.xlane.f32.xlu0 %v3585_v46 }
 0x774   : > { %v3527_v28 = vmul.f32 0.03125, %v3496_v2  ;;  %v3560_v45 = vmul.f32 %v11457_v52, %v11457_v52 }
 0x776   : > { %v11463_v34 = vsub.f32 %v11367_v56, %v3527_v28  ;;  %v3594_v5 = vsel %vm2698_vm3, %v3560_v45, 0.0 }
 0x777   : > { %v3505_v51 = vpop.xlane.xlu0 %3504  ;;  %3595 = vadd.xlane.f32.xlu0 %v3594_v5 }
 0x778   : > { %v3530_v35 = vmul.f32 0.03125, %v3505_v51  ;;  %v3559_v63 = vmul.f32 %v11463_v34, %v11463_v34 }
 0x77a   : > { %v11475_v25 = vsub.f32 %v11373_v15, %v3530_v35  ;;  %v3591_v31 = vsel %vm2698_vm3, %v3559_v63, 0.0 }
 0x77b   : > { %v3502_v7 = vpop.xlane.xlu0 %3501  ;;  %3592 = vadd.xlane.f32.xlu0 %v3591_v31 }
 0x77c   : > { %v3529_v43 = vmul.f32 0.03125, %v3502_v7  ;;  %v3562_v27 = vmul.f32 %v11475_v25, %v11475_v25 }
 0x77e   : > { %v11487_v17 = vsub.f32 %v11379_v19, %v3529_v43  ;;  %v3600_v1 = vsel %vm2698_vm3, %v3562_v27, 0.0 }
 0x77f   : > { %v3511_v26 = vpop.xlane.xlu0 %3510  ;;  %3601 = vadd.xlane.f32.xlu0 %v3600_v1 }
 0x780   : > { %v3532_v36 = vmul.f32 0.03125, %v3511_v26  ;;  %v3561_v46 = vmul.f32 %v11487_v17, %v11487_v17 }
 0x782   : > { %v11493_v2 = vsub.f32 %v11385_v39, %v3532_v36  ;;  %v3597_v28 = vsel %vm2698_vm3, %v3561_v46, 0.0 }
 0x783   : > { %v3508_v45 = vpop.xlane.xlu0 %3507  ;;  %3598 = vadd.xlane.f32.xlu0 %v3597_v28 }
 0x784   : > { %v3531_v5 = vmul.f32 0.03125, %v3508_v45  ;;  %v3564_v51 = vmul.f32 %v11493_v2, %v11493_v2 }
 0x786   : > { %v11499_v35 = vsub.f32 %v11391_v9, %v3531_v5  ;;  %v3606_v63 = vsel %vm2698_vm3, %v3564_v51, 0.0 }
 0x787   : > { %3607 = vadd.xlane.f32.xlu1 %v3606_v63  ;;  %v3514_v37 = vpop.xlane.xlu0 %3513 }
 0x788   : > { %v3533_v23 = vmul.f32 0.03125, %v3514_v37  ;;  %v3563_v31 = vmul.f32 %v11499_v35, %v11499_v35 }
 0x78a   : > { %v11505_v7 = vsub.f32 %v11398_v49, %v3533_v23  ;;  %v3603_v43 = vsel %vm2698_vm3, %v3563_v31, 0.0 }
 0x78b   : > { %3604 = vadd.xlane.f32.xlu0 %v3603_v43  ;;  %v3517_v27 = vpop.xlane.xlu0 %3516 }
 0x78c   : > { %v3534_v57 = vmul.f32 0.03125, %v3517_v27  ;;  %v3565_v10 = vmul.f32 %v11505_v7, %v11505_v7 }
 0x78e   : > { %v11511_v1 = vsub.f32 %v11403_v53, %v3534_v57  ;;  %v3609_v26 = vsel %vm2698_vm3, %v3565_v10, 0.0 }
 0x78f   : > { %3610 = vadd.xlane.f32.xlu0 %v3609_v26 }
 0x790   : > { %v3566_v36 = vmul.f32 %v11511_v1, %v11511_v1 }
 0x792   : > { %v3612_v46 = vsel %vm2698_vm3, %v3566_v36, 0.0  ;;  %v3468_v36 = vld [vmem:[%s12935_s1 + $0xc0] sm:$0xff] }
 0x793   : > { %3613 = vadd.xlane.f32.xlu1 %v3612_v46 }
 0x7e0   : > { %v3572_v28 = vpop.xlane.xlu0 %3571 }
 0x7e1   : > { %v3616_v45 = vmul.f32 0.03125, %v3572_v28 }
 0x7e3   : > { %v3632_v5 = vadd.f32 1e-05, %v3616_v45 }
 0x7e4   : > { %v3569_v51 = vpop.xlane.xlu0 %3568 }
 0x7e5   : > { %8459 = vrsqrt.f32 %v3632_v5  ;;  %v3615_v63 = vmul.f32 0.03125, %v3569_v51  ;;  %v11521_v5 = vrot.slane %v3468_v36, %v13121_v61 }
 0x7e7   : > { %v3631_v37 = vadd.f32 1e-05, %v3615_v63 }
 0x7e8   : > { %v3578_v23 = vpop.xlane.xlu0 %3577 }
 0x7e9   : > { %8461 = vrsqrt.f32 %v3631_v37  ;;  %v3618_v31 = vmul.f32 0.03125, %v3578_v23  ;;  %v3469_v23 = vld [vmem:[%s12935_s1 + $0xc8] sm:$0xff] }
 0x7eb   : > { %v3634_v43 = vadd.f32 1e-05, %v3618_v31 }
 0x7ec   : > { %v3575_v27 = vpop.xlane.xlu1 %3574 }
 0x7ed   : > { %8463 = vrsqrt.f32 %v3634_v43  ;;  %v3617_v57 = vmul.f32 0.03125, %v3575_v27 }
 0x7ef   : > { %v3633_v10 = vadd.f32 1e-05, %v3617_v57 }
 0x7f0   : > { %v3584_v26 = vpop.xlane.xlu0 %3583 }
 0x7f1   : > { %8465 = vrsqrt.f32 %v3633_v10  ;;  %v3620_v46 = vmul.f32 0.03125, %v3584_v26  ;;  %v11530_v26 = vrot.slane %v3469_v23, %v13121_v61 }
 0x7f2   : > { %v8460_v28 = vpop.eup %8459 }
 0x7f3   : > { %v3636_v45 = vadd.f32 1e-05, %v3620_v46  ;;  %v3664_v51 = vmul.f32 %v8460_v28, %v11410_v59 }
 0x7f4   : > { %v3581_v63 = vpop.xlane.xlu0 %3580 }
 0x7f5   : > { %8467 = vrsqrt.f32 %v3636_v45  ;;  %v3619_v37 = vmul.f32 0.03125, %v3581_v63  ;;  %v3684_v57 = vmul.f32 %v11521_v5, %v3664_v51 }
 0x7f6   : > { %v8462_v31 = vpop.eup %8461 }
 0x7f7   : > { %v3635_v43 = vadd.f32 1e-05, %v3619_v37  ;;  %v3663_v27 = vmul.f32 %v8462_v31, %v11415_v48  ;;  %v3704_v38 = vadd.f32 %v11530_v26, %v3684_v57 }
 0x7f8   : > { %v3590_v10 = vpop.xlane.xlu0 %3589 }
 0x7f9   : > { %8469 = vrsqrt.f32 %v3635_v43  ;;  %v3622_v36 = vmul.f32 0.03125, %v3590_v10  ;;  %v3683_v59 = vmul.f32 %v11521_v5, %v3663_v27 }
 0x7fa   : > { %v8464_v46 = vpop.eup %8463 }
 0x7fb   : > { %v3638_v28 = vadd.f32 1e-05, %v3622_v36  ;;  %v3703_v45 = vadd.f32 %v11530_v26, %v3683_v59  ;;  %v3666_v37 = vmul.f32 %v8464_v46, %v11421_v24 }
 0x7fc   : > { %v3587_v63 = vpop.xlane.xlu0 %3586 }
 0x7fd   : > { %8471 = vrsqrt.f32 %v3638_v28  ;;  %v3621_v48 = vmul.f32 0.03125, %v3587_v63  ;;  %7806 = vmatprep.mubr.msk.f32.mxu0 %vm2698_vm3, %v3703_v45  ;;  %v3686_v27 = vmul.f32 %v11521_v5, %v3666_v37 }
 0x7fe   : > { %v8466_v51 = vpop.eup %8465  ;;  %7807 = vmatmul.mubr.msk.f32.vlgmr.msra.gmra.mxu0 %vm2698_vm3, %v3704_v38 }
 0x7ff   : > { %v3637_v23 = vadd.f32 1e-05, %v3621_v48  ;;  %v3665_v31 = vmul.f32 %v8466_v51, %v11427_v30  ;;  %v3706_v28 = vadd.f32 %v11530_v26, %v3686_v27 }
 0x800   : > { %v3596_v43 = vpop.xlane.xlu0 %3595 }
 0x801   : > { %8473 = vrsqrt.f32 %v3637_v23  ;;  %v3624_v10 = vmul.f32 0.03125, %v3596_v43  ;;  %v3685_v36 = vmul.f32 %v11521_v5, %v3665_v31 }
 0x802   : > { %v8468_v57 = vpop.eup %8467 }
 0x803   : > { %v3640_v59 = vadd.f32 1e-05, %v3624_v10  ;;  %v3705_v24 = vadd.f32 %v11530_v26, %v3685_v36  ;;  %v3668_v45 = vmul.f32 %v8468_v57, %v11433_v12 }
 0x804   : > { %v3593_v46 = vpop.xlane.xlu0 %3592 }
 0x805   : > { %8475 = vrsqrt.f32 %v3640_v59  ;;  %v3623_v38 = vmul.f32 0.03125, %v3593_v46  ;;  %7809 = vmatprep.mubr.msk.f32.mxu0 %vm2698_vm3, %v3705_v24  ;;  %v3688_v51 = vmul.f32 %v11521_v5, %v3668_v45 }
 0x806   : > { %v8470_v30 = vpop.eup %8469  ;;  %7810 = vmatmul.mubr.msk.f32.gmra.mxu0 %vm2698_vm3, %v3706_v28 }
 0x807   : > { %v3639_v63 = vadd.f32 1e-05, %v3623_v38  ;;  %v3667_v37 = vmul.f32 %v8470_v30, %v11439_v40  ;;  %v3708_v36 = vadd.f32 %v11530_v26, %v3688_v51 }
 0x808   : > { %v3602_v48 = vpop.xlane.xlu0 %3601 }
 0x809   : > { %8477 = vrsqrt.f32 %v3639_v63  ;;  %v3626_v23 = vmul.f32 0.03125, %v3602_v48  ;;  %v3687_v31 = vmul.f32 %v11521_v5, %v3667_v37 }
 0x80a   : > { %v8472_v43 = vpop.eup %8471 }
 0x80b   : > { %v3642_v27 = vadd.f32 1e-05, %v3626_v23  ;;  %v3707_v12 = vadd.f32 %v11530_v26, %v3687_v31  ;;  %v3670_v57 = vmul.f32 %v8472_v43, %v11445_v18 }
 0x80c   : > { %v3599_v10 = vpop.xlane.xlu0 %3598 }
 0x80d   : > { %8479 = vrsqrt.f32 %v3642_v27  ;;  %v3625_v59 = vmul.f32 0.03125, %v3599_v10  ;;  %7812 = vmatprep.mubr.msk.f32.mxu0 %vm2698_vm3, %v3707_v12  ;;  %v3690_v45 = vmul.f32 %v11521_v5, %v3670_v57 }
 0x80e   : > { %v8474_v40 = vpop.eup %8473  ;;  %7813 = vmatmul.mubr.msk.f32.gmra.mxu0 %vm2698_vm3, %v3708_v36 }
 0x80f   : > { %v3641_v24 = vadd.f32 1e-05, %v3625_v59  ;;  %v3669_v46 = vmul.f32 %v8474_v40, %v11451_v22  ;;  %v3710_v51 = vadd.f32 %v11530_v26, %v3690_v45 }
 0x810   : > { %v3608_v28 = vpop.xlane.xlu1 %3607 }
 0x811   : > { %8481 = vrsqrt.f32 %v3641_v24  ;;  %v3628_v38 = vmul.f32 0.03125, %v3608_v28  ;;  %v3689_v30 = vmul.f32 %v11521_v5, %v3669_v46 }
 0x812   : > { %v8476_v63 = vpop.eup %8475 }
 0x813   : > { %v3644_v37 = vadd.f32 1e-05, %v3628_v38  ;;  %v3709_v18 = vadd.f32 %v11530_v26, %v3689_v30  ;;  %v3672_v23 = vmul.f32 %v8476_v63, %v11457_v52 }
 0x814   : > { %v3605_v48 = vpop.xlane.xlu0 %3604 }
 0x815   : > { %8483 = vrsqrt.f32 %v3644_v37  ;;  %v3627_v31 = vmul.f32 0.03125, %v3605_v48  ;;  %7815 = vmatprep.mubr.msk.f32.mxu0 %vm2698_vm3, %v3709_v18  ;;  %v3692_v10 = vmul.f32 %v11521_v5, %v3672_v23 }
 0x816   : > { %v8478_v22 = vpop.eup %8477  ;;  %7816 = vmatmul.mubr.msk.f32.gmra.mxu0 %vm2698_vm3, %v3710_v51 }
 0x817   : > { %v3643_v43 = vadd.f32 1e-05, %v3627_v31  ;;  %v3671_v27 = vmul.f32 %v8478_v22, %v11463_v34  ;;  %v3712_v46 = vadd.f32 %v11530_v26, %v3692_v10 }
 0x818   : > { %v3611_v12 = vpop.xlane.xlu0 %3610 }
 0x819   : > { %8485 = vrsqrt.f32 %v3643_v43  ;;  %v3629_v36 = vmul.f32 0.03125, %v3611_v12  ;;  %v3691_v57 = vmul.f32 %v11521_v5, %v3671_v27 }
 0x81a   : > { %v8480_v59 = vpop.eup %8479 }
 0x81b   : > { %v3645_v40 = vadd.f32 1e-05, %v3629_v36  ;;  %v3711_v52 = vadd.f32 %v11530_v26, %v3691_v57  ;;  %v3674_v28 = vmul.f32 %v8480_v59, %v11475_v25 }
 0x81c   : > { %v3614_v24 = vpop.xlane.xlu1 %3613 }
 0x81d   : > { %8487 = vrsqrt.f32 %v3645_v40  ;;  %v3630_v45 = vmul.f32 0.03125, %v3614_v24  ;;  %7818 = vmatprep.mubr.msk.f32.mxu0 %vm2698_vm3, %v3711_v52  ;;  %v3694_v63 = vmul.f32 %v11521_v5, %v3674_v28  ;;  %v4119_v52 = vld [vmem:[%s12935_s1 + $0x128] sm:$0xff]  ;;  %v4113_v28 = vld [vmem:[%s12935_s1 + $0xf8] sm:$0xff] }
 0x81e   : > { %v8482_v34 = vpop.eup %8481  ;;  %7819 = vmatmul.mubr.msk.f32.gmra.mxu0 %vm2698_vm3, %v3712_v46  ;;  %v4115_v24 = vld [vmem:[%s12935_s1 + $0x108] sm:$0xff]  ;;  %v4114_v46 = vld [vmem:[%s12935_s1 + $0x100] sm:$0xff] }
 0x81f   : > { %v3646_v38 = vadd.f32 1e-05, %v3630_v45  ;;  %v3673_v30 = vmul.f32 %v8482_v34, %v11487_v17  ;;  %v3714_v25 = vadd.f32 %v11530_v26, %v3694_v63  ;;  %v3723_v45 = vld [vmem:[%s12935_s1 + $0xf0] sm:$0xff] }
 0x820   : > { %v3727_v34 = vrot.slane %v3723_v45, %v13121_v61 }
 0x821   : > { %8489 = vrsqrt.f32 %v3646_v38  ;;  %v3693_v37 = vmul.f32 %v11521_v5, %v3673_v30 }
 0x822   : > { %v8484_v18 = vpop.eup %8483 }
 0x823   : > { %v3713_v48 = vadd.f32 %v11530_v26, %v3693_v37  ;;  %v3676_v51 = vmul.f32 %v8484_v18, %v11493_v2 }
 0x825   : > { %7821 = vmatprep.mubr.msk.f32.mxu0 %vm2698_vm3, %v3713_v48  ;;  %v3696_v17 = vmul.f32 %v11521_v5, %v3676_v51 }
 0x826   : > { %v8486_v23 = vpop.eup %8485  ;;  %7822 = vmatmul.mubr.msk.f32.gmra.mxu0 %vm2698_vm3, %v3714_v25 }
 0x827   : > { %v3675_v31 = vmul.f32 %v8486_v23, %v11499_v35  ;;  %v3716_v10 = vadd.f32 %v11530_v26, %v3696_v17 }
 0x829   : > { %v3695_v22 = vmul.f32 %v11521_v5, %v3675_v31 }
 0x82a   : > { %v8488_v43 = vpop.eup %8487 }
 0x82b   : > { %v3715_v27 = vadd.f32 %v11530_v26, %v3695_v22  ;;  %v3677_v12 = vmul.f32 %v8488_v43, %v11505_v7  ;;  %v4120_v7 = vld [vmem:[%s12935_s1 + $0x130] sm:$0xff] }
 0x82c   : > { %7830 = vmatprep.subr.mxu1 %v4120_v7 }
 0x82d   : > { %7824 = vmatprep.mubr.msk.f32.mxu0 %vm2698_vm3, %v3715_v27  ;;  %v3697_v2 = vmul.f32 %v11521_v5, %v3677_v12  ;;  %7831 = vmatpush3.msra.mxu1 %v4120_v7 }
 0x82e   : > { %v8490_v36 = vpop.eup %8489  ;;  %7825 = vmatmul.mubr.msk.f32.gmra.mxu0 %vm2698_vm3, %v3716_v10  ;;  %7832 = vmatprep.subr.mxu1 %v4119_v52 }
 0x82f   : > { %v3717_v35 = vadd.f32 %v11530_v26, %v3697_v2  ;;  %v3678_v57 = vmul.f32 %v8490_v36, %v11511_v1  ;;  %v4118_v1 = vld [vmem:[%s12935_s1 + $0x120] sm:$0xff]  ;;  %7833 = vmatpush3.msra.mxu1 %v4119_v52 }
 0x830   : > { %7834 = vmatprep.subr.mxu1 %v4118_v1 }
 0x831   : > { %7827 = vmatprep.mubr.msk.f32.mxu0 %vm2698_vm3, %v3717_v35  ;;  %v3698_v59 = vmul.f32 %v11521_v5, %v3678_v57  ;;  %v4117_v5 = vld [vmem:[%s12935_s1 + $0x118] sm:$0xff]  ;;  %7835 = vmatpush3.msra.mxu1 %v4118_v1 }
 0x832   : > { %7836 = vmatprep.subr.mxu1 %v4117_v5 }
 0x833   : > { %v3718_v40 = vadd.f32 %v11530_v26, %v3698_v59  ;;  %v4116_v26 = vld [vmem:[%s12935_s1 + $0x110] sm:$0xff]  ;;  %7837 = vmatpush3.msra.mxu1 %v4117_v5 }
 0x834   : > { %7838 = vmatprep.subr.mxu1 %v4116_v26 }
 0x835   : > { %7828 = vmatmul.mubr.msk.f32.gmra.mxu0 %vm2698_vm3, %v3718_v40  ;;  %7839 = vmatpush3.msra.mxu1 %v4116_v26 }
 0x836   : > { %7840 = vmatprep.subr.mxu1 %v4115_v24 }
 0x837   : > { %7841 = vmatpush3.msra.mxu1 %v4115_v24 }
 0x838   : > { %7842 = vmatprep.subr.mxu1 %v4114_v46 }
 0x839   : > { %7843 = vmatpush3.msra.mxu1 %v4114_v46 }
 0x83a   : > { %7844 = vmatprep.subr.mxu1 %v4113_v28 }
 0x83b   : > { %7845 = vmatpush3.msra.mxu1 %v4113_v28 }
 0x8be   : > { %v7808_v38 = vpop.f32.mrf.mxu0 }
 0x8bf   : > { %v11621_v30 = vadd.f32 %v7808_v38, %v3727_v34 }
 0x8c0   : > { %v3842_v63 = vpop.f32.mrf.mxu0 }
 0x8c1   : > { %v11623_v37 = vadd.f32 %v3842_v63, %v3727_v34  ;;  %4051 = vrot.lane.b32.xlu1 %v11621_v30, %s8868_s4  ;;  %v13272_v63 = vld [vmem:[#allocation14_spill] sm:$0xff] }
 0x8c3   : > { %4049 = vrot.lane.b32.xlu0 %v11623_v37, %s8868_s4 }
 0x8c6   : > { %v7811_v18 = vpop.f32.mrf.mxu0 }
 0x8c7   : > { %v11629_v48 = vadd.f32 %v7811_v18, %v3727_v34  ;;  %v13273_v18 = vld [vmem:[#allocation6_spill] sm:$0xff] }
 0x8c8   : > { %v3852_v25 = vpop.f32.mrf.mxu0 }
 0x8c9   : > { %v11631_v51 = vadd.f32 %v3852_v25, %v3727_v34  ;;  %4055 = vrot.lane.b32.xlu0 %v11629_v48, %s8868_s4  ;;  %v13274_v25 = vld [vmem:[#allocation23_spill] sm:$0xff] }
 0x8cb   : > { %4053 = vrot.lane.b32.xlu1 %v11631_v51, %s8868_s4 }
 0x8ce   : > { %v7814_v23 = vpop.f32.mrf.mxu0 }
 0x8cf   : > { %v11637_v31 = vadd.f32 %v7814_v23, %v3727_v34  ;;  %v13275_v23 = vld [vmem:[#allocation16_spill] sm:$0xff] }
 0x8d0   : > { %v3862_v17 = vpop.f32.mrf.mxu0 }
 0x8d1   : > { %v11639_v22 = vadd.f32 %v3862_v17, %v3727_v34  ;;  %4059 = vrot.lane.b32.xlu0 %v11637_v31, %s8868_s4  ;;  %v13276_v17 = vld [vmem:[#allocation31_spill] sm:$0xff] }
 0x8d3   : > { %4057 = vrot.lane.b32.xlu1 %v11639_v22, %s8868_s4 }
 0x8d6   : > { %v7817_v43 = vpop.f32.mrf.mxu0 }
 0x8d7   : > { %v11645_v27 = vadd.f32 %v7817_v43, %v3727_v34  ;;  %v13277_v43 = vld [vmem:[#allocation32_spill] sm:$0xff] }
 0x8d8   : > { %v3872_v12 = vpop.f32.mrf.mxu0 }
 0x8d9   : > { %v11647_v10 = vadd.f32 %v3872_v12, %v3727_v34  ;;  %4063 = vrot.lane.b32.xlu0 %v11645_v27, %s8868_s4  ;;  %v13279_v12 = vld [vmem:[#allocation22_spill] sm:$0xff] }
 0x8db   : > { %4061 = vrot.lane.b32.xlu1 %v11647_v10, %s8868_s4 }
 0x8de   : > { %v7820_v2 = vpop.f32.mrf.mxu0 }
 0x8df   : > { %v11653_v36 = vadd.f32 %v7820_v2, %v3727_v34  ;;  %v7148_v2 = vmul.f32 -1.442695, %v11623_v37 }
 0x8e0   : > { %v3882_v35 = vpop.f32.mrf.mxu0 }
 0x8e1   : > { %v11655_v57 = vadd.f32 %v3882_v35, %v3727_v34  ;;  %4067 = vrot.lane.b32.xlu0 %v11653_v36, %s8868_s4  ;;  %v13280_v35 = vld [vmem:[#allocation11_spill] sm:$0xff]  ;;  %8491 = vpow2.f32 %v7148_v2 }
 0x8e3   : > { %4065 = vrot.lane.b32.xlu1 %v11655_v57, %s8868_s4 }
 0x8e6   : > { %v7823_v59 = vpop.f32.mrf.mxu0 }
 0x8e7   : > { %v11661_v40 = vadd.f32 %v7823_v59, %v3727_v34  ;;  %v7149_v59 = vmul.f32 -1.442695, %v11621_v30 }
 0x8e8   : > { %v3892_v7 = vpop.f32.mrf.mxu0 }
 0x8e9   : > { %v11663_v52 = vadd.f32 %v3892_v7, %v3727_v34  ;;  %4071 = vrot.lane.b32.xlu0 %v11661_v40, %s8868_s4  ;;  %v13281_v7 = vld [vmem:[#allocation24_spill] sm:$0xff]  ;;  %8493 = vpow2.f32 %v7149_v59  ;;  %v7154_v59 = vmul.f32 -1.442695, %v11647_v10 }
 0x8eb   : > { %4069 = vrot.lane.b32.xlu1 %v11663_v52, %s8868_s4 }
 0x8ee   : > { %v7826_v1 = vpop.f32.mrf.mxu0 }
 0x8ef   : > { %v11669_v5 = vadd.f32 %v7826_v1, %v3727_v34  ;;  %v13282_v1 = vld [vmem:[#allocation13_spill] sm:$0xff] }
 0x8f0   : > { %v3902_v26 = vpop.f32.mrf.mxu0 }
 0x8f1   : > { %v11671_v24 = vadd.f32 %v3902_v26, %v3727_v34  ;;  %4075 = vrot.lane.b32.xlu0 %v11669_v5, %s8868_s4  ;;  %v13283_v26 = vld [vmem:[#allocation17_spill] sm:$0xff] }
 0x8f3   : > { %4073 = vrot.lane.b32.xlu1 %v11671_v24, %s8868_s4 }
 0x8f5   : > { %v7829_v46 = vpop.f32.mrf.mxu0 }
 0x8f6   : > { %v11677_v28 = vadd.f32 %v7829_v46, %v3727_v34  ;;  %v7150_v46 = vmul.f32 -1.442695, %v11631_v51 }
 0x8f7   : > { %v3912_v45 = vpop.f32.mrf.mxu0 }
 0x8f8   : > { %v11679_v38 = vadd.f32 %v3912_v45, %v3727_v34  ;;  %4079 = vrot.lane.b32.xlu0 %v11677_v28, %s8868_s4  ;;  %v13278_v34 = vld [vmem:[#allocation5_spill] sm:$0xff]  ;;  %8495 = vpow2.f32 %v7150_v46 }
 0x8f9   : > { %v13284_v45 = vld [vmem:[#allocation25_spill] sm:$0xff] }
 0x8fa   : > { %4077 = vrot.lane.b32.xlu1 %v11679_v38, %s8868_s4 }
 0x8fc   : > { %4571 = vrot.lane.b32.xlu0 %v13272_v63, %s8870_s6  ;;  %v7151_v63 = vmul.f32 -1.442695, %v11629_v48 }
 0x8fe   : > { %4569 = vrot.lane.b32.xlu1 %v13273_v18, %s8870_s6  ;;  %v13285_v18 = vld [vmem:[#allocation21_spill] sm:$0xff]  ;;  %8497 = vpow2.f32 %v7151_v63  ;;  %v7156_v63 = vmul.f32 -1.442695, %v11655_v57 }
 0x900   : > { %4575 = vrot.lane.b32.xlu0 %v13274_v25, %s8870_s6  ;;  %v13286_v25 = vld [vmem:[#allocation8_spill] sm:$0xff] }
 0x902   : > { %4573 = vrot.lane.b32.xlu1 %v13275_v23, %s8870_s6  ;;  %v13287_v23 = vld [vmem:[#allocation27_spill] sm:$0xff] }
 0x904   : > { %4579 = vrot.lane.b32.xlu0 %v13276_v17, %s8870_s6  ;;  %v7152_v17 = vmul.f32 -1.442695, %v11639_v22 }
 0x906   : > { %4577 = vrot.lane.b32.xlu1 %v13277_v43, %s8870_s6  ;;  %v8492_v43 = vpop.eup %8491  ;;  %8499 = vpow2.f32 %v7152_v17 }
 0x907   : > { %v3969_v2 = vadd.f32 1.0, %v8492_v43 }
 0x908   : > { %4583 = vrot.lane.b32.xlu0 %v13278_v34, %s8870_s6  ;;  %v7153_v34 = vmul.f32 -1.442695, %v11637_v31 }
 0x90a   : > { %4581 = vrot.lane.b32.xlu1 %v13279_v12, %s8870_s6  ;;  %v8494_v12 = vpop.eup %8493  ;;  %8501 = vpow2.f32 %v7153_v34 }
 0x90b   : > { %8503 = vrcp.f32 %v3969_v2  ;;  %v7158_v2 = vmul.f32 -1.442695, %v11663_v52 }
 0x90c   : > { %4587 = vrot.lane.b32.xlu0 %v13280_v35, %s8870_s6  ;;  %v3970_v35 = vadd.f32 1.0, %v8494_v12 }
 0x90e   : > { %4585 = vrot.lane.b32.xlu1 %v13281_v7, %s8870_s6  ;;  %v8496_v7 = vpop.eup %8495  ;;  %8505 = vrcp.f32 %v3970_v35 }
 0x90f   : > { %v3971_v46 = vadd.f32 1.0, %v8496_v7  ;;  %8507 = vpow2.f32 %v7154_v59 }
 0x910   : > { %4591 = vrot.lane.b32.xlu0 %v13282_v1, %s8870_s6  ;;  %v7155_v1 = vmul.f32 -1.442695, %v11645_v27 }
 0x912   : > { %4589 = vrot.lane.b32.xlu1 %v13283_v26, %s8870_s6  ;;  %v8498_v26 = vpop.eup %8497  ;;  %8509 = vpow2.f32 %v7155_v1  ;;  %v7159_v1 = vmul.f32 -1.442695, %v11661_v40 }
 0x913   : > { %8511 = vrcp.f32 %v3971_v46 }
 0x914   : > { %4595 = vrot.lane.b32.xlu0 %v13284_v45, %s8870_s6  ;;  %v3972_v45 = vadd.f32 1.0, %v8498_v26 }
 0x916   : > { %4593 = vrot.lane.b32.xlu1 %v13285_v18, %s8870_s6  ;;  %v8500_v18 = vpop.eup %8499  ;;  %8513 = vrcp.f32 %v3972_v45 }
 0x917   : > { %v3973_v17 = vadd.f32 1.0, %v8500_v18  ;;  %8515 = vpow2.f32 %v7156_v63 }
 0x918   : > { %4599 = vrot.lane.b32.xlu0 %v13286_v25, %s8870_s6  ;;  %v7157_v25 = vmul.f32 -1.442695, %v11653_v36 }
 0x91a   : > { %4597 = vrot.lane.b32.xlu1 %v13287_v23, %s8870_s6  ;;  %v8502_v23 = vpop.eup %8501  ;;  %8517 = vpow2.f32 %v7157_v25  ;;  %s134_s6 = sand.u32 1, %s8847_s10  }
 0x91b   : > { %v8504_v43 = vpop.eup %8503  ;;  %v3974_v34 = vadd.f32 1.0, %v8502_v23  ;;  %8519 = vrcp.f32 %v3973_v17  ;;  %v7160_v17 = vmul.f32 -1.442695, %v11671_v24  ;;  %s135_s8 = scalar_lea.vmem [#allocation2], %s134_s6  ;;  %s6927_s22 = scalar_lea.sflag [#allocation3], %s134_s6 }
 0x91c   : > { %v8506_v12 = vpop.eup %8505  ;;  %v4017_v59 = vmul.f32 %v8504_v43, %v11623_v37  ;;  %s6939_s14 = sshll.u32 %s135_s8, 4  ;;  %s6940_s14 = int_to_ptr.vmem [resolvable:$true] %s6939_s14 }
 0x91d   : > { %v8508_v7 = vpop.eup %8507  ;;  %8521 = vrcp.f32 %v3974_v34  ;;  %v4018_v26 = vmul.f32 %v8506_v12, %v11621_v30  ;;  %v7161_v12 = vmul.f32 -1.442695, %v11669_v5  ;;  %s8795_s23 = scalar_lea.vmem %s6940_s14, 16  ;;  %p8802_p0 = scmp.lt.s32.totalorder %s6940_s14, %s8800_s13 }
 0x91e   : > { %v3975_v4 = vadd.f32 1.0, %v8508_v7  ;;  %8523 = vpow2.f32 %v7158_v2  ;;  %p8796_p11 = scmp.ne.s32.totalorder %s6940_s14, %s8795_s23  ;;  %p8803_p1 = scmp.lt.s32.totalorder %s8801_s26, %s8795_s23 }
 0x91f   : > { %v8510_v45 = vpop.eup %8509  ;;  %8525 = vpow2.f32 %v7159_v1 }
 0x920   : > { %v8512_v25 = vpop.eup %8511  ;;  %v3976_v23 = vadd.f32 1.0, %v8510_v45  ;;  %8527 = vrcp.f32 %v3975_v4  ;;  %v7162_v45 = vmul.f32 -1.442695, %v11679_v38  ;;  %p8797_p12 = pnand %p8796_p11, %p8927_p5  ;;  %p8804_p2 = por %p8803_p1, %p8802_p0 }
 0x921   : > { %v4019_v30 = vmul.f32 %v8512_v25, %v11631_v51 }
 0x922   : > { %8529 = vrcp.f32 %v3976_v23  ;;  %p8798_p13 = pneg %p8797_p12 }
 0x923   : > { %v8514_v37 = vpop.eup %8513  ;;  %8531 = vpow2.f32 %v7160_v17 }
 0x924   : > { %v8516_v34 = vpop.eup %8515  ;;  %v4020_v2 = vmul.f32 %v8514_v37, %v11629_v48  ;;  %8533 = vpow2.f32 %v7161_v12  ;;  %p8805_p3 = pnand %p8804_p2, %p8798_p13 }
 0x925   : > { %v3977_v1 = vadd.f32 1.0, %v8516_v34 }
 0x927   : > { %8535 = vrcp.f32 %v3977_v1 }
 0x933   : > { %v4052_v35 = vpop.permute.xlu1 %4051 }
 0x934   : > { %v4098_v63 = vmul.f32 %v4052_v35, %v4018_v26 }
 0x935   : > { %v4050_v46 = vpop.permute.xlu0 %4049 }
 0x936   : > { %v4097_v18 = vmul.f32 %v4050_v46, %v4017_v59  ;;  %v8518_v59 = vpop.eup %8517 }
 0x937   : > { %v8520_v4 = vpop.eup %8519  ;;  %v3978_v46 = vadd.f32 1.0, %v8518_v59 }
 0x938   : > { %7846 = vmatprep.mubr.msk.f32.mxu1 %vm2495_vm15, %v4097_v18  ;;  %v8522_v51 = vpop.eup %8521  ;;  %v7163_v18 = vmul.f32 -1.442695, %v11677_v28 }
 0x939   : > { %7847 = vmatmul.mubr.msk.f32.vlgmr.msra.gmra.mxu1 %vm2495_vm15, %v4098_v63  ;;  %v4021_v63 = vmul.f32 %v8520_v4, %v11639_v22  ;;  %v8524_v25 = vpop.eup %8523  ;;  %8537 = vrcp.f32 %v3978_v46  ;;  %v4022_v23 = vmul.f32 %v8522_v51, %v11637_v31 }
 0x93a   : > { %v8526_v17 = vpop.eup %8525  ;;  %8539 = vpow2.f32 %v7162_v45  ;;  %v3979_v34 = vadd.f32 1.0, %v8524_v25 }
 0x93b   : > { %v4056_v43 = vpop.permute.xlu0 %4055  ;;  %8541 = vpow2.f32 %v7163_v18  ;;  %v8528_v12 = vpop.eup %8527 }
 0x93c   : > { %v4100_v26 = vmul.f32 %v4056_v43, %v4020_v2  ;;  %v3980_v2 = vadd.f32 1.0, %v8526_v17  ;;  %8543 = vrcp.f32 %v3979_v34  ;;  %v4023_v59 = vmul.f32 %v8528_v12, %v11647_v10 }
 0x93d   : > { %v4054_v35 = vpop.permute.xlu1 %4053 }
 0x93e   : > { %v4099_v7 = vmul.f32 %v4054_v35, %v4019_v30  ;;  %v8530_v35 = vpop.eup %8529  ;;  %8545 = vrcp.f32 %v3980_v2 }
 0x93f   : > { %v4024_v31 = vmul.f32 %v8530_v35, %v11645_v27 }
 0x940   : > { %7849 = vmatprep.mubr.msk.f32.mxu1 %vm2495_vm15, %v4099_v7  ;;  %v8532_v7 = vpop.eup %8531 }
 0x941   : > { %7850 = vmatmul.mubr.msk.f32.gmra.mxu1 %vm2495_vm15, %v4100_v26  ;;  %v8534_v1 = vpop.eup %8533  ;;  %v3981_v51 = vadd.f32 1.0, %v8532_v7 }
 0x942   : > { %v8536_v45 = vpop.eup %8535  ;;  %v3982_v18 = vadd.f32 1.0, %v8534_v1 }
 0x943   : > { %v4060_v48 = vpop.permute.xlu0 %4059  ;;  %8547 = vrcp.f32 %v3981_v51  ;;  %v4025_v10 = vmul.f32 %v8536_v45, %v11655_v57 }
 0x944   : > { %v4102_v30 = vmul.f32 %v4060_v48, %v4022_v23  ;;  %8549 = vrcp.f32 %v3982_v18 }
 0x945   : > { %v4058_v37 = vpop.permute.xlu1 %4057 }
 0x946   : > { %v4101_v43 = vmul.f32 %v4058_v37, %v4021_v63  ;;  %v8538_v48 = vpop.eup %8537 }
 0x947   : > { %v8540_v63 = vpop.eup %8539  ;;  %v4026_v27 = vmul.f32 %v8538_v48, %v11653_v36 }
 0x948   : > { %7852 = vmatprep.mubr.msk.f32.mxu1 %vm2495_vm15, %v4101_v43  ;;  %v8542_v23 = vpop.eup %8541  ;;  %v3983_v43 = vadd.f32 1.0, %v8540_v63 }
 0x949   : > { %7853 = vmatmul.mubr.msk.f32.gmra.mxu1 %vm2495_vm15, %v4102_v30  ;;  %v3984_v34 = vadd.f32 1.0, %v8542_v23  ;;  %v8544_v12 = vpop.eup %8543 }
 0x94a   : > { %8551 = vrcp.f32 %v3983_v43  ;;  %v4027_v57 = vmul.f32 %v8544_v12, %v11663_v52  ;;  %v4352_v43 = vld [vmem:[%s12935_s1 + $0x148] sm:$0xff] }
 0x94b   : > { %v4064_v22 = vpop.permute.xlu0 %4063  ;;  %v8546_v2 = vpop.eup %8545  ;;  %8553 = vrcp.f32 %v3984_v34  ;;  %v4351_v34 = vld [vmem:[%s12935_s1 + $0x140] sm:$0xff] }
 0x94c   : > { %v4104_v46 = vmul.f32 %v4064_v22, %v4024_v31  ;;  %v4028_v22 = vmul.f32 %v8546_v2, %v11661_v40 }
 0x94d   : > { %v4062_v26 = vpop.permute.xlu1 %4061 }
 0x94e   : > { %v4103_v4 = vmul.f32 %v4062_v26, %v4023_v59 }
 0x950   : > { %7855 = vmatprep.mubr.msk.f32.mxu1 %vm2495_vm15, %v4103_v4  ;;  %v8548_v31 = vpop.eup %8547 }
 0x951   : > { %7856 = vmatmul.mubr.msk.f32.gmra.mxu1 %vm2495_vm15, %v4104_v46  ;;  %v8550_v26 = vpop.eup %8549  ;;  %v4029_v4 = vmul.f32 %v8548_v31, %v11671_v24 }
 0x952   : > { %v4030_v46 = vmul.f32 %v8550_v26, %v11669_v5 }
 0x953   : > { %v4068_v25 = vpop.permute.xlu0 %4067 }
 0x954   : > { %v4106_v30 = vmul.f32 %v4068_v25, %v4026_v27 }
 0x955   : > { %v4066_v37 = vpop.permute.xlu1 %4065 }
 0x956   : > { %v4105_v17 = vmul.f32 %v4066_v37, %v4025_v10 }
 0x957   : > { %v8552_v52 = vpop.eup %8551 }
 0x958   : > { %7858 = vmatprep.mubr.msk.f32.mxu1 %vm2495_vm15, %v4105_v17  ;;  %v8554_v40 = vpop.eup %8553  ;;  %v4031_v63 = vmul.f32 %v8552_v52, %v11679_v38  ;;  %v4354_v38 = vld [vmem:[%s12935_s1 + $0x158] sm:$0xff]  ;;  %v4353_v17 = vld [vmem:[%s12935_s1 + $0x150] sm:$0xff] }
 0x959   : > { %7859 = vmatmul.mubr.msk.f32.gmra.mxu1 %vm2495_vm15, %v4106_v30  ;;  %v4032_v25 = vmul.f32 %v8554_v40, %v11677_v28  ;;  %7870 = vmatprep.subr.mxu0 %v4354_v38 }
 0x95a   : > { %7871 = vmatpush3.msra.mxu0 %v4354_v38 }
 0x95b   : > { %v4072_v35 = vpop.permute.xlu0 %4071  ;;  %7872 = vmatprep.subr.mxu0 %v4353_v17 }
 0x95c   : > { %v4108_v7 = vmul.f32 %v4072_v35, %v4028_v22  ;;  %7873 = vmatpush3.msra.mxu0 %v4353_v17 }
 0x95d   : > { %v4070_v59 = vpop.permute.xlu1 %4069  ;;  %7874 = vmatprep.subr.mxu0 %v4352_v43 }
 0x95e   : > { %v4107_v36 = vmul.f32 %v4070_v59, %v4027_v57  ;;  %7875 = vmatpush3.msra.mxu0 %v4352_v43 }
 0x95f   : > { %7876 = vmatprep.subr.mxu0 %v4351_v34 }
 0x960   : > { %7861 = vmatprep.mubr.msk.f32.mxu1 %vm2495_vm15, %v4107_v36  ;;  %7877 = vmatpush3.msra.mxu0 %v4351_v34 }
 0x961   : > { %7862 = vmatmul.mubr.msk.f32.gmra.mxu1 %vm2495_vm15, %v4108_v7 }
 0x963   : > { %v4076_v1 = vpop.permute.xlu0 %4075 }
 0x964   : > { %v4110_v18 = vmul.f32 %v4076_v1, %v4030_v46  ;;  %v4330_v46 = vld [vmem:[%s12935_s1 + $0x138] sm:$0xff] }
 0x965   : > { %v4074_v51 = vpop.permute.xlu1 %4073 }
 0x966   : > { %v4109_v45 = vmul.f32 %v4074_v51, %v4029_v4  ;;  %v13288_v4 = vmov 0  }
 0x968   : > { %7864 = vmatprep.mubr.msk.f32.mxu1 %vm2495_vm15, %v4109_v45 }
 0x969   : > { %7865 = vmatmul.mubr.msk.f32.gmra.mxu1 %vm2495_vm15, %v4110_v18  ;;  %v4334_v18 = vrot.slane %v4330_v46, %v13121_v61 }
 0x96a   : > { %v4080_v48 = vpop.permute.xlu0 %4079 }
 0x96b   : > { %v4112_v27 = vmul.f32 %v4080_v48, %v4032_v25 }
 0x96c   : > { %v4078_v10 = vpop.permute.xlu1 %4077 }
 0x96d   : > { %v4111_v23 = vmul.f32 %v4078_v10, %v4031_v63 }
 0x96e   : > { %v11752_v24 = vpop.permute.xlu0 %4571 }
 0x96f   : > { %7867 = vmatprep.mubr.msk.f32.mxu1 %vm2495_vm15, %v4111_v23 }
 0x970   : > { %v11748_v5 = vpop.permute.xlu1 %4569  ;;  %7868 = vmatmul.mubr.msk.f32.gmra.mxu1 %vm2495_vm15, %v4112_v27 }
 0x971   : > { %4617 = vxpose.xlu1.b32.start [1/16] (narrow) %v11748_v5, 32 }
 0x972   : > { %v11758_v28 = vpop.permute.xlu0 %4575 }
 0x974   : > { %v11755_v37 = vpop.permute.xlu1 %4573 }
 0x975   : > { %4618 = vxpose.xlu1.b32.cont [2/16] (narrow) %v11752_v24, 32 }
 0x976   : > { %v11776_v12 = vpop.permute.xlu0 %4579 }
 0x978   : > { %v11770_v30 = vpop.permute.xlu1 %4577 }
 0x979   : > { %4619 = vxpose.xlu1.b32.cont [3/16] (narrow) %v11755_v37, 32 }
 0x97a   : > { %v11782_v35 = vpop.permute.xlu0 %4583 }
 0x97c   : > { %v11779_v2 = vpop.permute.xlu1 %4581 }
 0x97d   : > { %4620 = vxpose.xlu1.b32.cont [4/16] (narrow) %v11758_v28, 32 }
 0x97e   : > { %v11788_v22 = vpop.permute.xlu0 %4587 }
 0x980   : > { %v11785_v57 = vpop.permute.xlu1 %4585 }
 0x981   : > { %4621 = vxpose.xlu1.b32.cont [5/16] (narrow) %v11770_v30, 32 }
 0x982   : > { %v11794_v36 = vpop.permute.xlu0 %4591 }
 0x984   : > { %v11791_v59 = vpop.permute.xlu1 %4589 }
 0x985   : > { %4622 = vxpose.xlu1.b32.cont [6/16] (narrow) %v11776_v12, 32 }
 0x986   : > { %v11800_v31 = vpop.permute.xlu0 %4595 }
 0x988   : > { %v11797_v7 = vpop.permute.xlu1 %4593 }
 0x989   : > { %4623 = vxpose.xlu1.b32.cont [7/16] (narrow) %v11779_v2, 32 }
 0x98a   : > { %v11806_v1 = vpop.permute.xlu0 %4599 }
 0x98c   : > { %v11803_v26 = vpop.permute.xlu1 %4597 }
 0x98d   : > { %4624 = vxpose.xlu1.b32.cont [8/16] (narrow) %v11782_v35, 32 }
 0x991   : > { %4625 = vxpose.xlu1.b32.cont [9/16] (narrow) %v11785_v57, 32 }
 0x995   : > { %4626 = vxpose.xlu1.b32.cont [10/16] (narrow) %v11788_v22, 32 }
 0x999   : > { %4627 = vxpose.xlu1.b32.cont [11/16] (narrow) %v11791_v59, 32 }
 0x99d   : > { %4628 = vxpose.xlu1.b32.cont [12/16] (narrow) %v11794_v36, 32 }
 0x9a1   : > { %4629 = vxpose.xlu1.b32.cont [13/16] (narrow) %v11797_v7, 32 }
 0x9a5   : > { %4630 = vxpose.xlu1.b32.cont [14/16] (narrow) %v11800_v31, 32 }
 0x9a9   : > { %4631 = vxpose.xlu1.b32.cont [15/16] (narrow) %v11803_v26, 32 }
 0x9ad   : > { %4632 = vxpose.xlu1.b32.end [16/16] (narrow) %v11806_v1, 32 }
 0x9cb   : > { %8329 = vset.pattern.permute.xlu1 %v13288_v4 }
 0x9f9   : > { %v7848_v51 = vpop.f32.mrf.mxu1 }
 0x9fa   : > { %v4315_v45 = vadd.f32 %v7848_v51, %v11315_v29 }
 0x9fb   : > { %v4235_v52 = vpop.f32.mrf.mxu1 }
 0x9fc   : > { %v4314_v40 = vadd.f32 %v4235_v52, %v11319_v55  ;;  %v11818_v63 = vadd.f32 %v4334_v18, %v4315_v45 }
 0x9fe   : > { %v11816_v48 = vadd.f32 %v4334_v18, %v4314_v40 }
 0xa00   : > { %7878 = vmatprep.mubr.msk.f32.mxu0 %vm2698_vm3, %v11816_v48 }
 0xa01   : > { %v7851_v25 = vpop.f32.mrf.mxu1  ;;  %7879 = vmatmul.mubr.msk.f32.vlgmr.msra.gmra.mxu0 %vm2698_vm3, %v11818_v63 }
 0xa02   : > { %v4317_v10 = vadd.f32 %v7851_v25, %v11325_v21 }
 0xa03   : > { %v4245_v23 = vpop.f32.mrf.mxu1 }
 0xa04   : > { %v4316_v29 = vadd.f32 %v4245_v23, %v11331_v41  ;;  %v11828_v38 = vadd.f32 %v4334_v18, %v4317_v10 }
 0xa06   : > { %v11826_v27 = vadd.f32 %v4334_v18, %v4316_v29 }
 0xa08   : > { %7881 = vmatprep.mubr.msk.f32.mxu0 %vm2698_vm3, %v11826_v27 }
 0xa09   : > { %v7854_v55 = vpop.f32.mrf.mxu1  ;;  %7882 = vmatmul.mubr.msk.f32.gmra.mxu0 %vm2698_vm3, %v11828_v38 }
 0xa0a   : > { %v4319_v17 = vadd.f32 %v7854_v55, %v11337_v62 }
 0xa0b   : > { %v4255_v43 = vpop.f32.mrf.mxu1 }
 0xa0c   : > { %v4318_v34 = vadd.f32 %v4255_v43, %v11343_v8  ;;  %v11838_v4 = vadd.f32 %v4334_v18, %v4319_v17 }
 0xa0e   : > { %v11836_v21 = vadd.f32 %v4334_v18, %v4318_v34 }
 0xa10   : > { %7884 = vmatprep.mubr.msk.f32.mxu0 %vm2698_vm3, %v11836_v21 }
 0xa11   : > { %v7857_v41 = vpop.f32.mrf.mxu1  ;;  %7885 = vmatmul.mubr.msk.f32.gmra.mxu0 %vm2698_vm3, %v11838_v4 }
 0xa12   : > { %v4321_v46 = vadd.f32 %v7857_v41, %v11349_v14 }
 0xa13   : > { %v4265_v51 = vpop.f32.mrf.mxu1 }
 0xa14   : > { %v4320_v45 = vadd.f32 %v4265_v51, %v11355_v47  ;;  %v11848_v52 = vadd.f32 %v4334_v18, %v4321_v46 }
 0xa16   : > { %v11846_v62 = vadd.f32 %v4334_v18, %v4320_v45  ;;  %13290 = vst [vmem:[#allocation18_spill] sm:$0xff] %v11848_v52 }
 0xa18   : > { %13289 = vst [vmem:[#allocation29_spill] sm:$0xff] %v11846_v62  ;;  %7887 = vmatprep.mubr.msk.f32.mxu0 %vm2698_vm3, %v11846_v62 }
 0xa19   : > { %v7860_v8 = vpop.f32.mrf.mxu1  ;;  %7888 = vmatmul.mubr.msk.f32.gmra.mxu0 %vm2698_vm3, %v11848_v52 }
 0xa1a   : > { %v4323_v40 = vadd.f32 %v7860_v8, %v11361_v50 }
 0xa1b   : > { %v4275_v25 = vpop.f32.mrf.mxu1 }
 0xa1c   : > { %v4322_v10 = vadd.f32 %v4275_v25, %v11367_v56  ;;  %v11858_v23 = vadd.f32 %v4334_v18, %v4323_v40 }
 0xa1e   : > { %v11856_v14 = vadd.f32 %v4334_v18, %v4322_v10  ;;  %13292 = vst [vmem:[#allocation10_spill] sm:$0xff] %v11858_v23  ;;  %v4737_v10 = vld [vmem:[%s12935_s1 + $0x180] sm:$0xff] }
 0xa1f   : > { %7940 = vmatprep.subr.mxu0 %v4737_v10 }
 0xa20   : > { %13291 = vst [vmem:[#allocation20_spill] sm:$0xff] %v11856_v14  ;;  %7890 = vmatprep.mubr.msk.f32.mxu0 %vm2698_vm3, %v11856_v14  ;;  %7941 = vmatpush3.msra.mxu0 %v4737_v10  ;;  %v4355_v10 = vld [vmem:[%s12935_s1 + $0x160] sm:$0xff] }
 0xa21   : > { %v7863_v47 = vpop.f32.mrf.mxu1  ;;  %7891 = vmatmul.mubr.msk.f32.gmra.mxu0 %vm2698_vm3, %v11858_v23 }
 0xa22   : > { %v4325_v29 = vadd.f32 %v7863_v47, %v11373_v15 }
 0xa23   : > { %v4285_v55 = vpop.f32.mrf.mxu1 }
 0xa24   : > { %v4324_v17 = vadd.f32 %v4285_v55, %v11379_v19  ;;  %v11868_v43 = vadd.f32 %v4334_v18, %v4325_v29 }
 0xa26   : > { %v11866_v50 = vadd.f32 %v4334_v18, %v4324_v17  ;;  %13294 = vst [vmem:[#allocation19_spill] sm:$0xff] %v11868_v43 }
 0xa28   : > { %13293 = vst [vmem:[#allocation7_spill] sm:$0xff] %v11866_v50  ;;  %7893 = vmatprep.mubr.msk.f32.mxu0 %vm2698_vm3, %v11866_v50 }
 0xa29   : > { %v7866_v56 = vpop.f32.mrf.mxu1  ;;  %7894 = vmatmul.mubr.msk.f32.gmra.mxu0 %vm2698_vm3, %v11868_v43 }
 0xa2a   : > { %v4327_v34 = vadd.f32 %v7866_v56, %v11385_v39 }
 0xa2b   : > { %v4295_v41 = vpop.f32.mrf.mxu1 }
 0xa2c   : > { %v4326_v46 = vadd.f32 %v4295_v41, %v11391_v9  ;;  %v11878_v51 = vadd.f32 %v4334_v18, %v4327_v34  ;;  %v4633_v9 = vpop.trf.xlu1 }
 0xa2d   : > { %7934 = vmatprep.mubr.f32.mxu1 %v4633_v9 }
 0xa2e   : > { %v11876_v15 = vadd.f32 %v4334_v18, %v4326_v46  ;;  %13296 = vst [vmem:[#allocation26_spill] sm:$0xff] %v11878_v51 }
 0xa30   : > { %13295 = vst [vmem:[#allocation9_spill] sm:$0xff] %v11876_v15  ;;  %v7869_v19 = vpop.f32.mrf.mxu1  ;;  %7896 = vmatprep.mubr.msk.f32.mxu0 %vm2698_vm3, %v11876_v15 }
 0xa31   : > { %7897 = vmatmul.mubr.msk.f32.gmra.mxu0 %vm2698_vm3, %v11878_v51  ;;  %v4329_v45 = vadd.f32 %v7869_v19, %v11403_v53  ;;  %v4735_v53 = vld [vmem:[%s12935_s1 + $0x170] sm:$0xff] }
 0xa32   : > { %v4305_v8 = vpop.f32.mrf.mxu1 }
 0xa33   : > { %v4328_v40 = vadd.f32 %v4305_v8, %v11398_v49  ;;  %v11888_v25 = vadd.f32 %v4334_v18, %v4329_v45  ;;  %v4736_v49 = vld [vmem:[%s12935_s1 + $0x178] sm:$0xff] }
 0xa34   : > { %7942 = vmatprep.subr.mxu0 %v4736_v49 }
 0xa35   : > { %v11886_v39 = vadd.f32 %v4334_v18, %v4328_v40  ;;  %13298 = vst [vmem:[#allocation28_spill] sm:$0xff] %v11888_v25  ;;  %7943 = vmatpush3.msra.mxu0 %v4736_v49  ;;  %v4734_v18 = vld [vmem:[%s12935_s1 + $0x168] sm:$0xff] }
 0xa36   : > { %7944 = vmatprep.subr.mxu0 %v4735_v53 }
 0xa37   : > { %13297 = vst [vmem:[#allocation12_spill] sm:$0xff] %v11886_v39  ;;  %7899 = vmatprep.mubr.msk.f32.mxu0 %vm2698_vm3, %v11886_v39  ;;  %7945 = vmatpush3.msra.mxu0 %v4735_v53  ;;  %v4359_v53 = vrot.slane %v4355_v10, %v13121_v61 }
 0xa38   : > { %7900 = vmatmul.mubr.msk.f32.gmra.mxu0 %vm2698_vm3, %v11888_v25  ;;  %7946 = vmatprep.subr.mxu0 %v4734_v18 }
 0xa39   : > { %7947 = vmatpush3.msra.mxu0 %v4734_v18 }
 0xac1   : > { %v11906_v47 = vpop.f32.mrf.mxu0 }
 0xac3   : > { %v11908_v29 = vpop.f32.mrf.mxu0 }
 0xac9   : > { %v7883_v55 = vpop.f32.mrf.mxu0 }
 0xacb   : > { %v4484_v17 = vpop.f32.mrf.mxu0 }
 0xad1   : > { %v7886_v56 = vpop.f32.mrf.mxu0 }
 0xad3   : > { %v4494_v34 = vpop.f32.mrf.mxu0 }
 0xad9   : > { %v7889_v41 = vpop.f32.mrf.mxu0 }
 0xadb   : > { %v4504_v46 = vpop.f32.mrf.mxu0 }
 0xae1   : > { %v7892_v19 = vpop.f32.mrf.mxu0 }
 0xae3   : > { %v4514_v45 = vpop.f32.mrf.mxu0 }
 0xae9   : > { %v7895_v8 = vpop.f32.mrf.mxu0 }
 0xaea   : > { %v4530_v23 = vadd.f32 %v7895_v8, %v4359_v53 }
 0xaeb   : > { %v4524_v40 = vpop.f32.mrf.mxu0 }
 0xaec   : > { %v4525_v52 = vadd.f32 %v4524_v40, %v4359_v53 }
 0xaf1   : > { %v7898_v9 = vpop.f32.mrf.mxu0 }
 0xaf2   : > { %v4540_v15 = vadd.f32 %v7898_v9, %v4359_v53  ;;  %v4564_v9 = vmul.f32 %v4530_v23, %v11228_v0  ;;  %v4495_v23 = vadd.f32 %v4494_v34, %v4359_v53 }
 0xaf3   : > { %v4534_v49 = vpop.f32.mrf.mxu0 }
 0xaf4   : > { %v4535_v43 = vadd.f32 %v4534_v49, %v4359_v53  ;;  %v4566_v62 = vmul.f32 %v4540_v15, %v11202_v60  ;;  %v4634_v15 = vpop.trf.xlu1 }
 0xaf6   : > { %v4565_v10 = vmul.f32 %v4535_v43, %v11204_v13  ;;  %v4485_v43 = vadd.f32 %v4484_v17, %v4359_v53 }
 0xaf8   : > { %v7901_v18 = vpop.f32.mrf.mxu0 }
 0xaf9   : > { %v4550_v25 = vadd.f32 %v7901_v18, %v4359_v53  ;;  %v4520_v18 = vadd.f32 %v7892_v19, %v4359_v53 }
 0xafa   : > { %v4544_v39 = vpop.f32.mrf.mxu0 }
 0xafb   : > { %v4568_v51 = vmul.f32 %v4550_v25, %v11198_v32  ;;  %v4545_v50 = vadd.f32 %v4544_v39, %v4359_v53  ;;  %v4515_v32 = vadd.f32 %v4514_v45, %v4359_v53  ;;  %v4562_v60 = vmul.f32 %v4520_v18, %v11208_v33  ;;  %v13301_v18 = vld [vmem:[#allocation18_spill] sm:$0xff] }
 0xafc   : > { %v4555_v39 = vmul.f32 %v4485_v43, %v11247_v42 }
 0xafd   : > { %v4567_v14 = vmul.f32 %v4545_v50, %v11200_v3  ;;  %7902 = vmatprep.subr.mxu1 %v4568_v51  ;;  %v4563_v3 = vmul.f32 %v4525_v52, %v11206_v58  ;;  %v4510_v50 = vadd.f32 %v7889_v41, %v4359_v53  ;;  %v4561_v13 = vmul.f32 %v4515_v32, %v11232_v16 }
 0xafe   : > { %7903 = vmatpush3.msra.mxu1 %v4568_v51  ;;  %v4490_v52 = vadd.f32 %v7883_v55, %v4359_v53  ;;  %v4557_v16 = vmul.f32 %v4495_v23, %v11242_v6  ;;  %v4635_v6 = vpop.trf.xlu1  ;;  %v13300_v55 = vld [vmem:[#allocation15_spill] sm:$0xff] }
 0xaff   : > { %7904 = vmatprep.subr.mxu1 %v4567_v14  ;;  %v4560_v0 = vmul.f32 %v4510_v50, %v11210_v20  ;;  %v4480_v20 = vadd.f32 %v11906_v47, %v4359_v53  ;;  %v13302_v50 = vld [vmem:[#allocation29_spill] sm:$0xff] }
 0xb00   : > { %7905 = vmatpush3.msra.mxu1 %v4567_v14  ;;  %v4505_v14 = vadd.f32 %v4504_v46, %v4359_v53  ;;  %v4556_v51 = vmul.f32 %v4490_v52, %v11214_v54 }
 0xb01   : > { %7906 = vmatprep.subr.mxu1 %v4566_v62 }
 0xb02   : > { %7907 = vmatpush3.msra.mxu1 %v4566_v62  ;;  %v4500_v62 = vadd.f32 %v7886_v56, %v4359_v53  ;;  %v4559_v58 = vmul.f32 %v4505_v14, %v11237_v11  ;;  %v4475_v11 = vadd.f32 %v11908_v29, %v4359_v53  ;;  %v4636_v54 = vpop.trf.xlu1 }
 0xb03   : > { %7908 = vmatprep.subr.mxu1 %v4565_v10 }
 0xb04   : > { %7909 = vmatpush3.msra.mxu1 %v4565_v10  ;;  %v4558_v33 = vmul.f32 %v4500_v62, %v11212_v44  ;;  %v13299_v44 = vld [vmem:[#allocation30_spill] sm:$0xff]  ;;  %v4553_v17 = vmul.f32 %v4475_v11, %v13300_v55 }
 0xb05   : > { %7910 = vmatprep.subr.mxu1 %v4564_v9  ;;  %v4554_v25 = vmul.f32 %v4480_v20, %v13299_v44  ;;  %v13303_v62 = vld [vmem:[#allocation10_spill] sm:$0xff] }
 0xb06   : > { %7911 = vmatpush3.msra.mxu1 %v4564_v9 }
 0xb07   : > { %7912 = vmatprep.subr.mxu1 %v4563_v3 }
 0xb08   : > { %7913 = vmatpush3.msra.mxu1 %v4563_v3 }
 0xb09   : > { %7914 = vmatprep.subr.mxu1 %v4562_v60 }
 0xb0a   : > { %7915 = vmatpush3.msra.mxu1 %v4562_v60 }
 0xb0b   : > { %7916 = vmatprep.subr.mxu1 %v4561_v13 }
 0xb0c   : > { %7917 = vmatpush3.msra.mxu1 %v4561_v13 }
 0xb0d   : > { %7918 = vmatprep.subr.mxu1 %v4560_v0 }
 0xb0e   : > { %7919 = vmatpush3.msra.mxu1 %v4560_v0 }
 0xb0f   : > { %7920 = vmatprep.subr.mxu1 %v4559_v58 }
 0xb10   : > { %7921 = vmatpush3.msra.mxu1 %v4559_v58 }
 0xb11   : > { %7922 = vmatprep.subr.mxu1 %v4558_v33 }
 0xb12   : > { %7923 = vmatpush3.msra.mxu1 %v4558_v33  ;;  %v13304_v33 = vld [vmem:[#allocation20_spill] sm:$0xff] }
 0xb13   : > { %7924 = vmatprep.subr.mxu1 %v4557_v16 }
 0xb14   : > { %7925 = vmatpush3.msra.mxu1 %v4557_v16 }
 0xb15   : > { %7926 = vmatprep.subr.mxu1 %v4556_v51 }
 0xb16   : > { %7927 = vmatpush3.msra.mxu1 %v4556_v51  ;;  %v13305_v51 = vld [vmem:[#allocation19_spill] sm:$0xff] }
 0xb17   : > { %7928 = vmatprep.subr.mxu1 %v4555_v39 }
 0xb18   : > { %7929 = vmatpush3.msra.mxu1 %v4555_v39 }
 0xb19   : > { %7930 = vmatprep.subr.mxu1 %v4554_v25 }
 0xb1a   : > { %7931 = vmatpush3.msra.mxu1 %v4554_v25 }
 0xb1b   : > { %7932 = vmatprep.subr.mxu1 %v4553_v17 }
 0xb1c   : > { %7933 = vmatpush3.msra.mxu1 %v4553_v17 }
 0xb1d   : > { %7935 = vmatmul.mubr.f32.vlgmr.msra.gmra.mxu1 %v4634_v15 }
 0xb1e   : > { %7937 = vmatprep.mubr.f32.mxu1 %v4635_v6  ;;  %v13306_v6 = vld [vmem:[#allocation7_spill] sm:$0xff] }
 0xb21   : > { %7938 = vmatmul.mubr.f32.gmra.mxu1 %v4636_v54 }
 0xb22   : > { %7962 = vmatprep.mubr.msk.f32.mxu1 %vm2698_vm3, %v11748_v5  ;;  %v5028_v5 = vld [vmem:[%s12935_s1 + $0x188] sm:$0xff] }
 0xbdd   : > { %v7936_v42 = vpop.f32.mrf.mxu1 }
 0xbdf   : > { %v4715_v47 = vpop.f32.mrf.mxu1 }
 0xbe0   : > { %7948 = vmatprep.mubr.msk.f32.mxu0 %vm2698_vm3, %v4715_v47  ;;  %v13307_v47 = vld [vmem:[#allocation26_spill] sm:$0xff] }
 0xbe1   : > { %v7939_v29 = vpop.f32.mrf.mxu1  ;;  %7949 = vmatmul.mubr.msk.f32.vlgmr.msra.gmra.mxu0 %vm2698_vm3, %v7936_v42 }
 0xbe3   : > { %v4725_v56 = vpop.f32.mrf.mxu1 }
 0xbe4   : > { %7951 = vmatprep.mubr.msk.f32.mxu0 %vm2698_vm3, %v4725_v56 }
 0xbe5   : > { %7952 = vmatmul.mubr.msk.f32.gmra.mxu0 %vm2698_vm3, %v7939_v29 }
 0xca1   : > { %v7950_v34 = vpop.f32.mrf.mxu0 }
 0xca3   : > { %v4816_v41 = vpop.f32.mrf.mxu0 }
 0xca5   : > { %v7953_v46 = vpop.f32.mrf.mxu0 }
 0xca6   : > { %7954 = vmatprep.subr.mxu1 %v7953_v46 }
 0xca7   : > { %v4826_v19 = vpop.f32.mrf.mxu0  ;;  %7955 = vmatpush3.msra.mxu1 %v7953_v46  ;;  %v13308_v46 = vld [vmem:[#allocation9_spill] sm:$0xff] }
 0xca8   : > { %7956 = vmatprep.subr.mxu1 %v4826_v19 }
 0xca9   : > { %7957 = vmatpush3.msra.mxu1 %v4826_v19 }
 0xcaa   : > { %7958 = vmatprep.subr.mxu1 %v7950_v34 }
 0xcab   : > { %7959 = vmatpush3.msra.mxu1 %v7950_v34 }
 0xcac   : > { %7960 = vmatprep.subr.mxu1 %v4816_v41 }
 0xcad   : > { %7961 = vmatpush3.msra.mxu1 %v4816_v41 }
 0xcae   : > { %7963 = vmatmul.mubr.msk.f32.vlgmr.msra.gmra.mxu1 %vm2698_vm3, %v11752_v24  ;;  %v11972_v24 = vrot.slane %v5028_v5, %v13121_v61 }
 0xcaf   : > { %7965 = vmatprep.mubr.msk.f32.mxu1 %vm2698_vm3, %v11755_v37 }
 0xcb2   : > { %7966 = vmatmul.mubr.msk.f32.gmra.mxu1 %vm2698_vm3, %v11758_v28 }
 0xcb3   : > { %7968 = vmatprep.mubr.msk.f32.mxu1 %vm2698_vm3, %v11770_v30 }
 0xcb6   : > { %7969 = vmatmul.mubr.msk.f32.gmra.mxu1 %vm2698_vm3, %v11776_v12 }
 0xcb7   : > { %7971 = vmatprep.mubr.msk.f32.mxu1 %vm2698_vm3, %v11779_v2 }
 0xcba   : > { %7972 = vmatmul.mubr.msk.f32.gmra.mxu1 %vm2698_vm3, %v11782_v35 }
 0xcbb   : > { %7974 = vmatprep.mubr.msk.f32.mxu1 %vm2698_vm3, %v11785_v57 }
 0xcbe   : > { %7975 = vmatmul.mubr.msk.f32.gmra.mxu1 %vm2698_vm3, %v11788_v22 }
 0xcbf   : > { %7977 = vmatprep.mubr.msk.f32.mxu1 %vm2698_vm3, %v11791_v59 }
 0xcc2   : > { %7978 = vmatmul.mubr.msk.f32.gmra.mxu1 %vm2698_vm3, %v11794_v36 }
 0xcc3   : > { %7980 = vmatprep.mubr.msk.f32.mxu1 %vm2698_vm3, %v11797_v7 }
 0xcc6   : > { %7981 = vmatmul.mubr.msk.f32.gmra.mxu1 %vm2698_vm3, %v11800_v31 }
 0xcc7   : > { %7983 = vmatprep.mubr.msk.f32.mxu1 %vm2698_vm3, %v11803_v26 }
 0xcca   : > { %7984 = vmatmul.mubr.msk.f32.gmra.mxu1 %vm2698_vm3, %v11806_v1 }
 0xd6e   : > { %v7964_v37 = vpop.f32.mrf.mxu1 }
 0xd6f   : > { %v5013_v28 = vadd.f32 %v7964_v37, %v11818_v63 }
 0xd70   : > { %v4933_v30 = vpop.f32.mrf.mxu1 }
 0xd71   : > { %v11976_v12 = vadd.f32 %v11972_v24, %v5013_v28  ;;  %v5012_v2 = vadd.f32 %v4933_v30, %v11816_v48  ;;  %v13309_v30 = vld [vmem:[#allocation12_spill] sm:$0xff] }
 0xd72   : > { %v7967_v35 = vpop.f32.mrf.mxu1 }
 0xd73   : > { %v11980_v57 = vadd.f32 %v11972_v24, %v5012_v2  ;;  %v5015_v22 = vadd.f32 %v7967_v35, %v11828_v38  ;;  %v5054_v59 = vsel %vm2698_vm3, %v11976_v12, 0.0 }
 0xd74   : > { %5055 = vadd.xlane.f32.xlu0 %v5054_v59  ;;  %v4943_v36 = vpop.f32.mrf.mxu1 }
 0xd75   : > { %v11986_v31 = vadd.f32 %v11972_v24, %v5015_v22  ;;  %v5014_v26 = vadd.f32 %v4943_v36, %v11826_v27  ;;  %v5051_v1 = vsel %vm2698_vm3, %v11980_v57, 0.0  ;;  %v13310_v22 = vld [vmem:[#allocation28_spill] sm:$0xff] }
 0xd76   : > { %v7970_v7 = vpop.f32.mrf.mxu1 }
 0xd77   : > { %v11992_v63 = vadd.f32 %v11972_v24, %v5014_v26  ;;  %v5017_v38 = vadd.f32 %v7970_v7, %v11838_v4  ;;  %v5060_v45 = vsel %vm2698_vm3, %v11986_v31, 0.0 }
 0xd78   : > { %5052 = vadd.xlane.f32.xlu0 %v5051_v1  ;;  %v4953_v48 = vpop.f32.mrf.mxu1 }
 0xd79   : > { %v11998_v40 = vadd.f32 %v11972_v24, %v5017_v38  ;;  %v5016_v27 = vadd.f32 %v4953_v48, %v11836_v21  ;;  %v5057_v49 = vsel %vm2698_vm3, %v11992_v63, 0.0 }
 0xd7a   : > { %v7973_v8 = vpop.f32.mrf.mxu1 }
 0xd7b   : > { %v12004_v10 = vadd.f32 %v11972_v24, %v5016_v27  ;;  %v5019_v4 = vadd.f32 %v7973_v8, %v13301_v18  ;;  %v5066_v9 = vsel %vm2698_vm3, %v11998_v40, 0.0 }
 0xd7c   : > { %5061 = vadd.xlane.f32.xlu0 %v5060_v45  ;;  %v4963_v53 = vpop.f32.mrf.mxu1 }
 0xd7d   : > { %v12010_v3 = vadd.f32 %v11972_v24, %v5019_v4  ;;  %v5018_v21 = vadd.f32 %v4963_v53, %v13302_v50  ;;  %v5063_v60 = vsel %vm2698_vm3, %v12004_v10, 0.0 }
 0xd7e   : > { %v7976_v32 = vpop.f32.mrf.mxu1 }
 0xd7f   : > { %v12016_v13 = vadd.f32 %v11972_v24, %v5018_v21  ;;  %v5021_v0 = vadd.f32 %v7976_v32, %v13303_v62  ;;  %v5072_v23 = vsel %vm2698_vm3, %v12010_v3, 0.0 }
 0xd80   : > { %5058 = vadd.xlane.f32.xlu0 %v5057_v49  ;;  %v4973_v14 = vpop.f32.mrf.mxu1 }
 0xd81   : > { %v12022_v52 = vadd.f32 %v11972_v24, %v5021_v0  ;;  %v5020_v43 = vadd.f32 %v4973_v14, %v13304_v33  ;;  %v5069_v16 = vsel %vm2698_vm3, %v12016_v13, 0.0 }
 0xd82   : > { %v7979_v58 = vpop.f32.mrf.mxu1 }
 0xd83   : > { %v12028_v20 = vadd.f32 %v11972_v24, %v5020_v43  ;;  %v5023_v11 = vadd.f32 %v7979_v58, %v13305_v51  ;;  %v5078_v39 = vsel %vm2698_vm3, %v12022_v52, 0.0 }
 0xd84   : > { %5067 = vadd.xlane.f32.xlu0 %v5066_v9  ;;  %v4983_v15 = vpop.f32.mrf.mxu1 }
 0xd85   : > { %v12034_v25 = vadd.f32 %v11972_v24, %v5023_v11  ;;  %v5022_v55 = vadd.f32 %v4983_v15, %v13306_v6  ;;  %v5075_v17 = vsel %vm2698_vm3, %v12028_v20, 0.0 }
 0xd86   : > { %v7982_v44 = vpop.f32.mrf.mxu1 }
 0xd87   : > { %v12040_v42 = vadd.f32 %v11972_v24, %v5022_v55  ;;  %v5025_v29 = vadd.f32 %v7982_v44, %v13307_v47  ;;  %v5084_v56 = vsel %vm2698_vm3, %v12034_v25, 0.0 }
 0xd88   : > { %5064 = vadd.xlane.f32.xlu0 %v5063_v60  ;;  %v4993_v54 = vpop.f32.mrf.mxu1 }
 0xd89   : > { %v12046_v41 = vadd.f32 %v11972_v24, %v5025_v29  ;;  %v5024_v19 = vadd.f32 %v4993_v54, %v13308_v46  ;;  %v5081_v5 = vsel %vm2698_vm3, %v12040_v42, 0.0 }
 0xd8a   : > { %v7985_v34 = vpop.f32.mrf.mxu1 }
 0xd8b   : > { %v12052_v28 = vadd.f32 %v11972_v24, %v5024_v19  ;;  %v5090_v35 = vsel %vm2698_vm3, %v12046_v41, 0.0  ;;  %v5027_v59 = vadd.f32 %v7985_v34, %v13310_v22 }
 0xd8c   : > { %5073 = vadd.xlane.f32.xlu0 %v5072_v23  ;;  %v5003_v37 = vpop.f32.mrf.mxu1 }
 0xd8d   : > { %v5026_v2 = vadd.f32 %v5003_v37, %v13309_v30  ;;  %v5087_v7 = vsel %vm2698_vm3, %v12052_v28, 0.0  ;;  %v12064_v26 = vadd.f32 %v11972_v24, %v5027_v59 }
 0xd8f   : > { %v12059_v36 = vadd.f32 %v11972_v24, %v5026_v2  ;;  %v5096_v48 = vsel %vm2698_vm3, %v12064_v26, 0.0 }
 0xd90   : > { %5070 = vadd.xlane.f32.xlu0 %v5069_v16 }
 0xd91   : > { %v5093_v1 = vsel %vm2698_vm3, %v12059_v36, 0.0 }
 0xd94   : > { %5079 = vadd.xlane.f32.xlu0 %v5078_v39 }
 0xd98   : > { %5076 = vadd.xlane.f32.xlu0 %v5075_v17 }
 0xd9c   : > { %5085 = vadd.xlane.f32.xlu0 %v5084_v56 }
 0xda0   : > { %5082 = vadd.xlane.f32.xlu0 %v5081_v5 }
 0xda4   : > { %5091 = vadd.xlane.f32.xlu0 %v5090_v35 }
 0xda8   : > { %5088 = vadd.xlane.f32.xlu0 %v5087_v7 }
 0xdac   : > { %5094 = vadd.xlane.f32.xlu0 %v5093_v1 }
 0xdb0   : > { %5097 = vadd.xlane.f32.xlu0 %v5096_v48 }
 0xdfd   : > { %v5056_v38 = vpop.xlane.xlu0 %5055 }
 0xdfe   : > { %v5100_v45 = vmul.f32 0.03125, %v5056_v38 }
 0xe00   : > { %v12071_v8 = vsub.f32 %v11976_v12, %v5100_v45 }
 0xe01   : > { %v5053_v27 = vpop.xlane.xlu0 %5052 }
 0xe02   : > { %v5099_v49 = vmul.f32 0.03125, %v5053_v27  ;;  %v5132_v53 = vmul.f32 %v12071_v8, %v12071_v8 }
 0xe04   : > { %v12076_v24 = vsub.f32 %v11980_v57, %v5099_v49  ;;  %v5150_v18 = vsel %vm2698_vm3, %v5132_v53, 0.0  ;;  %v5302_v53 = vld [vmem:[%s12935_s1 + $0x1b8] sm:$0xff] }
 0xe05   : > { %v5062_v4 = vpop.xlane.xlu0 %5061  ;;  %5151 = vadd.xlane.f32.xlu0 %v5150_v18  ;;  %v5301_v18 = vld [vmem:[%s12935_s1 + $0x1b0] sm:$0xff]  ;;  %7986 = vmatprep.subr.mxu0 %v5302_v53 }
 0xe06   : > { %v5102_v9 = vmul.f32 0.03125, %v5062_v4  ;;  %v5131_v32 = vmul.f32 %v12076_v24, %v12076_v24  ;;  %7987 = vmatpush3.msra.mxu0 %v5302_v53 }
 0xe07   : > { %7988 = vmatprep.subr.mxu0 %v5301_v18 }
 0xe08   : > { %v12082_v50 = vsub.f32 %v11986_v31, %v5102_v9  ;;  %v5147_v21 = vsel %vm2698_vm3, %v5131_v32, 0.0  ;;  %7989 = vmatpush3.msra.mxu0 %v5301_v18 }
 0xe09   : > { %v5059_v60 = vpop.xlane.xlu0 %5058  ;;  %5148 = vadd.xlane.f32.xlu0 %v5147_v21 }
 0xe0a   : > { %v5101_v14 = vmul.f32 0.03125, %v5059_v60  ;;  %v5134_v62 = vmul.f32 %v12082_v50, %v12082_v50 }
 0xe0c   : > { %v12088_v0 = vsub.f32 %v11992_v63, %v5101_v14  ;;  %v5156_v23 = vsel %vm2698_vm3, %v5134_v62, 0.0  ;;  %v5300_v14 = vld [vmem:[%s12935_s1 + $0x1a8] sm:$0xff]  ;;  %v5299_v62 = vld [vmem:[%s12935_s1 + $0x1a0] sm:$0xff] }
 0xe0d   : > { %v5068_v58 = vpop.xlane.xlu0 %5067  ;;  %5157 = vadd.xlane.f32.xlu0 %v5156_v23  ;;  %7990 = vmatprep.subr.mxu0 %v5300_v14 }
 0xe0e   : > { %v5104_v33 = vmul.f32 0.03125, %v5068_v58  ;;  %v5133_v43 = vmul.f32 %v12088_v0, %v12088_v0  ;;  %7991 = vmatpush3.msra.mxu0 %v5300_v14 }
 0xe0f   : > { %7992 = vmatprep.subr.mxu0 %v5299_v62 }
 0xe10   : > { %v12094_v16 = vsub.f32 %v11998_v40, %v5104_v33  ;;  %v5153_v15 = vsel %vm2698_vm3, %v5133_v43, 0.0  ;;  %7993 = vmatpush3.msra.mxu0 %v5299_v62 }
 0xe11   : > { %5154 = vadd.xlane.f32.xlu1 %v5153_v15  ;;  %v5065_v51 = vpop.xlane.xlu0 %5064 }
 0xe12   : > { %v5103_v11 = vmul.f32 0.03125, %v5065_v51  ;;  %v5136_v39 = vmul.f32 %v12094_v16, %v12094_v16 }
 0xe14   : > { %v12100_v44 = vsub.f32 %v12004_v10, %v5103_v11  ;;  %v5162_v6 = vsel %vm2698_vm3, %v5136_v39, 0.0 }
 0xe15   : > { %v5074_v55 = vpop.xlane.xlu0 %5073  ;;  %5163 = vadd.xlane.f32.xlu0 %v5162_v6 }
 0xe16   : > { %v5106_v17 = vmul.f32 0.03125, %v5074_v55  ;;  %v5135_v54 = vmul.f32 %v12100_v44, %v12100_v44 }
 0xe18   : > { %v12106_v47 = vsub.f32 %v12010_v3, %v5106_v17  ;;  %v5159_v29 = vsel %vm2698_vm3, %v5135_v54, 0.0 }
 0xe19   : > { %v5071_v56 = vpop.xlane.xlu0 %5070  ;;  %5160 = vadd.xlane.f32.xlu0 %v5159_v29 }
 0xe1a   : > { %v5105_v34 = vmul.f32 0.03125, %v5071_v56  ;;  %v5138_v46 = vmul.f32 %v12106_v47, %v12106_v47 }
 0xe1c   : > { %v12112_v19 = vsub.f32 %v12016_v13, %v5105_v34  ;;  %v5168_v5 = vsel %vm2698_vm3, %v5138_v46, 0.0 }
 0xe1d   : > { %v5080_v37 = vpop.xlane.xlu0 %5079  ;;  %5169 = vadd.xlane.f32.xlu0 %v5168_v5 }
 0xe1e   : > { %v5108_v30 = vmul.f32 0.03125, %v5080_v37  ;;  %v5137_v2 = vmul.f32 %v12112_v19, %v12112_v19 }
 0xe20   : > { %v12118_v35 = vsub.f32 %v12022_v52, %v5108_v30  ;;  %v5165_v22 = vsel %vm2698_vm3, %v5137_v2, 0.0 }
 0xe21   : > { %v5077_v59 = vpop.xlane.xlu0 %5076  ;;  %5166 = vadd.xlane.f32.xlu0 %v5165_v22 }
 0xe22   : > { %v5107_v7 = vmul.f32 0.03125, %v5077_v59  ;;  %v5140_v1 = vmul.f32 %v12118_v35, %v12118_v35 }
 0xe24   : > { %v12124_v48 = vsub.f32 %v12028_v20, %v5107_v7  ;;  %v5174_v38 = vsel %vm2698_vm3, %v5140_v1, 0.0 }
 0xe25   : > { %v5086_v45 = vpop.xlane.xlu0 %5085  ;;  %5175 = vadd.xlane.f32.xlu0 %v5174_v38 }
 0xe26   : > { %v5110_v27 = vmul.f32 0.03125, %v5086_v45  ;;  %v5139_v49 = vmul.f32 %v12124_v48, %v12124_v48 }
 0xe28   : > { %v12136_v4 = vsub.f32 %v12034_v25, %v5110_v27  ;;  %v5171_v9 = vsel %vm2698_vm3, %v5139_v49, 0.0 }
 0xe29   : > { %v5083_v32 = vpop.xlane.xlu0 %5082  ;;  %5172 = vadd.xlane.f32.xlu0 %v5171_v9 }
 0xe2a   : > { %v5109_v21 = vmul.f32 0.03125, %v5083_v32  ;;  %v5142_v60 = vmul.f32 %v12136_v4, %v12136_v4 }
 0xe2c   : > { %v12148_v23 = vsub.f32 %v12040_v42, %v5109_v21  ;;  %v5180_v58 = vsel %vm2698_vm3, %v5142_v60, 0.0 }
 0xe2d   : > { %v5092_v33 = vpop.xlane.xlu0 %5091  ;;  %5181 = vadd.xlane.f32.xlu0 %v5180_v58 }
 0xe2e   : > { %v5112_v43 = vmul.f32 0.03125, %v5092_v33  ;;  %v5141_v15 = vmul.f32 %v12148_v23, %v12148_v23  ;;  %v5049_v33 = vld [vmem:[%s12935_s1 + $0x190] sm:$0xff] }
 0xe30   : > { %v12154_v51 = vsub.f32 %v12046_v41, %v5112_v43  ;;  %v5177_v11 = vsel %vm2698_vm3, %v5141_v15, 0.0 }
 0xe31   : > { %v5089_v39 = vpop.xlane.xlu0 %5088  ;;  %5178 = vadd.xlane.f32.xlu0 %v5177_v11 }
 0xe32   : > { %v5111_v6 = vmul.f32 0.03125, %v5089_v39  ;;  %v5144_v55 = vmul.f32 %v12154_v51, %v12154_v51  ;;  %v12182_v39 = vrot.slane %v5049_v33, %v13121_v61 }
 0xe34   : > { %v12160_v17 = vsub.f32 %v12052_v28, %v5111_v6  ;;  %v5186_v54 = vsel %vm2698_vm3, %v5144_v55, 0.0 }
 0xe35   : > { %5187 = vadd.xlane.f32.xlu1 %v5186_v54  ;;  %v5095_v29 = vpop.xlane.xlu0 %5094 }
 0xe36   : > { %v5113_v56 = vmul.f32 0.03125, %v5095_v29  ;;  %v5143_v34 = vmul.f32 %v12160_v17, %v12160_v17  ;;  %v5050_v29 = vld [vmem:[%s12935_s1 + $0x198] sm:$0xff] }
 0xe38   : > { %v12166_v46 = vsub.f32 %v12059_v36, %v5113_v56  ;;  %v5183_v5 = vsel %vm2698_vm3, %v5143_v34, 0.0 }
 0xe39   : > { %5184 = vadd.xlane.f32.xlu0 %v5183_v5  ;;  %v5098_v37 = vpop.xlane.xlu0 %5097 }
 0xe3a   : > { %v5114_v30 = vmul.f32 0.03125, %v5098_v37  ;;  %v5145_v2 = vmul.f32 %v12166_v46, %v12166_v46 }
 0xe3c   : > { %v12172_v22 = vsub.f32 %v12064_v26, %v5114_v30  ;;  %v5189_v59 = vsel %vm2698_vm3, %v5145_v2, 0.0  ;;  %v12191_v2 = vrot.slane %v5050_v29, %v13121_v61 }
 0xe3d   : > { %5190 = vadd.xlane.f32.xlu0 %v5189_v59 }
 0xe3e   : > { %v5146_v7 = vmul.f32 %v12172_v22, %v12172_v22 }
 0xe40   : > { %v5192_v1 = vsel %vm2698_vm3, %v5146_v7, 0.0 }
 0xe41   : > { %5193 = vadd.xlane.f32.xlu1 %v5192_v1 }
 0xe8e   : > { %v5152_v38 = vpop.xlane.xlu0 %5151 }
 0xe8f   : > { %v5196_v45 = vmul.f32 0.03125, %v5152_v38 }
 0xe91   : > { %v5212_v27 = vadd.f32 1e-05, %v5196_v45 }
 0xe92   : > { %v5149_v49 = vpop.xlane.xlu0 %5148 }
 0xe93   : > { %8555 = vrsqrt.f32 %v5212_v27  ;;  %v5195_v53 = vmul.f32 0.03125, %v5149_v49 }
 0xe95   : > { %v5211_v18 = vadd.f32 1e-05, %v5195_v53 }
 0xe96   : > { %v5158_v9 = vpop.xlane.xlu0 %5157 }
 0xe97   : > { %8557 = vrsqrt.f32 %v5211_v18  ;;  %v5198_v32 = vmul.f32 0.03125, %v5158_v9 }
 0xe99   : > { %v5214_v21 = vadd.f32 1e-05, %v5198_v32 }
 0xe9a   : > { %v5155_v60 = vpop.xlane.xlu1 %5154 }
 0xe9b   : > { %8559 = vrsqrt.f32 %v5214_v21  ;;  %v5197_v14 = vmul.f32 0.03125, %v5155_v60 }
 0xe9d   : > { %v5213_v62 = vadd.f32 1e-05, %v5197_v14 }
 0xe9e   : > { %v5164_v58 = vpop.xlane.xlu0 %5163 }
 0xe9f   : > { %8561 = vrsqrt.f32 %v5213_v62  ;;  %v5200_v43 = vmul.f32 0.03125, %v5164_v58 }
 0xea0   : > { %v8556_v15 = vpop.eup %8555 }
 0xea1   : > { %v5216_v11 = vadd.f32 1e-05, %v5200_v43  ;;  %v5244_v6 = vmul.f32 %v8556_v15, %v12071_v8 }
 0xea2   : > { %v5161_v55 = vpop.xlane.xlu0 %5160 }
 0xea3   : > { %8563 = vrsqrt.f32 %v5216_v11  ;;  %v5199_v54 = vmul.f32 0.03125, %v5161_v55  ;;  %v5264_v37 = vmul.f32 %v12182_v39, %v5244_v6 }
 0xea4   : > { %v8558_v56 = vpop.eup %8557 }
 0xea5   : > { %v5215_v34 = vadd.f32 1e-05, %v5199_v54  ;;  %v5243_v5 = vmul.f32 %v8558_v56, %v12076_v24  ;;  %v5284_v27 = vadd.f32 %v12191_v2, %v5264_v37 }
 0xea6   : > { %v5170_v30 = vpop.xlane.xlu0 %5169 }
 0xea7   : > { %8565 = vrsqrt.f32 %v5215_v34  ;;  %v5202_v59 = vmul.f32 0.03125, %v5170_v30  ;;  %v5263_v8 = vmul.f32 %v12182_v39, %v5243_v5 }
 0xea8   : > { %v8560_v7 = vpop.eup %8559 }
 0xea9   : > { %v5218_v1 = vadd.f32 1e-05, %v5202_v59  ;;  %v5283_v38 = vadd.f32 %v12191_v2, %v5263_v8  ;;  %v5246_v49 = vmul.f32 %v8560_v7, %v12082_v50 }
 0xeaa   : > { %v5167_v45 = vpop.xlane.xlu0 %5166 }
 0xeab   : > { %8567 = vrsqrt.f32 %v5218_v1  ;;  %v5201_v24 = vmul.f32 0.03125, %v5167_v45  ;;  %7994 = vmatprep.mubr.msk.f32.mxu0 %vm2698_vm3, %v5283_v38  ;;  %v5266_v21 = vmul.f32 %v12182_v39, %v5246_v49 }
 0xeac   : > { %v8562_v53 = vpop.eup %8561  ;;  %7995 = vmatmul.mubr.msk.f32.vlgmr.msra.gmra.mxu0 %vm2698_vm3, %v5284_v27 }
 0xead   : > { %v5217_v18 = vadd.f32 1e-05, %v5201_v24  ;;  %v5245_v9 = vmul.f32 %v8562_v53, %v12088_v0  ;;  %v5286_v43 = vadd.f32 %v12191_v2, %v5266_v21 }
 0xeae   : > { %v5176_v32 = vpop.xlane.xlu0 %5175 }
 0xeaf   : > { %8569 = vrsqrt.f32 %v5217_v18  ;;  %v5204_v60 = vmul.f32 0.03125, %v5176_v32  ;;  %v5265_v14 = vmul.f32 %v12182_v39, %v5245_v9 }
 0xeb0   : > { %v8564_v62 = vpop.eup %8563 }
 0xeb1   : > { %v5220_v58 = vadd.f32 1e-05, %v5204_v60  ;;  %v5285_v50 = vadd.f32 %v12191_v2, %v5265_v14  ;;  %v5248_v15 = vmul.f32 %v8564_v62, %v12094_v16 }
 0xeb2   : > { %v5173_v33 = vpop.xlane.xlu0 %5172 }
 0xeb3   : > { %8571 = vrsqrt.f32 %v5220_v58  ;;  %v5203_v11 = vmul.f32 0.03125, %v5173_v33  ;;  %7997 = vmatprep.mubr.msk.f32.mxu0 %vm2698_vm3, %v5285_v50  ;;  %v5268_v29 = vmul.f32 %v12182_v39, %v5248_v15 }
 0xeb4   : > { %v8566_v0 = vpop.eup %8565  ;;  %7998 = vmatmul.mubr.msk.f32.gmra.mxu0 %vm2698_vm3, %v5286_v43 }
 0xeb5   : > { %v5219_v6 = vadd.f32 1e-05, %v5203_v11  ;;  %v5247_v55 = vmul.f32 %v8566_v0, %v12100_v44  ;;  %v5288_v59 = vadd.f32 %v12191_v2, %v5268_v29 }
 0xeb6   : > { %v5182_v54 = vpop.xlane.xlu0 %5181 }
 0xeb7   : > { %8573 = vrsqrt.f32 %v5219_v6  ;;  %v5206_v56 = vmul.f32 0.03125, %v5182_v54  ;;  %v5267_v34 = vmul.f32 %v12182_v39, %v5247_v55 }
 0xeb8   : > { %v8568_v5 = vpop.eup %8567 }
 0xeb9   : > { %v5222_v37 = vadd.f32 1e-05, %v5206_v56  ;;  %v5287_v16 = vadd.f32 %v12191_v2, %v5267_v34  ;;  %v5250_v8 = vmul.f32 %v8568_v5, %v12106_v47 }
 0xeba   : > { %v5179_v30 = vpop.xlane.xlu0 %5178 }
 0xebb   : > { %8575 = vrsqrt.f32 %v5222_v37  ;;  %v5205_v7 = vmul.f32 0.03125, %v5179_v30  ;;  %8000 = vmatprep.mubr.msk.f32.mxu0 %vm2698_vm3, %v5287_v16  ;;  %v5270_v27 = vmul.f32 %v12182_v39, %v5250_v8 }
 0xebc   : > { %v8570_v44 = vpop.eup %8569  ;;  %8001 = vmatmul.mubr.msk.f32.gmra.mxu0 %vm2698_vm3, %v5288_v59 }
 0xebd   : > { %v5221_v1 = vadd.f32 1e-05, %v5205_v7  ;;  %v5249_v38 = vmul.f32 %v8570_v44, %v12112_v19  ;;  %v5290_v32 = vadd.f32 %v12191_v2, %v5270_v27 }
 0xebe   : > { %v5188_v45 = vpop.xlane.xlu1 %5187 }
 0xebf   : > { %8577 = vrsqrt.f32 %v5221_v1  ;;  %v5208_v49 = vmul.f32 0.03125, %v5188_v45  ;;  %v5269_v24 = vmul.f32 %v12182_v39, %v5249_v38 }
 0xec0   : > { %v8572_v53 = vpop.eup %8571 }
 0xec1   : > { %v5224_v18 = vadd.f32 1e-05, %v5208_v49  ;;  %v5289_v47 = vadd.f32 %v12191_v2, %v5269_v24  ;;  %v5252_v21 = vmul.f32 %v8572_v53, %v12118_v35 }
 0xec2   : > { %v5185_v9 = vpop.xlane.xlu0 %5184 }
 0xec3   : > { %8579 = vrsqrt.f32 %v5224_v18  ;;  %v5207_v60 = vmul.f32 0.03125, %v5185_v9  ;;  %8003 = vmatprep.mubr.msk.f32.mxu0 %vm2698_vm3, %v5289_v47  ;;  %v5272_v50 = vmul.f32 %v12182_v39, %v5252_v21  ;;  %v5699_v18 = vld [vmem:[%s12935_s1 + $0x1f8] sm:$0xff]  ;;  %v5694_v9 = vld [vmem:[%s12935_s1 + $0x1d0] sm:$0xff]  ;;  %v5303_v21 = vld [vmem:[%s12935_s1 + $0x1c0] sm:$0xff] }
 0xec4   : > { %v8574_v19 = vpop.eup %8573  ;;  %8004 = vmatmul.mubr.msk.f32.gmra.mxu0 %vm2698_vm3, %v5290_v32  ;;  %v5695_v47 = vld [vmem:[%s12935_s1 + $0x1d8] sm:$0xff]  ;;  %v5693_v32 = vld [vmem:[%s12935_s1 + $0x1c8] sm:$0xff] }
 0xec5   : > { %v5223_v14 = vadd.f32 1e-05, %v5207_v60  ;;  %v5251_v62 = vmul.f32 %v8574_v19, %v12124_v48  ;;  %v5292_v6 = vadd.f32 %v12191_v2, %v5272_v50  ;;  %v5307_v60 = vrot.slane %v5303_v21, %v13121_v61 }
 0xec6   : > { %v5191_v58 = vpop.xlane.xlu0 %5190 }
 0xec7   : > { %8581 = vrsqrt.f32 %v5223_v14  ;;  %v5209_v33 = vmul.f32 0.03125, %v5191_v58  ;;  %v5271_v43 = vmul.f32 %v12182_v39, %v5251_v62 }
 0xec8   : > { %v8576_v15 = vpop.eup %8575 }
 0xec9   : > { %v5225_v11 = vadd.f32 1e-05, %v5209_v33  ;;  %v5291_v35 = vadd.f32 %v12191_v2, %v5271_v43  ;;  %v5254_v55 = vmul.f32 %v8576_v15, %v12136_v4 }
 0xeca   : > { %v5194_v0 = vpop.xlane.xlu1 %5193 }
 0xecb   : > { %8583 = vrsqrt.f32 %v5225_v11  ;;  %v5210_v54 = vmul.f32 0.03125, %v5194_v0  ;;  %8006 = vmatprep.mubr.msk.f32.mxu0 %vm2698_vm3, %v5291_v35  ;;  %v5274_v34 = vmul.f32 %v12182_v39, %v5254_v55 }
 0xecc   : > { %v8578_v48 = vpop.eup %8577  ;;  %8007 = vmatmul.mubr.msk.f32.gmra.mxu0 %vm2698_vm3, %v5292_v6 }
 0xecd   : > { %v5226_v29 = vadd.f32 1e-05, %v5210_v54  ;;  %v5253_v56 = vmul.f32 %v8578_v48, %v12148_v23  ;;  %v5294_v4 = vadd.f32 %v12191_v2, %v5274_v34 }
 0xecf   : > { %8585 = vrsqrt.f32 %v5226_v29  ;;  %v5273_v5 = vmul.f32 %v12182_v39, %v5253_v56 }
 0xed0   : > { %v8580_v37 = vpop.eup %8579 }
 0xed1   : > { %v5293_v16 = vadd.f32 %v12191_v2, %v5273_v5  ;;  %v5256_v30 = vmul.f32 %v8580_v37, %v12154_v51 }
 0xed3   : > { %8009 = vmatprep.mubr.msk.f32.mxu0 %vm2698_vm3, %v5293_v16  ;;  %v5276_v23 = vmul.f32 %v12182_v39, %v5256_v30 }
 0xed4   : > { %v8582_v59 = vpop.eup %8581  ;;  %8010 = vmatmul.mubr.msk.f32.gmra.mxu0 %vm2698_vm3, %v5294_v4 }
 0xed5   : > { %v5255_v8 = vmul.f32 %v8582_v59, %v12160_v17  ;;  %v5296_v45 = vadd.f32 %v12191_v2, %v5276_v23 }
 0xed7   : > { %v5275_v7 = vmul.f32 %v12182_v39, %v5255_v8 }
 0xed8   : > { %v8584_v44 = vpop.eup %8583 }
 0xed9   : > { %v5295_v1 = vadd.f32 %v12191_v2, %v5275_v7  ;;  %v5257_v38 = vmul.f32 %v8584_v44, %v12166_v46  ;;  %v5700_v46 = vld [vmem:[%s12935_s1 + $0x200] sm:$0xff] }
 0xeda   : > { %8018 = vmatprep.subr.mxu1 %v5700_v46 }
 0xedb   : > { %8012 = vmatprep.mubr.msk.f32.mxu0 %vm2698_vm3, %v5295_v1  ;;  %v5277_v51 = vmul.f32 %v12182_v39, %v5257_v38  ;;  %8019 = vmatpush3.msra.mxu1 %v5700_v46 }
 0xedc   : > { %v8586_v27 = vpop.eup %8585  ;;  %8013 = vmatmul.mubr.msk.f32.gmra.mxu0 %vm2698_vm3, %v5296_v45  ;;  %8020 = vmatprep.subr.mxu1 %v5699_v18 }
 0xedd   : > { %v5297_v17 = vadd.f32 %v12191_v2, %v5277_v51  ;;  %v5258_v49 = vmul.f32 %v8586_v27, %v12172_v22  ;;  %v5698_v22 = vld [vmem:[%s12935_s1 + $0x1f0] sm:$0xff]  ;;  %8021 = vmatpush3.msra.mxu1 %v5699_v18 }
 0xede   : > { %8022 = vmatprep.subr.mxu1 %v5698_v22 }
 0xedf   : > { %8015 = vmatprep.mubr.msk.f32.mxu0 %vm2698_vm3, %v5297_v17  ;;  %v5278_v24 = vmul.f32 %v12182_v39, %v5258_v49  ;;  %v5697_v39 = vld [vmem:[%s12935_s1 + $0x1e8] sm:$0xff]  ;;  %8023 = vmatpush3.msra.mxu1 %v5698_v22 }
 0xee0   : > { %8024 = vmatprep.subr.mxu1 %v5697_v39 }
 0xee1   : > { %v5298_v53 = vadd.f32 %v12191_v2, %v5278_v24  ;;  %v5696_v2 = vld [vmem:[%s12935_s1 + $0x1e0] sm:$0xff]  ;;  %8025 = vmatpush3.msra.mxu1 %v5697_v39 }
 0xee2   : > { %8026 = vmatprep.subr.mxu1 %v5696_v2 }
 0xee3   : > { %8016 = vmatmul.mubr.msk.f32.gmra.mxu0 %vm2698_vm3, %v5298_v53  ;;  %8027 = vmatpush3.msra.mxu1 %v5696_v2 }
 0xee4   : > { %8028 = vmatprep.subr.mxu1 %v5695_v47 }
 0xee5   : > { %8029 = vmatpush3.msra.mxu1 %v5695_v47 }
 0xee6   : > { %8030 = vmatprep.subr.mxu1 %v5694_v9 }
 0xee7   : > { %8031 = vmatpush3.msra.mxu1 %v5694_v9 }
 0xee8   : > { %8032 = vmatprep.subr.mxu1 %v5693_v32 }
 0xee9   : > { %8033 = vmatpush3.msra.mxu1 %v5693_v32 }
 0xf6c   : > { %v7996_v19 = vpop.f32.mrf.mxu0 }
 0xf6d   : > { %v12282_v14 = vadd.f32 %v7996_v19, %v5307_v60 }
 0xf6e   : > { %v5422_v62 = vpop.f32.mrf.mxu0 }
 0xf6f   : > { %v12284_v58 = vadd.f32 %v5422_v62, %v5307_v60  ;;  %5631 = vrot.lane.b32.xlu1 %v12282_v14, %s8868_s4  ;;  %v7233_v17 = vmul.f32 -1.442695, %v12282_v14 }
 0xf71   : > { %5629 = vrot.lane.b32.xlu0 %v12284_v58, %s8868_s4  ;;  %v7232_v27 = vmul.f32 -1.442695, %v12284_v58 }
 0xf73   : > { %8587 = vpow2.f32 %v7232_v27 }
 0xf74   : > { %v7999_v50 = vpop.f32.mrf.mxu0  ;;  %8589 = vpow2.f32 %v7233_v17 }
 0xf75   : > { %v12290_v33 = vadd.f32 %v7999_v50, %v5307_v60 }
 0xf76   : > { %v5432_v43 = vpop.f32.mrf.mxu0 }
 0xf77   : > { %v12292_v15 = vadd.f32 %v5432_v43, %v5307_v60  ;;  %5635 = vrot.lane.b32.xlu0 %v12290_v33, %s8868_s4  ;;  %v7235_v24 = vmul.f32 -1.442695, %v12290_v33 }
 0xf79   : > { %5633 = vrot.lane.b32.xlu1 %v12292_v15, %s8868_s4  ;;  %v7234_v49 = vmul.f32 -1.442695, %v12292_v15 }
 0xf7b   : > { %8591 = vpow2.f32 %v7234_v49 }
 0xf7c   : > { %v8002_v11 = vpop.f32.mrf.mxu0  ;;  %8593 = vpow2.f32 %v7235_v24 }
 0xf7d   : > { %v12298_v35 = vadd.f32 %v8002_v11, %v5307_v60 }
 0xf7e   : > { %v5442_v0 = vpop.f32.mrf.mxu0 }
 0xf7f   : > { %v12300_v6 = vadd.f32 %v5442_v0, %v5307_v60  ;;  %5639 = vrot.lane.b32.xlu0 %v12298_v35, %s8868_s4  ;;  %v7237_v18 = vmul.f32 -1.442695, %v12298_v35 }
 0xf80   : > { %v8588_v46 = vpop.eup %8587 }
 0xf81   : > { %5637 = vrot.lane.b32.xlu1 %v12300_v6, %s8868_s4  ;;  %v7236_v53 = vmul.f32 -1.442695, %v12300_v6  ;;  %v8590_v22 = vpop.eup %8589  ;;  %v5549_v39 = vadd.f32 1.0, %v8588_v46 }
 0xf82   : > { %v5550_v2 = vadd.f32 1.0, %v8590_v22 }
 0xf83   : > { %8595 = vpow2.f32 %v7236_v53 }
 0xf84   : > { %v8005_v55 = vpop.f32.mrf.mxu0  ;;  %8597 = vpow2.f32 %v7237_v18 }
 0xf85   : > { %v12306_v54 = vadd.f32 %v8005_v55, %v5307_v60  ;;  %8599 = vrcp.f32 %v5549_v39 }
 0xf86   : > { %v5452_v48 = vpop.f32.mrf.mxu0  ;;  %8601 = vrcp.f32 %v5550_v2 }
 0xf87   : > { %v12308_v29 = vadd.f32 %v5452_v48, %v5307_v60  ;;  %5643 = vrot.lane.b32.xlu0 %v12306_v54, %s8868_s4  ;;  %v7239_v32 = vmul.f32 -1.442695, %v12306_v54 }
 0xf88   : > { %v8592_v9 = vpop.eup %8591 }
 0xf89   : > { %5641 = vrot.lane.b32.xlu1 %v12308_v29, %s8868_s4  ;;  %v7238_v47 = vmul.f32 -1.442695, %v12308_v29  ;;  %v8594_v21 = vpop.eup %8593 }
 0xf8a   : > { %v5552_v19 = vadd.f32 1.0, %v8594_v21 }
 0xf8b   : > { %8603 = vpow2.f32 %v7238_v47 }
 0xf8c   : > { %v8008_v56 = vpop.f32.mrf.mxu0  ;;  %8605 = vpow2.f32 %v7239_v32 }
 0xf8d   : > { %v12314_v34 = vadd.f32 %v8008_v56, %v5307_v60 }
 0xf8e   : > { %v5462_v5 = vpop.f32.mrf.mxu0 }
 0xf8f   : > { %v12316_v37 = vadd.f32 %v5462_v5, %v5307_v60  ;;  %5647 = vrot.lane.b32.xlu0 %v12314_v34, %s8868_s4  ;;  %v7241_v43 = vmul.f32 -1.442695, %v12314_v34 }
 0xf90   : > { %v8596_v50 = vpop.eup %8595 }
 0xf91   : > { %5645 = vrot.lane.b32.xlu1 %v12316_v37, %s8868_s4  ;;  %v7240_v62 = vmul.f32 -1.442695, %v12316_v37  ;;  %v8598_v11 = vpop.eup %8597  ;;  %v5553_v0 = vadd.f32 1.0, %v8596_v50 }
 0xf92   : > { %v8600_v55 = vpop.eup %8599  ;;  %v5554_v48 = vadd.f32 1.0, %v8598_v11 }
 0xf93   : > { %v8602_v56 = vpop.eup %8601 }
 0xf94   : > { %v8011_v16 = vpop.f32.mrf.mxu0 }
 0xf95   : > { %v12322_v4 = vadd.f32 %v8011_v16, %v5307_v60 }
 0xf96   : > { %v5472_v30 = vpop.f32.mrf.mxu0 }
 0xf97   : > { %v12324_v59 = vadd.f32 %v5472_v30, %v5307_v60  ;;  %5651 = vrot.lane.b32.xlu0 %v12322_v4, %s8868_s4  ;;  %v5597_v30 = vmul.f32 %v8600_v55, %v12284_v58 }
 0xf99   : > { %5649 = vrot.lane.b32.xlu1 %v12324_v59, %s8868_s4  ;;  %v7242_v5 = vmul.f32 -1.442695, %v12324_v59 }
 0xf9c   : > { %v8014_v8 = vpop.f32.mrf.mxu0 }
 0xf9d   : > { %v12330_v23 = vadd.f32 %v8014_v8, %v5307_v60  ;;  %v8604_v8 = vpop.eup %8603 }
 0xf9e   : > { %v5482_v7 = vpop.f32.mrf.mxu0  ;;  %v8606_v27 = vpop.eup %8605  ;;  %v5555_v24 = vadd.f32 1.0, %v8604_v8 }
 0xf9f   : > { %v12332_v44 = vadd.f32 %v5482_v7, %v5307_v60  ;;  %5655 = vrot.lane.b32.xlu0 %v12330_v23, %s8868_s4  ;;  %v7243_v7 = vmul.f32 -1.442695, %v12322_v4  ;;  %v5556_v46 = vadd.f32 1.0, %v8606_v27  ;;  %v7245_v2 = vmul.f32 -1.442695, %v12330_v23 }
 0xfa1   : > { %5653 = vrot.lane.b32.xlu1 %v12332_v44, %s8868_s4  ;;  %v7244_v18 = vmul.f32 -1.442695, %v12332_v44 }
 0xfa3   : > { %v8017_v1 = vpop.f32.mrf.mxu0 }
 0xfa4   : > { %v12338_v38 = vadd.f32 %v8017_v1, %v5307_v60  ;;  %v5598_v1 = vmul.f32 %v8602_v56, %v12282_v14 }
 0xfa5   : > { %v5492_v45 = vpop.f32.mrf.mxu0 }
 0xfa6   : > { %v12340_v51 = vadd.f32 %v5492_v45, %v5307_v60  ;;  %5659 = vrot.lane.b32.xlu0 %v12338_v38, %s8868_s4  ;;  %v5551_v60 = vadd.f32 1.0, %v8592_v9  ;;  %v7247_v11 = vmul.f32 -1.442695, %v12338_v38 }
 0xfa8   : > { %5657 = vrot.lane.b32.xlu1 %v12340_v51, %s8868_s4  ;;  %8607 = vrcp.f32 %v5551_v60 }
 0xfa9   : > { %8609 = vrcp.f32 %v5552_v19 }
 0xfaa   : > { %8611 = vpow2.f32 %v7240_v62 }
 0xfab   : > { %8613 = vpow2.f32 %v7241_v43  ;;  %v7246_v43 = vmul.f32 -1.442695, %v12340_v51 }
 0xfac   : > { %8615 = vrcp.f32 %v5553_v0 }
 0xfad   : > { %8617 = vrcp.f32 %v5554_v48 }
 0xfae   : > { %8619 = vpow2.f32 %v7242_v5 }
 0xfaf   : > { %8621 = vpow2.f32 %v7243_v7 }
 0xfb0   : > { %8623 = vrcp.f32 %v5555_v24 }
 0xfb1   : > { %8625 = vrcp.f32 %v5556_v46 }
 0xfb2   : > { %8627 = vpow2.f32 %v7244_v18 }
 0xfb3   : > { %8629 = vpow2.f32 %v7245_v2 }
 0xfb5   : > { %v8608_v53 = vpop.eup %8607 }
 0xfb6   : > { %v8610_v58 = vpop.eup %8609  ;;  %v5599_v14 = vmul.f32 %v8608_v53, %v12292_v15 }
 0xfb7   : > { %v8612_v39 = vpop.eup %8611  ;;  %v5600_v47 = vmul.f32 %v8610_v58, %v12290_v33 }
 0xfb8   : > { %v8614_v32 = vpop.eup %8613  ;;  %v5557_v19 = vadd.f32 1.0, %v8612_v39 }
 0xfb9   : > { %v8616_v62 = vpop.eup %8615  ;;  %v5558_v50 = vadd.f32 1.0, %v8614_v32 }
 0xfba   : > { %v8618_v15 = vpop.eup %8617  ;;  %8631 = vrcp.f32 %v5557_v19  ;;  %v5601_v0 = vmul.f32 %v8616_v62, %v12300_v6 }
 0xfbb   : > { %v8620_v55 = vpop.eup %8619  ;;  %8633 = vrcp.f32 %v5558_v50  ;;  %v5602_v48 = vmul.f32 %v8618_v15, %v12298_v35 }
 0xfbc   : > { %v8622_v5 = vpop.eup %8621  ;;  %8635 = vpow2.f32 %v7246_v43  ;;  %v5559_v8 = vadd.f32 1.0, %v8620_v55 }
 0xfbd   : > { %8637 = vpow2.f32 %v7247_v11  ;;  %v8624_v7 = vpop.eup %8623 }
 0xfbe   : > { %8639 = vrcp.f32 %v5559_v8  ;;  %v5603_v27 = vmul.f32 %v8624_v7, %v12308_v29 }
 0xfe1   : > { %v5632_v16 = vpop.permute.xlu1 %5631 }
 0xfe2   : > { %v5678_v49 = vmul.f32 %v5632_v16, %v5598_v1  ;;  %v5560_v1 = vadd.f32 1.0, %v8622_v5 }
 0xfe3   : > { %v5630_v45 = vpop.permute.xlu0 %5629 }
 0xfe4   : > { %v5677_v17 = vmul.f32 %v5630_v45, %v5597_v30  ;;  %v8626_v45 = vpop.eup %8625  ;;  %8641 = vrcp.f32 %v5560_v1 }
 0xfe5   : > { %v5604_v35 = vmul.f32 %v8626_v45, %v12306_v54 }
 0xfe6   : > { %8034 = vmatprep.mubr.msk.f32.mxu1 %vm2495_vm15, %v5677_v17  ;;  %v8628_v17 = vpop.eup %8627 }
 0xfe7   : > { %8035 = vmatmul.mubr.msk.f32.vlgmr.msra.gmra.mxu1 %vm2495_vm15, %v5678_v49  ;;  %v8630_v24 = vpop.eup %8629  ;;  %v5561_v58 = vadd.f32 1.0, %v8628_v17 }
 0xfe8   : > { %v8632_v18 = vpop.eup %8631 }
 0xfe9   : > { %v5636_v22 = vpop.permute.xlu0 %5635  ;;  %8643 = vrcp.f32 %v5561_v58  ;;  %v5605_v29 = vmul.f32 %v8632_v18, %v12316_v37 }
 0xfea   : > { %v5680_v60 = vmul.f32 %v5636_v22, %v5600_v47  ;;  %v5562_v22 = vadd.f32 1.0, %v8630_v24 }
 0xfeb   : > { %v5634_v9 = vpop.permute.xlu1 %5633 }
 0xfec   : > { %v5679_v21 = vmul.f32 %v5634_v9, %v5599_v14  ;;  %v8634_v14 = vpop.eup %8633  ;;  %8645 = vrcp.f32 %v5562_v22 }
 0xfed   : > { %v8636_v39 = vpop.eup %8635  ;;  %v5606_v54 = vmul.f32 %v8634_v14, %v12314_v34 }
 0xfee   : > { %8037 = vmatprep.mubr.msk.f32.mxu1 %vm2495_vm15, %v5679_v21  ;;  %v8638_v47 = vpop.eup %8637  ;;  %v5563_v21 = vadd.f32 1.0, %v8636_v39 }
 0xfef   : > { %8038 = vmatmul.mubr.msk.f32.gmra.mxu1 %vm2495_vm15, %v5680_v60  ;;  %v5564_v19 = vadd.f32 1.0, %v8638_v47  ;;  %v8640_v62 = vpop.eup %8639 }
 0xff0   : > { %8647 = vrcp.f32 %v5563_v21  ;;  %v5607_v37 = vmul.f32 %v8640_v62, %v12324_v59 }
 0xff1   : > { %v5640_v33 = vpop.permute.xlu0 %5639  ;;  %v8642_v50 = vpop.eup %8641  ;;  %8649 = vrcp.f32 %v5564_v19 }
 0xff2   : > { %v5682_v30 = vmul.f32 %v5640_v33, %v5602_v48  ;;  %v5608_v43 = vmul.f32 %v8642_v50, %v12322_v4 }
 0xff3   : > { %v5638_v56 = vpop.permute.xlu1 %5637 }
 0xff4   : > { %v5681_v16 = vmul.f32 %v5638_v56, %v5601_v0 }
 0xff6   : > { %8040 = vmatprep.mubr.msk.f32.mxu1 %vm2495_vm15, %v5681_v16  ;;  %v8644_v0 = vpop.eup %8643 }
 0xff7   : > { %8041 = vmatmul.mubr.msk.f32.gmra.mxu1 %vm2495_vm15, %v5682_v30  ;;  %v5609_v56 = vmul.f32 %v8644_v0, %v12332_v44 }
 0xff9   : > { %v5644_v6 = vpop.permute.xlu0 %5643  ;;  %v8646_v55 = vpop.eup %8645 }
 0xffa   : > { %v5684_v46 = vmul.f32 %v5644_v6, %v5604_v35  ;;  %v5610_v5 = vmul.f32 %v8646_v55, %v12330_v23  ;;  %v5910_v23 = vld [vmem:[%s12935_s1 + $0x208] sm:$0xff] }
 0xffb   : > { %v5642_v49 = vpop.permute.xlu1 %5641  ;;  %v12398_v44 = vrot.slane %v5910_v23, %v13121_v61 }
 0xffc   : > { %v5683_v53 = vmul.f32 %v5642_v49, %v5603_v27 }
 0xffd   : > { %v8648_v59 = vpop.eup %8647 }
 0xffe   : > { %8043 = vmatprep.mubr.msk.f32.mxu1 %vm2495_vm15, %v5683_v53  ;;  %v8650_v4 = vpop.eup %8649  ;;  %v5611_v1 = vmul.f32 %v8648_v59, %v12340_v51 }
 0xfff   : > { %8044 = vmatmul.mubr.msk.f32.gmra.mxu1 %vm2495_vm15, %v5684_v46  ;;  %v5612_v45 = vmul.f32 %v8650_v4, %v12338_v38 }
0x1001   : > { %v5648_v2 = vpop.permute.xlu0 %5647 }
0x1002   : > { %v5686_v60 = vmul.f32 %v5648_v2, %v5606_v54 }
0x1003   : > { %v5646_v9 = vpop.permute.xlu1 %5645 }
0x1004   : > { %v5685_v32 = vmul.f32 %v5646_v9, %v5605_v29 }
0x1006   : > { %8046 = vmatprep.mubr.msk.f32.mxu1 %vm2495_vm15, %v5685_v32 }
0x1007   : > { %8047 = vmatmul.mubr.msk.f32.gmra.mxu1 %vm2495_vm15, %v5686_v60 }
0x1009   : > { %v5652_v15 = vpop.permute.xlu0 %5651 }
0x100a   : > { %v5688_v33 = vmul.f32 %v5652_v15, %v5608_v43 }
0x100b   : > { %v5650_v11 = vpop.permute.xlu1 %5649 }
0x100c   : > { %v5687_v34 = vmul.f32 %v5650_v11, %v5607_v37 }
0x100e   : > { %8049 = vmatprep.mubr.msk.f32.mxu1 %vm2495_vm15, %v5687_v34 }
0x100f   : > { %8050 = vmatmul.mubr.msk.f32.gmra.mxu1 %vm2495_vm15, %v5688_v33 }
0x1011   : > { %v5656_v48 = vpop.permute.xlu0 %5655 }
0x1012   : > { %v5690_v8 = vmul.f32 %v5656_v48, %v5610_v5 }
0x1013   : > { %v5654_v16 = vpop.permute.xlu1 %5653 }
0x1014   : > { %v5689_v30 = vmul.f32 %v5654_v16, %v5609_v56 }
0x1016   : > { %8052 = vmatprep.mubr.msk.f32.mxu1 %vm2495_vm15, %v5689_v30 }
0x1017   : > { %8053 = vmatmul.mubr.msk.f32.gmra.mxu1 %vm2495_vm15, %v5690_v8 }
0x1018   : > { %v5660_v7 = vpop.permute.xlu0 %5659 }
0x1019   : > { %v5692_v17 = vmul.f32 %v5660_v7, %v5612_v45 }
0x101a   : > { %v5658_v6 = vpop.permute.xlu1 %5657 }
0x101b   : > { %v5691_v27 = vmul.f32 %v5658_v6, %v5611_v1 }
0x101d   : > { %8055 = vmatprep.mubr.msk.f32.mxu1 %vm2495_vm15, %v5691_v27 }
0x101e   : > { %8056 = vmatmul.mubr.msk.f32.gmra.mxu1 %vm2495_vm15, %v5692_v17 }
0x10a7   : > { %v8036_v35 = vpop.f32.mrf.mxu1 }
0x10a8   : > { %v5895_v49 = vadd.f32 %v8036_v35, %v11976_v12 }
0x10a9   : > { %v5815_v51 = vpop.f32.mrf.mxu1 }
0x10aa   : > { %v12402_v38 = vadd.f32 %v12398_v44, %v5895_v49  ;;  %v5894_v24 = vadd.f32 %v5815_v51, %v11980_v57 }
0x10ac   : > { %v12406_v53 = vadd.f32 %v12398_v44, %v5894_v24  ;;  %v5936_v46 = vsel %vm2698_vm3, %v12402_v38, 0.0 }
0x10ad   : > { %5937 = vadd.xlane.f32.xlu0 %v5936_v46 }
0x10ae   : > { %v5933_v58 = vsel %vm2698_vm3, %v12406_v53, 0.0 }
0x10af   : > { %5934 = vadd.xlane.f32.xlu1 %v5933_v58  ;;  %v8039_v18 = vpop.f32.mrf.mxu1 }
0x10b0   : > { %v5897_v12 = vadd.f32 %v8039_v18, %v11986_v31 }
0x10b1   : > { %v5825_v22 = vpop.f32.mrf.mxu1 }
0x10b2   : > { %v12414_v14 = vadd.f32 %v12398_v44, %v5897_v12  ;;  %v5896_v57 = vadd.f32 %v5825_v22, %v11992_v63 }
0x10b4   : > { %v12418_v39 = vadd.f32 %v12398_v44, %v5896_v57  ;;  %v5942_v2 = vsel %vm2698_vm3, %v12414_v14, 0.0 }
0x10b5   : > { %5943 = vadd.xlane.f32.xlu1 %v5942_v2 }
0x10b6   : > { %v5939_v29 = vsel %vm2698_vm3, %v12418_v39, 0.0 }
0x10b7   : > { %5940 = vadd.xlane.f32.xlu0 %v5939_v29  ;;  %v8042_v47 = vpop.f32.mrf.mxu1 }
0x10b8   : > { %v5899_v31 = vadd.f32 %v8042_v47, %v11998_v40 }
0x10b9   : > { %v5835_v54 = vpop.f32.mrf.mxu1 }
0x10ba   : > { %v12426_v9 = vadd.f32 %v12398_v44, %v5899_v31  ;;  %v5898_v63 = vadd.f32 %v5835_v54, %v12004_v10 }
0x10bc   : > { %v12430_v32 = vadd.f32 %v12398_v44, %v5898_v63  ;;  %v5948_v21 = vsel %vm2698_vm3, %v12426_v9, 0.0 }
0x10bd   : > { %5949 = vadd.xlane.f32.xlu1 %v5948_v21 }
0x10be   : > { %v5945_v60 = vsel %vm2698_vm3, %v12430_v32, 0.0 }
0x10bf   : > { %5946 = vadd.xlane.f32.xlu0 %v5945_v60  ;;  %v8045_v19 = vpop.f32.mrf.mxu1 }
0x10c0   : > { %v5901_v40 = vadd.f32 %v8045_v19, %v12010_v3 }
0x10c1   : > { %v5845_v62 = vpop.f32.mrf.mxu1 }
0x10c2   : > { %v12438_v50 = vadd.f32 %v12398_v44, %v5901_v40  ;;  %v5900_v10 = vadd.f32 %v5845_v62, %v12016_v13 }
0x10c4   : > { %v12442_v15 = vadd.f32 %v12398_v44, %v5900_v10  ;;  %v5954_v37 = vsel %vm2698_vm3, %v12438_v50, 0.0 }
0x10c5   : > { %5955 = vadd.xlane.f32.xlu1 %v5954_v37 }
0x10c6   : > { %v5951_v43 = vsel %vm2698_vm3, %v12442_v15, 0.0 }
0x10c7   : > { %5952 = vadd.xlane.f32.xlu0 %v5951_v43  ;;  %v8048_v11 = vpop.f32.mrf.mxu1 }
0x10c8   : > { %v5903_v3 = vadd.f32 %v8048_v11, %v12022_v52 }
0x10c9   : > { %v5855_v34 = vpop.f32.mrf.mxu1 }
0x10ca   : > { %v12450_v33 = vadd.f32 %v12398_v44, %v5903_v3  ;;  %v5902_v13 = vadd.f32 %v5855_v34, %v12028_v20 }
0x10cc   : > { %v12454_v0 = vadd.f32 %v12398_v44, %v5902_v13  ;;  %v5960_v55 = vsel %vm2698_vm3, %v12450_v33, 0.0 }
0x10cd   : > { %5961 = vadd.xlane.f32.xlu1 %v5960_v55 }
0x10ce   : > { %v5957_v48 = vsel %vm2698_vm3, %v12454_v0, 0.0 }
0x10cf   : > { %5958 = vadd.xlane.f32.xlu0 %v5957_v48  ;;  %v8051_v56 = vpop.f32.mrf.mxu1 }
0x10d0   : > { %v5905_v52 = vadd.f32 %v8051_v56, %v12034_v25 }
0x10d1   : > { %v5865_v5 = vpop.f32.mrf.mxu1 }
0x10d2   : > { %v12462_v16 = vadd.f32 %v12398_v44, %v5905_v52  ;;  %v5904_v20 = vadd.f32 %v5865_v5, %v12040_v42 }
0x10d4   : > { %v12466_v30 = vadd.f32 %v12398_v44, %v5904_v20  ;;  %v5966_v8 = vsel %vm2698_vm3, %v12462_v16, 0.0 }
0x10d5   : > { %5967 = vadd.xlane.f32.xlu1 %v5966_v8 }
0x10d6   : > { %v5963_v59 = vsel %vm2698_vm3, %v12466_v30, 0.0 }
0x10d7   : > { %5964 = vadd.xlane.f32.xlu0 %v5963_v59  ;;  %v8054_v4 = vpop.f32.mrf.mxu1 }
0x10d8   : > { %v5907_v25 = vadd.f32 %v8054_v4, %v12046_v41 }
0x10d9   : > { %v5875_v7 = vpop.f32.mrf.mxu1 }
0x10da   : > { %v12474_v1 = vadd.f32 %v12398_v44, %v5907_v25  ;;  %v5906_v42 = vadd.f32 %v5875_v7, %v12052_v28 }
0x10dc   : > { %v12478_v45 = vadd.f32 %v12398_v44, %v5906_v42  ;;  %v5972_v6 = vsel %vm2698_vm3, %v12474_v1, 0.0 }
0x10dd   : > { %5973 = vadd.xlane.f32.xlu1 %v5972_v6 }
0x10de   : > { %v8057_v27 = vpop.f32.mrf.mxu1  ;;  %v5969_v17 = vsel %vm2698_vm3, %v12478_v45, 0.0 }
0x10df   : > { %v5909_v23 = vadd.f32 %v8057_v27, %v12064_v26  ;;  %5970 = vadd.xlane.f32.xlu0 %v5969_v17 }
0x10e0   : > { %v5885_v41 = vpop.f32.mrf.mxu1 }
0x10e1   : > { %v12486_v35 = vadd.f32 %v12398_v44, %v5909_v23  ;;  %v5908_v28 = vadd.f32 %v5885_v41, %v12059_v36  ;;  %v6184_v23 = vld [vmem:[%s12935_s1 + $0x238] sm:$0xff] }
0x10e2   : > { %8058 = vmatprep.subr.mxu0 %v6184_v23 }
0x10e3   : > { %v12490_v49 = vadd.f32 %v12398_v44, %v5908_v28  ;;  %v5978_v51 = vsel %vm2698_vm3, %v12486_v35, 0.0  ;;  %8059 = vmatpush3.msra.mxu0 %v6184_v23 }
0x10e4   : > { %5979 = vadd.xlane.f32.xlu1 %v5978_v51  ;;  %v6182_v51 = vld [vmem:[%s12935_s1 + $0x228] sm:$0xff] }
0x10e5   : > { %v5975_v24 = vsel %vm2698_vm3, %v12490_v49, 0.0 }
0x10e6   : > { %5976 = vadd.xlane.f32.xlu0 %v5975_v24 }
0x1136   : > { %v5938_v46 = vpop.xlane.xlu0 %5937 }
0x1137   : > { %v5982_v26 = vmul.f32 0.03125, %v5938_v46 }
0x1138   : > { %v5935_v58 = vpop.xlane.xlu1 %5934 }
0x1139   : > { %v12497_v18 = vsub.f32 %v12402_v38, %v5982_v26  ;;  %v5981_v12 = vmul.f32 0.03125, %v5935_v58 }
0x113b   : > { %v12500_v36 = vsub.f32 %v12406_v53, %v5981_v12  ;;  %v6014_v44 = vmul.f32 %v12497_v18, %v12497_v18  ;;  %v6181_v12 = vld [vmem:[%s12935_s1 + $0x220] sm:$0xff] }
0x113d   : > { %v6032_v22 = vsel %vm2698_vm3, %v6014_v44, 0.0  ;;  %v6013_v57 = vmul.f32 %v12500_v36, %v12500_v36 }
0x113e   : > { %v5944_v2 = vpop.xlane.xlu1 %5943  ;;  %6033 = vadd.xlane.f32.xlu1 %v6032_v22 }
0x113f   : > { %v5984_v29 = vmul.f32 0.03125, %v5944_v2  ;;  %v6029_v47 = vsel %vm2698_vm3, %v6013_v57, 0.0 }
0x1140   : > { %6030 = vadd.xlane.f32.xlu0 %v6029_v47  ;;  %v5941_v38 = vpop.xlane.xlu0 %5940 }
0x1141   : > { %v12509_v31 = vsub.f32 %v12414_v14, %v5984_v29  ;;  %v5983_v53 = vmul.f32 0.03125, %v5941_v38 }
0x1143   : > { %v12512_v54 = vsub.f32 %v12418_v39, %v5983_v53  ;;  %v6016_v63 = vmul.f32 %v12509_v31, %v12509_v31 }
0x1145   : > { %v6038_v21 = vsel %vm2698_vm3, %v6016_v63, 0.0  ;;  %v6015_v60 = vmul.f32 %v12512_v54, %v12512_v54 }
0x1146   : > { %v5950_v19 = vpop.xlane.xlu1 %5949  ;;  %6039 = vadd.xlane.f32.xlu1 %v6038_v21 }
0x1147   : > { %v5986_v40 = vmul.f32 0.03125, %v5950_v19  ;;  %v6035_v62 = vsel %vm2698_vm3, %v6015_v60, 0.0 }
0x1148   : > { %6036 = vadd.xlane.f32.xlu0 %v6035_v62  ;;  %v5947_v14 = vpop.xlane.xlu0 %5946 }
0x1149   : > { %v12521_v10 = vsub.f32 %v12426_v9, %v5986_v40  ;;  %v5985_v39 = vmul.f32 0.03125, %v5947_v14 }
0x114b   : > { %v12524_v37 = vsub.f32 %v12430_v32, %v5985_v39  ;;  %v6018_v43 = vmul.f32 %v12521_v10, %v12521_v10 }
0x114d   : > { %v6044_v11 = vsel %vm2698_vm3, %v6018_v43, 0.0  ;;  %v6017_v3 = vmul.f32 %v12524_v37, %v12524_v37 }
0x114e   : > { %v5956_v34 = vpop.xlane.xlu1 %5955  ;;  %6045 = vadd.xlane.f32.xlu1 %v6044_v11 }
0x114f   : > { %v5988_v13 = vmul.f32 0.03125, %v5956_v34  ;;  %v6041_v55 = vsel %vm2698_vm3, %v6017_v3, 0.0 }
0x1150   : > { %6042 = vadd.xlane.f32.xlu0 %v6041_v55  ;;  %v5953_v9 = vpop.xlane.xlu0 %5952 }
0x1151   : > { %v12533_v48 = vsub.f32 %v12438_v50, %v5988_v13  ;;  %v5987_v32 = vmul.f32 0.03125, %v5953_v9 }
0x1153   : > { %v12536_v56 = vsub.f32 %v12442_v15, %v5987_v32  ;;  %v6020_v52 = vmul.f32 %v12533_v48, %v12533_v48 }
0x1155   : > { %v6050_v5 = vsel %vm2698_vm3, %v6020_v52, 0.0  ;;  %v6019_v20 = vmul.f32 %v12536_v56, %v12536_v56 }
0x1156   : > { %v5962_v8 = vpop.xlane.xlu1 %5961  ;;  %6051 = vadd.xlane.f32.xlu1 %v6050_v5 }
0x1157   : > { %v5990_v59 = vmul.f32 0.03125, %v5962_v8  ;;  %v6047_v4 = vsel %vm2698_vm3, %v6019_v20, 0.0 }
0x1158   : > { %6048 = vadd.xlane.f32.xlu0 %v6047_v4  ;;  %v5959_v50 = vpop.xlane.xlu0 %5958  ;;  %v5931_v4 = vld [vmem:[%s12935_s1 + $0x210] sm:$0xff] }
0x1159   : > { %v12545_v25 = vsub.f32 %v12450_v33, %v5990_v59  ;;  %v5989_v15 = vmul.f32 0.03125, %v5959_v50  ;;  %v6183_v33 = vld [vmem:[%s12935_s1 + $0x230] sm:$0xff] }
0x115a   : > { %8060 = vmatprep.subr.mxu0 %v6183_v33 }
0x115b   : > { %v12548_v7 = vsub.f32 %v12454_v0, %v5989_v15  ;;  %v6022_v42 = vmul.f32 %v12545_v25, %v12545_v25  ;;  %8061 = vmatpush3.msra.mxu0 %v6183_v33 }
0x115c   : > { %8062 = vmatprep.subr.mxu0 %v6182_v51 }
0x115d   : > { %v6056_v6 = vsel %vm2698_vm3, %v6022_v42, 0.0  ;;  %v6021_v27 = vmul.f32 %v12548_v7, %v12548_v7  ;;  %8063 = vmatpush3.msra.mxu0 %v6182_v51 }
0x115e   : > { %v5968_v17 = vpop.xlane.xlu1 %5967  ;;  %6057 = vadd.xlane.f32.xlu1 %v6056_v6  ;;  %8064 = vmatprep.subr.mxu0 %v6181_v12  ;;  %v12608_v6 = vrot.slane %v5931_v4, %v13121_v61 }
0x115f   : > { %v5992_v0 = vmul.f32 0.03125, %v5968_v17  ;;  %v6053_v41 = vsel %vm2698_vm3, %v6021_v27, 0.0  ;;  %8065 = vmatpush3.msra.mxu0 %v6181_v12 }
0x1160   : > { %6054 = vadd.xlane.f32.xlu0 %v6053_v41  ;;  %v5965_v28 = vpop.xlane.xlu0 %5964 }
0x1161   : > { %v12566_v24 = vsub.f32 %v12462_v16, %v5992_v0  ;;  %v5991_v46 = vmul.f32 0.03125, %v5965_v28  ;;  %v5932_v0 = vld [vmem:[%s12935_s1 + $0x218] sm:$0xff] }
0x1163   : > { %v12569_v26 = vsub.f32 %v12466_v30, %v5991_v46  ;;  %v6024_v58 = vmul.f32 %v12566_v24, %v12566_v24 }
0x1165   : > { %v6062_v44 = vsel %vm2698_vm3, %v6024_v58, 0.0  ;;  %v6023_v16 = vmul.f32 %v12569_v26, %v12569_v26  ;;  %v12617_v58 = vrot.slane %v5932_v0, %v13121_v61 }
0x1166   : > { %v5974_v22 = vpop.xlane.xlu1 %5973  ;;  %6063 = vadd.xlane.f32.xlu1 %v6062_v44 }
0x1167   : > { %v5994_v30 = vmul.f32 0.03125, %v5974_v22  ;;  %v6059_v57 = vsel %vm2698_vm3, %v6023_v16, 0.0 }
0x1168   : > { %6060 = vadd.xlane.f32.xlu0 %v6059_v57  ;;  %v5971_v2 = vpop.xlane.xlu0 %5970 }
0x1169   : > { %v12581_v29 = vsub.f32 %v12474_v1, %v5994_v30  ;;  %v5993_v47 = vmul.f32 0.03125, %v5971_v2 }
0x116b   : > { %v12584_v38 = vsub.f32 %v12478_v45, %v5993_v47  ;;  %v6026_v53 = vmul.f32 %v12581_v29, %v12581_v29 }
0x116d   : > { %v5980_v63 = vpop.xlane.xlu1 %5979  ;;  %v6068_v21 = vsel %vm2698_vm3, %v6026_v53, 0.0  ;;  %v6025_v60 = vmul.f32 %v12584_v38, %v12584_v38 }
0x116e   : > { %v5996_v19 = vmul.f32 0.03125, %v5980_v63  ;;  %6069 = vadd.xlane.f32.xlu1 %v6068_v21 }
0x116f   : > { %v5977_v40 = vpop.xlane.xlu0 %5976  ;;  %v6065_v62 = vsel %vm2698_vm3, %v6025_v60, 0.0 }
0x1170   : > { %v12593_v1 = vsub.f32 %v12486_v35, %v5996_v19  ;;  %v5995_v14 = vmul.f32 0.03125, %v5977_v40  ;;  %6066 = vadd.xlane.f32.xlu0 %v6065_v62 }
0x1172   : > { %v12596_v45 = vsub.f32 %v12490_v49, %v5995_v14  ;;  %v6028_v39 = vmul.f32 %v12593_v1, %v12593_v1 }
0x1174   : > { %v6074_v43 = vsel %vm2698_vm3, %v6028_v39, 0.0  ;;  %v6027_v11 = vmul.f32 %v12596_v45, %v12596_v45 }
0x1175   : > { %6075 = vadd.xlane.f32.xlu1 %v6074_v43 }
0x1176   : > { %v6071_v3 = vsel %vm2698_vm3, %v6027_v11, 0.0 }
0x1177   : > { %6072 = vadd.xlane.f32.xlu0 %v6071_v3 }
0x11c7   : > { %v6034_v34 = vpop.xlane.xlu1 %6033 }
0x11c8   : > { %v6078_v35 = vmul.f32 0.03125, %v6034_v34 }
0x11c9   : > { %v6031_v13 = vpop.xlane.xlu0 %6030 }
0x11ca   : > { %v6094_v55 = vadd.f32 1e-05, %v6078_v35  ;;  %v6077_v9 = vmul.f32 0.03125, %v6031_v13 }
0x11cc   : > { %8651 = vrsqrt.f32 %v6094_v55  ;;  %v6093_v49 = vadd.f32 1e-05, %v6077_v9 }
0x11ce   : > { %8653 = vrsqrt.f32 %v6093_v49 }
0x11cf   : > { %v6040_v32 = vpop.xlane.xlu1 %6039 }
0x11d0   : > { %v6080_v52 = vmul.f32 0.03125, %v6040_v32 }
0x11d1   : > { %v6037_v5 = vpop.xlane.xlu0 %6036 }
0x11d2   : > { %v6096_v20 = vadd.f32 1e-05, %v6080_v52  ;;  %v6079_v8 = vmul.f32 0.03125, %v6037_v5 }
0x11d4   : > { %8655 = vrsqrt.f32 %v6096_v20  ;;  %v6095_v59 = vadd.f32 1e-05, %v6079_v8 }
0x11d6   : > { %8657 = vrsqrt.f32 %v6095_v59 }
0x11d7   : > { %v6046_v50 = vpop.xlane.xlu1 %6045 }
0x11d8   : > { %v6082_v15 = vmul.f32 0.03125, %v6046_v50 }
0x11d9   : > { %v8652_v42 = vpop.eup %8651  ;;  %v6043_v27 = vpop.xlane.xlu0 %6042 }
0x11da   : > { %v6126_v17 = vmul.f32 %v8652_v42, %v12497_v18  ;;  %v6098_v23 = vadd.f32 1e-05, %v6082_v15  ;;  %v6081_v33 = vmul.f32 0.03125, %v6043_v27 }
0x11db   : > { %v8654_v41 = vpop.eup %8653 }
0x11dc   : > { %8659 = vrsqrt.f32 %v6098_v23  ;;  %v6097_v28 = vadd.f32 1e-05, %v6081_v33  ;;  %v6125_v51 = vmul.f32 %v8654_v41, %v12500_v36  ;;  %v6146_v46 = vmul.f32 %v12608_v6, %v6126_v17 }
0x11de   : > { %8661 = vrsqrt.f32 %v6097_v28  ;;  %v6145_v12 = vmul.f32 %v12608_v6, %v6125_v51  ;;  %v6166_v57 = vadd.f32 %v12617_v58, %v6146_v46 }
0x11df   : > { %v6052_v18 = vpop.xlane.xlu1 %6051 }
0x11e0   : > { %v6084_v44 = vmul.f32 0.03125, %v6052_v18  ;;  %v6165_v16 = vadd.f32 %v12617_v58, %v6145_v12 }
0x11e1   : > { %v8656_v22 = vpop.eup %8655  ;;  %v6049_v30 = vpop.xlane.xlu0 %6048 }
0x11e2   : > { %v6100_v2 = vadd.f32 1e-05, %v6084_v44  ;;  %v6083_v47 = vmul.f32 0.03125, %v6049_v30  ;;  %8066 = vmatprep.mubr.msk.f32.mxu0 %vm2698_vm3, %v6165_v16  ;;  %v6128_v36 = vmul.f32 %v8656_v22, %v12509_v31 }
0x11e3   : > { %v8658_v53 = vpop.eup %8657  ;;  %8067 = vmatmul.mubr.msk.f32.vlgmr.msra.gmra.mxu0 %vm2698_vm3, %v6166_v57 }
0x11e4   : > { %8663 = vrsqrt.f32 %v6100_v2  ;;  %v6099_v63 = vadd.f32 1e-05, %v6083_v47  ;;  %v6127_v21 = vmul.f32 %v8658_v53, %v12512_v54  ;;  %v6148_v60 = vmul.f32 %v12608_v6, %v6128_v36 }
0x11e6   : > { %8665 = vrsqrt.f32 %v6099_v63  ;;  %v6147_v19 = vmul.f32 %v12608_v6, %v6127_v21  ;;  %v6168_v31 = vadd.f32 %v12617_v58, %v6148_v60 }
0x11e7   : > { %v6058_v40 = vpop.xlane.xlu1 %6057 }
0x11e8   : > { %v6086_v62 = vmul.f32 0.03125, %v6058_v40  ;;  %v6167_v14 = vadd.f32 %v12617_v58, %v6147_v19 }
0x11e9   : > { %v8660_v39 = vpop.eup %8659  ;;  %v6055_v43 = vpop.xlane.xlu0 %6054 }
0x11ea   : > { %v6102_v11 = vadd.f32 1e-05, %v6086_v62  ;;  %v6085_v3 = vmul.f32 0.03125, %v6055_v43  ;;  %8069 = vmatprep.mubr.msk.f32.mxu0 %vm2698_vm3, %v6167_v14  ;;  %v6130_v34 = vmul.f32 %v8660_v39, %v12521_v10 }
0x11eb   : > { %v8662_v54 = vpop.eup %8661  ;;  %8070 = vmatmul.mubr.msk.f32.gmra.mxu0 %vm2698_vm3, %v6168_v31 }
0x11ec   : > { %8667 = vrsqrt.f32 %v6102_v11  ;;  %v6101_v35 = vadd.f32 1e-05, %v6085_v3  ;;  %v6129_v13 = vmul.f32 %v8662_v54, %v12524_v37  ;;  %v6150_v55 = vmul.f32 %v12608_v6, %v6130_v34 }
0x11ee   : > { %8669 = vrsqrt.f32 %v6101_v35  ;;  %v6149_v9 = vmul.f32 %v12608_v6, %v6129_v13  ;;  %v6170_v10 = vadd.f32 %v12617_v58, %v6150_v55 }
0x11ef   : > { %v6064_v49 = vpop.xlane.xlu1 %6063 }
0x11f0   : > { %v6088_v32 = vmul.f32 0.03125, %v6064_v49  ;;  %v6169_v52 = vadd.f32 %v12617_v58, %v6149_v9 }
0x11f1   : > { %v8664_v5 = vpop.eup %8663  ;;  %v6061_v20 = vpop.xlane.xlu0 %6060 }
0x11f2   : > { %v6104_v8 = vadd.f32 1e-05, %v6088_v32  ;;  %v6087_v59 = vmul.f32 0.03125, %v6061_v20  ;;  %8072 = vmatprep.mubr.msk.f32.mxu0 %vm2698_vm3, %v6169_v52  ;;  %v6132_v4 = vmul.f32 %v8664_v5, %v12533_v48  ;;  %v6578_v32 = vld [vmem:[%s12935_s1 + $0x260] sm:$0xff]  ;;  %v6577_v52 = vld [vmem:[%s12935_s1 + $0x258] sm:$0xff]  ;;  %v6576_v5 = vld [vmem:[%s12935_s1 + $0x250] sm:$0xff] }
0x11f3   : > { %v8666_v37 = vpop.eup %8665  ;;  %8073 = vmatmul.mubr.msk.f32.gmra.mxu0 %vm2698_vm3, %v6170_v10  ;;  %v6575_v20 = vld [vmem:[%s12935_s1 + $0x248] sm:$0xff]  ;;  %v6185_v10 = vld [vmem:[%s12935_s1 + $0x240] sm:$0xff] }
0x11f4   : > { %8671 = vrsqrt.f32 %v6104_v8  ;;  %v6103_v50 = vadd.f32 1e-05, %v6087_v59  ;;  %v6131_v15 = vmul.f32 %v8666_v37, %v12536_v56  ;;  %v6152_v42 = vmul.f32 %v12608_v6, %v6132_v4 }
0x11f5   : > { %v6189_v8 = vrot.slane %v6185_v10, %v13121_v61 }
0x11f6   : > { %8673 = vrsqrt.f32 %v6103_v50  ;;  %v6151_v27 = vmul.f32 %v12608_v6, %v6131_v15  ;;  %v6172_v48 = vadd.f32 %v12617_v58, %v6152_v42 }
0x11f7   : > { %v6070_v17 = vpop.xlane.xlu1 %6069 }
0x11f8   : > { %v6090_v23 = vmul.f32 0.03125, %v6070_v17  ;;  %v6171_v33 = vadd.f32 %v12617_v58, %v6151_v27 }
0x11f9   : > { %v8668_v0 = vpop.eup %8667  ;;  %v6067_v41 = vpop.xlane.xlu0 %6066 }
0x11fa   : > { %v6106_v28 = vadd.f32 1e-05, %v6090_v23  ;;  %v6089_v51 = vmul.f32 0.03125, %v6067_v41  ;;  %8075 = vmatprep.mubr.msk.f32.mxu0 %vm2698_vm3, %v6171_v33  ;;  %v6134_v46 = vmul.f32 %v8668_v0, %v12545_v25 }
0x11fb   : > { %v8670_v56 = vpop.eup %8669  ;;  %8076 = vmatmul.mubr.msk.f32.gmra.mxu0 %vm2698_vm3, %v6172_v48 }
0x11fc   : > { %8675 = vrsqrt.f32 %v6106_v28  ;;  %v6105_v12 = vadd.f32 1e-05, %v6089_v51  ;;  %v6133_v18 = vmul.f32 %v8670_v56, %v12548_v7  ;;  %v6154_v44 = vmul.f32 %v12608_v6, %v6134_v46 }
0x11fe   : > { %8677 = vrsqrt.f32 %v6105_v12  ;;  %v6076_v16 = vpop.xlane.xlu1 %6075  ;;  %v6153_v22 = vmul.f32 %v12608_v6, %v6133_v18  ;;  %v6174_v53 = vadd.f32 %v12617_v58, %v6154_v44 }
0x11ff   : > { %v6092_v30 = vmul.f32 0.03125, %v6076_v16 }
0x1200   : > { %v6073_v57 = vpop.xlane.xlu0 %6072  ;;  %v6173_v2 = vadd.f32 %v12617_v58, %v6153_v22 }
0x1201   : > { %v8672_v47 = vpop.eup %8671  ;;  %v6108_v36 = vadd.f32 1e-05, %v6092_v30  ;;  %v6091_v25 = vmul.f32 0.03125, %v6073_v57 }
0x1202   : > { %8078 = vmatprep.mubr.msk.f32.mxu0 %vm2698_vm3, %v6173_v2  ;;  %v6136_v63 = vmul.f32 %v8672_v47, %v12566_v24 }
0x1203   : > { %v8674_v7 = vpop.eup %8673  ;;  %8679 = vrsqrt.f32 %v6108_v36  ;;  %v6107_v21 = vadd.f32 1e-05, %v6091_v25  ;;  %8079 = vmatmul.mubr.msk.f32.gmra.mxu0 %vm2698_vm3, %v6174_v53 }
0x1204   : > { %v6135_v60 = vmul.f32 %v8674_v7, %v12569_v26  ;;  %v6156_v19 = vmul.f32 %v12608_v6, %v6136_v63 }
0x1205   : > { %8681 = vrsqrt.f32 %v6107_v21 }
0x1206   : > { %v6155_v40 = vmul.f32 %v12608_v6, %v6135_v60  ;;  %v6176_v39 = vadd.f32 %v12617_v58, %v6156_v19 }
0x1208   : > { %v6175_v62 = vadd.f32 %v12617_v58, %v6155_v40 }
0x1209   : > { %v8676_v14 = vpop.eup %8675 }
0x120a   : > { %8081 = vmatprep.mubr.msk.f32.mxu0 %vm2698_vm3, %v6175_v62  ;;  %v6138_v24 = vmul.f32 %v8676_v14, %v12581_v29 }
0x120b   : > { %v8678_v43 = vpop.eup %8677  ;;  %8082 = vmatmul.mubr.msk.f32.gmra.mxu0 %vm2698_vm3, %v6176_v39 }
0x120c   : > { %v6137_v31 = vmul.f32 %v8678_v43, %v12584_v38  ;;  %v6158_v26 = vmul.f32 %v12608_v6, %v6138_v24 }
0x120e   : > { %v6157_v11 = vmul.f32 %v12608_v6, %v6137_v31  ;;  %v6178_v54 = vadd.f32 %v12617_v58, %v6158_v26 }
0x1210   : > { %v8680_v3 = vpop.eup %8679  ;;  %v6177_v34 = vadd.f32 %v12617_v58, %v6157_v11 }
0x1211   : > { %v6140_v35 = vmul.f32 %v8680_v3, %v12593_v1  ;;  %v6582_v1 = vld [vmem:[%s12935_s1 + $0x280] sm:$0xff] }
0x1212   : > { %v8682_v13 = vpop.eup %8681  ;;  %8084 = vmatprep.mubr.msk.f32.mxu0 %vm2698_vm3, %v6177_v34  ;;  %8090 = vmatprep.subr.mxu1 %v6582_v1 }
0x1213   : > { %8085 = vmatmul.mubr.msk.f32.gmra.mxu0 %vm2698_vm3, %v6178_v54  ;;  %v6139_v29 = vmul.f32 %v8682_v13, %v12596_v45  ;;  %v6160_v38 = vmul.f32 %v12608_v6, %v6140_v35  ;;  %v6581_v45 = vld [vmem:[%s12935_s1 + $0x278] sm:$0xff]  ;;  %8091 = vmatpush3.msra.mxu1 %v6582_v1 }
0x1214   : > { %8092 = vmatprep.subr.mxu1 %v6581_v45 }
0x1215   : > { %v6159_v55 = vmul.f32 %v12608_v6, %v6139_v29  ;;  %v6180_v49 = vadd.f32 %v12617_v58, %v6160_v38  ;;  %v6580_v6 = vld [vmem:[%s12935_s1 + $0x270] sm:$0xff]  ;;  %8093 = vmatpush3.msra.mxu1 %v6581_v45 }
0x1216   : > { %8094 = vmatprep.subr.mxu1 %v6580_v6 }
0x1217   : > { %v6179_v9 = vadd.f32 %v12617_v58, %v6159_v55  ;;  %v6579_v58 = vld [vmem:[%s12935_s1 + $0x268] sm:$0xff]  ;;  %8095 = vmatpush3.msra.mxu1 %v6580_v6 }
0x1218   : > { %8096 = vmatprep.subr.mxu1 %v6579_v58 }
0x1219   : > { %8087 = vmatprep.mubr.msk.f32.mxu0 %vm2698_vm3, %v6179_v9  ;;  %8097 = vmatpush3.msra.mxu1 %v6579_v58 }
0x121a   : > { %8088 = vmatmul.mubr.msk.f32.gmra.mxu0 %vm2698_vm3, %v6180_v49  ;;  %8098 = vmatprep.subr.mxu1 %v6578_v32 }
0x121b   : > { %8099 = vmatpush3.msra.mxu1 %v6578_v32 }
0x121c   : > { %8100 = vmatprep.subr.mxu1 %v6577_v52 }
0x121d   : > { %8101 = vmatpush3.msra.mxu1 %v6577_v52 }
0x121e   : > { %8102 = vmatprep.subr.mxu1 %v6576_v5 }
0x121f   : > { %8103 = vmatpush3.msra.mxu1 %v6576_v5 }
0x1220   : > { %8104 = vmatprep.subr.mxu1 %v6575_v20 }
0x1221   : > { %8105 = vmatpush3.msra.mxu1 %v6575_v20 }
0x12a3   : > { %v8068_v59 = vpop.f32.mrf.mxu0 }
0x12a4   : > { %v12708_v4 = vadd.f32 %v8068_v59, %v6189_v8 }
0x12a5   : > { %v6304_v37 = vpop.f32.mrf.mxu0 }
0x12a6   : > { %v12710_v50 = vadd.f32 %v6304_v37, %v6189_v8  ;;  %6513 = vrot.lane.b32.xlu1 %v12708_v4, %s8868_s4  ;;  %v7281_v19 = vmul.f32 -1.442695, %v12708_v4 }
0x12a8   : > { %6511 = vrot.lane.b32.xlu0 %v12710_v50, %s8868_s4  ;;  %v7280_v60 = vmul.f32 -1.442695, %v12710_v50 }
0x12aa   : > { %8683 = vpow2.f32 %v7280_v60 }
0x12ab   : > { %v8071_v15 = vpop.f32.mrf.mxu0  ;;  %8685 = vpow2.f32 %v7281_v19 }
0x12ac   : > { %v12716_v42 = vadd.f32 %v8071_v15, %v6189_v8 }
0x12ad   : > { %v6314_v27 = vpop.f32.mrf.mxu0 }
0x12ae   : > { %v12718_v17 = vadd.f32 %v6314_v27, %v6189_v8  ;;  %6517 = vrot.lane.b32.xlu0 %v12716_v42, %s8868_s4  ;;  %v7283_v62 = vmul.f32 -1.442695, %v12716_v42 }
0x12b0   : > { %6515 = vrot.lane.b32.xlu1 %v12718_v17, %s8868_s4  ;;  %v7282_v40 = vmul.f32 -1.442695, %v12718_v17 }
0x12b2   : > { %8687 = vpow2.f32 %v7282_v40 }
0x12b3   : > { %v8074_v23 = vpop.f32.mrf.mxu0  ;;  %8689 = vpow2.f32 %v7283_v62 }
0x12b4   : > { %v12724_v33 = vadd.f32 %v8074_v23, %v6189_v8 }
0x12b5   : > { %v6324_v0 = vpop.f32.mrf.mxu0 }
0x12b6   : > { %v12726_v41 = vadd.f32 %v6324_v0, %v6189_v8  ;;  %6521 = vrot.lane.b32.xlu0 %v12724_v33, %s8868_s4  ;;  %v7285_v24 = vmul.f32 -1.442695, %v12724_v33 }
0x12b7   : > { %v8684_v39 = vpop.eup %8683 }
0x12b8   : > { %6519 = vrot.lane.b32.xlu1 %v12726_v41, %s8868_s4  ;;  %v7284_v14 = vmul.f32 -1.442695, %v12726_v41  ;;  %v8686_v43 = vpop.eup %8685  ;;  %v6431_v31 = vadd.f32 1.0, %v8684_v39 }
0x12b9   : > { %v6432_v26 = vadd.f32 1.0, %v8686_v43 }
0x12ba   : > { %8691 = vpow2.f32 %v7284_v14 }
0x12bb   : > { %v8077_v48 = vpop.f32.mrf.mxu0  ;;  %8693 = vpow2.f32 %v7285_v24 }
0x12bc   : > { %v12732_v28 = vadd.f32 %v8077_v48, %v6189_v8  ;;  %8695 = vrcp.f32 %v6431_v31 }
0x12bd   : > { %v6334_v51 = vpop.f32.mrf.mxu0  ;;  %8697 = vrcp.f32 %v6432_v26 }
0x12be   : > { %v12734_v46 = vadd.f32 %v6334_v51, %v6189_v8  ;;  %6525 = vrot.lane.b32.xlu0 %v12732_v28, %s8868_s4  ;;  %v7287_v34 = vmul.f32 -1.442695, %v12732_v28 }
0x12bf   : > { %v8688_v3 = vpop.eup %8687 }
0x12c0   : > { %6523 = vrot.lane.b32.xlu1 %v12734_v46, %s8868_s4  ;;  %v7286_v11 = vmul.f32 -1.442695, %v12734_v46  ;;  %v8690_v54 = vpop.eup %8689  ;;  %v6433_v35 = vadd.f32 1.0, %v8688_v3 }
0x12c1   : > { %v6434_v13 = vadd.f32 1.0, %v8690_v54 }
0x12c2   : > { %8699 = vpow2.f32 %v7286_v11 }
0x12c3   : > { %v8080_v56 = vpop.f32.mrf.mxu0  ;;  %8701 = vpow2.f32 %v7287_v34 }
0x12c4   : > { %v12740_v12 = vadd.f32 %v8080_v56, %v6189_v8  ;;  %8703 = vrcp.f32 %v6433_v35 }
0x12c5   : > { %v6344_v18 = vpop.f32.mrf.mxu0  ;;  %8705 = vrcp.f32 %v6434_v13 }
0x12c6   : > { %v12742_v44 = vadd.f32 %v6344_v18, %v6189_v8  ;;  %6529 = vrot.lane.b32.xlu0 %v12740_v12, %s8868_s4  ;;  %v7289_v55 = vmul.f32 -1.442695, %v12740_v12 }
0x12c7   : > { %v8692_v38 = vpop.eup %8691 }
0x12c8   : > { %6527 = vrot.lane.b32.xlu1 %v12742_v44, %s8868_s4  ;;  %v7288_v29 = vmul.f32 -1.442695, %v12742_v44  ;;  %v8694_v9 = vpop.eup %8693  ;;  %v6435_v49 = vadd.f32 1.0, %v8692_v38 }
0x12c9   : > { %v8696_v1 = vpop.eup %8695  ;;  %v6436_v45 = vadd.f32 1.0, %v8694_v9 }
0x12ca   : > { %8707 = vpow2.f32 %v7288_v29  ;;  %v8698_v6 = vpop.eup %8697  ;;  %v6479_v52 = vmul.f32 %v8696_v1, %v12710_v50 }
0x12cb   : > { %v8083_v16 = vpop.f32.mrf.mxu0  ;;  %8709 = vpow2.f32 %v7289_v55  ;;  %v6480_v10 = vmul.f32 %v8698_v6, %v12708_v4 }
0x12cc   : > { %v12748_v22 = vadd.f32 %v8083_v16, %v6189_v8  ;;  %8711 = vrcp.f32 %v6435_v49 }
0x12cd   : > { %v6354_v30 = vpop.f32.mrf.mxu0  ;;  %8713 = vrcp.f32 %v6436_v45 }
0x12ce   : > { %v12750_v57 = vadd.f32 %v6354_v30, %v6189_v8  ;;  %6533 = vrot.lane.b32.xlu0 %v12748_v22, %s8868_s4  ;;  %v7291_v20 = vmul.f32 -1.442695, %v12748_v22 }
0x12cf   : > { %v8700_v5 = vpop.eup %8699 }
0x12d0   : > { %6531 = vrot.lane.b32.xlu1 %v12750_v57, %s8868_s4  ;;  %v7290_v58 = vmul.f32 -1.442695, %v12750_v57  ;;  %v8702_v59 = vpop.eup %8701  ;;  %v6437_v27 = vadd.f32 1.0, %v8700_v5 }
0x12d1   : > { %v8704_v23 = vpop.eup %8703  ;;  %v6438_v0 = vadd.f32 1.0, %v8702_v59 }
0x12d2   : > { %8715 = vpow2.f32 %v7290_v58  ;;  %v8706_v50 = vpop.eup %8705  ;;  %v6481_v4 = vmul.f32 %v8704_v23, %v12718_v17 }
0x12d3   : > { %v8086_v2 = vpop.f32.mrf.mxu0  ;;  %8717 = vpow2.f32 %v7291_v20  ;;  %v6482_v16 = vmul.f32 %v8706_v50, %v12716_v42 }
0x12d4   : > { %v12756_v47 = vadd.f32 %v8086_v2, %v6189_v8  ;;  %8719 = vrcp.f32 %v6437_v27 }
0x12d5   : > { %v6364_v36 = vpop.f32.mrf.mxu0  ;;  %8721 = vrcp.f32 %v6438_v0 }
0x12d6   : > { %v12758_v25 = vadd.f32 %v6364_v36, %v6189_v8  ;;  %6537 = vrot.lane.b32.xlu0 %v12756_v47, %s8868_s4  ;;  %v7293_v18 = vmul.f32 -1.442695, %v12756_v47 }
0x12d7   : > { %v8708_v56 = vpop.eup %8707 }
0x12d8   : > { %6535 = vrot.lane.b32.xlu1 %v12758_v25, %s8868_s4  ;;  %v7292_v48 = vmul.f32 -1.442695, %v12758_v25  ;;  %v8710_v2 = vpop.eup %8709 }
0x12d9   : > { %v8712_v60 = vpop.eup %8711  ;;  %v6440_v19 = vadd.f32 1.0, %v8710_v2 }
0x12da   : > { %v8089_v53 = vpop.f32.mrf.mxu0  ;;  %8723 = vpow2.f32 %v7292_v48  ;;  %v8714_v17 = vpop.eup %8713  ;;  %v6483_v14 = vmul.f32 %v8712_v60, %v12726_v41 }
0x12db   : > { %v12764_v63 = vadd.f32 %v8089_v53, %v6189_v8  ;;  %8725 = vpow2.f32 %v7293_v18  ;;  %v6484_v24 = vmul.f32 %v8714_v17, %v12724_v33 }
0x12dc   : > { %v6374_v7 = vpop.f32.mrf.mxu0 }
0x12dd   : > { %v12766_v21 = vadd.f32 %v6374_v7, %v6189_v8  ;;  %6541 = vrot.lane.b32.xlu0 %v12764_v63, %s8868_s4  ;;  %v6439_v7 = vadd.f32 1.0, %v8708_v56  ;;  %v7295_v62 = vmul.f32 -1.442695, %v12764_v63 }
0x12df   : > { %6539 = vrot.lane.b32.xlu1 %v12766_v21, %s8868_s4  ;;  %v7294_v40 = vmul.f32 -1.442695, %v12766_v21  ;;  %8727 = vrcp.f32 %v6439_v7  ;;  %v8716_v39 = vpop.eup %8715 }
0x12e0   : > { %8729 = vrcp.f32 %v6440_v19  ;;  %v8718_v31 = vpop.eup %8717  ;;  %v6441_v3 = vadd.f32 1.0, %v8716_v39 }
0x12e1   : > { %8731 = vpow2.f32 %v7294_v40  ;;  %v8720_v34 = vpop.eup %8719  ;;  %v6442_v54 = vadd.f32 1.0, %v8718_v31 }
0x12e2   : > { %8733 = vpow2.f32 %v7295_v62  ;;  %v8722_v35 = vpop.eup %8721  ;;  %v6485_v13 = vmul.f32 %v8720_v34, %v12734_v46 }
0x12e3   : > { %8735 = vrcp.f32 %v6441_v3  ;;  %v6486_v33 = vmul.f32 %v8722_v35, %v12732_v28 }
0x12e4   : > { %8737 = vrcp.f32 %v6442_v54  ;;  %v6583_v54 = vld [vmem:[%s12935_s1 + $0x288] sm:$0xff] }
0x12e7   : > { %v8724_v29 = vpop.eup %8723 }
0x12e8   : > { %v8726_v55 = vpop.eup %8725  ;;  %v6443_v1 = vadd.f32 1.0, %v8724_v29 }
0x12e9   : > { %v6444_v6 = vadd.f32 1.0, %v8726_v55 }
0x12ea   : > { %8739 = vrcp.f32 %v6443_v1 }
0x12eb   : > { %8741 = vrcp.f32 %v6444_v6 }
0x12ec   : > { %v8728_v45 = vpop.eup %8727 }
0x12ed   : > { %v8730_v58 = vpop.eup %8729  ;;  %v6487_v46 = vmul.f32 %v8728_v45, %v12742_v44 }
0x12ee   : > { %v6488_v28 = vmul.f32 %v8730_v58, %v12740_v12 }
0x1318   : > { %v6514_v32 = vpop.permute.xlu1 %6513 }
0x1319   : > { %v6560_v15 = vmul.f32 %v6514_v32, %v6480_v10  ;;  %v8732_v32 = vpop.eup %8731 }
0x131a   : > { %v6512_v8 = vpop.permute.xlu0 %6511  ;;  %v8734_v5 = vpop.eup %8733 }
0x131b   : > { %v6559_v37 = vmul.f32 %v6512_v8, %v6479_v52  ;;  %v6445_v8 = vadd.f32 1.0, %v8732_v32 }
0x131d   : > { %8106 = vmatprep.mubr.msk.f32.mxu1 %vm2495_vm15, %v6559_v37  ;;  %v6446_v37 = vadd.f32 1.0, %v8734_v5  ;;  %8743 = vrcp.f32 %v6445_v8 }
0x131e   : > { %8107 = vmatmul.mubr.msk.f32.vlgmr.msra.gmra.mxu1 %vm2495_vm15, %v6560_v15  ;;  %v8736_v15 = vpop.eup %8735 }
0x131f   : > { %v8738_v27 = vpop.eup %8737  ;;  %8745 = vrcp.f32 %v6446_v37  ;;  %v6489_v44 = vmul.f32 %v8736_v15, %v12750_v57 }
0x1320   : > { %v6518_v51 = vpop.permute.xlu0 %6517  ;;  %v6490_v0 = vmul.f32 %v8738_v27, %v12748_v22 }
0x1321   : > { %v6562_v53 = vmul.f32 %v6518_v51, %v6482_v16  ;;  %v8740_v51 = vpop.eup %8739 }
0x1322   : > { %v6516_v30 = vpop.permute.xlu1 %6515  ;;  %v6491_v18 = vmul.f32 %v8740_v51, %v12758_v25  ;;  %v6798_v25 = vld [vmem:[%s12935_s1 + $0x298] sm:$0xff] }
0x1323   : > { %v6561_v36 = vmul.f32 %v6516_v30, %v6481_v4  ;;  %v8742_v4 = vpop.eup %8741  ;;  %6801 = vperm.xlu1 %8329, %v6798_v25  }
0x1324   : > { %v6492_v16 = vmul.f32 %v8742_v4, %v12756_v47  ;;  %v8871_v47 = vmov 0.0  }
0x1325   : > { %8109 = vmatprep.mubr.msk.f32.mxu1 %vm2495_vm15, %v6561_v36  ;;  %8130 = vmatprep.subr.mxu0 %v8871_v47 }
0x1326   : > { %8110 = vmatmul.mubr.msk.f32.gmra.mxu1 %vm2495_vm15, %v6562_v53  ;;  %8162 = vmatprep.mubr.msk.f32.mxu0 %vm8872_vm0, %v8871_v47 }
0x1328   : > { %v6522_v42 = vpop.permute.xlu0 %6521 }
0x1329   : > { %v6564_v11 = vmul.f32 %v6522_v42, %v6484_v24 }
0x132a   : > { %v6520_v43 = vpop.permute.xlu1 %6519  ;;  %v8744_v57 = vpop.eup %8743 }
0x132b   : > { %v6563_v26 = vmul.f32 %v6520_v43, %v6483_v14  ;;  %v6493_v7 = vmul.f32 %v8744_v57, %v12766_v21 }
0x132c   : > { %v8746_v22 = vpop.eup %8745 }
0x132d   : > { %8112 = vmatprep.mubr.msk.f32.mxu1 %vm2495_vm15, %v6563_v26  ;;  %v6494_v60 = vmul.f32 %v8746_v22, %v12764_v63 }
0x132e   : > { %8113 = vmatmul.mubr.msk.f32.gmra.mxu1 %vm2495_vm15, %v6564_v11 }
0x1330   : > { %v6526_v41 = vpop.permute.xlu0 %6525 }
0x1331   : > { %v6566_v49 = vmul.f32 %v6526_v41, %v6486_v33  ;;  %v12837_v41 = vrot.slane %v6583_v54, %v13121_v61 }
0x1332   : > { %v6524_v38 = vpop.permute.xlu1 %6523 }
0x1333   : > { %v6565_v9 = vmul.f32 %v6524_v38, %v6485_v13 }
0x1335   : > { %8115 = vmatprep.mubr.msk.f32.mxu1 %vm2495_vm15, %v6565_v9 }
0x1336   : > { %8116 = vmatmul.mubr.msk.f32.gmra.mxu1 %vm2495_vm15, %v6566_v49 }
0x1338   : > { %v6530_v52 = vpop.permute.xlu0 %6529 }
0x1339   : > { %v6568_v59 = vmul.f32 %v6530_v52, %v6488_v28 }
0x133a   : > { %v6528_v20 = vpop.permute.xlu1 %6527 }
0x133b   : > { %v6567_v10 = vmul.f32 %v6528_v20, %v6487_v46 }
0x133d   : > { %8118 = vmatprep.mubr.msk.f32.mxu1 %vm2495_vm15, %v6567_v10 }
0x133e   : > { %8119 = vmatmul.mubr.msk.f32.gmra.mxu1 %vm2495_vm15, %v6568_v59 }
0x1340   : > { %v6534_v23 = vpop.permute.xlu0 %6533 }
0x1341   : > { %v6570_v48 = vmul.f32 %v6534_v23, %v6490_v0 }
0x1342   : > { %v6532_v50 = vpop.permute.xlu1 %6531 }
0x1343   : > { %v6569_v12 = vmul.f32 %v6532_v50, %v6489_v44 }
0x1345   : > { %8121 = vmatprep.mubr.msk.f32.mxu1 %vm2495_vm15, %v6569_v12 }
0x1346   : > { %8122 = vmatmul.mubr.msk.f32.gmra.mxu1 %vm2495_vm15, %v6570_v48 }
0x1348   : > { %v6538_v56 = vpop.permute.xlu0 %6537 }
0x1349   : > { %v6572_v36 = vmul.f32 %v6538_v56, %v6492_v16  ;;  %v6797_v16 = vld [vmem:[%s12935_s1 + $0x290] sm:$0xff] }
0x134a   : > { %v6536_v30 = vpop.permute.xlu1 %6535 }
0x134b   : > { %v6571_v2 = vmul.f32 %v6536_v30, %v6491_v18 }
0x134d   : > { %8124 = vmatprep.mubr.msk.f32.mxu1 %vm2495_vm15, %v6571_v2 }
0x134e   : > { %8125 = vmatmul.mubr.msk.f32.gmra.mxu1 %vm2495_vm15, %v6572_v36 }
0x134f   : > { %v6542_v53 = vpop.permute.xlu0 %6541 }
0x1350   : > { %v6574_v40 = vmul.f32 %v6542_v53, %v6494_v60 }
0x1351   : > { %v6540_v19 = vpop.permute.xlu1 %6539 }
0x1352   : > { %v6573_v17 = vmul.f32 %v6540_v19, %v6493_v7 }
0x1354   : > { %8127 = vmatprep.mubr.msk.f32.mxu1 %vm2495_vm15, %v6573_v17 }
0x1355   : > { %8128 = vmatmul.mubr.msk.f32.gmra.mxu1 %vm2495_vm15, %v6574_v40 }
0x139e   : > { %v6802_v30 = vpop.permute.xlu1 %6801 }
0x13de   : > { %v12825_v21 = vpop.f32.mrf.mxu1 }
0x13df   : > { %v6708_v0 = vadd.f32 %v12825_v21, %v12837_v41 }
0x13e0   : > { %v12827_v63 = vpop.f32.mrf.mxu1 }
0x13e1   : > { %v6703_v12 = vadd.f32 %v12827_v63, %v12837_v41 }
0x13e6   : > { %v12829_v62 = vpop.f32.mrf.mxu1 }
0x13e7   : > { %v6718_v15 = vadd.f32 %v12829_v62, %v12837_v41 }
0x13e8   : > { %v12831_v42 = vpop.f32.mrf.mxu1 }
0x13e9   : > { %v6713_v23 = vadd.f32 %v12831_v42, %v12837_v41 }
0x13ee   : > { %v8114_v14 = vpop.f32.mrf.mxu1 }
0x13ef   : > { %v6728_v10 = vadd.f32 %v8114_v14, %v12837_v41 }
0x13f0   : > { %v6722_v39 = vpop.f32.mrf.mxu1 }
0x13f1   : > { %v6723_v59 = vadd.f32 %v6722_v39, %v12837_v41 }
0x13f6   : > { %v8117_v24 = vpop.f32.mrf.mxu1 }
0x13f7   : > { %v6738_v46 = vadd.f32 %v8117_v24, %v12837_v41 }
0x13f8   : > { %v6732_v43 = vpop.f32.mrf.mxu1 }
0x13f9   : > { %v6733_v28 = vadd.f32 %v6732_v43, %v12837_v41 }
0x13fe   : > { %v8120_v31 = vpop.f32.mrf.mxu1 }
0x13ff   : > { %v6748_v6 = vadd.f32 %v8120_v31, %v12837_v41 }
0x1400   : > { %v6742_v26 = vpop.f32.mrf.mxu1 }
0x1401   : > { %v6743_v32 = vadd.f32 %v6742_v26, %v12837_v41 }
0x1406   : > { %v8123_v11 = vpop.f32.mrf.mxu1 }
0x1407   : > { %v6758_v49 = vadd.f32 %v8123_v11, %v12837_v41 }
0x1408   : > { %v6752_v3 = vpop.f32.mrf.mxu1 }
0x1409   : > { %v6753_v61 = vadd.f32 %v6752_v3, %v12837_v41 }
0x140e   : > { %v8126_v34 = vpop.f32.mrf.mxu1 }
0x140f   : > { %v6768_v55 = vadd.f32 %v8126_v34, %v12837_v41 }
0x1410   : > { %v6762_v35 = vpop.f32.mrf.mxu1 }
0x1411   : > { %v6763_v9 = vadd.f32 %v6762_v35, %v12837_v41 }
0x1415   : > { %v8129_v13 = vpop.f32.mrf.mxu1 }
0x1416   : > { %v6778_v29 = vadd.f32 %v8129_v13, %v12837_v41 }
0x1417   : > { %v6772_v33 = vpop.f32.mrf.mxu1 }
0x1418   : > { %8747 = vtanh.f32 %v6778_v29  ;;  %v6773_v38 = vadd.f32 %v6772_v33, %v12837_v41 }
0x141a   : > { %8749 = vtanh.f32 %v6773_v38 }
0x141b   : > { %8751 = vtanh.f32 %v6768_v55 }
0x141c   : > { %8753 = vtanh.f32 %v6763_v9 }
0x141d   : > { %8755 = vtanh.f32 %v6758_v49 }
0x141e   : > { %8757 = vtanh.f32 %v6753_v61 }
0x141f   : > { %8759 = vtanh.f32 %v6748_v6 }
0x1420   : > { %8761 = vtanh.f32 %v6743_v32 }
0x1421   : > { %8763 = vtanh.f32 %v6738_v46 }
0x1422   : > { %8765 = vtanh.f32 %v6733_v28 }
0x1423   : > { %8767 = vtanh.f32 %v6728_v10 }
0x1424   : > { %8769 = vtanh.f32 %v6723_v59 }
0x1425   : > { %v8748_v1 = vpop.eup %8747  ;;  %8771 = vtanh.f32 %v6718_v15 }
0x1426   : > { %8131 = vmatpush3.xpose.msk.msra.mxu0 %vm2698_vm3, %v8748_v1  ;;  %8773 = vtanh.f32 %v6713_v23 }
0x1427   : > { %8132 = vmatprep.subr.mxu0 %v8871_v47  ;;  %v8750_v45 = vpop.eup %8749  ;;  %8775 = vtanh.f32 %v6708_v0 }
0x1428   : > { %v8752_v58 = vpop.eup %8751  ;;  %8777 = vtanh.f32 %v6703_v12 }
0x1429   : > { %v8754_v52 = vpop.eup %8753 }
0x142a   : > { %8133 = vmatpush3.xpose.msk.msra.mxu0 %vm2698_vm3, %v8750_v45  ;;  %v8756_v5 = vpop.eup %8755 }
0x142b   : > { %8134 = vmatprep.subr.mxu0 %v8871_v47  ;;  %v8758_v20 = vpop.eup %8757 }
0x142c   : > { %v8760_v8 = vpop.eup %8759 }
0x142d   : > { %v8762_v37 = vpop.eup %8761 }
0x142e   : > { %8135 = vmatpush3.xpose.msk.msra.mxu0 %vm2698_vm3, %v8752_v58  ;;  %v8764_v27 = vpop.eup %8763 }
0x142f   : > { %8136 = vmatprep.subr.mxu0 %v8871_v47  ;;  %v8766_v44 = vpop.eup %8765 }
0x1430   : > { %v8768_v50 = vpop.eup %8767 }
0x1431   : > { %v8770_v48 = vpop.eup %8769 }
0x1432   : > { %8137 = vmatpush3.xpose.msk.msra.mxu0 %vm2698_vm3, %v8754_v52  ;;  %v8772_v51 = vpop.eup %8771 }
0x1433   : > { %8138 = vmatprep.subr.mxu0 %v8871_v47  ;;  %v8774_v4 = vpop.eup %8773 }
0x1434   : > { %v8776_v56 = vpop.eup %8775 }
0x1435   : > { %v8778_v18 = vpop.eup %8777 }
0x1436   : > { %8139 = vmatpush3.xpose.msk.msra.mxu0 %vm2698_vm3, %v8756_v5 }
0x1437   : > { %8140 = vmatprep.subr.mxu0 %v8871_v47 }
0x143a   : > { %8141 = vmatpush3.xpose.msk.msra.mxu0 %vm2698_vm3, %v8758_v20 }
0x143b   : > { %8142 = vmatprep.subr.mxu0 %v8871_v47 }
0x143e   : > { %8143 = vmatpush3.xpose.msk.msra.mxu0 %vm2698_vm3, %v8760_v8 }
0x143f   : > { %8144 = vmatprep.subr.mxu0 %v8871_v47 }
0x1442   : > { %8145 = vmatpush3.xpose.msk.msra.mxu0 %vm2698_vm3, %v8762_v37 }
0x1443   : > { %8146 = vmatprep.subr.mxu0 %v8871_v47 }
0x1446   : > { %8147 = vmatpush3.xpose.msk.msra.mxu0 %vm2698_vm3, %v8764_v27 }
0x1447   : > { %8148 = vmatprep.subr.mxu0 %v8871_v47 }
0x144a   : > { %8149 = vmatpush3.xpose.msk.msra.mxu0 %vm2698_vm3, %v8766_v44 }
0x144b   : > { %8150 = vmatprep.subr.mxu0 %v8871_v47 }
0x144e   : > { %8151 = vmatpush3.xpose.msk.msra.mxu0 %vm2698_vm3, %v8768_v50 }
0x144f   : > { %8152 = vmatprep.subr.mxu0 %v8871_v47 }
0x1452   : > { %8153 = vmatpush3.xpose.msk.msra.mxu0 %vm2698_vm3, %v8770_v48 }
0x1453   : > { %8154 = vmatprep.subr.mxu0 %v8871_v47 }
0x1456   : > { %8155 = vmatpush3.xpose.msk.msra.mxu0 %vm2698_vm3, %v8772_v51 }
0x1457   : > { %8156 = vmatprep.subr.mxu0 %v8871_v47 }
0x145a   : > { %8157 = vmatpush3.xpose.msk.msra.mxu0 %vm2698_vm3, %v8774_v4 }
0x145b   : > { %8158 = vmatprep.subr.mxu0 %v8871_v47 }
0x145e   : > { %8159 = vmatpush3.xpose.msk.msra.mxu0 %vm2698_vm3, %v8776_v56 }
0x145f   : > { %8160 = vmatprep.subr.mxu0 %v8871_v47 }
0x1462   : > { %8161 = vmatpush3.xpose.msk.msra.mxu0 %vm2698_vm3, %v8778_v18 }
0x1465   : > { %8163 = vmatmul.mubr.msk.f32.vlgmr.msra.gmra.mxu0 %vm2698_vm3, %v6797_v16 }
0x1525   : > { %v6921_v2 = vpop.f32.mrf.mxu0 }
0x1526   : > { %v6922_v36 = vadd.f32 %v6921_v2, %v6802_v30 }
0x1527   : > { %v8164_v57 = vpop.f32.mrf.mxu0 }
0x1528   : > { %6925 = vst [vmem:[%s135_s8] sm:$0x1] %v6922_v36 }
0x1529   : > { %8808 = shalt.err (!%p8805_p3)
}
0x152a   : > { %s8809_s25 = scalar_lea.hbm %s12899_s21, 16  ;;  %s8813_s28 = scalar_lea.hbm %s12936_s2, 32 }
0x152b   : > { %p8810_p4 = scmp.ne.s32.totalorder %s12899_s21, %s8809_s25  ;;  %p8814_p9 = scmp.lt.s32.totalorder %s12899_s21, %s12936_s2 }
0x152c   : > { %p8815_p10 = scmp.lt.s32.totalorder %s8813_s28, %s8809_s25 }
0x152d   : > { %p8811_p7 = pnand %p8810_p4, %p8927_p5 }
0x152e   : > { %p8816_p11 = por %p8815_p10, %p8814_p9 }
0x152f   : > { %p8812_p8 = pneg %p8811_p7 }
0x1531   : > { %p8817_p12 = pnand %p8816_p11, %p8812_p8 }
0x1533   : > { %8820 = shalt.err (!%p8817_p12)
}
0x1534   : > { %8229 = dma.vmem_to_hbm [thread:$0]  (%p8927_p5), %s6940_s14, 16, %s12899_s21, %s6927_s22  }
0x1535 PF: > { %p8235_p13 = scmp.ge.s32.totalorder %s8855_s12, 2  ;;  %s6951_s3 = sand.u32 1, %s8843_s9  }
0x1536   : > { %s6952_s5 = scalar_lea.sflag [#allocation3], %s6951_s3 }
0x1537   : > { %p8232_p0 = pnand %p8235_p13, %p8931_p6 }
0x1539   : > { %p8233_p1 = pneg %p8232_p0 }
0x153b   : > { %8838 = dma.done.wait (%p8233_p1), %s6952_s5, 16  }
0x153c   : > { %8840 = vsyncadd (%p8233_p1), %s6952_s5, 4294967280  ;;  %p12_p2 = scmp.ge.s32.totalorder %s8914_s15, 4   ;;  %s13311_s9 = smov %s8847_s10 }
0x153d   : > { %s13312_s10 = smov %s8851_s11  ;;  %s13313_s11 = smov %s8925_s18 }
0x153e   : > { %s13314_s12 = smov %s8914_s15  ;;  %14 = sbr.rel (!%p12_p2) target bundleno = 3 (0x3), region = 63 }
0x1543   :  { %6956 = vsyncpa [#allocation3], 1 }
0x1544   :  { %6958 = vsyncpa [#allocation3 + $0x1], 1 }

</bundles_post_ra>
